<compile_context>
chip_gen: v7x
topology: tpu7x:2x2x1
jax: 0.10.0
libtpu: 0.0.40
codegen_flags: <defaults>
</compile_context>

<pallas_src>
import functools
import jax
import jax.numpy as jnp
from jax.experimental import pallas as pl
from jax.experimental.pallas import tpu as pltpu


# ----------------------------------------------------------------------------
# Pallas kernels
# ----------------------------------------------------------------------------
def _mm_affine_kernel(a_ref, w_ref, sc_ref, sh_ref, o_ref, *, act):
    """o = act( (a @ w) * scale + shift )  -- bf16 operands, f32 accumulation."""
    acc = jnp.dot(a_ref[...], w_ref[...], preferred_element_type=jnp.float32)
    acc = acc * sc_ref[...] + sh_ref[...]
    if act == "relu":
        acc = jnp.maximum(acc, 0.0)
    elif act == "tanh":
        acc = jnp.tanh(acc)
    o_ref[...] = acc.astype(o_ref.dtype)


def _resblock_kernel(a_ref, x_ref, w1_ref, s1_ref, h1_ref, w2_ref, s2_ref,
                     h2_ref, o_ref):
    """Fused ResBlock + trailing BN:
       h = relu( BN1( relu(x)_patches @ W1 ) )          (conv1 bias folded in BN1)
       o = (x + h @ W2) * trail_scale + trail_shift     (conv2 bias folded)."""
    a = jnp.maximum(a_ref[...], 0)                                   # ReLU (bf16)
    h = jnp.dot(a, w1_ref[...], preferred_element_type=jnp.float32)  # 3x3 conv
    h = jnp.maximum(h * s1_ref[...] + h1_ref[...], 0.0)              # BN1 + ReLU
    y = jnp.dot(h.astype(jnp.bfloat16), w2_ref[...],
                preferred_element_type=jnp.float32)                  # 1x1 conv
    o = (x_ref[...].astype(jnp.float32) + y) * s2_ref[...] + h2_ref[...]
    o_ref[...] = o.astype(o_ref.dtype)


def _fc_reparam_kernel(h_ref, w_ref, b_ref, eps_ref, mu_ref, lv_ref, z_ref, *, D):
    """mu/logvar from one lane-dense matmul (fc11|fc12 concatenated) + reparam."""
    acc = jnp.dot(h_ref[...], w_ref[...],
                  preferred_element_type=jnp.float32) + b_ref[...]
    mu = acc[:, :D]
    lv = acc[:, D:]
    mu_ref[...] = mu
    lv_ref[...] = lv
    z_ref[...] = mu + eps_ref[...] * jnp.exp(0.5 * lv)


# ----------------------------------------------------------------------------
# Tiling helpers
# ----------------------------------------------------------------------------
def _round_up(n, m):
    return ((n + m - 1) // m) * m


_MAX_TM = 512   # all layers at these shapes fit in one grid step


def _tiles(m):
    if m <= _MAX_TM:
        mp = _round_up(max(m, 16), 16)
        return mp, mp
    mp = _round_up(m, _MAX_TM)
    return mp, _MAX_TM


# ----------------------------------------------------------------------------
# Pallas-call wrappers
# ----------------------------------------------------------------------------
def matmul_affine(a, w_p, sc_p, sh_p, *, act, n_real, out_dtype=jnp.bfloat16):
    """a:(M,K) @ w_p:(Kp,Np) with fused per-column affine + activation (MXU)."""
    M, K = a.shape
    Kp, Np = w_p.shape
    Mp, TM = _tiles(M)
    a_p = jnp.pad(a.astype(jnp.bfloat16), ((0, Mp - M), (0, Kp - K)))

    out = pl.pallas_call(
        functools.partial(_mm_affine_kernel, act=act),
        out_shape=jax.ShapeDtypeStruct((Mp, Np), out_dtype),
        grid=(Mp // TM,),
        in_specs=[
            pl.BlockSpec((TM, Kp), lambda i: (i, 0)),
            pl.BlockSpec((Kp, Np), lambda i: (0, 0)),
            pl.BlockSpec((1, Np), lambda i: (0, 0)),
            pl.BlockSpec((1, Np), lambda i: (0, 0)),
        ],
        out_specs=pl.BlockSpec((TM, Np), lambda i: (i, 0)),
        compiler_params=pltpu.CompilerParams(dimension_semantics=("parallel",)),
    )(a_p, w_p, sc_p, sh_p)
    return out[:M, :n_real]


def _extract_patches(x_nhwc, kh, kw, stride, pad):
    x = jnp.pad(x_nhwc, ((0, 0), (pad, pad), (pad, pad), (0, 0)))
    N, H, W, C = x.shape
    oh = (H - kh) // stride + 1
    ow = (W - kw) // stride + 1
    slices = []
    for i in range(kh):
        for j in range(kw):
            slices.append(x[:, i:i + oh * stride:stride, j:j + ow * stride:stride, :])
    p = jnp.stack(slices, axis=3)                      # (N, oh, ow, kh*kw, C)
    return p.reshape(N * oh * ow, kh * kw * C), (N, oh, ow)


def conv2d(x_nhwc, pk, *, kh, kw, stride, pad, oc, act, out_dtype=jnp.bfloat16):
    patches, (N, oh, ow) = _extract_patches(x_nhwc, kh, kw, stride, pad)
    out2d = matmul_affine(patches, pk["w"], pk["sc"], pk["sh"],
                          act=act, n_real=oc, out_dtype=out_dtype)
    return out2d.reshape(N, oh, ow, oc)


def conv_transpose2d_s2k4(x_nhwc, pk, *, cout, act, out_dtype=jnp.bfloat16):
    """ConvTranspose2d(k=4, s=2, p=1) via stride-phase decomposition:
       one 3x3 im2col on the un-upsampled input, one matmul producing the 4
       output phases lane-densely, then a spatial interleave."""
    patches, (N, H, W) = _extract_patches(x_nhwc, 3, 3, 1, 1)   # (N*H*W, 9*Cin)
    out2d = matmul_affine(patches, pk["w"], pk["sc"], pk["sh"],
                          act=act, n_real=4 * cout, out_dtype=out_dtype)
    out = out2d.reshape(N, H, W, 2, 2, cout)
    out = jnp.transpose(out, (0, 1, 3, 2, 4, 5)).reshape(N, 2 * H, 2 * W, cout)
    return out


def resblock(x_nhwc, pk):
    """Single fused Pallas call per ResBlock(+trailing BN)."""
    N, H, W, C = x_nhwc.shape
    M = N * H * W
    K = 9 * C
    Kp = pk["w1"].shape[0]
    Cp = pk["w2"].shape[1]
    Mp, TM = _tiles(M)

    patches, _ = _extract_patches(x_nhwc, 3, 3, 1, 1)
    a_p = jnp.pad(patches.astype(jnp.bfloat16), ((0, Mp - M), (0, Kp - K)))
    x_p = jnp.pad(x_nhwc.reshape(M, C).astype(jnp.bfloat16),
                  ((0, Mp - M), (0, Cp - C)))

    out = pl.pallas_call(
        _resblock_kernel,
        out_shape=jax.ShapeDtypeStruct((Mp, Cp), jnp.bfloat16),
        grid=(Mp // TM,),
        in_specs=[
            pl.BlockSpec((TM, Kp), lambda i: (i, 0)),
            pl.BlockSpec((TM, Cp), lambda i: (i, 0)),
            pl.BlockSpec((Kp, Cp), lambda i: (0, 0)),
            pl.BlockSpec((1, Cp), lambda i: (0, 0)),
            pl.BlockSpec((1, Cp), lambda i: (0, 0)),
            pl.BlockSpec((Cp, Cp), lambda i: (0, 0)),
            pl.BlockSpec((1, Cp), lambda i: (0, 0)),
            pl.BlockSpec((1, Cp), lambda i: (0, 0)),
        ],
        out_specs=pl.BlockSpec((TM, Cp), lambda i: (i, 0)),
        compiler_params=pltpu.CompilerParams(dimension_semantics=("parallel",)),
    )(a_p, x_p, pk["w1"], pk["s1"], pk["h1"], pk["w2"], pk["s2"], pk["h2"])
    return out[:M, :C].reshape(N, H, W, C)


def fc_reparam(h1, w_cat, b_cat, eps):
    """mu = h1@W11^T+b11 ; logvar = h1@W12^T+b12 ; z = mu + eps*exp(.5*logvar)."""
    Nb, D = h1.shape                                   # D is a multiple of 128
    TM = _round_up(max(Nb, 16), 16)
    h_p = jnp.pad(h1.astype(jnp.bfloat16), ((0, TM - Nb), (0, 0)))
    e_p = jnp.pad(eps.astype(jnp.float32), ((0, TM - Nb), (0, 0)))

    mu, lv, z = pl.pallas_call(
        functools.partial(_fc_reparam_kernel, D=D),
        out_shape=(jax.ShapeDtypeStruct((TM, D), jnp.float32),) * 3,
        grid=(1,),
        in_specs=[
            pl.BlockSpec((TM, D), lambda i: (0, 0)),
            pl.BlockSpec((D, 2 * D), lambda i: (0, 0)),
            pl.BlockSpec((1, 2 * D), lambda i: (0, 0)),
            pl.BlockSpec((TM, D), lambda i: (0, 0)),
        ],
        out_specs=(pl.BlockSpec((TM, D), lambda i: (0, 0)),) * 3,
        compiler_params=pltpu.CompilerParams(dimension_semantics=("arbitrary",)),
    )(h_p, w_cat, b_cat, e_p)
    return mu[:Nb], lv[:Nb], z[:Nb]


# ----------------------------------------------------------------------------
# Parameter initialization (deterministic, PyTorch-shaped)
# ----------------------------------------------------------------------------
BN_EPS = 1e-5


def _conv_w(key, shape):
    fan_in = shape[1] * shape[2] * shape[3]
    return jax.random.normal(key, shape, jnp.float32) / jnp.sqrt(jnp.float32(fan_in))


def _make_bn(key, c):
    k1, k2 = jax.random.split(key)
    gamma = 1.0 + 0.1 * jax.random.normal(k1, (c,), jnp.float32)
    beta = 0.1 * jax.random.normal(k2, (c,), jnp.float32)
    scale = gamma / jnp.sqrt(1.0 + BN_EPS)             # running_var = 1
    shift = beta                                       # running_mean = 0
    return scale, shift


def _make_resblock(key, c):
    ks = jax.random.split(key, 5)
    w1 = _conv_w(ks[0], (c, c, 3, 3))                  # Conv2d(c, c, 3, 1, 1)
    b1 = 0.05 * jax.random.normal(ks[1], (c,), jnp.float32)
    bn_scale, bn_shift = _make_bn(ks[2], c)            # BN after the 3x3 conv
    w2 = _conv_w(ks[3], (c, c, 1, 1))                  # Conv2d(c, c, 1, 1, 0)
    b2 = 0.05 * jax.random.normal(ks[4], (c,), jnp.float32)
    return {
        "w1": w1,
        "bn1_scale": bn_scale,
        "bn1_shift": bn_shift + bn_scale * b1,         # conv1 bias folded into BN
        "w2": w2,
        "b2": b2,
    }


def _deconv_phase_weights(w_t):
    """ConvTranspose2d(k=4,s=2,p=1) weight (Cin,Cout,4,4) -> (9*Cin, 4*Cout)
       phase-decomposed matrix acting on 3x3/stride-1/pad-1 patches."""
    Cin, Cout, KH, KW = w_t.shape
    W = jnp.zeros((3, 3, Cin, 4 * Cout), jnp.float32)
    for py in range(2):
        for px in range(2):
            ph = py * 2 + px
            for dy in (-1, 0, 1):
                ky = py + 1 - 2 * dy
                if not 0 <= ky < KH:
                    continue
                for dx in (-1, 0, 1):
                    kx = px + 1 - 2 * dx
                    if not 0 <= kx < KW:
                        continue
                    W = W.at[dy + 1, dx + 1, :,
                             ph * Cout:(ph + 1) * Cout].set(w_t[:, :, ky, kx])
    return W.reshape(9 * Cin, 4 * Cout)


def init_params(key, conv_mindim):
    c1, c2 = conv_mindim, conv_mindim * 2
    D = c2 * 8 * 8
    ks = jax.random.split(key, 18)
    fc11_w = jax.random.normal(ks[10], (D, D), jnp.float32) / jnp.sqrt(jnp.float32(D))
    fc12_w = jax.random.normal(ks[12], (D, D), jnp.float32) / jnp.sqrt(jnp.float32(D))
    dc1 = _conv_w(ks[14], (c2, c1, 4, 4))              # ConvTranspose (in,out,kh,kw)
    dc2 = _conv_w(ks[16], (c1, 3, 4, 4))
    return {
        "enc1_w": _conv_w(ks[0], (c1, 3, 4, 4)),       # bias=False
        "enc1_bn": _make_bn(ks[1], c1),
        "enc2_w": _conv_w(ks[2], (c2, c1, 4, 4)),      # bias=False
        "enc2_bn": _make_bn(ks[3], c2),
        "enc_rb1": _make_resblock(ks[4], c2),
        "enc_bn1": _make_bn(ks[5], c2),
        "enc_rb2": _make_resblock(ks[6], c2),
        "enc_bn2": _make_bn(ks[7], c2),
        "fc11_w": fc11_w,
        "fc11_b": 0.05 * jax.random.normal(ks[11], (D,), jnp.float32),
        "fc12_w": fc12_w,
        "fc12_b": 0.05 * jax.random.normal(ks[13], (D,), jnp.float32),
        "dec_rb1": _make_resblock(ks[8], c2),
        "dec_bn1": _make_bn(ks[9], c2),
        "dec_rb2": _make_resblock(ks[17], c2),
        "dec_dc1_wp": _deconv_phase_weights(dc1),      # pre-built phase matrix
        "dec_dc1_bn": _make_bn(ks[15], c1),
        "dec_dc2_wp": _deconv_phase_weights(dc2),
    }


# ----------------------------------------------------------------------------
# Kernel-ready weight packing (done ONCE, outside the jitted forward)
# ----------------------------------------------------------------------------
def _pad_row(v, np_):
    return jnp.pad(v.reshape(1, -1).astype(jnp.float32), ((0, 0), (0, np_ - v.shape[0])))


def pack_params(p, conv_mindim):
    c1, c2 = conv_mindim, conv_mindim * 2
    D = c2 * 8 * 8

    def conv_pack(w_oihw, scale, shift):
        OC, IC, KH, KW = w_oihw.shape
        K = KH * KW * IC
        Kp, Np = _round_up(K, 128), _round_up(OC, 128)
        w2d = jnp.transpose(w_oihw, (2, 3, 1, 0)).reshape(K, OC)
        return {"w": jnp.pad(w2d.astype(jnp.bfloat16), ((0, Kp - K), (0, Np - OC))),
                "sc": _pad_row(scale, Np), "sh": _pad_row(shift, Np)}

    def resblock_pack(rp, trail_scale, trail_shift, c):
        K = 9 * c
        Kp, Cp = _round_up(K, 128), _round_up(c, 128)
        w1 = jnp.transpose(rp["w1"], (2, 3, 1, 0)).reshape(K, c)
        w2 = rp["w2"].reshape(c, c).T                  # (O,I,1,1) -> (I,O)
        return {"w1": jnp.pad(w1.astype(jnp.bfloat16), ((0, Kp - K), (0, Cp - c))),
                "s1": _pad_row(rp["bn1_scale"], Cp),
                "h1": _pad_row(rp["bn1_shift"], Cp),
                "w2": jnp.pad(w2.astype(jnp.bfloat16), ((0, Cp - c), (0, Cp - c))),
                "s2": _pad_row(trail_scale, Cp),
                "h2": _pad_row(trail_shift + trail_scale * rp["b2"], Cp)}

    def deconv_pack(w_phase2d, scale, shift):
        K, N4 = w_phase2d.shape                        # (9*Cin, 4*Cout)
        Kp, Np = _round_up(K, 128), _round_up(N4, 128)
        return {"w": jnp.pad(w_phase2d.astype(jnp.bfloat16), ((0, Kp - K), (0, Np - N4))),
                "sc": _pad_row(jnp.tile(scale, 4), Np),
                "sh": _pad_row(jnp.tile(shift, 4), Np)}

    ones2 = jnp.ones((c2,), jnp.float32)
    zeros2 = jnp.zeros((c2,), jnp.float32)
    ones3 = jnp.ones((3,), jnp.float32)
    zeros3 = jnp.zeros((3,), jnp.float32)

    fc_w = jnp.concatenate([p["fc11_w"].T, p["fc12_w"].T], axis=1).astype(jnp.bfloat16)
    fc_b = jnp.concatenate([p["fc11_b"], p["fc12_b"]]).reshape(1, 2 * D).astype(jnp.float32)

    return {
        "enc1": conv_pack(p["enc1_w"], *p["enc1_bn"]),
        "enc2": conv_pack(p["enc2_w"], *p["enc2_bn"]),
        "enc_rb1": resblock_pack(p["enc_rb1"], *p["enc_bn1"], c2),
        "enc_rb2": resblock_pack(p["enc_rb2"], *p["enc_bn2"], c2),
        "fc": {"w": fc_w, "b": fc_b},
        "dec_rb1": resblock_pack(p["dec_rb1"], *p["dec_bn1"], c2),
        "dec_rb2": resblock_pack(p["dec_rb2"], ones2, zeros2, c2),   # no trailing BN
        "dec_dc1": deconv_pack(p["dec_dc1_wp"], *p["dec_dc1_bn"]),
        "dec_dc2": deconv_pack(p["dec_dc2_wp"], ones3, zeros3),
    }


# ----------------------------------------------------------------------------
# Model forward (VAE_reset.forward): returns (recon, mu, logvar)
# ----------------------------------------------------------------------------
def vae_reset_forward(x_nchw, pk, eps, conv_mindim):
    c1, c2 = conv_mindim, conv_mindim * 2
    N = x_nchw.shape[0]
    x = jnp.transpose(x_nchw, (0, 2, 3, 1)).astype(jnp.bfloat16)    # NCHW -> NHWC

    # --- encoder ---
    x1 = conv2d(x, pk["enc1"], kh=4, kw=4, stride=2, pad=1, oc=c1, act="relu")
    x2 = conv2d(x1, pk["enc2"], kh=4, kw=4, stride=2, pad=1, oc=c2, act="relu")
    h = resblock(x2, pk["enc_rb1"])
    h = resblock(h, pk["enc_rb2"])

    # flatten like PyTorch .view(-1, c2*8*8) on an NCHW tensor
    h1 = jnp.transpose(h, (0, 3, 1, 2)).reshape(N, -1)

    # --- fc11/fc12 + reparameterize (training mode) fused ---
    mu, logvar, z = fc_reparam(h1, pk["fc"]["w"], pk["fc"]["b"], eps)

    # --- decoder ---
    zh = jnp.transpose(z.reshape(N, c2, 8, 8), (0, 2, 3, 1)).astype(jnp.bfloat16)
    d = resblock(zh, pk["dec_rb1"])
    d = resblock(d, pk["dec_rb2"])
    d = conv_transpose2d_s2k4(d, pk["dec_dc1"], cout=c1, act="relu")
    recon = conv_transpose2d_s2k4(d, pk["dec_dc2"], cout=3, act="tanh",
                                  out_dtype=jnp.float32)            # fused tanh
    recon = jnp.transpose(recon, (0, 3, 1, 2))                      # NHWC -> NCHW
    return recon, mu, logvar


# ----------------------------------------------------------------------------
if __name__ == "__main__":
    key = jax.random.PRNGKey(0)
    k_param, k_input, k_eps = jax.random.split(key, 3)

    conv_mindim = 8                                    # c2 = 16, latent D = 1024
    raw_params = init_params(k_param, conv_mindim)
    packed = pack_params(raw_params, conv_mindim)      # one-time weight packing

    # architecture implies 32x32 input (two stride-2 downsamples -> 8x8 latent)
    x = jax.random.normal(k_input, (2, 3, 32, 32), jnp.float32)
    eps = jax.random.normal(k_eps, (2, conv_mindim * 2 * 8 * 8), jnp.float32)

    fwd = jax.jit(functools.partial(vae_reset_forward, conv_mindim=conv_mindim))
    recon, mu, logvar = fwd(x, packed, eps)
    recon = jax.block_until_ready(recon)

    assert recon.shape == (2, 3, 32, 32), recon.shape
    assert mu.shape == (2, 1024) and logvar.shape == (2, 1024)
    assert jnp.all(jnp.isfinite(recon))
    assert jnp.all(jnp.isfinite(mu)) and jnp.all(jnp.isfinite(logvar))
    print("KERNEL_OK")
</pallas_src>

<mosaic_0001>
module attributes {stable_mosaic.version = 11 : i64} {
  func.func @_mm_affine_kernel(%arg0: i32, %arg1: memref<512x128xbf16, #tpu.memory_space<vmem>>, %arg2: memref<128x128xbf16, #tpu.memory_space<vmem>>, %arg3: memref<1x128xf32, #tpu.memory_space<vmem>>, %arg4: memref<1x128xf32, #tpu.memory_space<vmem>>, %arg5: memref<512x128xbf16, #tpu.memory_space<vmem>>) attributes {dimension_semantics = [#tpu.dimension_semantics<parallel>], iteration_bounds = array<i64: 1>, scalar_prefetch = 0 : i64, scratch_operands = 0 : i64, tpu.core_type = #tpu.core_type<tc>, window_params = [{transform_indices = @transform_0, window_bounds = array<i64: 512, 128>}, {pipeline_mode = #tpu.pipeline_mode<synchronous>, transform_indices = @transform_1, window_bounds = array<i64: 128, 128>}, {pipeline_mode = #tpu.pipeline_mode<synchronous>, transform_indices = @transform_2, window_bounds = array<i64: 1, 128>}, {pipeline_mode = #tpu.pipeline_mode<synchronous>, transform_indices = @transform_3, window_bounds = array<i64: 1, 128>}, {transform_indices = @transform_4, window_bounds = array<i64: 512, 128>}]} {
    %c0 = arith.constant 0 : index
    %c0_0 = arith.constant 0 : index
    %0 = vector.load %arg1[%c0, %c0_0] : memref<512x128xbf16, #tpu.memory_space<vmem>>, vector<512x128xbf16>
    %c0_1 = arith.constant 0 : index
    %c0_2 = arith.constant 0 : index
    %1 = vector.load %arg2[%c0_1, %c0_2] : memref<128x128xbf16, #tpu.memory_space<vmem>>, vector<128x128xbf16>
    %cst = arith.constant dense<0.000000e+00> : vector<512x128xf32>
    %2 = tpu.matmul %0, %1, %cst {dimension_numbers = #tpu.dot_dimension_numbers<[1], [0], [0], [1], [0, 0, 1, 1], [], []>} : vector<512x128xbf16>, vector<128x128xbf16>, vector<512x128xf32> -> vector<512x128xf32>
    %c0_3 = arith.constant 0 : index
    %c0_4 = arith.constant 0 : index
    %3 = vector.load %arg3[%c0_3, %c0_4] : memref<1x128xf32, #tpu.memory_space<vmem>>, vector<1x128xf32>
    %4 = vector.broadcast %3 : vector<1x128xf32> to vector<512x128xf32>
    %5 = arith.mulf %2, %4 : vector<512x128xf32>
    %c0_5 = arith.constant 0 : index
    %c0_6 = arith.constant 0 : index
    %6 = vector.load %arg4[%c0_5, %c0_6] : memref<1x128xf32, #tpu.memory_space<vmem>>, vector<1x128xf32>
    %7 = vector.broadcast %6 : vector<1x128xf32> to vector<512x128xf32>
    %8 = arith.addf %5, %7 : vector<512x128xf32>
    %cst_7 = arith.constant 0.000000e+00 : f32
    %9 = vector.broadcast %cst_7 : f32 to vector<512x128xf32>
    %10 = arith.maximumf %8, %9 : vector<512x128xf32>
    %11 = arith.truncf %10 : vector<512x128xf32> to vector<512x128xbf16>
    %c0_8 = arith.constant 0 : index
    %c0_9 = arith.constant 0 : index
    %12 = vector.load %arg5[%c0_8, %c0_9] : memref<512x128xbf16, #tpu.memory_space<vmem>>, vector<512x128xbf16>
    tpu.vector_store %arg5[%c0_8, %c0_9], %11 {strides = array<i32>} : memref<512x128xbf16, #tpu.memory_space<vmem>>, vector<512x128xbf16>,
    return
  }
  func.func @transform_0(%arg0: i32) -> (i32, i32) {
    %c0_i32 = arith.constant 0 : i32
    %c0_i32_0 = arith.constant 0 : i32
    return %arg0, %c0_i32 : i32, i32
  }
  func.func @transform_1(%arg0: i32) -> (i32, i32) {
    %c0_i32 = arith.constant 0 : i32
    %c0_i32_0 = arith.constant 0 : i32
    %c0_i32_1 = arith.constant 0 : i32
    return %c0_i32, %c0_i32_0 : i32, i32
  }
  func.func @transform_2(%arg0: i32) -> (i32, i32) {
    %c0_i32 = arith.constant 0 : i32
    %c0_i32_0 = arith.constant 0 : i32
    %c0_i32_1 = arith.constant 0 : i32
    return %c0_i32, %c0_i32_0 : i32, i32
  }
  func.func @transform_3(%arg0: i32) -> (i32, i32) {
    %c0_i32 = arith.constant 0 : i32
    %c0_i32_0 = arith.constant 0 : i32
    %c0_i32_1 = arith.constant 0 : i32
    return %c0_i32, %c0_i32_0 : i32, i32
  }
  func.func @transform_4(%arg0: i32) -> (i32, i32) {
    %c0_i32 = arith.constant 0 : i32
    %c0_i32_0 = arith.constant 0 : i32
    return %arg0, %c0_i32 : i32, i32
  }
}

module attributes {stable_mosaic.version = 11 : i64} {
  func.func @_mm_affine_kernel(%arg0: i32, %arg1: memref<128x128xbf16, #tpu.memory_space<vmem>>, %arg2: memref<128x128xbf16, #tpu.memory_space<vmem>>, %arg3: memref<1x128xf32, #tpu.memory_space<vmem>>, %arg4: memref<1x128xf32, #tpu.memory_space<vmem>>, %arg5: memref<128x128xbf16, #tpu.memory_space<vmem>>) attributes {dimension_semantics = [#tpu.dimension_semantics<parallel>], iteration_bounds = array<i64: 1>, scalar_prefetch = 0 : i64, scratch_operands = 0 : i64, tpu.core_type = #tpu.core_type<tc>, window_params = [{transform_indices = @transform_0, window_bounds = array<i64: 128, 128>}, {pipeline_mode = #tpu.pipeline_mode<synchronous>, transform_indices = @transform_1, window_bounds = array<i64: 128, 128>}, {pipeline_mode = #tpu.pipeline_mode<synchronous>, transform_indices = @transform_2, window_bounds = array<i64: 1, 128>}, {pipeline_mode = #tpu.pipeline_mode<synchronous>, transform_indices = @transform_3, window_bounds = array<i64: 1, 128>}, {transform_indices = @transform_4, window_bounds = array<i64: 128, 128>}]} {
    %c0 = arith.constant 0 : index
    %c0_0 = arith.constant 0 : index
    %0 = vector.load %arg1[%c0, %c0_0] : memref<128x128xbf16, #tpu.memory_space<vmem>>, vector<128x128xbf16>
    %c0_1 = arith.constant 0 : index
    %c0_2 = arith.constant 0 : index
    %1 = vector.load %arg2[%c0_1, %c0_2] : memref<128x128xbf16, #tpu.memory_space<vmem>>, vector<128x128xbf16>
    %cst = arith.constant dense<0.000000e+00> : vector<128x128xf32>
    %2 = tpu.matmul %0, %1, %cst {dimension_numbers = #tpu.dot_dimension_numbers<[1], [0], [0], [1], [0, 0, 1, 1], [], []>} : vector<128x128xbf16>, vector<128x128xbf16>, vector<128x128xf32> -> vector<128x128xf32>
    %c0_3 = arith.constant 0 : index
    %c0_4 = arith.constant 0 : index
    %3 = vector.load %arg3[%c0_3, %c0_4] : memref<1x128xf32, #tpu.memory_space<vmem>>, vector<1x128xf32>
    %4 = vector.broadcast %3 : vector<1x128xf32> to vector<128x128xf32>
    %5 = arith.mulf %2, %4 : vector<128x128xf32>
    %c0_5 = arith.constant 0 : index
    %c0_6 = arith.constant 0 : index
    %6 = vector.load %arg4[%c0_5, %c0_6] : memref<1x128xf32, #tpu.memory_space<vmem>>, vector<1x128xf32>
    %7 = vector.broadcast %6 : vector<1x128xf32> to vector<128x128xf32>
    %8 = arith.addf %5, %7 : vector<128x128xf32>
    %cst_7 = arith.constant 0.000000e+00 : f32
    %9 = vector.broadcast %cst_7 : f32 to vector<128x128xf32>
    %10 = arith.maximumf %8, %9 : vector<128x128xf32>
    %11 = arith.truncf %10 : vector<128x128xf32> to vector<128x128xbf16>
    %c0_8 = arith.constant 0 : index
    %c0_9 = arith.constant 0 : index
    %12 = vector.load %arg5[%c0_8, %c0_9] : memref<128x128xbf16, #tpu.memory_space<vmem>>, vector<128x128xbf16>
    tpu.vector_store %arg5[%c0_8, %c0_9], %11 {strides = array<i32>} : memref<128x128xbf16, #tpu.memory_space<vmem>>, vector<128x128xbf16>,
    return
  }
  func.func @transform_0(%arg0: i32) -> (i32, i32) {
    %c0_i32 = arith.constant 0 : i32
    %c0_i32_0 = arith.constant 0 : i32
    return %arg0, %c0_i32 : i32, i32
  }
  func.func @transform_1(%arg0: i32) -> (i32, i32) {
    %c0_i32 = arith.constant 0 : i32
    %c0_i32_0 = arith.constant 0 : i32
    %c0_i32_1 = arith.constant 0 : i32
    return %c0_i32, %c0_i32_0 : i32, i32
  }
  func.func @transform_2(%arg0: i32) -> (i32, i32) {
    %c0_i32 = arith.constant 0 : i32
    %c0_i32_0 = arith.constant 0 : i32
    %c0_i32_1 = arith.constant 0 : i32
    return %c0_i32, %c0_i32_0 : i32, i32
  }
  func.func @transform_3(%arg0: i32) -> (i32, i32) {
    %c0_i32 = arith.constant 0 : i32
    %c0_i32_0 = arith.constant 0 : i32
    %c0_i32_1 = arith.constant 0 : i32
    return %c0_i32, %c0_i32_0 : i32, i32
  }
  func.func @transform_4(%arg0: i32) -> (i32, i32) {
    %c0_i32 = arith.constant 0 : i32
    %c0_i32_0 = arith.constant 0 : i32
    return %arg0, %c0_i32 : i32, i32
  }
}

module attributes {stable_mosaic.version = 11 : i64} {
  func.func @_resblock_kernel(%arg0: i32, %arg1: memref<128x256xbf16, #tpu.memory_space<vmem>>, %arg2: memref<128x128xbf16, #tpu.memory_space<vmem>>, %arg3: memref<256x128xbf16, #tpu.memory_space<vmem>>, %arg4: memref<1x128xf32, #tpu.memory_space<vmem>>, %arg5: memref<1x128xf32, #tpu.memory_space<vmem>>, %arg6: memref<128x128xbf16, #tpu.memory_space<vmem>>, %arg7: memref<1x128xf32, #tpu.memory_space<vmem>>, %arg8: memref<1x128xf32, #tpu.memory_space<vmem>>, %arg9: memref<128x128xbf16, #tpu.memory_space<vmem>>) attributes {dimension_semantics = [#tpu.dimension_semantics<parallel>], iteration_bounds = array<i64: 1>, scalar_prefetch = 0 : i64, scratch_operands = 0 : i64, tpu.core_type = #tpu.core_type<tc>, window_params = [{transform_indices = @transform_0, window_bounds = array<i64: 128, 256>}, {transform_indices = @transform_1, window_bounds = array<i64: 128, 128>}, {pipeline_mode = #tpu.pipeline_mode<synchronous>, transform_indices = @transform_2, window_bounds = array<i64: 256, 128>}, {pipeline_mode = #tpu.pipeline_mode<synchronous>, transform_indices = @transform_3, window_bounds = array<i64: 1, 128>}, {pipeline_mode = #tpu.pipeline_mode<synchronous>, transform_indices = @transform_4, window_bounds = array<i64: 1, 128>}, {pipeline_mode = #tpu.pipeline_mode<synchronous>, transform_indices = @transform_5, window_bounds = array<i64: 128, 128>}, {pipeline_mode = #tpu.pipeline_mode<synchronous>, transform_indices = @transform_6, window_bounds = array<i64: 1, 128>}, {pipeline_mode = #tpu.pipeline_mode<synchronous>, transform_indices = @transform_7, window_bounds = array<i64: 1, 128>}, {transform_indices = @transform_8, window_bounds = array<i64: 128, 128>}]} {
    %c0 = arith.constant 0 : index
    %c0_0 = arith.constant 0 : index
    %0 = vector.load %arg1[%c0, %c0_0] : memref<128x256xbf16, #tpu.memory_space<vmem>>, vector<128x256xbf16>
    %cst = arith.constant 0.000000e+00 : bf16
    %1 = vector.broadcast %cst : bf16 to vector<128x256xbf16>
    %2 = arith.maximumf %0, %1 : vector<128x256xbf16>
    %c0_1 = arith.constant 0 : index
    %c0_2 = arith.constant 0 : index
    %3 = vector.load %arg3[%c0_1, %c0_2] : memref<256x128xbf16, #tpu.memory_space<vmem>>, vector<256x128xbf16>
    %cst_3 = arith.constant dense<0.000000e+00> : vector<128x128xf32>
    %4 = tpu.matmul %2, %3, %cst_3 {dimension_numbers = #tpu.dot_dimension_numbers<[1], [0], [0], [1], [0, 0, 1, 1], [], []>} : vector<128x256xbf16>, vector<256x128xbf16>, vector<128x128xf32> -> vector<128x128xf32>
    %c0_4 = arith.constant 0 : index
    %c0_5 = arith.constant 0 : index
    %5 = vector.load %arg4[%c0_4, %c0_5] : memref<1x128xf32, #tpu.memory_space<vmem>>, vector<1x128xf32>
    %6 = vector.broadcast %5 : vector<1x128xf32> to vector<128x128xf32>
    %7 = arith.mulf %4, %6 : vector<128x128xf32>
    %c0_6 = arith.constant 0 : index
    %c0_7 = arith.constant 0 : index
    %8 = vector.load %arg5[%c0_6, %c0_7] : memref<1x128xf32, #tpu.memory_space<vmem>>, vector<1x128xf32>
    %9 = vector.broadcast %8 : vector<1x128xf32> to vector<128x128xf32>
    %10 = arith.addf %7, %9 : vector<128x128xf32>
    %cst_8 = arith.constant 0.000000e+00 : f32
    %11 = vector.broadcast %cst_8 : f32 to vector<128x128xf32>
    %12 = arith.maximumf %10, %11 : vector<128x128xf32>
    %13 = arith.truncf %12 : vector<128x128xf32> to vector<128x128xbf16>
    %c0_9 = arith.constant 0 : index
    %c0_10 = arith.constant 0 : index
    %14 = vector.load %arg6[%c0_9, %c0_10] : memref<128x128xbf16, #tpu.memory_space<vmem>>, vector<128x128xbf16>
    %cst_11 = arith.constant dense<0.000000e+00> : vector<128x128xf32>
    %15 = tpu.matmul %13, %14, %cst_11 {dimension_numbers = #tpu.dot_dimension_numbers<[1], [0], [0], [1], [0, 0, 1, 1], [], []>} : vector<128x128xbf16>, vector<128x128xbf16>, vector<128x128xf32> -> vector<128x128xf32>
    %c0_12 = arith.constant 0 : index
    %c0_13 = arith.constant 0 : index
    %16 = vector.load %arg2[%c0_12, %c0_13] : memref<128x128xbf16, #tpu.memory_space<vmem>>, vector<128x128xbf16>
    %17 = arith.extf %16 : vector<128x128xbf16> to vector<128x128xf32>
    %18 = arith.addf %17, %15 : vector<128x128xf32>
    %c0_14 = arith.constant 0 : index
    %c0_15 = arith.constant 0 : index
    %19 = vector.load %arg7[%c0_14, %c0_15] : memref<1x128xf32, #tpu.memory_space<vmem>>, vector<1x128xf32>
    %20 = vector.broadcast %19 : vector<1x128xf32> to vector<128x128xf32>
    %21 = arith.mulf %18, %20 : vector<128x128xf32>
    %c0_16 = arith.constant 0 : index
    %c0_17 = arith.constant 0 : index
    %22 = vector.load %arg8[%c0_16, %c0_17] : memref<1x128xf32, #tpu.memory_space<vmem>>, vector<1x128xf32>
    %23 = vector.broadcast %22 : vector<1x128xf32> to vector<128x128xf32>
    %24 = arith.addf %21, %23 : vector<128x128xf32>
    %25 = arith.truncf %24 : vector<128x128xf32> to vector<128x128xbf16>
    %c0_18 = arith.constant 0 : index
    %c0_19 = arith.constant 0 : index
    %26 = vector.load %arg9[%c0_18, %c0_19] : memref<128x128xbf16, #tpu.memory_space<vmem>>, vector<128x128xbf16>
    tpu.vector_store %arg9[%c0_18, %c0_19], %25 {strides = array<i32>} : memref<128x128xbf16, #tpu.memory_space<vmem>>, vector<128x128xbf16>,
    return
  }
  func.func @transform_0(%arg0: i32) -> (i32, i32) {
    %c0_i32 = arith.constant 0 : i32
    %c0_i32_0 = arith.constant 0 : i32
    return %arg0, %c0_i32 : i32, i32
  }
  func.func @transform_1(%arg0: i32) -> (i32, i32) {
    %c0_i32 = arith.constant 0 : i32
    %c0_i32_0 = arith.constant 0 : i32
    return %arg0, %c0_i32 : i32, i32
  }
  func.func @transform_2(%arg0: i32) -> (i32, i32) {
    %c0_i32 = arith.constant 0 : i32
    %c0_i32_0 = arith.constant 0 : i32
    %c0_i32_1 = arith.constant 0 : i32
    return %c0_i32, %c0_i32_0 : i32, i32
  }
  func.func @transform_3(%arg0: i32) -> (i32, i32) {
    %c0_i32 = arith.constant 0 : i32
    %c0_i32_0 = arith.constant 0 : i32
    %c0_i32_1 = arith.constant 0 : i32
    return %c0_i32, %c0_i32_0 : i32, i32
  }
  func.func @transform_4(%arg0: i32) -> (i32, i32) {
    %c0_i32 = arith.constant 0 : i32
    %c0_i32_0 = arith.constant 0 : i32
    %c0_i32_1 = arith.constant 0 : i32
    return %c0_i32, %c0_i32_0 : i32, i32
  }
  func.func @transform_5(%arg0: i32) -> (i32, i32) {
    %c0_i32 = arith.constant 0 : i32
    %c0_i32_0 = arith.constant 0 : i32
    %c0_i32_1 = arith.constant 0 : i32
    return %c0_i32, %c0_i32_0 : i32, i32
  }
  func.func @transform_6(%arg0: i32) -> (i32, i32) {
    %c0_i32 = arith.constant 0 : i32
    %c0_i32_0 = arith.constant 0 : i32
    %c0_i32_1 = arith.constant 0 : i32
    return %c0_i32, %c0_i32_0 : i32, i32
  }
  func.func @transform_7(%arg0: i32) -> (i32, i32) {
    %c0_i32 = arith.constant 0 : i32
    %c0_i32_0 = arith.constant 0 : i32
    %c0_i32_1 = arith.constant 0 : i32
    return %c0_i32, %c0_i32_0 : i32, i32
  }
  func.func @transform_8(%arg0: i32) -> (i32, i32) {
    %c0_i32 = arith.constant 0 : i32
    %c0_i32_0 = arith.constant 0 : i32
    return %arg0, %c0_i32 : i32, i32
  }
}

module attributes {stable_mosaic.version = 11 : i64} {
  func.func @_fc_reparam_kernel(%arg0: i32, %arg1: memref<16x1024xbf16, #tpu.memory_space<vmem>>, %arg2: memref<1024x2048xbf16, #tpu.memory_space<vmem>>, %arg3: memref<1x2048xf32, #tpu.memory_space<vmem>>, %arg4: memref<16x1024xf32, #tpu.memory_space<vmem>>, %arg5: memref<16x1024xf32, #tpu.memory_space<vmem>>, %arg6: memref<16x1024xf32, #tpu.memory_space<vmem>>, %arg7: memref<16x1024xf32, #tpu.memory_space<vmem>>) attributes {dimension_semantics = [#tpu.dimension_semantics<arbitrary>], iteration_bounds = array<i64: 1>, scalar_prefetch = 0 : i64, scratch_operands = 0 : i64, tpu.core_type = #tpu.core_type<tc>, window_params = [{pipeline_mode = #tpu.pipeline_mode<synchronous>, transform_indices = @transform_0, window_bounds = array<i64: 16, 1024>}, {pipeline_mode = #tpu.pipeline_mode<synchronous>, transform_indices = @transform_1, window_bounds = array<i64: 1024, 2048>}, {pipeline_mode = #tpu.pipeline_mode<synchronous>, transform_indices = @transform_2, window_bounds = array<i64: 1, 2048>}, {pipeline_mode = #tpu.pipeline_mode<synchronous>, transform_indices = @transform_3, window_bounds = array<i64: 16, 1024>}, {pipeline_mode = #tpu.pipeline_mode<synchronous>, transform_indices = @transform_4, window_bounds = array<i64: 16, 1024>}, {pipeline_mode = #tpu.pipeline_mode<synchronous>, transform_indices = @transform_5, window_bounds = array<i64: 16, 1024>}, {pipeline_mode = #tpu.pipeline_mode<synchronous>, transform_indices = @transform_6, window_bounds = array<i64: 16, 1024>}]} {
    %c0 = arith.constant 0 : index
    %c0_0 = arith.constant 0 : index
    %0 = vector.load %arg1[%c0, %c0_0] : memref<16x1024xbf16, #tpu.memory_space<vmem>>, vector<16x1024xbf16>
    %c0_1 = arith.constant 0 : index
    %c0_2 = arith.constant 0 : index
    %1 = vector.load %arg2[%c0_1, %c0_2] : memref<1024x2048xbf16, #tpu.memory_space<vmem>>, vector<1024x2048xbf16>
    %cst = arith.constant dense<0.000000e+00> : vector<16x2048xf32>
    %2 = tpu.matmul %0, %1, %cst {dimension_numbers = #tpu.dot_dimension_numbers<[1], [0], [0], [1], [0, 0, 1, 1], [], []>} : vector<16x1024xbf16>, vector<1024x2048xbf16>, vector<16x2048xf32> -> vector<16x2048xf32>
    %c0_3 = arith.constant 0 : index
    %c0_4 = arith.constant 0 : index
    %3 = vector.load %arg3[%c0_3, %c0_4] : memref<1x2048xf32, #tpu.memory_space<vmem>>, vector<1x2048xf32>
    %4 = vector.broadcast %3 : vector<1x2048xf32> to vector<16x2048xf32>
    %5 = arith.addf %2, %4 : vector<16x2048xf32>
    %6 = vector.extract_strided_slice %5 {offsets = [0, 0], sizes = [16, 1024], strides = [1, 1]} : vector<16x2048xf32> to vector<16x1024xf32>
    %7 = vector.extract_strided_slice %5 {offsets = [0, 1024], sizes = [16, 1024], strides = [1, 1]} : vector<16x2048xf32> to vector<16x1024xf32>
    %c0_5 = arith.constant 0 : index
    %c0_6 = arith.constant 0 : index
    %8 = vector.load %arg5[%c0_5, %c0_6] : memref<16x1024xf32, #tpu.memory_space<vmem>>, vector<16x1024xf32>
    tpu.vector_store %arg5[%c0_5, %c0_6], %6 {strides = array<i32>} : memref<16x1024xf32, #tpu.memory_space<vmem>>, vector<16x1024xf32>,
    %c0_7 = arith.constant 0 : index
    %c0_8 = arith.constant 0 : index
    %9 = vector.load %arg6[%c0_7, %c0_8] : memref<16x1024xf32, #tpu.memory_space<vmem>>, vector<16x1024xf32>
    tpu.vector_store %arg6[%c0_7, %c0_8], %7 {strides = array<i32>} : memref<16x1024xf32, #tpu.memory_space<vmem>>, vector<16x1024xf32>,
    %c0_9 = arith.constant 0 : index
    %c0_10 = arith.constant 0 : index
    %10 = vector.load %arg4[%c0_9, %c0_10] : memref<16x1024xf32, #tpu.memory_space<vmem>>, vector<16x1024xf32>
    %cst_11 = arith.constant 5.000000e-01 : f32
    %11 = vector.broadcast %cst_11 : f32 to vector<16x1024xf32>
    %12 = arith.mulf %11, %7 : vector<16x1024xf32>
    %13 = math.exp %12 : vector<16x1024xf32>
    %14 = arith.mulf %10, %13 : vector<16x1024xf32>
    %15 = arith.addf %6, %14 : vector<16x1024xf32>
    %c0_12 = arith.constant 0 : index
    %c0_13 = arith.constant 0 : index
    %16 = vector.load %arg7[%c0_12, %c0_13] : memref<16x1024xf32, #tpu.memory_space<vmem>>, vector<16x1024xf32>
    tpu.vector_store %arg7[%c0_12, %c0_13], %15 {strides = array<i32>} : memref<16x1024xf32, #tpu.memory_space<vmem>>, vector<16x1024xf32>,
    return
  }
  func.func @transform_0(%arg0: i32) -> (i32, i32) {
    %c0_i32 = arith.constant 0 : i32
    %c0_i32_0 = arith.constant 0 : i32
    %c0_i32_1 = arith.constant 0 : i32
    return %c0_i32, %c0_i32_0 : i32, i32
  }
  func.func @transform_1(%arg0: i32) -> (i32, i32) {
    %c0_i32 = arith.constant 0 : i32
    %c0_i32_0 = arith.constant 0 : i32
    %c0_i32_1 = arith.constant 0 : i32
    return %c0_i32, %c0_i32_0 : i32, i32
  }
  func.func @transform_2(%arg0: i32) -> (i32, i32) {
    %c0_i32 = arith.constant 0 : i32
    %c0_i32_0 = arith.constant 0 : i32
    %c0_i32_1 = arith.constant 0 : i32
    return %c0_i32, %c0_i32_0 : i32, i32
  }
  func.func @transform_3(%arg0: i32) -> (i32, i32) {
    %c0_i32 = arith.constant 0 : i32
    %c0_i32_0 = arith.constant 0 : i32
    %c0_i32_1 = arith.constant 0 : i32
    return %c0_i32, %c0_i32_0 : i32, i32
  }
  func.func @transform_4(%arg0: i32) -> (i32, i32) {
    %c0_i32 = arith.constant 0 : i32
    %c0_i32_0 = arith.constant 0 : i32
    %c0_i32_1 = arith.constant 0 : i32
    return %c0_i32, %c0_i32_0 : i32, i32
  }
  func.func @transform_5(%arg0: i32) -> (i32, i32) {
    %c0_i32 = arith.constant 0 : i32
    %c0_i32_0 = arith.constant 0 : i32
    %c0_i32_1 = arith.constant 0 : i32
    return %c0_i32, %c0_i32_0 : i32, i32
  }
  func.func @transform_6(%arg0: i32) -> (i32, i32) {
    %c0_i32 = arith.constant 0 : i32
    %c0_i32_0 = arith.constant 0 : i32
    %c0_i32_1 = arith.constant 0 : i32
    return %c0_i32, %c0_i32_0 : i32, i32
  }
}

module attributes {stable_mosaic.version = 11 : i64} {
  func.func @_mm_affine_kernel(%arg0: i32, %arg1: memref<128x256xbf16, #tpu.memory_space<vmem>>, %arg2: memref<256x128xbf16, #tpu.memory_space<vmem>>, %arg3: memref<1x128xf32, #tpu.memory_space<vmem>>, %arg4: memref<1x128xf32, #tpu.memory_space<vmem>>, %arg5: memref<128x128xbf16, #tpu.memory_space<vmem>>) attributes {dimension_semantics = [#tpu.dimension_semantics<parallel>], iteration_bounds = array<i64: 1>, scalar_prefetch = 0 : i64, scratch_operands = 0 : i64, tpu.core_type = #tpu.core_type<tc>, window_params = [{transform_indices = @transform_0, window_bounds = array<i64: 128, 256>}, {pipeline_mode = #tpu.pipeline_mode<synchronous>, transform_indices = @transform_1, window_bounds = array<i64: 256, 128>}, {pipeline_mode = #tpu.pipeline_mode<synchronous>, transform_indices = @transform_2, window_bounds = array<i64: 1, 128>}, {pipeline_mode = #tpu.pipeline_mode<synchronous>, transform_indices = @transform_3, window_bounds = array<i64: 1, 128>}, {transform_indices = @transform_4, window_bounds = array<i64: 128, 128>}]} {
    %c0 = arith.constant 0 : index
    %c0_0 = arith.constant 0 : index
    %0 = vector.load %arg1[%c0, %c0_0] : memref<128x256xbf16, #tpu.memory_space<vmem>>, vector<128x256xbf16>
    %c0_1 = arith.constant 0 : index
    %c0_2 = arith.constant 0 : index
    %1 = vector.load %arg2[%c0_1, %c0_2] : memref<256x128xbf16, #tpu.memory_space<vmem>>, vector<256x128xbf16>
    %cst = arith.constant dense<0.000000e+00> : vector<128x128xf32>
    %2 = tpu.matmul %0, %1, %cst {dimension_numbers = #tpu.dot_dimension_numbers<[1], [0], [0], [1], [0, 0, 1, 1], [], []>} : vector<128x256xbf16>, vector<256x128xbf16>, vector<128x128xf32> -> vector<128x128xf32>
    %c0_3 = arith.constant 0 : index
    %c0_4 = arith.constant 0 : index
    %3 = vector.load %arg3[%c0_3, %c0_4] : memref<1x128xf32, #tpu.memory_space<vmem>>, vector<1x128xf32>
    %4 = vector.broadcast %3 : vector<1x128xf32> to vector<128x128xf32>
    %5 = arith.mulf %2, %4 : vector<128x128xf32>
    %c0_5 = arith.constant 0 : index
    %c0_6 = arith.constant 0 : index
    %6 = vector.load %arg4[%c0_5, %c0_6] : memref<1x128xf32, #tpu.memory_space<vmem>>, vector<1x128xf32>
    %7 = vector.broadcast %6 : vector<1x128xf32> to vector<128x128xf32>
    %8 = arith.addf %5, %7 : vector<128x128xf32>
    %cst_7 = arith.constant 0.000000e+00 : f32
    %9 = vector.broadcast %cst_7 : f32 to vector<128x128xf32>
    %10 = arith.maximumf %8, %9 : vector<128x128xf32>
    %11 = arith.truncf %10 : vector<128x128xf32> to vector<128x128xbf16>
    %c0_8 = arith.constant 0 : index
    %c0_9 = arith.constant 0 : index
    %12 = vector.load %arg5[%c0_8, %c0_9] : memref<128x128xbf16, #tpu.memory_space<vmem>>, vector<128x128xbf16>
    tpu.vector_store %arg5[%c0_8, %c0_9], %11 {strides = array<i32>} : memref<128x128xbf16, #tpu.memory_space<vmem>>, vector<128x128xbf16>,
    return
  }
  func.func @transform_0(%arg0: i32) -> (i32, i32) {
    %c0_i32 = arith.constant 0 : i32
    %c0_i32_0 = arith.constant 0 : i32
    return %arg0, %c0_i32 : i32, i32
  }
  func.func @transform_1(%arg0: i32) -> (i32, i32) {
    %c0_i32 = arith.constant 0 : i32
    %c0_i32_0 = arith.constant 0 : i32
    %c0_i32_1 = arith.constant 0 : i32
    return %c0_i32, %c0_i32_0 : i32, i32
  }
  func.func @transform_2(%arg0: i32) -> (i32, i32) {
    %c0_i32 = arith.constant 0 : i32
    %c0_i32_0 = arith.constant 0 : i32
    %c0_i32_1 = arith.constant 0 : i32
    return %c0_i32, %c0_i32_0 : i32, i32
  }
  func.func @transform_3(%arg0: i32) -> (i32, i32) {
    %c0_i32 = arith.constant 0 : i32
    %c0_i32_0 = arith.constant 0 : i32
    %c0_i32_1 = arith.constant 0 : i32
    return %c0_i32, %c0_i32_0 : i32, i32
  }
  func.func @transform_4(%arg0: i32) -> (i32, i32) {
    %c0_i32 = arith.constant 0 : i32
    %c0_i32_0 = arith.constant 0 : i32
    return %arg0, %c0_i32 : i32, i32
  }
}

module attributes {stable_mosaic.version = 11 : i64} {
  func.func @_mm_affine_kernel(%arg0: i32, %arg1: memref<512x128xbf16, #tpu.memory_space<vmem>>, %arg2: memref<128x128xbf16, #tpu.memory_space<vmem>>, %arg3: memref<1x128xf32, #tpu.memory_space<vmem>>, %arg4: memref<1x128xf32, #tpu.memory_space<vmem>>, %arg5: memref<512x128xf32, #tpu.memory_space<vmem>>) attributes {dimension_semantics = [#tpu.dimension_semantics<parallel>], iteration_bounds = array<i64: 1>, scalar_prefetch = 0 : i64, scratch_operands = 0 : i64, tpu.core_type = #tpu.core_type<tc>, window_params = [{transform_indices = @transform_0, window_bounds = array<i64: 512, 128>}, {pipeline_mode = #tpu.pipeline_mode<synchronous>, transform_indices = @transform_1, window_bounds = array<i64: 128, 128>}, {pipeline_mode = #tpu.pipeline_mode<synchronous>, transform_indices = @transform_2, window_bounds = array<i64: 1, 128>}, {pipeline_mode = #tpu.pipeline_mode<synchronous>, transform_indices = @transform_3, window_bounds = array<i64: 1, 128>}, {transform_indices = @transform_4, window_bounds = array<i64: 512, 128>}]} {
    %c0 = arith.constant 0 : index
    %c0_0 = arith.constant 0 : index
    %0 = vector.load %arg1[%c0, %c0_0] : memref<512x128xbf16, #tpu.memory_space<vmem>>, vector<512x128xbf16>
    %c0_1 = arith.constant 0 : index
    %c0_2 = arith.constant 0 : index
    %1 = vector.load %arg2[%c0_1, %c0_2] : memref<128x128xbf16, #tpu.memory_space<vmem>>, vector<128x128xbf16>
    %cst = arith.constant dense<0.000000e+00> : vector<512x128xf32>
    %2 = tpu.matmul %0, %1, %cst {dimension_numbers = #tpu.dot_dimension_numbers<[1], [0], [0], [1], [0, 0, 1, 1], [], []>} : vector<512x128xbf16>, vector<128x128xbf16>, vector<512x128xf32> -> vector<512x128xf32>
    %c0_3 = arith.constant 0 : index
    %c0_4 = arith.constant 0 : index
    %3 = vector.load %arg3[%c0_3, %c0_4] : memref<1x128xf32, #tpu.memory_space<vmem>>, vector<1x128xf32>
    %4 = vector.broadcast %3 : vector<1x128xf32> to vector<512x128xf32>
    %5 = arith.mulf %2, %4 : vector<512x128xf32>
    %c0_5 = arith.constant 0 : index
    %c0_6 = arith.constant 0 : index
    %6 = vector.load %arg4[%c0_5, %c0_6] : memref<1x128xf32, #tpu.memory_space<vmem>>, vector<1x128xf32>
    %7 = vector.broadcast %6 : vector<1x128xf32> to vector<512x128xf32>
    %8 = arith.addf %5, %7 : vector<512x128xf32>
    %9 = math.tanh %8 : vector<512x128xf32>
    %c0_7 = arith.constant 0 : index
    %c0_8 = arith.constant 0 : index
    %10 = vector.load %arg5[%c0_7, %c0_8] : memref<512x128xf32, #tpu.memory_space<vmem>>, vector<512x128xf32>
    tpu.vector_store %arg5[%c0_7, %c0_8], %9 {strides = array<i32>} : memref<512x128xf32, #tpu.memory_space<vmem>>, vector<512x128xf32>,
    return
  }
  func.func @transform_0(%arg0: i32) -> (i32, i32) {
    %c0_i32 = arith.constant 0 : i32
    %c0_i32_0 = arith.constant 0 : i32
    return %arg0, %c0_i32 : i32, i32
  }
  func.func @transform_1(%arg0: i32) -> (i32, i32) {
    %c0_i32 = arith.constant 0 : i32
    %c0_i32_0 = arith.constant 0 : i32
    %c0_i32_1 = arith.constant 0 : i32
    return %c0_i32, %c0_i32_0 : i32, i32
  }
  func.func @transform_2(%arg0: i32) -> (i32, i32) {
    %c0_i32 = arith.constant 0 : i32
    %c0_i32_0 = arith.constant 0 : i32
    %c0_i32_1 = arith.constant 0 : i32
    return %c0_i32, %c0_i32_0 : i32, i32
  }
  func.func @transform_3(%arg0: i32) -> (i32, i32) {
    %c0_i32 = arith.constant 0 : i32
    %c0_i32_0 = arith.constant 0 : i32
    %c0_i32_1 = arith.constant 0 : i32
    return %c0_i32, %c0_i32_0 : i32, i32
  }
  func.func @transform_4(%arg0: i32) -> (i32, i32) {
    %c0_i32 = arith.constant 0 : i32
    %c0_i32_0 = arith.constant 0 : i32
    return %arg0, %c0_i32 : i32, i32
  }
}

</mosaic_0001>

<bundles_post_ra>
// kernel: vae_reset_forward.9
= control target key start
LH: loop header
LB: loop body
LE: loop exit
PB: predicated region body
PF: predicated region fallthrough
CT: control target
= control target key end

     0   :  { %s2073_s1 = inlined_call_operand.vmem [shape: bf16[128,128], index: 1, kind: input, shape index: {}]   ;;  %s2074_s0 = inlined_call_operand.vmem [shape: bf16[512,128], index: 0, kind: input, shape index: {}]   ;;  %s2075_s2 = inlined_call_operand.vmem [shape: f32[1,128], index: 2, kind: input, shape index: {}]   ;;  %s2076_s3 = inlined_call_operand.vmem [shape: f32[1,128], index: 3, kind: input, shape index: {}]   ;;  %s2077_s4 = inlined_call_operand.vmem [shape: bf16[512,128], index: 4, kind: output, shape index: {}]  }
   0x1   :  { %v1654_v0 = vld [vmem:[%s2073_s1] sm:$0xff]   ;;  %v1655_v1 = vld [vmem:[%s2073_s1 + $0x8] sm:$0xff]   ;;  %v1656_v2 = vld [vmem:[%s2073_s1 + $0x10] sm:$0xff]  }
   0x2   :  { %1558 = vmatprep.subr.bf16.mxu0 %v1654_v0  ;;  %1638 = vmatprep.subr.bf16.mxu1 %v1654_v0  ;;  %v1657_v3 = vld [vmem:[%s2073_s1 + $0x18] sm:$0xff]   ;;  %v1662_v4 = vld [vmem:[%s2074_s0] sm:$0xff]   ;;  %v1659_v7 = vld [vmem:[%s2073_s1 + $0x28] sm:$0xff]  }
   0x3   :  { %1559 = vmatpush3.bf16.msra.mxu0 %v1654_v0  ;;  %1646 = vmatpush3.bf16.msra.mxu1 %v1654_v0  ;;  %v1663_v5 = vld [vmem:[%s2074_s0 + $0x80] sm:$0xff]   ;;  %v1660_v8 = vld [vmem:[%s2073_s1 + $0x30] sm:$0xff]   ;;  %v1661_v9 = vld [vmem:[%s2073_s1 + $0x38] sm:$0xff]  }
   0x4   :  { %1560 = vmatprep.subr.bf16.mxu0 %v1655_v1  ;;  %1639 = vmatprep.subr.bf16.mxu1 %v1655_v1  ;;  %v1658_v6 = vld [vmem:[%s2073_s1 + $0x20] sm:$0xff]   ;;  %v1664_v10 = vld [vmem:[%s2074_s0 + $0x8] sm:$0xff]   ;;  %v1666_v12 = vld [vmem:[%s2074_s0 + $0x10] sm:$0xff]  }
   0x5   :  { %1574 = vmatprep.mubr.bf16.mxu0 %v1662_v4  ;;  %1606 = vmatprep.mubr.bf16.mxu1 %v1663_v5  ;;  %v1665_v11 = vld [vmem:[%s2074_s0 + $0x88] sm:$0xff]   ;;  %v1667_v13 = vld [vmem:[%s2074_s0 + $0x90] sm:$0xff]   ;;  %v1668_v14 = vld [vmem:[%s2074_s0 + $0x18] sm:$0xff]  }
   0x6   :  { %v1669_v15 = vld [vmem:[%s2074_s0 + $0x98] sm:$0xff]   ;;  %v1670_v16 = vld [vmem:[%s2074_s0 + $0x20] sm:$0xff]   ;;  %v1672_v18 = vld [vmem:[%s2074_s0 + $0x28] sm:$0xff]  }
   0x7   :  { %1561 = vmatpush3.bf16.msra.mxu0 %v1655_v1  ;;  %1647 = vmatpush3.bf16.msra.mxu1 %v1655_v1  ;;  %v1671_v17 = vld [vmem:[%s2074_s0 + $0xa0] sm:$0xff]   ;;  %v1673_v19 = vld [vmem:[%s2074_s0 + $0xa8] sm:$0xff]   ;;  %v1674_v20 = vld [vmem:[%s2074_s0 + $0x30] sm:$0xff]  }
   0x8   :  { %1562 = vmatprep.subr.bf16.mxu0 %v1656_v2  ;;  %1640 = vmatprep.subr.bf16.mxu1 %v1656_v2  ;;  %v1675_v21 = vld [vmem:[%s2074_s0 + $0xb0] sm:$0xff]   ;;  %v1676_v22 = vld [vmem:[%s2074_s0 + $0x38] sm:$0xff]   ;;  %v1678_v24 = vld [vmem:[%s2074_s0 + $0x40] sm:$0xff]  }
   0x9   :  { %v1677_v23 = vld [vmem:[%s2074_s0 + $0xb8] sm:$0xff]   ;;  %v1679_v25 = vld [vmem:[%s2074_s0 + $0xc0] sm:$0xff]   ;;  %v1680_v26 = vld [vmem:[%s2074_s0 + $0x48] sm:$0xff]  }
   0xa   :  { %v1681_v27 = vld [vmem:[%s2074_s0 + $0xc8] sm:$0xff]   ;;  %v1682_v28 = vld [vmem:[%s2074_s0 + $0x50] sm:$0xff]   ;;  %v1684_v30 = vld [vmem:[%s2074_s0 + $0x58] sm:$0xff]  }
   0xb   :  { %1563 = vmatpush3.bf16.msra.mxu0 %v1656_v2  ;;  %1648 = vmatpush3.bf16.msra.mxu1 %v1656_v2  ;;  %v1683_v29 = vld [vmem:[%s2074_s0 + $0xd0] sm:$0xff]   ;;  %v1685_v31 = vld [vmem:[%s2074_s0 + $0xd8] sm:$0xff]   ;;  %v1686_v32 = vld [vmem:[%s2074_s0 + $0x60] sm:$0xff]  }
   0xc   :  { %1564 = vmatprep.subr.bf16.mxu0 %v1657_v3  ;;  %1641 = vmatprep.subr.bf16.mxu1 %v1657_v3  ;;  %v1687_v33 = vld [vmem:[%s2074_s0 + $0xe0] sm:$0xff]   ;;  %v1688_v34 = vld [vmem:[%s2074_s0 + $0x68] sm:$0xff]   ;;  %v1690_v36 = vld [vmem:[%s2074_s0 + $0x70] sm:$0xff]  }
   0xd   :  { %v1689_v35 = vld [vmem:[%s2074_s0 + $0xe8] sm:$0xff]   ;;  %v1691_v37 = vld [vmem:[%s2074_s0 + $0xf0] sm:$0xff]   ;;  %v1692_v38 = vld [vmem:[%s2074_s0 + $0x78] sm:$0xff]  }
   0xe   :  { %v1693_v39 = vld [vmem:[%s2074_s0 + $0xf8] sm:$0xff]   ;;  %v1842_v40 = vld [vmem:[%s2075_s2] ss:$0 sm:$0xff] }
   0xf   :  { %1565 = vmatpush3.bf16.msra.mxu0 %v1657_v3  ;;  %1649 = vmatpush3.bf16.msra.mxu1 %v1657_v3  ;;  %v1847_v42 = vld [vmem:[%s2076_s3] ss:$0 sm:$0xff] }
  0x10   :  { %1566 = vmatprep.subr.bf16.mxu0 %v1658_v6  ;;  %1642 = vmatprep.subr.bf16.mxu1 %v1658_v6 }
  0x13   :  { %1567 = vmatpush3.bf16.msra.mxu0 %v1658_v6  ;;  %1650 = vmatpush3.bf16.msra.mxu1 %v1658_v6 }
  0x14   :  { %1568 = vmatprep.subr.bf16.mxu0 %v1659_v7  ;;  %1643 = vmatprep.subr.bf16.mxu1 %v1659_v7 }
  0x17   :  { %1569 = vmatpush3.bf16.msra.mxu0 %v1659_v7  ;;  %1651 = vmatpush3.bf16.msra.mxu1 %v1659_v7 }
  0x18   :  { %1570 = vmatprep.subr.bf16.mxu0 %v1660_v8  ;;  %1644 = vmatprep.subr.bf16.mxu1 %v1660_v8 }
  0x1b   :  { %1571 = vmatpush3.bf16.msra.mxu0 %v1660_v8  ;;  %1652 = vmatpush3.bf16.msra.mxu1 %v1660_v8 }
  0x1c   :  { %1572 = vmatprep.subr.bf16.mxu0 %v1661_v9  ;;  %1645 = vmatprep.subr.bf16.mxu1 %v1661_v9 }
  0x1f   :  { %1573 = vmatpush3.bf16.msra.mxu0 %v1661_v9  ;;  %1653 = vmatpush3.bf16.msra.mxu1 %v1661_v9 }
  0x22   :  { %1575 = vmatmul.mubr.bf16.vlgmr.msra.gmra.mrb[0].mxu0 %v1664_v10  ;;  %1607 = vmatmul.mubr.bf16.vlgmr.msra.gmra.mrb[0].mxu1 %v1665_v11 }
  0x23   :  { %1578 = vmatprep.mubr.bf16.mxu0 %v1666_v12  ;;  %1610 = vmatprep.mubr.bf16.mxu1 %v1667_v13 }
  0x2a   :  { %1579 = vmatmul.mubr.bf16.gmra.mrb[4].mxu0 %v1668_v14  ;;  %1611 = vmatmul.mubr.bf16.gmra.mrb[4].mxu1 %v1669_v15 }
  0x2b   :  { %1582 = vmatprep.mubr.bf16.mxu0 %v1670_v16  ;;  %1614 = vmatprep.mubr.bf16.mxu1 %v1671_v17 }
  0x32   :  { %1583 = vmatmul.mubr.bf16.gmra.mrb[8].mxu0 %v1672_v18  ;;  %1615 = vmatmul.mubr.bf16.gmra.mrb[8].mxu1 %v1673_v19 }
  0x33   :  { %1586 = vmatprep.mubr.bf16.mxu0 %v1674_v20  ;;  %1618 = vmatprep.mubr.bf16.mxu1 %v1675_v21 }
  0x3a   :  { %1587 = vmatmul.mubr.bf16.gmra.mrb[12].mxu0 %v1676_v22  ;;  %1619 = vmatmul.mubr.bf16.gmra.mrb[12].mxu1 %v1677_v23 }
  0x3b   :  { %1590 = vmatprep.mubr.bf16.mxu0 %v1678_v24  ;;  %1622 = vmatprep.mubr.bf16.mxu1 %v1679_v25 }
  0x42   :  { %1591 = vmatmul.mubr.bf16.gmra.mrb[16].mxu0 %v1680_v26  ;;  %1623 = vmatmul.mubr.bf16.gmra.mrb[16].mxu1 %v1681_v27 }
  0x43   :  { %1594 = vmatprep.mubr.bf16.mxu0 %v1682_v28  ;;  %1626 = vmatprep.mubr.bf16.mxu1 %v1683_v29 }
  0x4a   :  { %1595 = vmatmul.mubr.bf16.gmra.mrb[20].mxu0 %v1684_v30  ;;  %1627 = vmatmul.mubr.bf16.gmra.mrb[20].mxu1 %v1685_v31 }
  0x4b   :  { %1598 = vmatprep.mubr.bf16.mxu0 %v1686_v32  ;;  %1630 = vmatprep.mubr.bf16.mxu1 %v1687_v33 }
  0x52   :  { %1599 = vmatmul.mubr.bf16.gmra.mrb[24].mxu0 %v1688_v34  ;;  %1631 = vmatmul.mubr.bf16.gmra.mrb[24].mxu1 %v1689_v35 }
  0x53   :  { %1602 = vmatprep.mubr.bf16.mxu0 %v1690_v36  ;;  %1634 = vmatprep.mubr.bf16.mxu1 %v1691_v37 }
  0x5a   :  { %1603 = vmatmul.mubr.bf16.gmra.mrb[28].mxu0 %v1692_v38  ;;  %1635 = vmatmul.mubr.bf16.gmra.mrb[28].mxu1 %v1693_v39 }
  0xf5   :  { %v1576_v41 = vpop.f32.mrb[0].mxu0  ;;  %v1608_v43 = vpop.f32.mrb[0].mxu1 }
  0xf6   :  { %v636_v44 = vmul.f32 %v1576_v41, %v1842_v40  ;;  %v668_v45 = vmul.f32 %v1608_v43, %v1842_v40  ;;  %v372_v46 = vpop.f32.mrb[1].mxu0  ;;  %v500_v47 = vpop.f32.mrb[1].mxu1 }
  0xf7   :  { %v634_v48 = vmul.f32 %v1842_v40, %v372_v46  ;;  %v666_v49 = vmul.f32 %v1842_v40, %v500_v47  ;;  %v1577_v50 = vpop.f32.mrb[2].mxu0  ;;  %v1609_v51 = vpop.f32.mrb[2].mxu1 }
  0xf8   :  { %v707_v52 = vadd.f32 %v1847_v42, %v636_v44  ;;  %v739_v53 = vadd.f32 %v1847_v42, %v668_v45  ;;  %v637_v54 = vmul.f32 %v1577_v50, %v1842_v40  ;;  %v669_v55 = vmul.f32 %v1609_v51, %v1842_v40  ;;  %v375_v56 = vpop.f32.mrb[3].mxu0  ;;  %v503_v57 = vpop.f32.mrb[3].mxu1 }
  0xf9   :  { %v705_v58 = vadd.f32 %v1847_v42, %v634_v48  ;;  %v737_v59 = vadd.f32 %v1847_v42, %v666_v49  ;;  %v635_v60 = vmul.f32 %v1842_v40, %v375_v56  ;;  %v667_v61 = vmul.f32 %v1842_v40, %v503_v57 }
  0xfa   :  { %v708_v62 = vadd.f32 %v1847_v42, %v637_v54  ;;  %v740_v63 = vadd.f32 %v1847_v42, %v669_v55  ;;  %v771_v2 = vmax.f32 %v707_v52, 0.0  ;;  %v803_v3 = vmax.f32 %v739_v53, 0.0 }
  0xfb   :  { %v706_v0 = vadd.f32 %v1847_v42, %v635_v60  ;;  %v738_v1 = vadd.f32 %v1847_v42, %v667_v61  ;;  %v769_v6 = vmax.f32 %v705_v58, 0.0  ;;  %v801_v7 = vmax.f32 %v737_v59, 0.0 }
  0xfc   :  { %v772_v4 = vmax.f32 %v708_v62, 0.0  ;;  %v804_v5 = vmax.f32 %v740_v63, 0.0 }
  0xfd   :  { %v770_v8 = vmax.f32 %v706_v0, 0.0  ;;  %v802_v9 = vmax.f32 %v738_v1, 0.0  ;;  %v1580_v10 = vpop.f32.mrb[4].mxu0  ;;  %v1612_v11 = vpop.f32.mrb[4].mxu1 }
  0xfe   :  { %v1335_v12 = vpack.c.bf16 %v772_v4, %v771_v2  ;;  %v1415_v13 = vpack.c.bf16 %v804_v5, %v803_v3  ;;  %v640_v14 = vmul.f32 %v1580_v10, %v1842_v40  ;;  %v672_v15 = vmul.f32 %v1612_v11, %v1842_v40  ;;  %v388_v16 = vpop.f32.mrb[5].mxu0  ;;  %v516_v17 = vpop.f32.mrb[5].mxu1 }
  0xff   :  { %v1330_v18 = vpack.c.bf16 %v770_v8, %v769_v6  ;;  %v1410_v19 = vpack.c.bf16 %v802_v9, %v801_v7  ;;  %v638_v20 = vmul.f32 %v1842_v40, %v388_v16  ;;  %v670_v21 = vmul.f32 %v1842_v40, %v516_v17  ;;  %v1581_v22 = vpop.f32.mrb[6].mxu0  ;;  %v1613_v23 = vpop.f32.mrb[6].mxu1 }
 0x100   :  { %1487 = vst [vmem:[%s2077_s4 + $0x8] sm:$0xff] %v1335_v12   ;;  %1503 = vst [vmem:[%s2077_s4 + $0x88] sm:$0xff] %v1415_v13   ;;  %v711_v24 = vadd.f32 %v1847_v42, %v640_v14  ;;  %v743_v25 = vadd.f32 %v1847_v42, %v672_v15  ;;  %v641_v26 = vmul.f32 %v1581_v22, %v1842_v40  ;;  %v391_v28 = vpop.f32.mrb[7].mxu0  ;;  %v519_v29 = vpop.f32.mrb[7].mxu1 }
 0x101   :  { %v673_v27 = vmul.f32 %v1613_v23, %v1842_v40  ;;  %1331 = vst [vmem:[%s2077_s4] sm:$0xff] %v1330_v18   ;;  %1502 = vst [vmem:[%s2077_s4 + $0x80] sm:$0xff] %v1410_v19   ;;  %v709_v30 = vadd.f32 %v1847_v42, %v638_v20  ;;  %v741_v31 = vadd.f32 %v1847_v42, %v670_v21 }
 0x102   :  { %v639_v32 = vmul.f32 %v1842_v40, %v391_v28  ;;  %v671_v33 = vmul.f32 %v1842_v40, %v519_v29  ;;  %v712_v34 = vadd.f32 %v1847_v42, %v641_v26  ;;  %v775_v38 = vmax.f32 %v711_v24, 0.0 }
 0x103   :  { %v744_v35 = vadd.f32 %v1847_v42, %v673_v27  ;;  %v807_v39 = vmax.f32 %v743_v25, 0.0  ;;  %v773_v44 = vmax.f32 %v709_v30, 0.0  ;;  %v805_v45 = vmax.f32 %v741_v31, 0.0 }
 0x104   :  { %v710_v36 = vadd.f32 %v1847_v42, %v639_v32  ;;  %v742_v37 = vadd.f32 %v1847_v42, %v671_v33  ;;  %v776_v41 = vmax.f32 %v712_v34, 0.0 }
 0x105   :  { %v808_v43 = vmax.f32 %v744_v35, 0.0  ;;  %v1584_v48 = vpop.f32.mrb[8].mxu0  ;;  %v1616_v49 = vpop.f32.mrb[8].mxu1 }
 0x106   :  { %v774_v46 = vmax.f32 %v710_v36, 0.0  ;;  %v806_v47 = vmax.f32 %v742_v37, 0.0  ;;  %v1345_v50 = vpack.c.bf16 %v776_v41, %v775_v38  ;;  %v644_v52 = vmul.f32 %v1584_v48, %v1842_v40  ;;  %v404_v54 = vpop.f32.mrb[9].mxu0  ;;  %v532_v55 = vpop.f32.mrb[9].mxu1 }
 0x107   :  { %v1425_v51 = vpack.c.bf16 %v808_v43, %v807_v39  ;;  %v676_v53 = vmul.f32 %v1616_v49, %v1842_v40  ;;  %v642_v58 = vmul.f32 %v1842_v40, %v404_v54  ;;  %v674_v59 = vmul.f32 %v1842_v40, %v532_v55  ;;  %v1585_v60 = vpop.f32.mrb[10].mxu0  ;;  %v1617_v61 = vpop.f32.mrb[10].mxu1 }
 0x108   :  { %v1340_v56 = vpack.c.bf16 %v774_v46, %v773_v44  ;;  %v1420_v57 = vpack.c.bf16 %v806_v47, %v805_v45  ;;  %1489 = vst [vmem:[%s2077_s4 + $0x18] sm:$0xff] %v1345_v50   ;;  %v715_v62 = vadd.f32 %v1847_v42, %v644_v52  ;;  %v645_v0 = vmul.f32 %v1585_v60, %v1842_v40  ;;  %v407_v2 = vpop.f32.mrb[11].mxu0  ;;  %v535_v3 = vpop.f32.mrb[11].mxu1 }
 0x109   :  { %1505 = vst [vmem:[%s2077_s4 + $0x98] sm:$0xff] %v1425_v51   ;;  %v747_v63 = vadd.f32 %v1847_v42, %v676_v53  ;;  %v677_v1 = vmul.f32 %v1617_v61, %v1842_v40  ;;  %v713_v4 = vadd.f32 %v1847_v42, %v642_v58  ;;  %v745_v5 = vadd.f32 %v1847_v42, %v674_v59 }
 0x10a   :  { %1488 = vst [vmem:[%s2077_s4 + $0x10] sm:$0xff] %v1340_v56   ;;  %1504 = vst [vmem:[%s2077_s4 + $0x90] sm:$0xff] %v1420_v57   ;;  %v643_v6 = vmul.f32 %v1842_v40, %v407_v2  ;;  %v675_v7 = vmul.f32 %v1842_v40, %v535_v3  ;;  %v716_v8 = vadd.f32 %v1847_v42, %v645_v0  ;;  %v779_v12 = vmax.f32 %v715_v62, 0.0 }
 0x10b   :  { %v748_v9 = vadd.f32 %v1847_v42, %v677_v1  ;;  %v811_v13 = vmax.f32 %v747_v63, 0.0  ;;  %v777_v16 = vmax.f32 %v713_v4, 0.0  ;;  %v809_v17 = vmax.f32 %v745_v5, 0.0 }
 0x10c   :  { %v714_v10 = vadd.f32 %v1847_v42, %v643_v6  ;;  %v746_v11 = vadd.f32 %v1847_v42, %v675_v7  ;;  %v780_v14 = vmax.f32 %v716_v8, 0.0 }
 0x10d   :  { %v812_v15 = vmax.f32 %v748_v9, 0.0  ;;  %v1588_v20 = vpop.f32.mrb[12].mxu0  ;;  %v1620_v21 = vpop.f32.mrb[12].mxu1 }
 0x10e   :  { %v778_v18 = vmax.f32 %v714_v10, 0.0  ;;  %v810_v19 = vmax.f32 %v746_v11, 0.0  ;;  %v1355_v22 = vpack.c.bf16 %v780_v14, %v779_v12  ;;  %v648_v24 = vmul.f32 %v1588_v20, %v1842_v40  ;;  %v420_v26 = vpop.f32.mrb[13].mxu0  ;;  %v548_v27 = vpop.f32.mrb[13].mxu1 }
 0x10f   :  { %v1435_v23 = vpack.c.bf16 %v812_v15, %v811_v13  ;;  %v680_v25 = vmul.f32 %v1620_v21, %v1842_v40  ;;  %v646_v30 = vmul.f32 %v1842_v40, %v420_v26  ;;  %v678_v31 = vmul.f32 %v1842_v40, %v548_v27  ;;  %v1589_v32 = vpop.f32.mrb[14].mxu0  ;;  %v1621_v33 = vpop.f32.mrb[14].mxu1 }
 0x110   :  { %v1350_v28 = vpack.c.bf16 %v778_v18, %v777_v16  ;;  %v1430_v29 = vpack.c.bf16 %v810_v19, %v809_v17  ;;  %1491 = vst [vmem:[%s2077_s4 + $0x28] sm:$0xff] %v1355_v22   ;;  %v719_v34 = vadd.f32 %v1847_v42, %v648_v24  ;;  %v649_v36 = vmul.f32 %v1589_v32, %v1842_v40  ;;  %v423_v38 = vpop.f32.mrb[15].mxu0  ;;  %v551_v39 = vpop.f32.mrb[15].mxu1 }
 0x111   :  { %1507 = vst [vmem:[%s2077_s4 + $0xa8] sm:$0xff] %v1435_v23   ;;  %v751_v35 = vadd.f32 %v1847_v42, %v680_v25  ;;  %v681_v37 = vmul.f32 %v1621_v33, %v1842_v40  ;;  %v717_v41 = vadd.f32 %v1847_v42, %v646_v30  ;;  %v749_v43 = vadd.f32 %v1847_v42, %v678_v31 }
 0x112   :  { %1490 = vst [vmem:[%s2077_s4 + $0x20] sm:$0xff] %v1350_v28   ;;  %1506 = vst [vmem:[%s2077_s4 + $0xa0] sm:$0xff] %v1430_v29   ;;  %v647_v44 = vmul.f32 %v1842_v40, %v423_v38  ;;  %v679_v45 = vmul.f32 %v1842_v40, %v551_v39  ;;  %v720_v46 = vadd.f32 %v1847_v42, %v649_v36  ;;  %v783_v50 = vmax.f32 %v719_v34, 0.0 }
 0x113   :  { %v752_v47 = vadd.f32 %v1847_v42, %v681_v37  ;;  %v815_v51 = vmax.f32 %v751_v35, 0.0  ;;  %v781_v54 = vmax.f32 %v717_v41, 0.0  ;;  %v813_v55 = vmax.f32 %v749_v43, 0.0 }
 0x114   :  { %v718_v48 = vadd.f32 %v1847_v42, %v647_v44  ;;  %v750_v49 = vadd.f32 %v1847_v42, %v679_v45  ;;  %v784_v52 = vmax.f32 %v720_v46, 0.0 }
 0x115   :  { %v816_v53 = vmax.f32 %v752_v47, 0.0  ;;  %v1592_v58 = vpop.f32.mrb[16].mxu0  ;;  %v1624_v59 = vpop.f32.mrb[16].mxu1 }
 0x116   :  { %v782_v56 = vmax.f32 %v718_v48, 0.0  ;;  %v814_v57 = vmax.f32 %v750_v49, 0.0  ;;  %v1365_v60 = vpack.c.bf16 %v784_v52, %v783_v50  ;;  %v652_v62 = vmul.f32 %v1592_v58, %v1842_v40  ;;  %v436_v0 = vpop.f32.mrb[17].mxu0  ;;  %v564_v1 = vpop.f32.mrb[17].mxu1 }
 0x117   :  { %v1445_v61 = vpack.c.bf16 %v816_v53, %v815_v51  ;;  %v684_v63 = vmul.f32 %v1624_v59, %v1842_v40  ;;  %v650_v4 = vmul.f32 %v1842_v40, %v436_v0  ;;  %v682_v5 = vmul.f32 %v1842_v40, %v564_v1  ;;  %v1593_v6 = vpop.f32.mrb[18].mxu0  ;;  %v1625_v7 = vpop.f32.mrb[18].mxu1 }
 0x118   :  { %v1360_v2 = vpack.c.bf16 %v782_v56, %v781_v54  ;;  %v1440_v3 = vpack.c.bf16 %v814_v57, %v813_v55  ;;  %1493 = vst [vmem:[%s2077_s4 + $0x38] sm:$0xff] %v1365_v60   ;;  %v723_v8 = vadd.f32 %v1847_v42, %v652_v62  ;;  %v653_v10 = vmul.f32 %v1593_v6, %v1842_v40  ;;  %v439_v12 = vpop.f32.mrb[19].mxu0  ;;  %v567_v13 = vpop.f32.mrb[19].mxu1 }
 0x119   :  { %1509 = vst [vmem:[%s2077_s4 + $0xb8] sm:$0xff] %v1445_v61   ;;  %v755_v9 = vadd.f32 %v1847_v42, %v684_v63  ;;  %v685_v11 = vmul.f32 %v1625_v7, %v1842_v40  ;;  %v721_v14 = vadd.f32 %v1847_v42, %v650_v4  ;;  %v753_v15 = vadd.f32 %v1847_v42, %v682_v5 }
 0x11a   :  { %1492 = vst [vmem:[%s2077_s4 + $0x30] sm:$0xff] %v1360_v2   ;;  %1508 = vst [vmem:[%s2077_s4 + $0xb0] sm:$0xff] %v1440_v3   ;;  %v651_v16 = vmul.f32 %v1842_v40, %v439_v12  ;;  %v683_v17 = vmul.f32 %v1842_v40, %v567_v13  ;;  %v724_v18 = vadd.f32 %v1847_v42, %v653_v10  ;;  %v787_v22 = vmax.f32 %v723_v8, 0.0 }
 0x11b   :  { %v756_v19 = vadd.f32 %v1847_v42, %v685_v11  ;;  %v819_v23 = vmax.f32 %v755_v9, 0.0  ;;  %v785_v26 = vmax.f32 %v721_v14, 0.0  ;;  %v817_v27 = vmax.f32 %v753_v15, 0.0 }
 0x11c   :  { %v722_v20 = vadd.f32 %v1847_v42, %v651_v16  ;;  %v754_v21 = vadd.f32 %v1847_v42, %v683_v17  ;;  %v788_v24 = vmax.f32 %v724_v18, 0.0 }
 0x11d   :  { %v820_v25 = vmax.f32 %v756_v19, 0.0  ;;  %v1596_v30 = vpop.f32.mrb[20].mxu0  ;;  %v1628_v31 = vpop.f32.mrb[20].mxu1 }
 0x11e   :  { %v786_v28 = vmax.f32 %v722_v20, 0.0  ;;  %v818_v29 = vmax.f32 %v754_v21, 0.0  ;;  %v1375_v32 = vpack.c.bf16 %v788_v24, %v787_v22  ;;  %v656_v34 = vmul.f32 %v1596_v30, %v1842_v40  ;;  %v452_v36 = vpop.f32.mrb[21].mxu0  ;;  %v580_v37 = vpop.f32.mrb[21].mxu1 }
 0x11f   :  { %v1455_v33 = vpack.c.bf16 %v820_v25, %v819_v23  ;;  %v688_v35 = vmul.f32 %v1628_v31, %v1842_v40  ;;  %v654_v41 = vmul.f32 %v1842_v40, %v452_v36  ;;  %v686_v43 = vmul.f32 %v1842_v40, %v580_v37  ;;  %v1597_v44 = vpop.f32.mrb[22].mxu0  ;;  %v1629_v45 = vpop.f32.mrb[22].mxu1 }
 0x120   :  { %v1370_v38 = vpack.c.bf16 %v786_v28, %v785_v26  ;;  %v1450_v39 = vpack.c.bf16 %v818_v29, %v817_v27  ;;  %1495 = vst [vmem:[%s2077_s4 + $0x48] sm:$0xff] %v1375_v32   ;;  %v727_v46 = vadd.f32 %v1847_v42, %v656_v34  ;;  %v657_v48 = vmul.f32 %v1597_v44, %v1842_v40  ;;  %v455_v50 = vpop.f32.mrb[23].mxu0  ;;  %v583_v51 = vpop.f32.mrb[23].mxu1 }
 0x121   :  { %1511 = vst [vmem:[%s2077_s4 + $0xc8] sm:$0xff] %v1455_v33   ;;  %v759_v47 = vadd.f32 %v1847_v42, %v688_v35  ;;  %v689_v49 = vmul.f32 %v1629_v45, %v1842_v40  ;;  %v725_v52 = vadd.f32 %v1847_v42, %v654_v41  ;;  %v757_v53 = vadd.f32 %v1847_v42, %v686_v43 }
 0x122   :  { %1494 = vst [vmem:[%s2077_s4 + $0x40] sm:$0xff] %v1370_v38   ;;  %1510 = vst [vmem:[%s2077_s4 + $0xc0] sm:$0xff] %v1450_v39   ;;  %v655_v54 = vmul.f32 %v1842_v40, %v455_v50  ;;  %v687_v55 = vmul.f32 %v1842_v40, %v583_v51  ;;  %v728_v56 = vadd.f32 %v1847_v42, %v657_v48  ;;  %v791_v60 = vmax.f32 %v727_v46, 0.0 }
 0x123   :  { %v760_v57 = vadd.f32 %v1847_v42, %v689_v49  ;;  %v823_v61 = vmax.f32 %v759_v47, 0.0  ;;  %v789_v0 = vmax.f32 %v725_v52, 0.0  ;;  %v821_v1 = vmax.f32 %v757_v53, 0.0 }
 0x124   :  { %v726_v58 = vadd.f32 %v1847_v42, %v655_v54  ;;  %v758_v59 = vadd.f32 %v1847_v42, %v687_v55  ;;  %v792_v62 = vmax.f32 %v728_v56, 0.0 }
 0x125   :  { %v824_v63 = vmax.f32 %v760_v57, 0.0  ;;  %v1600_v4 = vpop.f32.mrb[24].mxu0  ;;  %v1632_v5 = vpop.f32.mrb[24].mxu1 }
 0x126   :  { %v790_v2 = vmax.f32 %v726_v58, 0.0  ;;  %v822_v3 = vmax.f32 %v758_v59, 0.0  ;;  %v1385_v6 = vpack.c.bf16 %v792_v62, %v791_v60  ;;  %v660_v8 = vmul.f32 %v1600_v4, %v1842_v40  ;;  %v468_v10 = vpop.f32.mrb[25].mxu0  ;;  %v596_v11 = vpop.f32.mrb[25].mxu1 }
 0x127   :  { %v1465_v7 = vpack.c.bf16 %v824_v63, %v823_v61  ;;  %v692_v9 = vmul.f32 %v1632_v5, %v1842_v40  ;;  %v658_v14 = vmul.f32 %v1842_v40, %v468_v10  ;;  %v690_v15 = vmul.f32 %v1842_v40, %v596_v11  ;;  %v1601_v16 = vpop.f32.mrb[26].mxu0  ;;  %v1633_v17 = vpop.f32.mrb[26].mxu1 }
 0x128   :  { %v1380_v12 = vpack.c.bf16 %v790_v2, %v789_v0  ;;  %v1460_v13 = vpack.c.bf16 %v822_v3, %v821_v1  ;;  %1497 = vst [vmem:[%s2077_s4 + $0x58] sm:$0xff] %v1385_v6   ;;  %v731_v18 = vadd.f32 %v1847_v42, %v660_v8  ;;  %v661_v20 = vmul.f32 %v1601_v16, %v1842_v40  ;;  %v471_v22 = vpop.f32.mrb[27].mxu0  ;;  %v599_v23 = vpop.f32.mrb[27].mxu1 }
 0x129   :  { %1513 = vst [vmem:[%s2077_s4 + $0xd8] sm:$0xff] %v1465_v7   ;;  %v763_v19 = vadd.f32 %v1847_v42, %v692_v9  ;;  %v693_v21 = vmul.f32 %v1633_v17, %v1842_v40  ;;  %v729_v24 = vadd.f32 %v1847_v42, %v658_v14  ;;  %v761_v25 = vadd.f32 %v1847_v42, %v690_v15 }
 0x12a   :  { %1496 = vst [vmem:[%s2077_s4 + $0x50] sm:$0xff] %v1380_v12   ;;  %1512 = vst [vmem:[%s2077_s4 + $0xd0] sm:$0xff] %v1460_v13   ;;  %v659_v26 = vmul.f32 %v1842_v40, %v471_v22  ;;  %v691_v27 = vmul.f32 %v1842_v40, %v599_v23  ;;  %v732_v28 = vadd.f32 %v1847_v42, %v661_v20  ;;  %v795_v32 = vmax.f32 %v731_v18, 0.0 }
 0x12b   :  { %v764_v29 = vadd.f32 %v1847_v42, %v693_v21  ;;  %v827_v33 = vmax.f32 %v763_v19, 0.0  ;;  %v793_v36 = vmax.f32 %v729_v24, 0.0  ;;  %v825_v37 = vmax.f32 %v761_v25, 0.0 }
 0x12c   :  { %v730_v30 = vadd.f32 %v1847_v42, %v659_v26  ;;  %v762_v31 = vadd.f32 %v1847_v42, %v691_v27  ;;  %v796_v34 = vmax.f32 %v732_v28, 0.0 }
 0x12d   :  { %v828_v35 = vmax.f32 %v764_v29, 0.0  ;;  %v1604_v41 = vpop.f32.mrb[28].mxu0  ;;  %v1636_v43 = vpop.f32.mrb[28].mxu1 }
 0x12e   :  { %v794_v38 = vmax.f32 %v730_v30, 0.0  ;;  %v826_v39 = vmax.f32 %v762_v31, 0.0  ;;  %v1395_v44 = vpack.c.bf16 %v796_v34, %v795_v32  ;;  %v664_v46 = vmul.f32 %v1604_v41, %v1842_v40  ;;  %v484_v48 = vpop.f32.mrb[29].mxu0  ;;  %v612_v49 = vpop.f32.mrb[29].mxu1 }
 0x12f   :  { %v1475_v45 = vpack.c.bf16 %v828_v35, %v827_v33  ;;  %v696_v47 = vmul.f32 %v1636_v43, %v1842_v40  ;;  %v662_v52 = vmul.f32 %v1842_v40, %v484_v48  ;;  %v694_v53 = vmul.f32 %v1842_v40, %v612_v49  ;;  %v1605_v54 = vpop.f32.mrb[30].mxu0  ;;  %v1637_v55 = vpop.f32.mrb[30].mxu1 }
 0x130   :  { %v1390_v50 = vpack.c.bf16 %v794_v38, %v793_v36  ;;  %v1470_v51 = vpack.c.bf16 %v826_v39, %v825_v37  ;;  %1499 = vst [vmem:[%s2077_s4 + $0x68] sm:$0xff] %v1395_v44   ;;  %v735_v56 = vadd.f32 %v1847_v42, %v664_v46  ;;  %v665_v58 = vmul.f32 %v1605_v54, %v1842_v40  ;;  %v487_v60 = vpop.f32.mrb[31].mxu0  ;;  %v615_v61 = vpop.f32.mrb[31].mxu1 }
 0x131   :  { %1515 = vst [vmem:[%s2077_s4 + $0xe8] sm:$0xff] %v1475_v45   ;;  %v767_v57 = vadd.f32 %v1847_v42, %v696_v47  ;;  %v697_v59 = vmul.f32 %v1637_v55, %v1842_v40  ;;  %v733_v62 = vadd.f32 %v1847_v42, %v662_v52  ;;  %v765_v63 = vadd.f32 %v1847_v42, %v694_v53 }
 0x132   :  { %1498 = vst [vmem:[%s2077_s4 + $0x60] sm:$0xff] %v1390_v50   ;;  %1514 = vst [vmem:[%s2077_s4 + $0xe0] sm:$0xff] %v1470_v51   ;;  %v663_v0 = vmul.f32 %v1842_v40, %v487_v60  ;;  %v695_v1 = vmul.f32 %v1842_v40, %v615_v61  ;;  %v736_v2 = vadd.f32 %v1847_v42, %v665_v58  ;;  %v799_v6 = vmax.f32 %v735_v56, 0.0 }
 0x133   :  { %v768_v3 = vadd.f32 %v1847_v42, %v697_v59  ;;  %v831_v7 = vmax.f32 %v767_v57, 0.0  ;;  %v797_v10 = vmax.f32 %v733_v62, 0.0  ;;  %v829_v11 = vmax.f32 %v765_v63, 0.0 }
 0x134   :  { %v734_v4 = vadd.f32 %v1847_v42, %v663_v0  ;;  %v766_v5 = vadd.f32 %v1847_v42, %v695_v1  ;;  %v800_v8 = vmax.f32 %v736_v2, 0.0 }
 0x135   :  { %v832_v9 = vmax.f32 %v768_v3, 0.0 }
 0x136   :  { %v798_v12 = vmax.f32 %v734_v4, 0.0  ;;  %v830_v13 = vmax.f32 %v766_v5, 0.0  ;;  %v1405_v14 = vpack.c.bf16 %v800_v8, %v799_v6 }
 0x137   :  { %v1485_v15 = vpack.c.bf16 %v832_v9, %v831_v7 }
 0x138   :  { %v1400_v16 = vpack.c.bf16 %v798_v12, %v797_v10  ;;  %v1480_v40 = vpack.c.bf16 %v830_v13, %v829_v11  ;;  %1501 = vst [vmem:[%s2077_s4 + $0x78] sm:$0xff] %v1405_v14  }
 0x139   :  { %1517 = vst [vmem:[%s2077_s4 + $0xf8] sm:$0xff] %v1485_v15  }
 0x13a   :  { %1500 = vst [vmem:[%s2077_s4 + $0x70] sm:$0xff] %v1400_v16   ;;  %1516 = vst [vmem:[%s2077_s4 + $0xf0] sm:$0xff] %v1480_v40  }

// kernel: vae_reset_forward.10
= control target key start
LH: loop header
LB: loop body
LE: loop exit
PB: predicated region body
PF: predicated region fallthrough
CT: control target
= control target key end

     0   :  { %s687_s1 = inlined_call_operand.vmem [shape: bf16[128,128], index: 1, kind: input, shape index: {}]   ;;  %s688_s0 = inlined_call_operand.vmem [shape: bf16[128,128], index: 0, kind: input, shape index: {}]   ;;  %s689_s2 = inlined_call_operand.vmem [shape: f32[1,128], index: 2, kind: input, shape index: {}]   ;;  %s690_s3 = inlined_call_operand.vmem [shape: f32[1,128], index: 3, kind: input, shape index: {}]   ;;  %s691_s4 = inlined_call_operand.vmem [shape: bf16[128,128], index: 4, kind: output, shape index: {}]  }
   0x1   :  { %v550_v0 = vld [vmem:[%s687_s1] sm:$0xff]   ;;  %v551_v1 = vld [vmem:[%s687_s1 + $0x8] sm:$0xff]   ;;  %v552_v2 = vld [vmem:[%s687_s1 + $0x10] sm:$0xff]  }
   0x2   :  { %502 = vmatprep.subr.bf16.mxu0 %v550_v0  ;;  %534 = vmatprep.subr.bf16.mxu1 %v550_v0  ;;  %v553_v3 = vld [vmem:[%s687_s1 + $0x18] sm:$0xff]   ;;  %v558_v4 = vld [vmem:[%s688_s0] sm:$0xff]   ;;  %v555_v7 = vld [vmem:[%s687_s1 + $0x28] sm:$0xff]  }
   0x3   :  { %503 = vmatpush3.bf16.msra.mxu0 %v550_v0  ;;  %542 = vmatpush3.bf16.msra.mxu1 %v550_v0  ;;  %v559_v5 = vld [vmem:[%s688_s0 + $0x20] sm:$0xff]   ;;  %v556_v8 = vld [vmem:[%s687_s1 + $0x30] sm:$0xff]   ;;  %v557_v9 = vld [vmem:[%s687_s1 + $0x38] sm:$0xff]  }
   0x4   :  { %504 = vmatprep.subr.bf16.mxu0 %v551_v1  ;;  %535 = vmatprep.subr.bf16.mxu1 %v551_v1  ;;  %v554_v6 = vld [vmem:[%s687_s1 + $0x20] sm:$0xff]   ;;  %v560_v10 = vld [vmem:[%s688_s0 + $0x8] sm:$0xff]   ;;  %v562_v12 = vld [vmem:[%s688_s0 + $0x10] sm:$0xff]  }
   0x5   :  { %518 = vmatprep.mubr.bf16.mxu0 %v558_v4  ;;  %526 = vmatprep.mubr.bf16.mxu1 %v559_v5  ;;  %v561_v11 = vld [vmem:[%s688_s0 + $0x28] sm:$0xff]   ;;  %v563_v13 = vld [vmem:[%s688_s0 + $0x30] sm:$0xff]   ;;  %v564_v14 = vld [vmem:[%s688_s0 + $0x18] sm:$0xff]  }
   0x6   :  { %v565_v15 = vld [vmem:[%s688_s0 + $0x38] sm:$0xff]   ;;  %v405_v16 = vld [vmem:[%s689_s2] ss:$0 sm:$0xff] }
   0x7   :  { %505 = vmatpush3.bf16.msra.mxu0 %v551_v1  ;;  %543 = vmatpush3.bf16.msra.mxu1 %v551_v1  ;;  %v645_v18 = vld [vmem:[%s690_s3] ss:$0 sm:$0xff] }
   0x8   :  { %506 = vmatprep.subr.bf16.mxu0 %v552_v2  ;;  %536 = vmatprep.subr.bf16.mxu1 %v552_v2 }
   0xb   :  { %507 = vmatpush3.bf16.msra.mxu0 %v552_v2  ;;  %544 = vmatpush3.bf16.msra.mxu1 %v552_v2 }
   0xc   :  { %508 = vmatprep.subr.bf16.mxu0 %v553_v3  ;;  %537 = vmatprep.subr.bf16.mxu1 %v553_v3 }
   0xf   :  { %509 = vmatpush3.bf16.msra.mxu0 %v553_v3  ;;  %545 = vmatpush3.bf16.msra.mxu1 %v553_v3 }
  0x10   :  { %510 = vmatprep.subr.bf16.mxu0 %v554_v6  ;;  %538 = vmatprep.subr.bf16.mxu1 %v554_v6 }
  0x13   :  { %511 = vmatpush3.bf16.msra.mxu0 %v554_v6  ;;  %546 = vmatpush3.bf16.msra.mxu1 %v554_v6 }
  0x14   :  { %512 = vmatprep.subr.bf16.mxu0 %v555_v7  ;;  %539 = vmatprep.subr.bf16.mxu1 %v555_v7 }
  0x17   :  { %513 = vmatpush3.bf16.msra.mxu0 %v555_v7  ;;  %547 = vmatpush3.bf16.msra.mxu1 %v555_v7 }
  0x18   :  { %514 = vmatprep.subr.bf16.mxu0 %v556_v8  ;;  %540 = vmatprep.subr.bf16.mxu1 %v556_v8 }
  0x1b   :  { %515 = vmatpush3.bf16.msra.mxu0 %v556_v8  ;;  %548 = vmatpush3.bf16.msra.mxu1 %v556_v8 }
  0x1c   :  { %516 = vmatprep.subr.bf16.mxu0 %v557_v9  ;;  %541 = vmatprep.subr.bf16.mxu1 %v557_v9 }
  0x1f   :  { %517 = vmatpush3.bf16.msra.mxu0 %v557_v9  ;;  %549 = vmatpush3.bf16.msra.mxu1 %v557_v9 }
  0x22   :  { %519 = vmatmul.mubr.bf16.vlgmr.msra.gmra.mrb[0].mxu0 %v560_v10  ;;  %527 = vmatmul.mubr.bf16.vlgmr.msra.gmra.mrb[0].mxu1 %v561_v11 }
  0x23   :  { %522 = vmatprep.mubr.bf16.mxu0 %v562_v12  ;;  %530 = vmatprep.mubr.bf16.mxu1 %v563_v13 }
  0x2a   :  { %523 = vmatmul.mubr.bf16.gmra.mrb[4].mxu0 %v564_v14  ;;  %531 = vmatmul.mubr.bf16.gmra.mrb[4].mxu1 %v565_v15 }
  0xf5   :  { %v520_v17 = vpop.f32.mrb[0].mxu0  ;;  %v528_v19 = vpop.f32.mrb[0].mxu1 }
  0xf6   :  { %v252_v20 = vmul.f32 %v520_v17, %v405_v16  ;;  %v260_v21 = vmul.f32 %v528_v19, %v405_v16  ;;  %v180_v22 = vpop.f32.mrb[1].mxu0  ;;  %v212_v23 = vpop.f32.mrb[1].mxu1 }
  0xf7   :  { %v250_v24 = vmul.f32 %v405_v16, %v180_v22  ;;  %v258_v25 = vmul.f32 %v405_v16, %v212_v23  ;;  %v521_v26 = vpop.f32.mrb[2].mxu0  ;;  %v529_v27 = vpop.f32.mrb[2].mxu1 }
  0xf8   :  { %v275_v28 = vadd.f32 %v645_v18, %v252_v20  ;;  %v283_v29 = vadd.f32 %v645_v18, %v260_v21  ;;  %v253_v30 = vmul.f32 %v521_v26, %v405_v16  ;;  %v261_v31 = vmul.f32 %v529_v27, %v405_v16  ;;  %v183_v32 = vpop.f32.mrb[3].mxu0  ;;  %v215_v33 = vpop.f32.mrb[3].mxu1 }
  0xf9   :  { %v273_v34 = vadd.f32 %v645_v18, %v250_v24  ;;  %v281_v35 = vadd.f32 %v645_v18, %v258_v25  ;;  %v251_v36 = vmul.f32 %v405_v16, %v183_v32  ;;  %v259_v37 = vmul.f32 %v405_v16, %v215_v33 }
  0xfa   :  { %v276_v38 = vadd.f32 %v645_v18, %v253_v30  ;;  %v284_v39 = vadd.f32 %v645_v18, %v261_v31  ;;  %v291_v42 = vmax.f32 %v275_v28, 0.0  ;;  %v299_v43 = vmax.f32 %v283_v29, 0.0 }
  0xfb   :  { %v274_v40 = vadd.f32 %v645_v18, %v251_v36  ;;  %v282_v41 = vadd.f32 %v645_v18, %v259_v37  ;;  %v289_v46 = vmax.f32 %v273_v34, 0.0  ;;  %v297_v47 = vmax.f32 %v281_v35, 0.0 }
  0xfc   :  { %v292_v44 = vmax.f32 %v276_v38, 0.0  ;;  %v300_v45 = vmax.f32 %v284_v39, 0.0 }
  0xfd   :  { %v290_v48 = vmax.f32 %v274_v40, 0.0  ;;  %v298_v49 = vmax.f32 %v282_v41, 0.0  ;;  %v524_v50 = vpop.f32.mrb[4].mxu0  ;;  %v532_v51 = vpop.f32.mrb[4].mxu1 }
  0xfe   :  { %v447_v52 = vpack.c.bf16 %v292_v44, %v291_v42  ;;  %v467_v53 = vpack.c.bf16 %v300_v45, %v299_v43  ;;  %v256_v54 = vmul.f32 %v524_v50, %v405_v16  ;;  %v264_v55 = vmul.f32 %v532_v51, %v405_v16  ;;  %v196_v56 = vpop.f32.mrb[5].mxu0  ;;  %v228_v57 = vpop.f32.mrb[5].mxu1 }
  0xff   :  { %v442_v58 = vpack.c.bf16 %v290_v48, %v289_v46  ;;  %v462_v59 = vpack.c.bf16 %v298_v49, %v297_v47  ;;  %v254_v60 = vmul.f32 %v405_v16, %v196_v56  ;;  %v262_v61 = vmul.f32 %v405_v16, %v228_v57  ;;  %v525_v62 = vpop.f32.mrb[6].mxu0  ;;  %v533_v63 = vpop.f32.mrb[6].mxu1 }
 0x100   :  { %479 = vst [vmem:[%s691_s4 + $0x8] sm:$0xff] %v447_v52   ;;  %483 = vst [vmem:[%s691_s4 + $0x28] sm:$0xff] %v467_v53   ;;  %v279_v0 = vadd.f32 %v645_v18, %v256_v54  ;;  %v287_v1 = vadd.f32 %v645_v18, %v264_v55  ;;  %v257_v2 = vmul.f32 %v525_v62, %v405_v16  ;;  %v199_v4 = vpop.f32.mrb[7].mxu0  ;;  %v231_v5 = vpop.f32.mrb[7].mxu1 }
 0x101   :  { %v265_v3 = vmul.f32 %v533_v63, %v405_v16  ;;  %443 = vst [vmem:[%s691_s4] sm:$0xff] %v442_v58   ;;  %482 = vst [vmem:[%s691_s4 + $0x20] sm:$0xff] %v462_v59   ;;  %v277_v6 = vadd.f32 %v645_v18, %v254_v60  ;;  %v285_v7 = vadd.f32 %v645_v18, %v262_v61 }
 0x102   :  { %v255_v8 = vmul.f32 %v405_v16, %v199_v4  ;;  %v263_v9 = vmul.f32 %v405_v16, %v231_v5  ;;  %v280_v10 = vadd.f32 %v645_v18, %v257_v2  ;;  %v295_v14 = vmax.f32 %v279_v0, 0.0 }
 0x103   :  { %v288_v11 = vadd.f32 %v645_v18, %v265_v3  ;;  %v303_v15 = vmax.f32 %v287_v1, 0.0  ;;  %v293_v20 = vmax.f32 %v277_v6, 0.0  ;;  %v301_v21 = vmax.f32 %v285_v7, 0.0 }
 0x104   :  { %v278_v12 = vadd.f32 %v645_v18, %v255_v8  ;;  %v286_v13 = vadd.f32 %v645_v18, %v263_v9  ;;  %v296_v17 = vmax.f32 %v280_v10, 0.0 }
 0x105   :  { %v304_v19 = vmax.f32 %v288_v11, 0.0 }
 0x106   :  { %v294_v22 = vmax.f32 %v278_v12, 0.0  ;;  %v302_v23 = vmax.f32 %v286_v13, 0.0  ;;  %v457_v24 = vpack.c.bf16 %v296_v17, %v295_v14 }
 0x107   :  { %v477_v25 = vpack.c.bf16 %v304_v19, %v303_v15 }
 0x108   :  { %v452_v26 = vpack.c.bf16 %v294_v22, %v293_v20  ;;  %v472_v16 = vpack.c.bf16 %v302_v23, %v301_v21  ;;  %481 = vst [vmem:[%s691_s4 + $0x18] sm:$0xff] %v457_v24  }
 0x109   :  { %485 = vst [vmem:[%s691_s4 + $0x38] sm:$0xff] %v477_v25  }
 0x10a   :  { %480 = vst [vmem:[%s691_s4 + $0x10] sm:$0xff] %v452_v26   ;;  %484 = vst [vmem:[%s691_s4 + $0x30] sm:$0xff] %v472_v16  }

// kernel: vae_reset_forward.11
= control target key start
LH: loop header
LB: loop body
LE: loop exit
PB: predicated region body
PF: predicated region fallthrough
CT: control target
= control target key end

     0   :  { %v1075_v13 = vmov 0   ;;  %s1389_s2 = inlined_call_operand.vmem [shape: bf16[256,128], index: 2, kind: input, shape index: {}]   ;;  %s1390_s0 = inlined_call_operand.vmem [shape: bf16[128,256], index: 0, kind: input, shape index: {}]   ;;  %s1391_s5 = inlined_call_operand.vmem [shape: bf16[128,128], index: 5, kind: input, shape index: {}]   ;;  %s1392_s3 = inlined_call_operand.vmem [shape: f32[1,128], index: 3, kind: input, shape index: {}]   ;;  %s1393_s4 = inlined_call_operand.vmem [shape: f32[1,128], index: 4, kind: input, shape index: {}]   ;;  %s1394_s1 = inlined_call_operand.vmem [shape: bf16[128,128], index: 1, kind: input, shape index: {}]   ;;  %s1395_s6 = inlined_call_operand.vmem [shape: f32[1,128], index: 6, kind: input, shape index: {}]   ;;  %s1396_s7 = inlined_call_operand.vmem [shape: f32[1,128], index: 7, kind: input, shape index: {}]   ;;  %s1397_s8 = inlined_call_operand.vmem [shape: bf16[128,128], index: 8, kind: output, shape index: {}]  }
   0x1   :  { %v1051_v0 = vld [vmem:[%s1389_s2 + $0x40] sm:$0xff]   ;;  %v1053_v2 = vld [vmem:[%s1389_s2 + $0x48] sm:$0xff]   ;;  %v1055_v4 = vld [vmem:[%s1389_s2 + $0x50] sm:$0xff]  }
   0x2   :  { %v1052_v1 = vld [vmem:[%s1389_s2] sm:$0xff]   ;;  %938 = vmatprep.subr.bf16.mxu0 %v1051_v0  ;;  %v1054_v3 = vld [vmem:[%s1389_s2 + $0x8] sm:$0xff]   ;;  %v1056_v5 = vld [vmem:[%s1389_s2 + $0x10] sm:$0xff]  }
   0x3   :  { %939 = vmatpush3.bf16.msra.mxu0 %v1052_v1  ;;  %v1057_v6 = vld [vmem:[%s1389_s2 + $0x58] sm:$0xff]   ;;  %v1059_v8 = vld [vmem:[%s1389_s2 + $0x60] sm:$0xff]   ;;  %v1061_v10 = vld [vmem:[%s1389_s2 + $0x68] sm:$0xff]  }
   0x4   :  { %940 = vmatprep.subr.bf16.mxu0 %v1053_v2  ;;  %v1058_v7 = vld [vmem:[%s1389_s2 + $0x18] sm:$0xff]   ;;  %v1060_v9 = vld [vmem:[%s1389_s2 + $0x20] sm:$0xff]   ;;  %v31_v12 = vld [vmem:[%s1390_s0 + $0x8] sm:$0xff] }
   0x5   :  { %v30_v11 = vld [vmem:[%s1390_s0] sm:$0xff]  ;;  %v47_v15 = vmax.bf16 %v1075_v13, %v31_v12  ;;  %v1062_v16 = vld [vmem:[%s1389_s2 + $0x28] sm:$0xff]   ;;  %v1063_v18 = vld [vmem:[%s1389_s2 + $0x70] sm:$0xff]  }
   0x6   :  { %v46_v14 = vmax.bf16 %v1075_v13, %v30_v11  ;;  %v1064_v19 = vld [vmem:[%s1389_s2 + $0x30] sm:$0xff]   ;;  %v1065_v20 = vld [vmem:[%s1389_s2 + $0x78] sm:$0xff]   ;;  %v1067_v22 = vld [vmem:[%s1391_s5] sm:$0xff]  }
   0x7   :  { %941 = vmatpush3.bf16.msra.mxu0 %v1054_v3  ;;  %v32_v21 = vld [vmem:[%s1390_s0 + $0x10] sm:$0xff]  ;;  %v1068_v23 = vld [vmem:[%s1391_s5 + $0x8] sm:$0xff]   ;;  %v33_v24 = vld [vmem:[%s1390_s0 + $0x18] sm:$0xff]  ;;  %1018 = vmatprep.subr.bf16.mxu1 %v1067_v22 }
   0x8   :  { %942 = vmatprep.subr.bf16.mxu0 %v1055_v4  ;;  %v777_v17 = vcombine.high %v46_v14, %v47_v15  ;;  %v1066_v25 = vld [vmem:[%s1389_s2 + $0x38] sm:$0xff]   ;;  %1019 = vmatpush3.bf16.msra.mxu1 %v1067_v22  ;;  %v48_v26 = vmax.bf16 %v1075_v13, %v32_v21  ;;  %v49_v27 = vmax.bf16 %v1075_v13, %v33_v24  ;;  %v1069_v28 = vld [vmem:[%s1391_s5 + $0x10] sm:$0xff]   ;;  %v34_v31 = vld [vmem:[%s1390_s0 + $0x20] sm:$0xff] }
   0x9   :  { %1020 = vmatprep.subr.bf16.mxu1 %v1068_v23  ;;  %v776_v29 = vcombine.low %v46_v14, %v47_v15  ;;  %v35_v32 = vld [vmem:[%s1390_s0 + $0x28] sm:$0xff]  ;;  %v50_v33 = vmax.bf16 %v1075_v13, %v34_v31  ;;  %v36_v37 = vld [vmem:[%s1390_s0 + $0x30] sm:$0xff]  ;;  %v37_v38 = vld [vmem:[%s1390_s0 + $0x38] sm:$0xff] }
   0xa   :  { %302 = vmatprep.mubr.bf16.mxu0 %v777_v17  ;;  %v779_v30 = vcombine.high %v48_v26, %v49_v27  ;;  %v51_v34 = vmax.bf16 %v1075_v13, %v35_v32  ;;  %v778_v35 = vcombine.low %v48_v26, %v49_v27  ;;  %v52_v39 = vmax.bf16 %v1075_v13, %v36_v37  ;;  %v38_v43 = vld [vmem:[%s1390_s0 + $0x40] sm:$0xff]  ;;  %v39_v44 = vld [vmem:[%s1390_s0 + $0x48] sm:$0xff]  ;;  %v40_v49 = vld [vmem:[%s1390_s0 + $0x50] sm:$0xff] }
   0xb   :  { %943 = vmatpush3.bf16.msra.mxu0 %v1056_v5  ;;  %v53_v40 = vmax.bf16 %v1075_v13, %v37_v38  ;;  %v54_v45 = vmax.bf16 %v1075_v13, %v38_v43  ;;  %v55_v46 = vmax.bf16 %v1075_v13, %v39_v44  ;;  %v41_v50 = vld [vmem:[%s1390_s0 + $0x58] sm:$0xff]  ;;  %v56_v51 = vmax.bf16 %v1075_v13, %v40_v49  ;;  %v42_v55 = vld [vmem:[%s1390_s0 + $0x60] sm:$0xff]  ;;  %v43_v56 = vld [vmem:[%s1390_s0 + $0x68] sm:$0xff] }
   0xc   :  { %944 = vmatprep.subr.bf16.mxu0 %v1057_v6  ;;  %1021 = vmatpush3.bf16.msra.mxu1 %v1068_v23  ;;  %v781_v36 = vcombine.high %v50_v33, %v51_v34  ;;  %v780_v41 = vcombine.low %v50_v33, %v51_v34  ;;  %v57_v52 = vmax.bf16 %v1075_v13, %v41_v50  ;;  %v44_v61 = vld [vmem:[%s1390_s0 + $0x70] sm:$0xff]  ;;  %v45_v62 = vld [vmem:[%s1390_s0 + $0x78] sm:$0xff]  ;;  %v1071_v5 = vld [vmem:[%s1391_s5 + $0x20] sm:$0xff]  }
   0xd   :  { %1022 = vmatprep.subr.bf16.mxu1 %v1069_v28  ;;  %v783_v42 = vcombine.high %v52_v39, %v53_v40  ;;  %v782_v47 = vcombine.low %v52_v39, %v53_v40  ;;  %v785_v48 = vcombine.high %v54_v45, %v55_v46  ;;  %v784_v53 = vcombine.low %v54_v45, %v55_v46  ;;  %v1070_v4 = vld [vmem:[%s1391_s5 + $0x18] sm:$0xff]   ;;  %v1072_v6 = vld [vmem:[%s1391_s5 + $0x28] sm:$0xff]   ;;  %v1260_v11 = vld [vmem:[%s1392_s3] ss:$0 sm:$0xff] }
   0xe   :  { %v787_v54 = vcombine.high %v56_v51, %v57_v52  ;;  %v58_v57 = vmax.bf16 %v1075_v13, %v42_v55  ;;  %v59_v58 = vmax.bf16 %v1075_v13, %v43_v56  ;;  %v786_v59 = vcombine.low %v56_v51, %v57_v52  ;;  %v1265_v15 = vld [vmem:[%s1393_s4] ss:$0 sm:$0xff] }
   0xf   :  { %945 = vmatpush3.bf16.msra.mxu0 %v1058_v7  ;;  %v60_v63 = vmax.bf16 %v1075_v13, %v44_v61  ;;  %v61_v0 = vmax.bf16 %v1075_v13, %v45_v62  ;;  %v1073_v7 = vld [vmem:[%s1391_s5 + $0x30] sm:$0xff]  }
  0x10   :  { %946 = vmatprep.subr.bf16.mxu0 %v1059_v8  ;;  %1023 = vmatpush3.bf16.msra.mxu1 %v1069_v28  ;;  %v789_v60 = vcombine.high %v58_v57, %v59_v58  ;;  %v788_v1 = vcombine.low %v58_v57, %v59_v58  ;;  %v1074_v8 = vld [vmem:[%s1391_s5 + $0x38] sm:$0xff]  }
  0x11   :  { %v791_v2 = vcombine.high %v60_v63, %v61_v0  ;;  %v790_v3 = vcombine.low %v60_v63, %v61_v0  ;;  %1024 = vmatprep.subr.bf16.mxu1 %v1070_v4 }
  0x13   :  { %947 = vmatpush3.bf16.msra.mxu0 %v1060_v9 }
  0x14   :  { %948 = vmatprep.subr.bf16.mxu0 %v1061_v10  ;;  %1025 = vmatpush3.bf16.msra.mxu1 %v1070_v4 }
  0x15   :  { %1026 = vmatprep.subr.bf16.mxu1 %v1071_v5 }
  0x17   :  { %949 = vmatpush3.bf16.msra.mxu0 %v1062_v16 }
  0x18   :  { %950 = vmatprep.subr.bf16.mxu0 %v1063_v18  ;;  %1027 = vmatpush3.bf16.msra.mxu1 %v1071_v5 }
  0x19   :  { %1028 = vmatprep.subr.bf16.mxu1 %v1072_v6 }
  0x1b   :  { %951 = vmatpush3.bf16.msra.mxu0 %v1064_v19 }
  0x1c   :  { %952 = vmatprep.subr.bf16.mxu0 %v1065_v20  ;;  %1029 = vmatpush3.bf16.msra.mxu1 %v1072_v6 }
  0x1d   :  { %1030 = vmatprep.subr.bf16.mxu1 %v1073_v7 }
  0x1f   :  { %953 = vmatpush3.bf16.msra.mxu0 %v1066_v25 }
  0x20   :  { %1031 = vmatpush3.bf16.msra.mxu1 %v1073_v7 }
  0x21   :  { %1032 = vmatprep.subr.bf16.mxu1 %v1074_v8 }
  0x22   :  { %303 = vmatmul.mubr.bf16.vlgmr.msra.gmra.mrb[0].mxu0 %v776_v29 }
  0x23   :  { %310 = vmatprep.mubr.bf16.mxu0 %v779_v30 }
  0x24   :  { %1033 = vmatpush3.bf16.msra.mxu1 %v1074_v8 }
  0x2a   :  { %311 = vmatmul.mubr.bf16.gmra.mrb[4].mxu0 %v778_v35 }
  0x2b   :  { %318 = vmatprep.mubr.bf16.mxu0 %v781_v36 }
  0x32   :  { %319 = vmatmul.mubr.bf16.gmra.mrb[8].mxu0 %v780_v41 }
  0x33   :  { %326 = vmatprep.mubr.bf16.mxu0 %v783_v42 }
  0x3a   :  { %327 = vmatmul.mubr.bf16.gmra.mrb[12].mxu0 %v782_v47 }
  0x3b   :  { %334 = vmatprep.mubr.bf16.mxu0 %v785_v48 }
  0x42   :  { %335 = vmatmul.mubr.bf16.gmra.mrb[16].mxu0 %v784_v53 }
  0x43   :  { %342 = vmatprep.mubr.bf16.mxu0 %v787_v54 }
  0x4a   :  { %343 = vmatmul.mubr.bf16.gmra.mrb[20].mxu0 %v786_v59 }
  0x4b   :  { %350 = vmatprep.mubr.bf16.mxu0 %v789_v60 }
  0x52   :  { %351 = vmatmul.mubr.bf16.gmra.mrb[24].mxu0 %v788_v1 }
  0x53   :  { %358 = vmatprep.mubr.bf16.mxu0 %v791_v2 }
  0x5a   :  { %359 = vmatmul.mubr.bf16.gmra.mrb[28].mxu0 %v790_v3 }
  0xf5   :  { %v954_v9 = vpop.f32.mrb[0].mxu0 }
  0xf6   :  { %v955_v10 = vpop.f32.mrb[1].mxu0 }
  0xf7   :  { %v956_v12 = vadd.f32 %v955_v10, %v954_v9  ;;  %v957_v13 = vpop.f32.mrb[2].mxu0 }
  0xf8   :  { %v958_v14 = vpop.f32.mrb[3].mxu0 }
  0xf9   :  { %v374_v16 = vmul.f32 %v956_v12, %v1260_v11  ;;  %v959_v17 = vadd.f32 %v958_v14, %v957_v13 }
  0xfb   :  { %v375_v18 = vmul.f32 %v959_v17, %v1260_v11  ;;  %v397_v19 = vadd.f32 %v1265_v15, %v374_v16 }
  0xfd   :  { %v960_v20 = vpop.f32.mrb[4].mxu0  ;;  %v398_v21 = vadd.f32 %v1265_v15, %v375_v18  ;;  %v413_v25 = vmax.f32 %v397_v19, 0.0 }
  0xfe   :  { %v961_v22 = vpop.f32.mrb[5].mxu0 }
  0xff   :  { %v962_v23 = vadd.f32 %v961_v22, %v960_v20  ;;  %v963_v24 = vpop.f32.mrb[6].mxu0  ;;  %v414_v26 = vmax.f32 %v398_v21, 0.0 }
 0x100   :  { %v964_v27 = vpop.f32.mrb[7].mxu0 }
 0x101   :  { %v376_v28 = vmul.f32 %v962_v23, %v1260_v11  ;;  %v965_v29 = vadd.f32 %v964_v27, %v963_v24  ;;  %v429_v30 = vpack.c.bf16 %v414_v26, %v413_v25 }
 0x103   :  { %v399_v31 = vadd.f32 %v1265_v15, %v376_v28  ;;  %v377_v32 = vmul.f32 %v965_v29, %v1260_v11  ;;  %1034 = vmatprep.mubr.bf16.mxu1 %v429_v30 }
 0x105   :  { %v400_v33 = vadd.f32 %v1265_v15, %v377_v32  ;;  %v966_v34 = vpop.f32.mrb[8].mxu0  ;;  %v415_v36 = vmax.f32 %v399_v31, 0.0 }
 0x106   :  { %v967_v35 = vpop.f32.mrb[9].mxu0 }
 0x107   :  { %v416_v37 = vmax.f32 %v400_v33, 0.0  ;;  %v968_v38 = vadd.f32 %v967_v35, %v966_v34  ;;  %v969_v39 = vpop.f32.mrb[10].mxu0 }
 0x108   :  { %v970_v40 = vpop.f32.mrb[11].mxu0 }
 0x109   :  { %v378_v41 = vmul.f32 %v968_v38, %v1260_v11  ;;  %v971_v42 = vadd.f32 %v970_v40, %v969_v39  ;;  %v430_v43 = vpack.c.bf16 %v416_v37, %v415_v36 }
 0x10b   :  { %v401_v44 = vadd.f32 %v1265_v15, %v378_v41  ;;  %v379_v45 = vmul.f32 %v971_v42, %v1260_v11  ;;  %1035 = vmatmul.mubr.bf16.vlgmr.msra.gmra.mrb[0].mxu1 %v430_v43 }
 0x10d   :  { %v402_v46 = vadd.f32 %v1265_v15, %v379_v45  ;;  %v972_v47 = vpop.f32.mrb[12].mxu0  ;;  %v417_v49 = vmax.f32 %v401_v44, 0.0 }
 0x10e   :  { %v973_v48 = vpop.f32.mrb[13].mxu0 }
 0x10f   :  { %v418_v50 = vmax.f32 %v402_v46, 0.0  ;;  %v974_v51 = vadd.f32 %v973_v48, %v972_v47  ;;  %v975_v52 = vpop.f32.mrb[14].mxu0 }
 0x110   :  { %v976_v53 = vpop.f32.mrb[15].mxu0 }
 0x111   :  { %v380_v54 = vmul.f32 %v974_v51, %v1260_v11  ;;  %v977_v55 = vadd.f32 %v976_v53, %v975_v52  ;;  %v431_v56 = vpack.c.bf16 %v418_v50, %v417_v49  ;;  %v924_v53 = vld [vmem:[%s1394_s1 + $0x8] sm:$0xff]  }
 0x113   :  { %v403_v57 = vadd.f32 %v1265_v15, %v380_v54  ;;  %v381_v58 = vmul.f32 %v977_v55, %v1260_v11  ;;  %1038 = vmatprep.mubr.bf16.mxu1 %v431_v56  ;;  %v853_v54 = vld [vmem:[%s1394_s1] sm:$0xff]   ;;  %v858_v55 = vunpack.c.l.bf16 %v924_v53 }
 0x114   :  { %v854_v56 = vunpack.c.l.bf16 %v853_v54 }
 0x115   :  { %v404_v59 = vadd.f32 %v1265_v15, %v381_v58  ;;  %v978_v60 = vpop.f32.mrb[16].mxu0  ;;  %v419_v62 = vmax.f32 %v403_v57, 0.0  ;;  %v859_v57 = vunpack.c.h.bf16 %v924_v53 }
 0x116   :  { %v979_v61 = vpop.f32.mrb[17].mxu0 }
 0x117   :  { %v420_v63 = vmax.f32 %v404_v59, 0.0  ;;  %v980_v0 = vadd.f32 %v979_v61, %v978_v60  ;;  %v981_v1 = vpop.f32.mrb[18].mxu0 }
 0x118   :  { %v982_v2 = vpop.f32.mrb[19].mxu0 }
 0x119   :  { %v382_v3 = vmul.f32 %v980_v0, %v1260_v11  ;;  %v983_v4 = vadd.f32 %v982_v2, %v981_v1  ;;  %v432_v5 = vpack.c.bf16 %v420_v63, %v419_v62  ;;  %v1314_v2 = vld [vmem:[%s1396_s7] ss:$0 sm:$0xff] }
 0x11b   :  { %v405_v6 = vadd.f32 %v1265_v15, %v382_v3  ;;  %v383_v7 = vmul.f32 %v983_v4, %v1260_v11  ;;  %1039 = vmatmul.mubr.bf16.gmra.mrb[4].mxu1 %v432_v5 }
 0x11d   :  { %v406_v8 = vadd.f32 %v1265_v15, %v383_v7  ;;  %v984_v9 = vpop.f32.mrb[20].mxu0  ;;  %v421_v12 = vmax.f32 %v405_v6, 0.0 }
 0x11e   :  { %v985_v10 = vpop.f32.mrb[21].mxu0 }
 0x11f   :  { %v422_v13 = vmax.f32 %v406_v8, 0.0  ;;  %v986_v14 = vadd.f32 %v985_v10, %v984_v9  ;;  %v987_v16 = vpop.f32.mrb[22].mxu0 }
 0x120   :  { %v988_v17 = vpop.f32.mrb[23].mxu0 }
 0x121   :  { %v384_v18 = vmul.f32 %v986_v14, %v1260_v11  ;;  %v989_v19 = vadd.f32 %v988_v17, %v987_v16  ;;  %v433_v20 = vpack.c.bf16 %v422_v13, %v421_v12  ;;  %v926_v14 = vld [vmem:[%s1394_s1 + $0x18] sm:$0xff]   ;;  %v925_v16 = vld [vmem:[%s1394_s1 + $0x10] sm:$0xff]  }
 0x122   :  { %v866_v17 = vunpack.c.l.bf16 %v926_v14 }
 0x123   :  { %v407_v21 = vadd.f32 %v1265_v15, %v384_v18  ;;  %v385_v22 = vmul.f32 %v989_v19, %v1260_v11  ;;  %1042 = vmatprep.mubr.bf16.mxu1 %v433_v20  ;;  %v862_v18 = vunpack.c.l.bf16 %v925_v16  ;;  %v867_v19 = vunpack.c.h.bf16 %v926_v14 }
 0x125   :  { %v408_v23 = vadd.f32 %v1265_v15, %v385_v22  ;;  %v990_v24 = vpop.f32.mrb[24].mxu0  ;;  %v423_v26 = vmax.f32 %v407_v21, 0.0  ;;  %v863_v21 = vunpack.c.h.bf16 %v925_v16 }
 0x126   :  { %v991_v25 = vpop.f32.mrb[25].mxu0 }
 0x127   :  { %v424_v27 = vmax.f32 %v408_v23, 0.0  ;;  %v992_v28 = vadd.f32 %v991_v25, %v990_v24  ;;  %v993_v29 = vpop.f32.mrb[26].mxu0 }
 0x128   :  { %v994_v30 = vpop.f32.mrb[27].mxu0 }
 0x129   :  { %v386_v31 = vmul.f32 %v992_v28, %v1260_v11  ;;  %v995_v32 = vadd.f32 %v994_v30, %v993_v29  ;;  %v434_v33 = vpack.c.bf16 %v424_v27, %v423_v26 }
 0x12b   :  { %v409_v34 = vadd.f32 %v1265_v15, %v386_v31  ;;  %v387_v35 = vmul.f32 %v995_v32, %v1260_v11  ;;  %1043 = vmatmul.mubr.bf16.gmra.mrb[8].mxu1 %v434_v33 }
 0x12d   :  { %v410_v36 = vadd.f32 %v1265_v15, %v387_v35  ;;  %v996_v37 = vpop.f32.mrb[28].mxu0  ;;  %v425_v39 = vmax.f32 %v409_v34, 0.0 }
 0x12e   :  { %v997_v38 = vpop.f32.mrb[29].mxu0 }
 0x12f   :  { %v426_v40 = vmax.f32 %v410_v36, 0.0  ;;  %v998_v41 = vadd.f32 %v997_v38, %v996_v37  ;;  %v999_v42 = vpop.f32.mrb[30].mxu0 }
 0x130   :  { %v1000_v43 = vpop.f32.mrb[31].mxu0 }
 0x131   :  { %v388_v44 = vmul.f32 %v998_v41, %v1260_v11  ;;  %v1001_v45 = vadd.f32 %v1000_v43, %v999_v42  ;;  %v435_v46 = vpack.c.bf16 %v426_v40, %v425_v39  ;;  %v928_v39 = vld [vmem:[%s1394_s1 + $0x28] sm:$0xff]   ;;  %v927_v40 = vld [vmem:[%s1394_s1 + $0x20] sm:$0xff]  }
 0x132   :  { %v874_v41 = vunpack.c.l.bf16 %v928_v39  ;;  %v870_v42 = vunpack.c.l.bf16 %v927_v40  ;;  %v875_v43 = vunpack.c.h.bf16 %v928_v39 }
 0x133   :  { %v411_v47 = vadd.f32 %v1265_v15, %v388_v44  ;;  %v389_v48 = vmul.f32 %v1001_v45, %v1260_v11  ;;  %1046 = vmatprep.mubr.bf16.mxu1 %v435_v46  ;;  %v1308_v11 = vld [vmem:[%s1395_s6] ss:$0 sm:$0xff]  ;;  %v871_v45 = vunpack.c.h.bf16 %v927_v40 }
 0x135   :  { %v412_v49 = vadd.f32 %v1265_v15, %v389_v48  ;;  %v427_v50 = vmax.f32 %v411_v47, 0.0  ;;  %v855_v15 = vunpack.c.h.bf16 %v853_v54 }
 0x137   :  { %v428_v51 = vmax.f32 %v412_v49, 0.0 }
 0x139   :  { %v436_v52 = vpack.c.bf16 %v428_v51, %v427_v50 }
 0x13b   :  { %1047 = vmatmul.mubr.bf16.gmra.mrb[12].mxu1 %v436_v52 }
 0x1de   :  { %v1036_v58 = vpop.f32.mrb[0].mxu1 }
 0x1df   :  { %v632_v59 = vadd.f32 %v1036_v58, %v858_v55  ;;  %v535_v60 = vpop.f32.mrb[1].mxu1 }
 0x1e0   :  { %v630_v61 = vadd.f32 %v854_v56, %v535_v60  ;;  %v1037_v62 = vpop.f32.mrb[2].mxu1 }
 0x1e1   :  { %v655_v63 = vmul.f32 %v1308_v11, %v632_v59  ;;  %v633_v0 = vadd.f32 %v1037_v62, %v859_v57  ;;  %v538_v1 = vpop.f32.mrb[3].mxu1  ;;  %v930_v62 = vld [vmem:[%s1394_s1 + $0x38] sm:$0xff]  }
 0x1e2   :  { %v653_v3 = vmul.f32 %v1308_v11, %v630_v61  ;;  %v631_v4 = vadd.f32 %v855_v15, %v538_v1 }
 0x1e3   :  { %v656_v5 = vmul.f32 %v1308_v11, %v633_v0  ;;  %v678_v7 = vadd.f32 %v1314_v2, %v655_v63  ;;  %v929_v63 = vld [vmem:[%s1394_s1 + $0x30] sm:$0xff]   ;;  %v882_v0 = vunpack.c.l.bf16 %v930_v62 }
 0x1e4   :  { %v654_v6 = vmul.f32 %v1308_v11, %v631_v4  ;;  %v676_v9 = vadd.f32 %v1314_v2, %v653_v3  ;;  %v878_v1 = vunpack.c.l.bf16 %v929_v63  ;;  %v883_v3 = vunpack.c.h.bf16 %v930_v62 }
 0x1e5   :  { %v679_v8 = vadd.f32 %v1314_v2, %v656_v5  ;;  %v879_v5 = vunpack.c.h.bf16 %v929_v63 }
 0x1e6   :  { %v677_v10 = vadd.f32 %v1314_v2, %v654_v6 }
 0x1e7   :  { %v892_v12 = vpack.c.bf16 %v679_v8, %v678_v7 }
 0x1e8   :  { %v887_v13 = vpack.c.bf16 %v677_v10, %v676_v9 }
 0x1e9   :  { %931 = vst [vmem:[%s1397_s8 + $0x8] sm:$0xff] %v892_v12  }
 0x1ea   :  { %888 = vst [vmem:[%s1397_s8] sm:$0xff] %v887_v13  }
 0x1ee   :  { %v1040_v20 = vpop.f32.mrb[4].mxu1 }
 0x1ef   :  { %v636_v22 = vadd.f32 %v1040_v20, %v866_v17  ;;  %v551_v23 = vpop.f32.mrb[5].mxu1 }
 0x1f0   :  { %v634_v24 = vadd.f32 %v862_v18, %v551_v23  ;;  %v1041_v25 = vpop.f32.mrb[6].mxu1 }
 0x1f1   :  { %v659_v26 = vmul.f32 %v1308_v11, %v636_v22  ;;  %v637_v27 = vadd.f32 %v1041_v25, %v867_v19  ;;  %v554_v28 = vpop.f32.mrb[7].mxu1 }
 0x1f2   :  { %v657_v29 = vmul.f32 %v1308_v11, %v634_v24  ;;  %v635_v30 = vadd.f32 %v863_v21, %v554_v28 }
 0x1f3   :  { %v660_v31 = vmul.f32 %v1308_v11, %v637_v27  ;;  %v682_v33 = vadd.f32 %v1314_v2, %v659_v26 }
 0x1f4   :  { %v658_v32 = vmul.f32 %v1308_v11, %v635_v30  ;;  %v680_v35 = vadd.f32 %v1314_v2, %v657_v29 }
 0x1f5   :  { %v683_v34 = vadd.f32 %v1314_v2, %v660_v31 }
 0x1f6   :  { %v681_v36 = vadd.f32 %v1314_v2, %v658_v32 }
 0x1f7   :  { %v902_v37 = vpack.c.bf16 %v683_v34, %v682_v33 }
 0x1f8   :  { %v897_v38 = vpack.c.bf16 %v681_v36, %v680_v35 }
 0x1f9   :  { %933 = vst [vmem:[%s1397_s8 + $0x18] sm:$0xff] %v902_v37  }
 0x1fa   :  { %932 = vst [vmem:[%s1397_s8 + $0x10] sm:$0xff] %v897_v38  }
 0x1fe   :  { %v1044_v44 = vpop.f32.mrb[8].mxu1 }
 0x1ff   :  { %v640_v46 = vadd.f32 %v1044_v44, %v874_v41  ;;  %v567_v47 = vpop.f32.mrb[9].mxu1 }
 0x200   :  { %v638_v48 = vadd.f32 %v870_v42, %v567_v47  ;;  %v1045_v49 = vpop.f32.mrb[10].mxu1 }
 0x201   :  { %v663_v50 = vmul.f32 %v1308_v11, %v640_v46  ;;  %v641_v51 = vadd.f32 %v1045_v49, %v875_v43  ;;  %v570_v52 = vpop.f32.mrb[11].mxu1 }
 0x202   :  { %v661_v53 = vmul.f32 %v1308_v11, %v638_v48  ;;  %v639_v54 = vadd.f32 %v871_v45, %v570_v52 }
 0x203   :  { %v664_v55 = vmul.f32 %v1308_v11, %v641_v51  ;;  %v686_v57 = vadd.f32 %v1314_v2, %v663_v50 }
 0x204   :  { %v662_v56 = vmul.f32 %v1308_v11, %v639_v54  ;;  %v684_v15 = vadd.f32 %v1314_v2, %v661_v53 }
 0x205   :  { %v687_v58 = vadd.f32 %v1314_v2, %v664_v55 }
 0x206   :  { %v685_v59 = vadd.f32 %v1314_v2, %v662_v56 }
 0x207   :  { %v912_v60 = vpack.c.bf16 %v687_v58, %v686_v57 }
 0x208   :  { %v907_v61 = vpack.c.bf16 %v685_v59, %v684_v15 }
 0x209   :  { %935 = vst [vmem:[%s1397_s8 + $0x28] sm:$0xff] %v912_v60  }
 0x20a   :  { %934 = vst [vmem:[%s1397_s8 + $0x20] sm:$0xff] %v907_v61  }
 0x20e   :  { %v1048_v4 = vpop.f32.mrb[12].mxu1 }
 0x20f   :  { %v644_v6 = vadd.f32 %v1048_v4, %v882_v0  ;;  %v583_v7 = vpop.f32.mrb[13].mxu1 }
 0x210   :  { %v642_v8 = vadd.f32 %v878_v1, %v583_v7  ;;  %v1049_v9 = vpop.f32.mrb[14].mxu1 }
 0x211   :  { %v667_v10 = vmul.f32 %v1308_v11, %v644_v6  ;;  %v645_v12 = vadd.f32 %v1049_v9, %v883_v3  ;;  %v586_v13 = vpop.f32.mrb[15].mxu1 }
 0x212   :  { %v665_v14 = vmul.f32 %v1308_v11, %v642_v8  ;;  %v643_v16 = vadd.f32 %v879_v5, %v586_v13 }
 0x213   :  { %v668_v17 = vmul.f32 %v1308_v11, %v645_v12  ;;  %v690_v19 = vadd.f32 %v1314_v2, %v667_v10 }
 0x214   :  { %v666_v18 = vmul.f32 %v1308_v11, %v643_v16  ;;  %v688_v21 = vadd.f32 %v1314_v2, %v665_v14 }
 0x215   :  { %v691_v20 = vadd.f32 %v1314_v2, %v668_v17 }
 0x216   :  { %v689_v22 = vadd.f32 %v1314_v2, %v666_v18 }
 0x217   :  { %v922_v23 = vpack.c.bf16 %v691_v20, %v690_v19 }
 0x218   :  { %v917_v24 = vpack.c.bf16 %v689_v22, %v688_v21 }
 0x219   :  { %937 = vst [vmem:[%s1397_s8 + $0x38] sm:$0xff] %v922_v23  }
 0x21a   :  { %936 = vst [vmem:[%s1397_s8 + $0x30] sm:$0xff] %v917_v24  }

// kernel: vae_reset_forward.16
= control target key start
LH: loop header
LB: loop body
LE: loop exit
PB: predicated region body
PF: predicated region fallthrough
CT: control target
= control target key end

     0   :  { %s905_s1 = inlined_call_operand.vmem [shape: bf16[256,128], index: 1, kind: input, shape index: {}]   ;;  %s906_s0 = inlined_call_operand.vmem [shape: bf16[128,256], index: 0, kind: input, shape index: {}]   ;;  %s907_s2 = inlined_call_operand.vmem [shape: f32[1,128], index: 2, kind: input, shape index: {}]   ;;  %s908_s3 = inlined_call_operand.vmem [shape: f32[1,128], index: 3, kind: input, shape index: {}]   ;;  %s909_s4 = inlined_call_operand.vmem [shape: bf16[128,128], index: 4, kind: output, shape index: {}]  }
   0x1   :  { %v678_v0 = vld [vmem:[%s905_s1 + $0x40] sm:$0xff]   ;;  %v680_v2 = vld [vmem:[%s905_s1 + $0x48] sm:$0xff]   ;;  %v682_v4 = vld [vmem:[%s905_s1 + $0x50] sm:$0xff]  }
   0x2   :  { %v679_v1 = vld [vmem:[%s905_s1] sm:$0xff]   ;;  %598 = vmatprep.subr.bf16.mxu0 %v678_v0  ;;  %662 = vmatprep.subr.bf16.mxu1 %v678_v0  ;;  %v681_v3 = vld [vmem:[%s905_s1 + $0x8] sm:$0xff]   ;;  %v683_v5 = vld [vmem:[%s905_s1 + $0x10] sm:$0xff]  }
   0x3   :  { %599 = vmatpush3.bf16.msra.mxu0 %v679_v1  ;;  %670 = vmatpush3.bf16.msra.mxu1 %v679_v1  ;;  %v684_v6 = vld [vmem:[%s905_s1 + $0x58] sm:$0xff]   ;;  %v686_v8 = vld [vmem:[%s905_s1 + $0x60] sm:$0xff]   ;;  %v688_v10 = vld [vmem:[%s905_s1 + $0x68] sm:$0xff]  }
   0x4   :  { %600 = vmatprep.subr.bf16.mxu0 %v680_v2  ;;  %663 = vmatprep.subr.bf16.mxu1 %v680_v2  ;;  %v685_v7 = vld [vmem:[%s905_s1 + $0x18] sm:$0xff]   ;;  %v687_v9 = vld [vmem:[%s905_s1 + $0x20] sm:$0xff]   ;;  %v689_v13 = vld [vmem:[%s905_s1 + $0x28] sm:$0xff]  }
   0x5   :  { %v696_v11 = vld [vmem:[%s906_s0 + $0x4] ss:$8 sps:$4 sm:$0xff]   ;;  %v690_v14 = vld [vmem:[%s905_s1 + $0x70] sm:$0xff]   ;;  %v692_v16 = vld [vmem:[%s905_s1 + $0x78] sm:$0xff]  }
   0x6   :  { %v699_v12 = vld [vmem:[%s906_s0 + $0x44] ss:$8 sps:$4 sm:$0xff]   ;;  %274 = vmatprep.mubr.bf16.mxu0 %v696_v11  ;;  %v691_v15 = vld [vmem:[%s905_s1 + $0x30] sm:$0xff]   ;;  %v693_v17 = vld [vmem:[%s905_s1 + $0x38] sm:$0xff]  }
   0x7   :  { %601 = vmatpush3.bf16.msra.mxu0 %v681_v3  ;;  %671 = vmatpush3.bf16.msra.mxu1 %v681_v3  ;;  %v694_v18 = vld [vmem:[%s906_s0] ss:$8 sps:$4 sm:$0xff]   ;;  %v700_v20 = vld [vmem:[%s906_s0 + $0x14] ss:$8 sps:$4 sm:$0xff]   ;;  %v704_v22 = vld [vmem:[%s906_s0 + $0x10] ss:$8 sps:$4 sm:$0xff]  }
   0x8   :  { %602 = vmatprep.subr.bf16.mxu0 %v682_v4  ;;  %664 = vmatprep.subr.bf16.mxu1 %v682_v4  ;;  %v697_v19 = vld [vmem:[%s906_s0 + $0x40] ss:$8 sps:$4 sm:$0xff]   ;;  %v702_v21 = vld [vmem:[%s906_s0 + $0x54] ss:$8 sps:$4 sm:$0xff]   ;;  %v705_v23 = vld [vmem:[%s906_s0 + $0x50] ss:$8 sps:$4 sm:$0xff]  }
   0x9   :  { %306 = vmatprep.mubr.bf16.mxu1 %v699_v12  ;;  %v706_v24 = vld [vmem:[%s906_s0 + $0x24] ss:$8 sps:$4 sm:$0xff]   ;;  %v710_v26 = vld [vmem:[%s906_s0 + $0x20] ss:$8 sps:$4 sm:$0xff]   ;;  %v712_v28 = vld [vmem:[%s906_s0 + $0x34] ss:$8 sps:$4 sm:$0xff]  }
   0xa   :  { %v708_v25 = vld [vmem:[%s906_s0 + $0x64] ss:$8 sps:$4 sm:$0xff]   ;;  %v711_v27 = vld [vmem:[%s906_s0 + $0x60] ss:$8 sps:$4 sm:$0xff]   ;;  %v714_v29 = vld [vmem:[%s906_s0 + $0x74] ss:$8 sps:$4 sm:$0xff]  }
   0xb   :  { %603 = vmatpush3.bf16.msra.mxu0 %v683_v5  ;;  %672 = vmatpush3.bf16.msra.mxu1 %v683_v5  ;;  %v716_v30 = vld [vmem:[%s906_s0 + $0x30] ss:$8 sps:$4 sm:$0xff]   ;;  %v842_v35 = vld [vmem:[%s907_s2] ss:$0 sm:$0xff] }
   0xc   :  { %604 = vmatprep.subr.bf16.mxu0 %v684_v6  ;;  %665 = vmatprep.subr.bf16.mxu1 %v684_v6  ;;  %v717_v31 = vld [vmem:[%s906_s0 + $0x70] ss:$8 sps:$4 sm:$0xff]   ;;  %v847_v41 = vld [vmem:[%s908_s3] ss:$0 sm:$0xff] }
   0xf   :  { %605 = vmatpush3.bf16.msra.mxu0 %v685_v7  ;;  %673 = vmatpush3.bf16.msra.mxu1 %v685_v7 }
  0x10   :  { %606 = vmatprep.subr.bf16.mxu0 %v686_v8  ;;  %666 = vmatprep.subr.bf16.mxu1 %v686_v8 }
  0x13   :  { %607 = vmatpush3.bf16.msra.mxu0 %v687_v9  ;;  %674 = vmatpush3.bf16.msra.mxu1 %v687_v9 }
  0x14   :  { %608 = vmatprep.subr.bf16.mxu0 %v688_v10  ;;  %667 = vmatprep.subr.bf16.mxu1 %v688_v10 }
  0x17   :  { %609 = vmatpush3.bf16.msra.mxu0 %v689_v13  ;;  %675 = vmatpush3.bf16.msra.mxu1 %v689_v13 }
  0x18   :  { %610 = vmatprep.subr.bf16.mxu0 %v690_v14  ;;  %668 = vmatprep.subr.bf16.mxu1 %v690_v14 }
  0x1b   :  { %611 = vmatpush3.bf16.msra.mxu0 %v691_v15  ;;  %676 = vmatpush3.bf16.msra.mxu1 %v691_v15 }
  0x1c   :  { %612 = vmatprep.subr.bf16.mxu0 %v692_v16  ;;  %669 = vmatprep.subr.bf16.mxu1 %v692_v16 }
  0x1f   :  { %613 = vmatpush3.bf16.msra.mxu0 %v693_v17  ;;  %677 = vmatpush3.bf16.msra.mxu1 %v693_v17 }
  0x22   :  { %275 = vmatmul.mubr.bf16.vlgmr.msra.gmra.mrb[0].mxu0 %v694_v18  ;;  %307 = vmatmul.mubr.bf16.vlgmr.msra.gmra.mrb[0].mxu1 %v697_v19 }
  0x23   :  { %282 = vmatprep.mubr.bf16.mxu0 %v700_v20  ;;  %314 = vmatprep.mubr.bf16.mxu1 %v702_v21 }
  0x2a   :  { %283 = vmatmul.mubr.bf16.gmra.mrb[4].mxu0 %v704_v22  ;;  %315 = vmatmul.mubr.bf16.gmra.mrb[4].mxu1 %v705_v23 }
  0x2b   :  { %290 = vmatprep.mubr.bf16.mxu0 %v706_v24  ;;  %322 = vmatprep.mubr.bf16.mxu1 %v708_v25 }
  0x32   :  { %291 = vmatmul.mubr.bf16.gmra.mrb[8].mxu0 %v710_v26  ;;  %323 = vmatmul.mubr.bf16.gmra.mrb[8].mxu1 %v711_v27 }
  0x33   :  { %298 = vmatprep.mubr.bf16.mxu0 %v712_v28  ;;  %330 = vmatprep.mubr.bf16.mxu1 %v714_v29 }
  0x3a   :  { %299 = vmatmul.mubr.bf16.gmra.mrb[12].mxu0 %v716_v30  ;;  %331 = vmatmul.mubr.bf16.gmra.mrb[12].mxu1 %v717_v31 }
  0xf5   :  { %v614_v32 = vpop.f32.mrb[0].mxu0  ;;  %v638_v33 = vpop.f32.mrb[0].mxu1 }
  0xf6   :  { %v615_v34 = vpop.f32.mrb[1].mxu0  ;;  %v639_v36 = vpop.f32.mrb[1].mxu1 }
  0xf7   :  { %v616_v37 = vadd.f32 %v615_v34, %v614_v32  ;;  %v640_v38 = vadd.f32 %v639_v36, %v638_v33  ;;  %v617_v39 = vpop.f32.mrb[2].mxu0  ;;  %v641_v40 = vpop.f32.mrb[2].mxu1 }
  0xf8   :  { %v618_v42 = vpop.f32.mrb[3].mxu0  ;;  %v642_v43 = vpop.f32.mrb[3].mxu1 }
  0xf9   :  { %v346_v44 = vmul.f32 %v616_v37, %v842_v35  ;;  %v354_v45 = vmul.f32 %v640_v38, %v842_v35  ;;  %v619_v46 = vadd.f32 %v618_v42, %v617_v39  ;;  %v643_v47 = vadd.f32 %v642_v43, %v641_v40 }
  0xfb   :  { %v369_v48 = vadd.f32 %v847_v41, %v346_v44  ;;  %v377_v49 = vadd.f32 %v847_v41, %v354_v45  ;;  %v347_v50 = vmul.f32 %v619_v46, %v842_v35  ;;  %v355_v51 = vmul.f32 %v643_v47, %v842_v35 }
  0xfd   :  { %v370_v52 = vadd.f32 %v847_v41, %v347_v50  ;;  %v378_v53 = vadd.f32 %v847_v41, %v355_v51  ;;  %v620_v54 = vpop.f32.mrb[4].mxu0  ;;  %v644_v55 = vpop.f32.mrb[4].mxu1  ;;  %v385_v56 = vmax.f32 %v369_v48, 0.0  ;;  %v393_v57 = vmax.f32 %v377_v49, 0.0 }
  0xfe   :  { %v621_v58 = vpop.f32.mrb[5].mxu0  ;;  %v645_v59 = vpop.f32.mrb[5].mxu1 }
  0xff   :  { %v386_v60 = vmax.f32 %v370_v52, 0.0  ;;  %v394_v61 = vmax.f32 %v378_v53, 0.0  ;;  %v622_v62 = vadd.f32 %v621_v58, %v620_v54  ;;  %v646_v63 = vadd.f32 %v645_v59, %v644_v55  ;;  %v623_v0 = vpop.f32.mrb[6].mxu0  ;;  %v647_v1 = vpop.f32.mrb[6].mxu1 }
 0x100   :  { %v624_v2 = vpop.f32.mrb[7].mxu0  ;;  %v648_v3 = vpop.f32.mrb[7].mxu1 }
 0x101   :  { %v554_v4 = vpack.c.bf16 %v386_v60, %v385_v56  ;;  %v574_v5 = vpack.c.bf16 %v394_v61, %v393_v57  ;;  %v348_v6 = vmul.f32 %v622_v62, %v842_v35  ;;  %v356_v7 = vmul.f32 %v646_v63, %v842_v35 }
 0x102   :  { %v625_v8 = vadd.f32 %v624_v2, %v623_v0  ;;  %v649_v9 = vadd.f32 %v648_v3, %v647_v1 }
 0x103   :  { %555 = vst [vmem:[%s909_s4] sm:$0xff] %v554_v4   ;;  %594 = vst [vmem:[%s909_s4 + $0x20] sm:$0xff] %v574_v5   ;;  %v371_v10 = vadd.f32 %v847_v41, %v348_v6  ;;  %v379_v11 = vadd.f32 %v847_v41, %v356_v7 }
 0x104   :  { %v349_v12 = vmul.f32 %v625_v8, %v842_v35  ;;  %v357_v13 = vmul.f32 %v649_v9, %v842_v35 }
 0x105   :  { %v626_v14 = vpop.f32.mrb[8].mxu0  ;;  %v650_v15 = vpop.f32.mrb[8].mxu1  ;;  %v387_v24 = vmax.f32 %v371_v10, 0.0  ;;  %v395_v25 = vmax.f32 %v379_v11, 0.0 }
 0x106   :  { %v372_v16 = vadd.f32 %v847_v41, %v349_v12  ;;  %v380_v17 = vadd.f32 %v847_v41, %v357_v13  ;;  %v627_v18 = vpop.f32.mrb[9].mxu0  ;;  %v651_v19 = vpop.f32.mrb[9].mxu1 }
 0x107   :  { %v628_v20 = vadd.f32 %v627_v18, %v626_v14  ;;  %v652_v21 = vadd.f32 %v651_v19, %v650_v15  ;;  %v629_v22 = vpop.f32.mrb[10].mxu0  ;;  %v653_v23 = vpop.f32.mrb[10].mxu1 }
 0x108   :  { %v388_v26 = vmax.f32 %v372_v16, 0.0  ;;  %v396_v27 = vmax.f32 %v380_v17, 0.0  ;;  %v630_v28 = vpop.f32.mrb[11].mxu0  ;;  %v654_v29 = vpop.f32.mrb[11].mxu1 }
 0x109   :  { %v350_v30 = vmul.f32 %v628_v20, %v842_v35  ;;  %v358_v31 = vmul.f32 %v652_v21, %v842_v35  ;;  %v631_v32 = vadd.f32 %v630_v28, %v629_v22  ;;  %v655_v33 = vadd.f32 %v654_v29, %v653_v23 }
 0x10a   :  { %v559_v34 = vpack.c.bf16 %v388_v26, %v387_v24  ;;  %v579_v36 = vpack.c.bf16 %v396_v27, %v395_v25 }
 0x10b   :  { %v373_v37 = vadd.f32 %v847_v41, %v350_v30  ;;  %v381_v38 = vadd.f32 %v847_v41, %v358_v31  ;;  %v351_v39 = vmul.f32 %v631_v32, %v842_v35  ;;  %v359_v40 = vmul.f32 %v655_v33, %v842_v35 }
 0x10c   :  { %591 = vst [vmem:[%s909_s4 + $0x8] sm:$0xff] %v559_v34   ;;  %595 = vst [vmem:[%s909_s4 + $0x28] sm:$0xff] %v579_v36  }
 0x10d   :  { %v374_v42 = vadd.f32 %v847_v41, %v351_v39  ;;  %v382_v43 = vadd.f32 %v847_v41, %v359_v40  ;;  %v632_v44 = vpop.f32.mrb[12].mxu0  ;;  %v656_v45 = vpop.f32.mrb[12].mxu1  ;;  %v389_v46 = vmax.f32 %v373_v37, 0.0  ;;  %v397_v47 = vmax.f32 %v381_v38, 0.0 }
 0x10e   :  { %v633_v48 = vpop.f32.mrb[13].mxu0  ;;  %v657_v49 = vpop.f32.mrb[13].mxu1 }
 0x10f   :  { %v390_v50 = vmax.f32 %v374_v42, 0.0  ;;  %v398_v51 = vmax.f32 %v382_v43, 0.0  ;;  %v634_v52 = vadd.f32 %v633_v48, %v632_v44  ;;  %v658_v53 = vadd.f32 %v657_v49, %v656_v45  ;;  %v635_v54 = vpop.f32.mrb[14].mxu0  ;;  %v659_v55 = vpop.f32.mrb[14].mxu1 }
 0x110   :  { %v636_v56 = vpop.f32.mrb[15].mxu0  ;;  %v660_v57 = vpop.f32.mrb[15].mxu1 }
 0x111   :  { %v564_v58 = vpack.c.bf16 %v390_v50, %v389_v46  ;;  %v584_v59 = vpack.c.bf16 %v398_v51, %v397_v47  ;;  %v352_v60 = vmul.f32 %v634_v52, %v842_v35  ;;  %v360_v61 = vmul.f32 %v658_v53, %v842_v35 }
 0x112   :  { %v637_v62 = vadd.f32 %v636_v56, %v635_v54  ;;  %v661_v63 = vadd.f32 %v660_v57, %v659_v55 }
 0x113   :  { %592 = vst [vmem:[%s909_s4 + $0x10] sm:$0xff] %v564_v58   ;;  %596 = vst [vmem:[%s909_s4 + $0x30] sm:$0xff] %v584_v59   ;;  %v375_v0 = vadd.f32 %v847_v41, %v352_v60  ;;  %v383_v1 = vadd.f32 %v847_v41, %v360_v61 }
 0x114   :  { %v353_v2 = vmul.f32 %v637_v62, %v842_v35  ;;  %v361_v3 = vmul.f32 %v661_v63, %v842_v35 }
 0x115   :  { %v391_v6 = vmax.f32 %v375_v0, 0.0  ;;  %v399_v7 = vmax.f32 %v383_v1, 0.0 }
 0x116   :  { %v376_v4 = vadd.f32 %v847_v41, %v353_v2  ;;  %v384_v5 = vadd.f32 %v847_v41, %v361_v3 }
 0x118   :  { %v392_v8 = vmax.f32 %v376_v4, 0.0  ;;  %v400_v9 = vmax.f32 %v384_v5, 0.0 }
 0x11a   :  { %v569_v10 = vpack.c.bf16 %v392_v8, %v391_v6  ;;  %v589_v11 = vpack.c.bf16 %v400_v9, %v399_v7 }
 0x11c   :  { %593 = vst [vmem:[%s909_s4 + $0x18] sm:$0xff] %v569_v10   ;;  %597 = vst [vmem:[%s909_s4 + $0x38] sm:$0xff] %v589_v11  }

// kernel: vae_reset_forward.13
= control target key start
LH: loop header
LB: loop body
LE: loop exit
PB: predicated region body
PF: predicated region fallthrough
CT: control target
= control target key end

     0   :  { %s12637_s1 = inlined_call_operand.vmem [shape: bf16[1024,2048], index: 1, kind: input, shape index: {}]   ;;  %s12638_s0 = inlined_call_operand.vmem [shape: bf16[16,1024], index: 0, kind: input, shape index: {}]   ;;  %s12639_s2 = inlined_call_operand.vmem [shape: f32[1,2048], index: 2, kind: input, shape index: {}]   ;;  %s12640_s4 = inlined_call_operand.vmem [shape: f32[16,1024], index: 4, kind: output, shape index: {0}]   ;;  %s12641_s5 = inlined_call_operand.vmem [shape: f32[16,1024], index: 5, kind: output, shape index: {1}]   ;;  %s12642_s3 = inlined_call_operand.vmem [shape: f32[16,1024], index: 3, kind: input, shape index: {}]   ;;  %s12643_s6 = inlined_call_operand.vmem [shape: f32[16,1024], index: 6, kind: output, shape index: {2}]  }
   0x1   :  { %v28_v0 = vld [vmem:[%s12637_s1] sm:$0xff]  ;;  %v29_v2 = vld [vmem:[%s12637_s1 + $0x8] sm:$0xff] }
   0x2   :  { %v36_v1 = vld [vmem:[%s12637_s1 + $0x40] sm:$0xff]  ;;  %v37_v4 = vld [vmem:[%s12637_s1 + $0x48] sm:$0xff] }
   0x3   :  { %v7837_v3 = vcombine.high %v28_v0, %v36_v1  ;;  %v7836_v5 = vcombine.low %v28_v0, %v36_v1  ;;  %v44_v6 = vld [vmem:[%s12637_s1 + $0x80] sm:$0xff]  ;;  %v7839_v8 = vcombine.high %v29_v2, %v37_v4  ;;  %v7838_v9 = vcombine.low %v29_v2, %v37_v4  ;;  %v45_v11 = vld [vmem:[%s12637_s1 + $0x88] sm:$0xff] }
   0x4   :  { %v52_v7 = vld [vmem:[%s12637_s1 + $0xc0] sm:$0xff]  ;;  %v53_v12 = vld [vmem:[%s12637_s1 + $0xc8] sm:$0xff] }
   0x5   :  { %v7853_v10 = vcombine.high %v44_v6, %v52_v7  ;;  %v60_v13 = vld [vmem:[%s12637_s1 + $0x100] sm:$0xff]  ;;  %6296 = vmatprep.subr.bf16.mxu0 %v7837_v3  ;;  %v7855_v14 = vcombine.high %v45_v11, %v53_v12  ;;  %v61_v16 = vld [vmem:[%s12637_s1 + $0x108] sm:$0xff]  ;;  %6468 = vmatprep.subr.bf16.mxu1 %v7839_v8  ;;  %v7852_v18 = vcombine.low %v44_v6, %v52_v7 }
   0x6   :  { %v68_v15 = vld [vmem:[%s12637_s1 + $0x140] sm:$0xff]  ;;  %v69_v17 = vld [vmem:[%s12637_s1 + $0x148] sm:$0xff]  ;;  %6297 = vmatpush1.bf16.msra.mxu0 %v7836_v5  ;;  %6469 = vmatpush1.bf16.msra.mxu1 %v7838_v9  ;;  %v7854_v19 = vcombine.low %v45_v11, %v53_v12 }
   0x7   :  { %6298 = vmatprep.subr.bf16.mxu0 %v7853_v10  ;;  %v7869_v20 = vcombine.high %v60_v13, %v68_v15  ;;  %6470 = vmatprep.subr.bf16.mxu1 %v7855_v14  ;;  %v7871_v21 = vcombine.high %v61_v16, %v69_v17  ;;  %v76_v22 = vld [vmem:[%s12637_s1 + $0x180] sm:$0xff]  ;;  %v77_v24 = vld [vmem:[%s12637_s1 + $0x188] sm:$0xff]  ;;  %v7868_v26 = vcombine.low %v60_v13, %v68_v15 }
   0x8   :  { %v84_v23 = vld [vmem:[%s12637_s1 + $0x1c0] sm:$0xff]  ;;  %v85_v25 = vld [vmem:[%s12637_s1 + $0x1c8] sm:$0xff]  ;;  %v7870_v27 = vcombine.low %v61_v16, %v69_v17 }
   0x9   :  { %v7885_v28 = vcombine.high %v76_v22, %v84_v23  ;;  %v7887_v29 = vcombine.high %v77_v24, %v85_v25  ;;  %v92_v30 = vld [vmem:[%s12637_s1 + $0x200] sm:$0xff]  ;;  %v93_v32 = vld [vmem:[%s12637_s1 + $0x208] sm:$0xff]  ;;  %v7884_v34 = vcombine.low %v76_v22, %v84_v23  ;;  %v7886_v35 = vcombine.low %v77_v24, %v85_v25 }
   0xa   :  { %6299 = vmatpush1.bf16.msra.mxu0 %v7852_v18  ;;  %6471 = vmatpush1.bf16.msra.mxu1 %v7854_v19  ;;  %v100_v31 = vld [vmem:[%s12637_s1 + $0x240] sm:$0xff]  ;;  %v101_v33 = vld [vmem:[%s12637_s1 + $0x248] sm:$0xff] }
   0xb   :  { %6300 = vmatprep.subr.bf16.mxu0 %v7869_v20  ;;  %6472 = vmatprep.subr.bf16.mxu1 %v7871_v21  ;;  %v7901_v36 = vcombine.high %v92_v30, %v100_v31  ;;  %v7903_v37 = vcombine.high %v93_v32, %v101_v33  ;;  %v108_v38 = vld [vmem:[%s12637_s1 + $0x280] sm:$0xff]  ;;  %v109_v40 = vld [vmem:[%s12637_s1 + $0x288] sm:$0xff]  ;;  %v7900_v42 = vcombine.low %v92_v30, %v100_v31 }
   0xc   :  { %v116_v39 = vld [vmem:[%s12637_s1 + $0x2c0] sm:$0xff]  ;;  %v117_v41 = vld [vmem:[%s12637_s1 + $0x2c8] sm:$0xff]  ;;  %v7902_v43 = vcombine.low %v93_v32, %v101_v33 }
   0xd   :  { %v7917_v44 = vcombine.high %v108_v38, %v116_v39  ;;  %v7919_v45 = vcombine.high %v109_v40, %v117_v41  ;;  %v124_v46 = vld [vmem:[%s12637_s1 + $0x300] sm:$0xff]  ;;  %v125_v48 = vld [vmem:[%s12637_s1 + $0x308] sm:$0xff]  ;;  %v7916_v50 = vcombine.low %v108_v38, %v116_v39  ;;  %v7918_v51 = vcombine.low %v109_v40, %v117_v41 }
   0xe   :  { %6301 = vmatpush1.bf16.msra.mxu0 %v7868_v26  ;;  %6473 = vmatpush1.bf16.msra.mxu1 %v7870_v27  ;;  %v132_v47 = vld [vmem:[%s12637_s1 + $0x340] sm:$0xff]  ;;  %v133_v49 = vld [vmem:[%s12637_s1 + $0x348] sm:$0xff] }
   0xf   :  { %6302 = vmatprep.subr.bf16.mxu0 %v7885_v28  ;;  %6474 = vmatprep.subr.bf16.mxu1 %v7887_v29  ;;  %v7933_v52 = vcombine.high %v124_v46, %v132_v47  ;;  %v9159_v53 = vld [vmem:[%s12638_s0] sm:$0xff]  ;;  %v7935_v55 = vcombine.high %v125_v48, %v133_v49  ;;  %v141_v59 = vld [vmem:[%s12637_s1 + $0x388] sm:$0xff]  ;;  %v7932_v61 = vcombine.low %v124_v46, %v132_v47 }
  0x10   :  { %v9164_v54 = vld [vmem:[%s12638_s0 + $0x20] sm:$0xff]  ;;  %v149_v60 = vld [vmem:[%s12637_s1 + $0x3c8] sm:$0xff]  ;;  %v7934_v62 = vcombine.low %v125_v48, %v133_v49 }
  0x11   :  { %v140_v56 = vld [vmem:[%s12637_s1 + $0x380] sm:$0xff]  ;;  %v9174_v58 = vcombine.high %v9159_v53, %v9164_v54  ;;  %v7951_v0 = vcombine.high %v141_v59, %v149_v60  ;;  %v157_v3 = vld [vmem:[%s12637_s1 + $0x408] sm:$0xff]  ;;  %v7950_v6 = vcombine.low %v141_v59, %v149_v60 }
  0x12   :  { %6303 = vmatpush1.bf16.msra.mxu0 %v7884_v34  ;;  %6475 = vmatpush1.bf16.msra.mxu1 %v7886_v35  ;;  %v148_v57 = vld [vmem:[%s12637_s1 + $0x3c0] sm:$0xff]  ;;  %v165_v4 = vld [vmem:[%s12637_s1 + $0x448] sm:$0xff] }
  0x13   :  { %6304 = vmatprep.subr.bf16.mxu0 %v7901_v36  ;;  %6476 = vmatprep.subr.bf16.mxu1 %v7903_v37  ;;  %v7949_v63 = vcombine.high %v140_v56, %v148_v57  ;;  %v156_v1 = vld [vmem:[%s12637_s1 + $0x400] sm:$0xff]  ;;  %v7948_v5 = vcombine.low %v140_v56, %v148_v57  ;;  %v7967_v8 = vcombine.high %v157_v3, %v165_v4  ;;  %v173_v11 = vld [vmem:[%s12637_s1 + $0x488] sm:$0xff] }
  0x14   :  { %6328 = vmatprep.mubr.bf16.mxu0 %v9174_v58  ;;  %v164_v2 = vld [vmem:[%s12637_s1 + $0x440] sm:$0xff]  ;;  %6500 = vmatprep.mubr.bf16.mxu1 %v9174_v58  ;;  %v181_v12 = vld [vmem:[%s12637_s1 + $0x4c8] sm:$0xff]  ;;  %v7966_v14 = vcombine.low %v157_v3, %v165_v4 }
  0x15   :  { %v7965_v7 = vcombine.high %v156_v1, %v164_v2  ;;  %v172_v9 = vld [vmem:[%s12637_s1 + $0x480] sm:$0xff]  ;;  %v7964_v13 = vcombine.low %v156_v1, %v164_v2  ;;  %v7983_v16 = vcombine.high %v173_v11, %v181_v12  ;;  %v189_v19 = vld [vmem:[%s12637_s1 + $0x508] sm:$0xff]  ;;  %v7982_v22 = vcombine.low %v173_v11, %v181_v12 }
  0x16   :  { %6305 = vmatpush1.bf16.msra.mxu0 %v7900_v42  ;;  %6477 = vmatpush1.bf16.msra.mxu1 %v7902_v43  ;;  %v180_v10 = vld [vmem:[%s12637_s1 + $0x4c0] sm:$0xff]  ;;  %v197_v20 = vld [vmem:[%s12637_s1 + $0x548] sm:$0xff] }
  0x17   :  { %6306 = vmatprep.subr.bf16.mxu0 %v7917_v44  ;;  %6478 = vmatprep.subr.bf16.mxu1 %v7919_v45  ;;  %v7981_v15 = vcombine.high %v172_v9, %v180_v10  ;;  %v188_v17 = vld [vmem:[%s12637_s1 + $0x500] sm:$0xff]  ;;  %v7980_v21 = vcombine.low %v172_v9, %v180_v10  ;;  %v7999_v24 = vcombine.high %v189_v19, %v197_v20  ;;  %v205_v27 = vld [vmem:[%s12637_s1 + $0x588] sm:$0xff] }
  0x18   :  { %v196_v18 = vld [vmem:[%s12637_s1 + $0x540] sm:$0xff]  ;;  %v213_v28 = vld [vmem:[%s12637_s1 + $0x5c8] sm:$0xff]  ;;  %v7998_v30 = vcombine.low %v189_v19, %v197_v20 }
  0x19   :  { %v7997_v23 = vcombine.high %v188_v17, %v196_v18  ;;  %v204_v25 = vld [vmem:[%s12637_s1 + $0x580] sm:$0xff]  ;;  %v7996_v29 = vcombine.low %v188_v17, %v196_v18  ;;  %v8015_v32 = vcombine.high %v205_v27, %v213_v28  ;;  %v221_v35 = vld [vmem:[%s12637_s1 + $0x608] sm:$0xff]  ;;  %v8014_v38 = vcombine.low %v205_v27, %v213_v28 }
  0x1a   :  { %6307 = vmatpush1.bf16.msra.mxu0 %v7916_v50  ;;  %6479 = vmatpush1.bf16.msra.mxu1 %v7918_v51  ;;  %v212_v26 = vld [vmem:[%s12637_s1 + $0x5c0] sm:$0xff]  ;;  %v229_v36 = vld [vmem:[%s12637_s1 + $0x648] sm:$0xff] }
  0x1b   :  { %6308 = vmatprep.subr.bf16.mxu0 %v7933_v52  ;;  %6480 = vmatprep.subr.bf16.mxu1 %v7935_v55  ;;  %v8013_v31 = vcombine.high %v204_v25, %v212_v26  ;;  %v220_v33 = vld [vmem:[%s12637_s1 + $0x600] sm:$0xff]  ;;  %v8012_v37 = vcombine.low %v204_v25, %v212_v26  ;;  %v8031_v40 = vcombine.high %v221_v35, %v229_v36  ;;  %v237_v43 = vld [vmem:[%s12637_s1 + $0x688] sm:$0xff] }
  0x1c   :  { %v228_v34 = vld [vmem:[%s12637_s1 + $0x640] sm:$0xff]  ;;  %v245_v44 = vld [vmem:[%s12637_s1 + $0x6c8] sm:$0xff]  ;;  %v8030_v46 = vcombine.low %v221_v35, %v229_v36 }
  0x1d   :  { %v8029_v39 = vcombine.high %v220_v33, %v228_v34  ;;  %v236_v41 = vld [vmem:[%s12637_s1 + $0x680] sm:$0xff]  ;;  %v8028_v45 = vcombine.low %v220_v33, %v228_v34  ;;  %v8047_v48 = vcombine.high %v237_v43, %v245_v44  ;;  %v253_v51 = vld [vmem:[%s12637_s1 + $0x708] sm:$0xff]  ;;  %v8046_v56 = vcombine.low %v237_v43, %v245_v44 }
  0x1e   :  { %6309 = vmatpush1.bf16.msra.mxu0 %v7932_v61  ;;  %6481 = vmatpush1.bf16.msra.mxu1 %v7934_v62  ;;  %v244_v42 = vld [vmem:[%s12637_s1 + $0x6c0] sm:$0xff]  ;;  %v261_v52 = vld [vmem:[%s12637_s1 + $0x748] sm:$0xff] }
  0x1f   :  { %6310 = vmatprep.subr.bf16.mxu0 %v7949_v63  ;;  %6482 = vmatprep.subr.bf16.mxu1 %v7951_v0  ;;  %v8045_v47 = vcombine.high %v236_v41, %v244_v42  ;;  %v252_v49 = vld [vmem:[%s12637_s1 + $0x700] sm:$0xff]  ;;  %v8044_v55 = vcombine.low %v236_v41, %v244_v42  ;;  %v8063_v59 = vcombine.high %v253_v51, %v261_v52  ;;  %v269_v62 = vld [vmem:[%s12637_s1 + $0x788] sm:$0xff] }
  0x20   :  { %v260_v50 = vld [vmem:[%s12637_s1 + $0x740] sm:$0xff]  ;;  %v277_v63 = vld [vmem:[%s12637_s1 + $0x7c8] sm:$0xff]  ;;  %v8062_v1 = vcombine.low %v253_v51, %v261_v52 }
  0x21   :  { %v8061_v57 = vcombine.high %v252_v49, %v260_v50  ;;  %v268_v60 = vld [vmem:[%s12637_s1 + $0x780] sm:$0xff]  ;;  %v8060_v0 = vcombine.low %v252_v49, %v260_v50  ;;  %v8079_v3 = vcombine.high %v269_v62, %v277_v63  ;;  %v8078_v9 = vcombine.low %v269_v62, %v277_v63  ;;  %v9311_v17 = vld [vmem:[%s12638_s0 + $0x8] sm:$0xff] }
  0x22   :  { %6311 = vmatpush1.bf16.msra.mxu0 %v7948_v5  ;;  %6483 = vmatpush1.bf16.msra.mxu1 %v7950_v6  ;;  %v276_v61 = vld [vmem:[%s12637_s1 + $0x7c0] sm:$0xff]  ;;  %v285_v6 = vld [vmem:[%s12637_s1 + $0x808] sm:$0xff] }
  0x23   :  { %6312 = vmatprep.subr.bf16.mxu0 %v7965_v7  ;;  %6484 = vmatprep.subr.bf16.mxu1 %v7967_v8  ;;  %v8077_v2 = vcombine.high %v268_v60, %v276_v61  ;;  %v284_v4 = vld [vmem:[%s12637_s1 + $0x800] sm:$0xff]  ;;  %v293_v7 = vld [vmem:[%s12637_s1 + $0x848] sm:$0xff]  ;;  %v8076_v8 = vcombine.low %v268_v60, %v276_v61 }
  0x24   :  { %v292_v5 = vld [vmem:[%s12637_s1 + $0x840] sm:$0xff]  ;;  %v8095_v11 = vcombine.high %v285_v6, %v293_v7  ;;  %v9316_v18 = vld [vmem:[%s12638_s0 + $0x28] sm:$0xff] }
  0x25   :  { %v8093_v10 = vcombine.high %v284_v4, %v292_v5  ;;  %v300_v12 = vld [vmem:[%s12637_s1 + $0x880] sm:$0xff]  ;;  %v8092_v19 = vcombine.low %v284_v4, %v292_v5  ;;  %v325_v25 = vld [vmem:[%s12637_s1 + $0x948] sm:$0xff] }
  0x26   :  { %6313 = vmatpush1.bf16.msra.mxu0 %v7964_v13  ;;  %6485 = vmatpush1.bf16.msra.mxu1 %v7966_v14  ;;  %v308_v13 = vld [vmem:[%s12637_s1 + $0x8c0] sm:$0xff]  ;;  %v301_v14 = vld [vmem:[%s12637_s1 + $0x888] sm:$0xff] }
  0x27   :  { %6314 = vmatprep.subr.bf16.mxu0 %v7981_v15  ;;  %6486 = vmatprep.subr.bf16.mxu1 %v7983_v16  ;;  %v9303_v15 = vcombine.low %v9159_v53, %v9164_v54  ;;  %v309_v16 = vld [vmem:[%s12637_s1 + $0x8c8] sm:$0xff]  ;;  %v8094_v53 = vcombine.low %v285_v6, %v293_v7  ;;  %v8109_v54 = vcombine.high %v300_v12, %v308_v13 }
  0x28   :  { %v8111_v20 = vcombine.high %v301_v14, %v309_v16  ;;  %v8108_v26 = vcombine.low %v300_v12, %v308_v13  ;;  %v8110_v27 = vcombine.low %v301_v14, %v309_v16  ;;  %v341_v33 = vld [vmem:[%s12637_s1 + $0x9c8] sm:$0xff] }
  0x29   :  { %v357_v41 = vld [vmem:[%s12637_s1 + $0xa48] sm:$0xff] }
  0x2a   :  { %6315 = vmatpush1.bf16.msra.mxu0 %v7980_v21  ;;  %6487 = vmatpush1.bf16.msra.mxu1 %v7982_v22  ;;  %v316_v21 = vld [vmem:[%s12637_s1 + $0x900] sm:$0xff]  ;;  %v373_v49 = vld [vmem:[%s12637_s1 + $0xac8] sm:$0xff] }
  0x2b   :  { %6316 = vmatprep.subr.bf16.mxu0 %v7997_v23  ;;  %6488 = vmatprep.subr.bf16.mxu1 %v7999_v24  ;;  %v324_v22 = vld [vmem:[%s12637_s1 + $0x940] sm:$0xff]  ;;  %v9326_v23 = vcombine.high %v9311_v17, %v9316_v18  ;;  %v317_v24 = vld [vmem:[%s12637_s1 + $0x908] sm:$0xff] }
  0x2c   :  { %v8125_v28 = vcombine.high %v316_v21, %v324_v22  ;;  %v8124_v34 = vcombine.low %v316_v21, %v324_v22  ;;  %v8126_v35 = vcombine.low %v317_v24, %v325_v25  ;;  %v389_v60 = vld [vmem:[%s12637_s1 + $0xb48] sm:$0xff] }
  0x2d   :  { %v405_v4 = vld [vmem:[%s12637_s1 + $0xbc8] sm:$0xff] }
  0x2e   :  { %6317 = vmatpush1.bf16.msra.mxu0 %v7996_v29  ;;  %6489 = vmatpush1.bf16.msra.mxu1 %v7998_v30  ;;  %v8127_v29 = vcombine.high %v317_v24, %v325_v25  ;;  %v332_v30 = vld [vmem:[%s12637_s1 + $0x980] sm:$0xff]  ;;  %v421_v12 = vld [vmem:[%s12637_s1 + $0xc48] sm:$0xff] }
  0x2f   :  { %6318 = vmatprep.subr.bf16.mxu0 %v8013_v31  ;;  %6490 = vmatprep.subr.bf16.mxu1 %v8015_v32  ;;  %v340_v31 = vld [vmem:[%s12637_s1 + $0x9c0] sm:$0xff]  ;;  %v333_v32 = vld [vmem:[%s12637_s1 + $0x988] sm:$0xff] }
  0x30   :  { %v8141_v36 = vcombine.high %v332_v30, %v340_v31  ;;  %v8140_v42 = vcombine.low %v332_v30, %v340_v31  ;;  %v8142_v43 = vcombine.low %v333_v32, %v341_v33  ;;  %v437_v21 = vld [vmem:[%s12637_s1 + $0xcc8] sm:$0xff] }
  0x31   :  { %v453_v30 = vld [vmem:[%s12637_s1 + $0xd48] sm:$0xff] }
  0x32   :  { %6319 = vmatpush1.bf16.msra.mxu0 %v8012_v37  ;;  %6491 = vmatpush1.bf16.msra.mxu1 %v8014_v38  ;;  %v8143_v37 = vcombine.high %v333_v32, %v341_v33  ;;  %v348_v38 = vld [vmem:[%s12637_s1 + $0xa00] sm:$0xff] }
  0x33   :  { %6320 = vmatprep.subr.bf16.mxu0 %v8029_v39  ;;  %6492 = vmatprep.subr.bf16.mxu1 %v8031_v40  ;;  %v356_v39 = vld [vmem:[%s12637_s1 + $0xa40] sm:$0xff]  ;;  %v349_v40 = vld [vmem:[%s12637_s1 + $0xa08] sm:$0xff] }
  0x34   :  { %v8157_v44 = vcombine.high %v348_v38, %v356_v39  ;;  %v8156_v50 = vcombine.low %v348_v38, %v356_v39  ;;  %v8158_v51 = vcombine.low %v349_v40, %v357_v41  ;;  %v469_v38 = vld [vmem:[%s12637_s1 + $0xdc8] sm:$0xff] }
  0x36   :  { %6321 = vmatpush1.bf16.msra.mxu0 %v8028_v45  ;;  %6493 = vmatpush1.bf16.msra.mxu1 %v8030_v46  ;;  %v8159_v45 = vcombine.high %v349_v40, %v357_v41  ;;  %v364_v46 = vld [vmem:[%s12637_s1 + $0xa80] sm:$0xff] }
  0x37   :  { %6322 = vmatprep.subr.bf16.mxu0 %v8045_v47  ;;  %6494 = vmatprep.subr.bf16.mxu1 %v8047_v48  ;;  %v372_v47 = vld [vmem:[%s12637_s1 + $0xac0] sm:$0xff]  ;;  %v365_v48 = vld [vmem:[%s12637_s1 + $0xa88] sm:$0xff] }
  0x38   :  { %v8173_v52 = vcombine.high %v364_v46, %v372_v47  ;;  %v8172_v61 = vcombine.low %v364_v46, %v372_v47  ;;  %v8174_v62 = vcombine.low %v365_v48, %v373_v49  ;;  %v485_v46 = vld [vmem:[%s12637_s1 + $0xe48] sm:$0xff] }
  0x3a   :  { %6323 = vmatpush1.bf16.msra.mxu0 %v8044_v55  ;;  %6495 = vmatpush1.bf16.msra.mxu1 %v8046_v56  ;;  %v8175_v55 = vcombine.high %v365_v48, %v373_v49  ;;  %v380_v56 = vld [vmem:[%s12637_s1 + $0xb00] sm:$0xff] }
  0x3b   :  { %6324 = vmatprep.subr.bf16.mxu0 %v8061_v57  ;;  %6496 = vmatprep.subr.bf16.mxu1 %v8063_v59  ;;  %v388_v57 = vld [vmem:[%s12637_s1 + $0xb40] sm:$0xff]  ;;  %v381_v59 = vld [vmem:[%s12637_s1 + $0xb08] sm:$0xff] }
  0x3c   :  { %v8189_v63 = vcombine.high %v380_v56, %v388_v57  ;;  %v8188_v5 = vcombine.low %v380_v56, %v388_v57  ;;  %v8190_v6 = vcombine.low %v381_v59, %v389_v60  ;;  %v501_v56 = vld [vmem:[%s12637_s1 + $0xec8] sm:$0xff] }
  0x3e   :  { %6325 = vmatpush1.bf16.msra.mxu0 %v8060_v0  ;;  %6497 = vmatpush1.bf16.msra.mxu1 %v8062_v1  ;;  %v8191_v0 = vcombine.high %v381_v59, %v389_v60  ;;  %v396_v1 = vld [vmem:[%s12637_s1 + $0xb80] sm:$0xff] }
  0x3f   :  { %6326 = vmatprep.subr.bf16.mxu0 %v8077_v2  ;;  %6498 = vmatprep.subr.bf16.mxu1 %v8079_v3  ;;  %v404_v2 = vld [vmem:[%s12637_s1 + $0xbc0] sm:$0xff]  ;;  %v397_v3 = vld [vmem:[%s12637_s1 + $0xb88] sm:$0xff] }
  0x40   :  { %v8205_v7 = vcombine.high %v396_v1, %v404_v2  ;;  %v8204_v13 = vcombine.low %v396_v1, %v404_v2  ;;  %v8206_v14 = vcombine.low %v397_v3, %v405_v4  ;;  %v517_v1 = vld [vmem:[%s12637_s1 + $0xf48] sm:$0xff] }
  0x42   :  { %6327 = vmatpush1.bf16.msra.mxu0 %v8076_v8  ;;  %6499 = vmatpush1.bf16.msra.mxu1 %v8078_v9  ;;  %v8207_v8 = vcombine.high %v397_v3, %v405_v4  ;;  %v412_v9 = vld [vmem:[%s12637_s1 + $0xc00] sm:$0xff] }
  0x43   :  { %6339 = vmatprep.subr.bf16.mxu0 %v8093_v10  ;;  %6511 = vmatprep.subr.bf16.mxu1 %v8095_v11  ;;  %v420_v10 = vld [vmem:[%s12637_s1 + $0xc40] sm:$0xff]  ;;  %v413_v11 = vld [vmem:[%s12637_s1 + $0xc08] sm:$0xff] }
  0x44   :  { %v8221_v16 = vcombine.high %v412_v9, %v420_v10  ;;  %v8220_v22 = vcombine.low %v412_v9, %v420_v10  ;;  %v8222_v24 = vcombine.low %v413_v11, %v421_v12  ;;  %v533_v9 = vld [vmem:[%s12637_s1 + $0xfc8] sm:$0xff] }
  0x45   :  { %6329 = vmatmul.mubr.bf16.vlgmr.msra.gmra.mrb[0].mxu0 %v9303_v15  ;;  %6501 = vmatmul.mubr.bf16.vlgmr.msra.gmra.mrb[0].mxu1 %v9303_v15 }
  0x46   :  { %6340 = vmatpush1.bf16.msra.mxu0 %v8092_v19  ;;  %6512 = vmatpush1.bf16.msra.mxu1 %v8094_v53  ;;  %v8223_v19 = vcombine.high %v413_v11, %v421_v12  ;;  %v428_v53 = vld [vmem:[%s12637_s1 + $0xc80] sm:$0xff] }
  0x47   :  { %6341 = vmatprep.subr.bf16.mxu0 %v8109_v54  ;;  %6513 = vmatprep.subr.bf16.mxu1 %v8111_v20  ;;  %v436_v54 = vld [vmem:[%s12637_s1 + $0xcc0] sm:$0xff]  ;;  %v429_v20 = vld [vmem:[%s12637_s1 + $0xc88] sm:$0xff] }
  0x48   :  { %6371 = vmatprep.mubr.bf16.mxu0 %v9326_v23  ;;  %6543 = vmatprep.mubr.bf16.mxu1 %v9326_v23  ;;  %v8237_v25 = vcombine.high %v428_v53, %v436_v54  ;;  %v8236_v31 = vcombine.low %v428_v53, %v436_v54  ;;  %v8238_v32 = vcombine.low %v429_v20, %v437_v21  ;;  %v549_v53 = vld [vmem:[%s12637_s1 + $0x1048] sm:$0xff] }
  0x4a   :  { %6342 = vmatpush1.bf16.msra.mxu0 %v8108_v26  ;;  %6514 = vmatpush1.bf16.msra.mxu1 %v8110_v27  ;;  %v8239_v26 = vcombine.high %v429_v20, %v437_v21  ;;  %v444_v27 = vld [vmem:[%s12637_s1 + $0xd00] sm:$0xff] }
  0x4b   :  { %6343 = vmatprep.subr.bf16.mxu0 %v8125_v28  ;;  %6515 = vmatprep.subr.bf16.mxu1 %v8127_v29  ;;  %v452_v28 = vld [vmem:[%s12637_s1 + $0xd40] sm:$0xff]  ;;  %v445_v29 = vld [vmem:[%s12637_s1 + $0xd08] sm:$0xff] }
  0x4c   :  { %v8253_v33 = vcombine.high %v444_v27, %v452_v28  ;;  %v8252_v39 = vcombine.low %v444_v27, %v452_v28  ;;  %v8254_v40 = vcombine.low %v445_v29, %v453_v30  ;;  %v9517_v27 = vcombine.low %v9311_v17, %v9316_v18  ;;  %v565_v28 = vld [vmem:[%s12637_s1 + $0x10c8] sm:$0xff] }
  0x4e   :  { %6344 = vmatpush1.bf16.msra.mxu0 %v8124_v34  ;;  %6516 = vmatpush1.bf16.msra.mxu1 %v8126_v35  ;;  %v8255_v34 = vcombine.high %v445_v29, %v453_v30  ;;  %v460_v35 = vld [vmem:[%s12637_s1 + $0xd80] sm:$0xff]  ;;  %v9525_v29 = vld [vmem:[%s12638_s0 + $0x10] sm:$0xff] }
  0x4f   :  { %6345 = vmatprep.subr.bf16.mxu0 %v8141_v36  ;;  %6517 = vmatprep.subr.bf16.mxu1 %v8143_v37  ;;  %v468_v36 = vld [vmem:[%s12637_s1 + $0xdc0] sm:$0xff]  ;;  %v461_v37 = vld [vmem:[%s12637_s1 + $0xd88] sm:$0xff]  ;;  %v9530_v30 = vld [vmem:[%s12638_s0 + $0x30] sm:$0xff] }
  0x50   :  { %v8269_v41 = vcombine.high %v460_v35, %v468_v36  ;;  %v8268_v47 = vcombine.low %v460_v35, %v468_v36  ;;  %v8270_v48 = vcombine.low %v461_v37, %v469_v38  ;;  %v9540_v35 = vcombine.high %v9525_v29, %v9530_v30  ;;  %v573_v36 = vld [vmem:[%s12637_s1 + $0x1108] sm:$0xff] }
  0x52   :  { %6346 = vmatpush1.bf16.msra.mxu0 %v8140_v42  ;;  %6518 = vmatpush1.bf16.msra.mxu1 %v8142_v43  ;;  %v8271_v42 = vcombine.high %v461_v37, %v469_v38  ;;  %v476_v43 = vld [vmem:[%s12637_s1 + $0xe00] sm:$0xff]  ;;  %v581_v37 = vld [vmem:[%s12637_s1 + $0x1148] sm:$0xff] }
  0x53   :  { %6347 = vmatprep.subr.bf16.mxu0 %v8157_v44  ;;  %6519 = vmatprep.subr.bf16.mxu1 %v8159_v45  ;;  %v484_v44 = vld [vmem:[%s12637_s1 + $0xe40] sm:$0xff]  ;;  %v477_v45 = vld [vmem:[%s12637_s1 + $0xe08] sm:$0xff] }
  0x54   :  { %v8285_v49 = vcombine.high %v476_v43, %v484_v44  ;;  %v8284_v57 = vcombine.low %v476_v43, %v484_v44  ;;  %v8286_v59 = vcombine.low %v477_v45, %v485_v46  ;;  %v596_v43 = vld [vmem:[%s12637_s1 + $0x11c0] sm:$0xff]  ;;  %v589_v44 = vld [vmem:[%s12637_s1 + $0x1188] sm:$0xff] }
  0x56   :  { %6348 = vmatpush1.bf16.msra.mxu0 %v8156_v50  ;;  %6520 = vmatpush1.bf16.msra.mxu1 %v8158_v51  ;;  %v8287_v50 = vcombine.high %v477_v45, %v485_v46  ;;  %v492_v51 = vld [vmem:[%s12637_s1 + $0xe80] sm:$0xff]  ;;  %v597_v45 = vld [vmem:[%s12637_s1 + $0x11c8] sm:$0xff] }
  0x57   :  { %6349 = vmatprep.subr.bf16.mxu0 %v8173_v52  ;;  %6521 = vmatprep.subr.bf16.mxu1 %v8175_v55  ;;  %v500_v52 = vld [vmem:[%s12637_s1 + $0xec0] sm:$0xff]  ;;  %v493_v55 = vld [vmem:[%s12637_s1 + $0xe88] sm:$0xff] }
  0x58   :  { %v8301_v60 = vcombine.high %v492_v51, %v500_v52  ;;  %v8300_v2 = vcombine.low %v492_v51, %v500_v52  ;;  %v8302_v3 = vcombine.low %v493_v55, %v501_v56  ;;  %v612_v51 = vld [vmem:[%s12637_s1 + $0x1240] sm:$0xff]  ;;  %v605_v52 = vld [vmem:[%s12637_s1 + $0x1208] sm:$0xff] }
  0x5a   :  { %6350 = vmatpush1.bf16.msra.mxu0 %v8172_v61  ;;  %6522 = vmatpush1.bf16.msra.mxu1 %v8174_v62  ;;  %v8303_v61 = vcombine.high %v493_v55, %v501_v56  ;;  %v508_v62 = vld [vmem:[%s12637_s1 + $0xf00] sm:$0xff]  ;;  %v613_v55 = vld [vmem:[%s12637_s1 + $0x1248] sm:$0xff] }
  0x5b   :  { %6351 = vmatprep.subr.bf16.mxu0 %v8189_v63  ;;  %6523 = vmatprep.subr.bf16.mxu1 %v8191_v0  ;;  %v516_v63 = vld [vmem:[%s12637_s1 + $0xf40] sm:$0xff]  ;;  %v509_v0 = vld [vmem:[%s12637_s1 + $0xf08] sm:$0xff] }
  0x5c   :  { %v8317_v4 = vcombine.high %v508_v62, %v516_v63  ;;  %v8316_v10 = vcombine.low %v508_v62, %v516_v63  ;;  %v8318_v11 = vcombine.low %v509_v0, %v517_v1  ;;  %v628_v62 = vld [vmem:[%s12637_s1 + $0x12c0] sm:$0xff]  ;;  %v621_v63 = vld [vmem:[%s12637_s1 + $0x1288] sm:$0xff] }
  0x5e   :  { %6352 = vmatpush1.bf16.msra.mxu0 %v8188_v5  ;;  %6524 = vmatpush1.bf16.msra.mxu1 %v8190_v6  ;;  %v8319_v5 = vcombine.high %v509_v0, %v517_v1  ;;  %v524_v6 = vld [vmem:[%s12637_s1 + $0xf80] sm:$0xff]  ;;  %v629_v0 = vld [vmem:[%s12637_s1 + $0x12c8] sm:$0xff] }
  0x5f   :  { %6353 = vmatprep.subr.bf16.mxu0 %v8205_v7  ;;  %6525 = vmatprep.subr.bf16.mxu1 %v8207_v8  ;;  %v532_v7 = vld [vmem:[%s12637_s1 + $0xfc0] sm:$0xff]  ;;  %v525_v8 = vld [vmem:[%s12637_s1 + $0xf88] sm:$0xff] }
  0x60   :  { %v8333_v12 = vcombine.high %v524_v6, %v532_v7  ;;  %v8332_v54 = vcombine.low %v524_v6, %v532_v7  ;;  %v8334_v20 = vcombine.low %v525_v8, %v533_v9  ;;  %v644_v6 = vld [vmem:[%s12637_s1 + $0x1340] sm:$0xff]  ;;  %v637_v7 = vld [vmem:[%s12637_s1 + $0x1308] sm:$0xff] }
  0x62   :  { %6354 = vmatpush1.bf16.msra.mxu0 %v8204_v13  ;;  %6526 = vmatpush1.bf16.msra.mxu1 %v8206_v14  ;;  %v8335_v13 = vcombine.high %v525_v8, %v533_v9  ;;  %v540_v14 = vld [vmem:[%s12637_s1 + $0x1000] sm:$0xff]  ;;  %v645_v8 = vld [vmem:[%s12637_s1 + $0x1348] sm:$0xff] }
  0x63   :  { %6355 = vmatprep.subr.bf16.mxu0 %v8221_v16  ;;  %6527 = vmatprep.subr.bf16.mxu1 %v8223_v19  ;;  %v548_v16 = vld [vmem:[%s12637_s1 + $0x1040] sm:$0xff]  ;;  %v541_v19 = vld [vmem:[%s12637_s1 + $0x1008] sm:$0xff] }
  0x64   :  { %v8349_v21 = vcombine.high %v540_v14, %v548_v16  ;;  %v8350_v17 = vcombine.low %v541_v19, %v549_v53 }
  0x66   :  { %6356 = vmatpush1.bf16.msra.mxu0 %v8220_v22  ;;  %6528 = vmatpush1.bf16.msra.mxu1 %v8222_v24  ;;  %v8351_v22 = vcombine.high %v541_v19, %v549_v53  ;;  %v556_v24 = vld [vmem:[%s12637_s1 + $0x1080] sm:$0xff]  ;;  %v661_v19 = vld [vmem:[%s12637_s1 + $0x13c8] sm:$0xff] }
  0x67   :  { %6357 = vmatprep.subr.bf16.mxu0 %v8237_v25  ;;  %6529 = vmatprep.subr.bf16.mxu1 %v8239_v26  ;;  %v564_v25 = vld [vmem:[%s12637_s1 + $0x10c0] sm:$0xff]  ;;  %v557_v26 = vld [vmem:[%s12637_s1 + $0x1088] sm:$0xff] }
  0x68   :  { %v8365_v18 = vcombine.high %v556_v24, %v564_v25  ;;  %v8364_v38 = vcombine.low %v556_v24, %v564_v25  ;;  %v676_v24 = vld [vmem:[%s12637_s1 + $0x1440] sm:$0xff]  ;;  %v669_v25 = vld [vmem:[%s12637_s1 + $0x1408] sm:$0xff] }
  0x6a   :  { %6358 = vmatpush1.bf16.msra.mxu0 %v8236_v31  ;;  %6530 = vmatpush1.bf16.msra.mxu1 %v8238_v32  ;;  %v8348_v31 = vcombine.low %v540_v14, %v548_v16  ;;  %v8367_v32 = vcombine.high %v557_v26, %v565_v28  ;;  %v660_v14 = vld [vmem:[%s12637_s1 + $0x13c0] sm:$0xff]  ;;  %v653_v16 = vld [vmem:[%s12637_s1 + $0x1388] sm:$0xff] }
  0x6b   :  { %6359 = vmatprep.subr.bf16.mxu0 %v8253_v33  ;;  %6531 = vmatprep.subr.bf16.mxu1 %v8255_v34  ;;  %v572_v33 = vld [vmem:[%s12637_s1 + $0x1100] sm:$0xff] }
  0x6c   :  { %v580_v34 = vld [vmem:[%s12637_s1 + $0x1140] sm:$0xff] }
  0x6d   :  { %v8380_v46 = vcombine.low %v572_v33, %v580_v34 }
  0x6e   :  { %6360 = vmatpush1.bf16.msra.mxu0 %v8252_v39  ;;  %6532 = vmatpush1.bf16.msra.mxu1 %v8254_v40  ;;  %v8366_v39 = vcombine.low %v557_v26, %v565_v28  ;;  %v8381_v40 = vcombine.high %v572_v33, %v580_v34  ;;  %v677_v26 = vld [vmem:[%s12637_s1 + $0x1448] sm:$0xff]  ;;  %v692_v33 = vld [vmem:[%s12637_s1 + $0x14c0] sm:$0xff] }
  0x6f   :  { %6361 = vmatprep.subr.bf16.mxu0 %v8269_v41  ;;  %6533 = vmatprep.subr.bf16.mxu1 %v8271_v42  ;;  %v8383_v41 = vcombine.high %v573_v36, %v581_v37  ;;  %v588_v42 = vld [vmem:[%s12637_s1 + $0x1180] sm:$0xff]  ;;  %v685_v34 = vld [vmem:[%s12637_s1 + $0x1488] sm:$0xff] }
  0x70   :  { %v8396_v56 = vcombine.low %v588_v42, %v596_v43 }
  0x72   :  { %6362 = vmatpush1.bf16.msra.mxu0 %v8268_v47  ;;  %6534 = vmatpush1.bf16.msra.mxu1 %v8270_v48  ;;  %v8382_v47 = vcombine.low %v573_v36, %v581_v37  ;;  %v8397_v48 = vcombine.high %v588_v42, %v596_v43  ;;  %v693_v36 = vld [vmem:[%s12637_s1 + $0x14c8] sm:$0xff]  ;;  %v708_v42 = vld [vmem:[%s12637_s1 + $0x1540] sm:$0xff] }
  0x73   :  { %6363 = vmatprep.subr.bf16.mxu0 %v8285_v49  ;;  %6535 = vmatprep.subr.bf16.mxu1 %v8287_v50  ;;  %v8399_v49 = vcombine.high %v589_v44, %v597_v45  ;;  %v604_v50 = vld [vmem:[%s12637_s1 + $0x1200] sm:$0xff]  ;;  %v701_v43 = vld [vmem:[%s12637_s1 + $0x1508] sm:$0xff] }
  0x74   :  { %v8412_v1 = vcombine.low %v604_v50, %v612_v51 }
  0x76   :  { %6364 = vmatpush1.bf16.msra.mxu0 %v8284_v57  ;;  %6536 = vmatpush1.bf16.msra.mxu1 %v8286_v59  ;;  %v8398_v57 = vcombine.low %v589_v44, %v597_v45  ;;  %v8413_v59 = vcombine.high %v604_v50, %v612_v51  ;;  %v709_v44 = vld [vmem:[%s12637_s1 + $0x1548] sm:$0xff]  ;;  %v724_v50 = vld [vmem:[%s12637_s1 + $0x15c0] sm:$0xff] }
  0x77   :  { %6365 = vmatprep.subr.bf16.mxu0 %v8301_v60  ;;  %6537 = vmatprep.subr.bf16.mxu1 %v8303_v61  ;;  %v8415_v60 = vcombine.high %v605_v52, %v613_v55  ;;  %v620_v61 = vld [vmem:[%s12637_s1 + $0x1280] sm:$0xff]  ;;  %v717_v51 = vld [vmem:[%s12637_s1 + $0x1588] sm:$0xff] }
  0x78   :  { %v8428_v9 = vcombine.low %v620_v61, %v628_v62 }
  0x7a   :  { %6366 = vmatpush1.bf16.msra.mxu0 %v8300_v2  ;;  %6538 = vmatpush1.bf16.msra.mxu1 %v8302_v3  ;;  %v8414_v2 = vcombine.low %v605_v52, %v613_v55  ;;  %v8429_v3 = vcombine.high %v620_v61, %v628_v62  ;;  %v725_v52 = vld [vmem:[%s12637_s1 + $0x15c8] sm:$0xff]  ;;  %v740_v61 = vld [vmem:[%s12637_s1 + $0x1640] sm:$0xff] }
  0x7b   :  { %6367 = vmatprep.subr.bf16.mxu0 %v8317_v4  ;;  %6539 = vmatprep.subr.bf16.mxu1 %v8319_v5  ;;  %v8431_v4 = vcombine.high %v621_v63, %v629_v0  ;;  %v636_v5 = vld [vmem:[%s12637_s1 + $0x1300] sm:$0xff]  ;;  %v733_v62 = vld [vmem:[%s12637_s1 + $0x1608] sm:$0xff] }
  0x7c   :  { %v8444_v53 = vcombine.low %v636_v5, %v644_v6 }
  0x7e   :  { %6368 = vmatpush1.bf16.msra.mxu0 %v8316_v10  ;;  %6540 = vmatpush1.bf16.msra.mxu1 %v8318_v11  ;;  %v8430_v10 = vcombine.low %v621_v63, %v629_v0  ;;  %v8445_v11 = vcombine.high %v636_v5, %v644_v6  ;;  %v741_v63 = vld [vmem:[%s12637_s1 + $0x1648] sm:$0xff]  ;;  %v756_v5 = vld [vmem:[%s12637_s1 + $0x16c0] sm:$0xff] }
  0x7f   :  { %6369 = vmatprep.subr.bf16.mxu0 %v8333_v12  ;;  %6541 = vmatprep.subr.bf16.mxu1 %v8335_v13  ;;  %v8447_v12 = vcombine.high %v637_v7, %v645_v8  ;;  %v652_v13 = vld [vmem:[%s12637_s1 + $0x1380] sm:$0xff]  ;;  %v749_v6 = vld [vmem:[%s12637_s1 + $0x1688] sm:$0xff] }
  0x80   :  { %v8460_v28 = vcombine.low %v652_v13, %v660_v14 }
  0x82   :  { %6370 = vmatpush1.bf16.msra.mxu0 %v8332_v54  ;;  %6542 = vmatpush1.bf16.msra.mxu1 %v8334_v20  ;;  %v8446_v54 = vcombine.low %v637_v7, %v645_v8  ;;  %v8461_v20 = vcombine.high %v652_v13, %v660_v14  ;;  %v757_v7 = vld [vmem:[%s12637_s1 + $0x16c8] sm:$0xff]  ;;  %v772_v13 = vld [vmem:[%s12637_s1 + $0x1740] sm:$0xff] }
  0x83   :  { %6382 = vmatprep.subr.bf16.mxu0 %v8349_v21  ;;  %6554 = vmatprep.subr.bf16.mxu1 %v8351_v22  ;;  %v8463_v21 = vcombine.high %v653_v16, %v661_v19  ;;  %v668_v22 = vld [vmem:[%s12637_s1 + $0x1400] sm:$0xff]  ;;  %v765_v14 = vld [vmem:[%s12637_s1 + $0x1708] sm:$0xff] }
  0x84   :  { %v8476_v37 = vcombine.low %v668_v22, %v676_v24 }
  0x85   :  { %6372 = vmatmul.mubr.bf16.vlgmr.msra.gmra.mrb[0].mxu0 %v9517_v27  ;;  %6544 = vmatmul.mubr.bf16.vlgmr.msra.gmra.mrb[0].mxu1 %v9517_v27 }
  0x86   :  { %6383 = vmatpush1.bf16.msra.mxu0 %v8348_v31  ;;  %6555 = vmatpush1.bf16.msra.mxu1 %v8350_v17  ;;  %v8462_v31 = vcombine.low %v653_v16, %v661_v19  ;;  %v8477_v17 = vcombine.high %v668_v22, %v676_v24  ;;  %v773_v16 = vld [vmem:[%s12637_s1 + $0x1748] sm:$0xff]  ;;  %v788_v22 = vld [vmem:[%s12637_s1 + $0x17c0] sm:$0xff] }
  0x87   :  { %6384 = vmatprep.subr.bf16.mxu0 %v8365_v18  ;;  %6556 = vmatprep.subr.bf16.mxu1 %v8367_v32  ;;  %v8479_v18 = vcombine.high %v669_v25, %v677_v26  ;;  %v684_v32 = vld [vmem:[%s12637_s1 + $0x1480] sm:$0xff]  ;;  %v781_v24 = vld [vmem:[%s12637_s1 + $0x1788] sm:$0xff] }
  0x88   :  { %6414 = vmatprep.mubr.bf16.mxu0 %v9540_v35  ;;  %6586 = vmatprep.mubr.bf16.mxu1 %v9540_v35  ;;  %v8492_v45 = vcombine.low %v684_v32, %v692_v33 }
  0x8a   :  { %6385 = vmatpush1.bf16.msra.mxu0 %v8364_v38  ;;  %6557 = vmatpush1.bf16.msra.mxu1 %v8366_v39  ;;  %v8478_v38 = vcombine.low %v669_v25, %v677_v26  ;;  %v8493_v39 = vcombine.high %v684_v32, %v692_v33  ;;  %v789_v25 = vld [vmem:[%s12637_s1 + $0x17c8] sm:$0xff]  ;;  %v804_v32 = vld [vmem:[%s12637_s1 + $0x1840] sm:$0xff] }
  0x8b   :  { %6386 = vmatprep.subr.bf16.mxu0 %v8381_v40  ;;  %6558 = vmatprep.subr.bf16.mxu1 %v8383_v41  ;;  %v8495_v40 = vcombine.high %v685_v34, %v693_v36  ;;  %v700_v41 = vld [vmem:[%s12637_s1 + $0x1500] sm:$0xff]  ;;  %v797_v33 = vld [vmem:[%s12637_s1 + $0x1808] sm:$0xff] }
  0x8c   :  { %v8508_v55 = vcombine.low %v700_v41, %v708_v42 }
  0x8e   :  { %6387 = vmatpush1.bf16.msra.mxu0 %v8380_v46  ;;  %6559 = vmatpush1.bf16.msra.mxu1 %v8382_v47  ;;  %v8494_v46 = vcombine.low %v685_v34, %v693_v36  ;;  %v8509_v47 = vcombine.high %v700_v41, %v708_v42  ;;  %v805_v34 = vld [vmem:[%s12637_s1 + $0x1848] sm:$0xff]  ;;  %v820_v41 = vld [vmem:[%s12637_s1 + $0x18c0] sm:$0xff] }
  0x8f   :  { %6388 = vmatprep.subr.bf16.mxu0 %v8397_v48  ;;  %6560 = vmatprep.subr.bf16.mxu1 %v8399_v49  ;;  %v8511_v48 = vcombine.high %v701_v43, %v709_v44  ;;  %v716_v49 = vld [vmem:[%s12637_s1 + $0x1580] sm:$0xff]  ;;  %v813_v42 = vld [vmem:[%s12637_s1 + $0x1888] sm:$0xff] }
  0x90   :  { %v8524_v0 = vcombine.low %v716_v49, %v724_v50 }
  0x92   :  { %6389 = vmatpush1.bf16.msra.mxu0 %v8396_v56  ;;  %6561 = vmatpush1.bf16.msra.mxu1 %v8398_v57  ;;  %v8510_v56 = vcombine.low %v701_v43, %v709_v44  ;;  %v8525_v57 = vcombine.high %v716_v49, %v724_v50  ;;  %v9731_v43 = vcombine.low %v9525_v29, %v9530_v30  ;;  %v821_v44 = vld [vmem:[%s12637_s1 + $0x18c8] sm:$0xff]  ;;  %v828_v49 = vld [vmem:[%s12637_s1 + $0x1900] sm:$0xff] }
  0x93   :  { %6390 = vmatprep.subr.bf16.mxu0 %v8413_v59  ;;  %6562 = vmatprep.subr.bf16.mxu1 %v8415_v60  ;;  %v8527_v59 = vcombine.high %v717_v51, %v725_v52  ;;  %v732_v60 = vld [vmem:[%s12637_s1 + $0x1600] sm:$0xff]  ;;  %v8606_v29 = vcombine.low %v797_v33, %v805_v34 }
  0x94   :  { %v8540_v8 = vcombine.low %v732_v60, %v740_v61  ;;  %v836_v50 = vld [vmem:[%s12637_s1 + $0x1940] sm:$0xff] }
  0x96   :  { %6391 = vmatpush1.bf16.msra.mxu0 %v8412_v1  ;;  %6563 = vmatpush1.bf16.msra.mxu1 %v8414_v2  ;;  %v8526_v1 = vcombine.low %v717_v51, %v725_v52  ;;  %v8541_v2 = vcombine.high %v732_v60, %v740_v61  ;;  %v829_v52 = vld [vmem:[%s12637_s1 + $0x1908] sm:$0xff]  ;;  %v844_v61 = vld [vmem:[%s12637_s1 + $0x1980] sm:$0xff] }
  0x97   :  { %6392 = vmatprep.subr.bf16.mxu0 %v8429_v3  ;;  %6564 = vmatprep.subr.bf16.mxu1 %v8431_v4  ;;  %v8543_v3 = vcombine.high %v733_v62, %v741_v63  ;;  %v748_v4 = vld [vmem:[%s12637_s1 + $0x1680] sm:$0xff] }
  0x98   :  { %v8556_v19 = vcombine.low %v748_v4, %v756_v5 }
  0x9a   :  { %6393 = vmatpush1.bf16.msra.mxu0 %v8428_v9  ;;  %6565 = vmatpush1.bf16.msra.mxu1 %v8430_v10  ;;  %v8542_v9 = vcombine.low %v733_v62, %v741_v63  ;;  %v8557_v10 = vcombine.high %v748_v4, %v756_v5  ;;  %v852_v62 = vld [vmem:[%s12637_s1 + $0x19c0] sm:$0xff]  ;;  %v845_v63 = vld [vmem:[%s12637_s1 + $0x1988] sm:$0xff] }
  0x9b   :  { %6394 = vmatprep.subr.bf16.mxu0 %v8445_v11  ;;  %6566 = vmatprep.subr.bf16.mxu1 %v8447_v12  ;;  %v8559_v11 = vcombine.high %v749_v6, %v757_v7  ;;  %v764_v12 = vld [vmem:[%s12637_s1 + $0x1700] sm:$0xff] }
  0x9c   :  { %v8572_v26 = vcombine.low %v764_v12, %v772_v13  ;;  %v860_v5 = vld [vmem:[%s12637_s1 + $0x1a00] sm:$0xff] }
  0x9e   :  { %6395 = vmatpush1.bf16.msra.mxu0 %v8444_v53  ;;  %6567 = vmatpush1.bf16.msra.mxu1 %v8446_v54  ;;  %v8558_v53 = vcombine.low %v749_v6, %v757_v7  ;;  %v8573_v54 = vcombine.high %v764_v12, %v772_v13  ;;  %v868_v6 = vld [vmem:[%s12637_s1 + $0x1a40] sm:$0xff]  ;;  %v861_v7 = vld [vmem:[%s12637_s1 + $0x1a08] sm:$0xff] }
  0x9f   :  { %6396 = vmatprep.subr.bf16.mxu0 %v8461_v20  ;;  %6568 = vmatprep.subr.bf16.mxu1 %v8463_v21  ;;  %v8575_v20 = vcombine.high %v765_v14, %v773_v16  ;;  %v780_v21 = vld [vmem:[%s12637_s1 + $0x1780] sm:$0xff] }
  0xa0   :  { %v8588_v36 = vcombine.low %v780_v21, %v788_v22  ;;  %v876_v13 = vld [vmem:[%s12637_s1 + $0x1a80] sm:$0xff] }
  0xa2   :  { %6397 = vmatpush1.bf16.msra.mxu0 %v8460_v28  ;;  %6569 = vmatpush1.bf16.msra.mxu1 %v8462_v31  ;;  %v8574_v28 = vcombine.low %v765_v14, %v773_v16  ;;  %v8589_v31 = vcombine.high %v780_v21, %v788_v22  ;;  %v884_v14 = vld [vmem:[%s12637_s1 + $0x1ac0] sm:$0xff]  ;;  %v877_v16 = vld [vmem:[%s12637_s1 + $0x1a88] sm:$0xff] }
  0xa3   :  { %6398 = vmatprep.subr.bf16.mxu0 %v8477_v17  ;;  %6570 = vmatprep.subr.bf16.mxu1 %v8479_v18  ;;  %v8591_v17 = vcombine.high %v781_v24, %v789_v25  ;;  %v796_v18 = vld [vmem:[%s12637_s1 + $0x1800] sm:$0xff] }
  0xa4   :  { %v892_v22 = vld [vmem:[%s12637_s1 + $0x1b00] sm:$0xff] }
  0xa6   :  { %6399 = vmatpush1.bf16.msra.mxu0 %v8476_v37  ;;  %6571 = vmatpush1.bf16.msra.mxu1 %v8478_v38  ;;  %v8590_v37 = vcombine.low %v781_v24, %v789_v25  ;;  %v8605_v38 = vcombine.high %v796_v18, %v804_v32  ;;  %v900_v24 = vld [vmem:[%s12637_s1 + $0x1b40] sm:$0xff]  ;;  %v893_v25 = vld [vmem:[%s12637_s1 + $0x1b08] sm:$0xff] }
  0xa7   :  { %6400 = vmatprep.subr.bf16.mxu0 %v8493_v39  ;;  %6572 = vmatprep.subr.bf16.mxu1 %v8495_v40  ;;  %v8607_v39 = vcombine.high %v797_v33, %v805_v34  ;;  %v812_v40 = vld [vmem:[%s12637_s1 + $0x1880] sm:$0xff]  ;;  %v909_v34 = vld [vmem:[%s12637_s1 + $0x1b88] sm:$0xff] }
  0xa8   :  { %v8621_v30 = vcombine.high %v812_v40, %v820_v41  ;;  %v916_v33 = vld [vmem:[%s12637_s1 + $0x1bc0] sm:$0xff] }
  0xaa   :  { %6401 = vmatpush1.bf16.msra.mxu0 %v8492_v45  ;;  %6573 = vmatpush1.bf16.msra.mxu1 %v8494_v46  ;;  %v9739_v45 = vld [vmem:[%s12638_s0 + $0x18] sm:$0xff] }
  0xab   :  { %6402 = vmatprep.subr.bf16.mxu0 %v8509_v47  ;;  %6574 = vmatprep.subr.bf16.mxu1 %v8511_v48  ;;  %v9744_v46 = vld [vmem:[%s12638_s0 + $0x38] sm:$0xff]  ;;  %v8604_v47 = vcombine.low %v796_v18, %v804_v32  ;;  %v8623_v48 = vcombine.high %v813_v42, %v821_v44  ;;  %v908_v32 = vld [vmem:[%s12637_s1 + $0x1b80] sm:$0xff] }
  0xac   :  { %v9754_v51 = vcombine.high %v9739_v45, %v9744_v46 }
  0xae   :  { %6403 = vmatpush1.bf16.msra.mxu0 %v8508_v55  ;;  %6575 = vmatpush1.bf16.msra.mxu1 %v8510_v56  ;;  %v837_v55 = vld [vmem:[%s12637_s1 + $0x1948] sm:$0xff]  ;;  %v8620_v56 = vcombine.low %v812_v40, %v820_v41  ;;  %v924_v41 = vld [vmem:[%s12637_s1 + $0x1c00] sm:$0xff] }
  0xaf   :  { %6404 = vmatprep.subr.bf16.mxu0 %v8525_v57  ;;  %6576 = vmatprep.subr.bf16.mxu1 %v8527_v59  ;;  %v8622_v57 = vcombine.low %v813_v42, %v821_v44  ;;  %v8637_v59 = vcombine.high %v828_v49, %v836_v50  ;;  %v8639_v60 = vcombine.high %v829_v52, %v837_v55  ;;  %v932_v42 = vld [vmem:[%s12637_s1 + $0x1c40] sm:$0xff]  ;;  %v925_v44 = vld [vmem:[%s12637_s1 + $0x1c08] sm:$0xff] }
  0xb2   :  { %6405 = vmatpush1.bf16.msra.mxu0 %v8524_v0  ;;  %6577 = vmatpush1.bf16.msra.mxu1 %v8526_v1  ;;  %v853_v0 = vld [vmem:[%s12637_s1 + $0x19c8] sm:$0xff]  ;;  %v8636_v1 = vcombine.low %v828_v49, %v836_v50  ;;  %v940_v50 = vld [vmem:[%s12637_s1 + $0x1c80] sm:$0xff] }
  0xb3   :  { %6406 = vmatprep.subr.bf16.mxu0 %v8541_v2  ;;  %6578 = vmatprep.subr.bf16.mxu1 %v8543_v3  ;;  %v8638_v2 = vcombine.low %v829_v52, %v837_v55  ;;  %v8653_v3 = vcombine.high %v844_v61, %v852_v62  ;;  %v8655_v4 = vcombine.high %v845_v63, %v853_v0  ;;  %v948_v52 = vld [vmem:[%s12637_s1 + $0x1cc0] sm:$0xff]  ;;  %v941_v55 = vld [vmem:[%s12637_s1 + $0x1c88] sm:$0xff] }
  0xb6   :  { %6407 = vmatpush1.bf16.msra.mxu0 %v8540_v8  ;;  %6579 = vmatpush1.bf16.msra.mxu1 %v8542_v9  ;;  %v869_v8 = vld [vmem:[%s12637_s1 + $0x1a48] sm:$0xff]  ;;  %v8652_v9 = vcombine.low %v844_v61, %v852_v62  ;;  %v956_v62 = vld [vmem:[%s12637_s1 + $0x1d00] sm:$0xff] }
  0xb7   :  { %6408 = vmatprep.subr.bf16.mxu0 %v8557_v10  ;;  %6580 = vmatprep.subr.bf16.mxu1 %v8559_v11  ;;  %v8654_v10 = vcombine.low %v845_v63, %v853_v0  ;;  %v8669_v11 = vcombine.high %v860_v5, %v868_v6  ;;  %v8671_v12 = vcombine.high %v861_v7, %v869_v8  ;;  %v964_v63 = vld [vmem:[%s12637_s1 + $0x1d40] sm:$0xff]  ;;  %v957_v0 = vld [vmem:[%s12637_s1 + $0x1d08] sm:$0xff] }
  0xba   :  { %6409 = vmatpush1.bf16.msra.mxu0 %v8556_v19  ;;  %6581 = vmatpush1.bf16.msra.mxu1 %v8558_v53  ;;  %v885_v19 = vld [vmem:[%s12637_s1 + $0x1ac8] sm:$0xff]  ;;  %v8668_v53 = vcombine.low %v860_v5, %v868_v6  ;;  %v972_v6 = vld [vmem:[%s12637_s1 + $0x1d80] sm:$0xff] }
  0xbb   :  { %6410 = vmatprep.subr.bf16.mxu0 %v8573_v54  ;;  %6582 = vmatprep.subr.bf16.mxu1 %v8575_v20  ;;  %v8670_v54 = vcombine.low %v861_v7, %v869_v8  ;;  %v8685_v20 = vcombine.high %v876_v13, %v884_v14  ;;  %v8687_v21 = vcombine.high %v877_v16, %v885_v19  ;;  %v980_v7 = vld [vmem:[%s12637_s1 + $0x1dc0] sm:$0xff]  ;;  %v973_v8 = vld [vmem:[%s12637_s1 + $0x1d88] sm:$0xff] }
  0xbe   :  { %6411 = vmatpush1.bf16.msra.mxu0 %v8572_v26  ;;  %6583 = vmatpush1.bf16.msra.mxu1 %v8574_v28  ;;  %v901_v26 = vld [vmem:[%s12637_s1 + $0x1b48] sm:$0xff]  ;;  %v8684_v28 = vcombine.low %v876_v13, %v884_v14  ;;  %v988_v14 = vld [vmem:[%s12637_s1 + $0x1e00] sm:$0xff] }
  0xbf   :  { %6412 = vmatprep.subr.bf16.mxu0 %v8589_v31  ;;  %6584 = vmatprep.subr.bf16.mxu1 %v8591_v17  ;;  %v8686_v31 = vcombine.low %v877_v16, %v885_v19  ;;  %v8701_v17 = vcombine.high %v892_v22, %v900_v24  ;;  %v8703_v18 = vcombine.high %v893_v25, %v901_v26  ;;  %v996_v16 = vld [vmem:[%s12637_s1 + $0x1e40] sm:$0xff]  ;;  %v989_v19 = vld [vmem:[%s12637_s1 + $0x1e08] sm:$0xff] }
  0xc2   :  { %6413 = vmatpush1.bf16.msra.mxu0 %v8588_v36  ;;  %6585 = vmatpush1.bf16.msra.mxu1 %v8590_v37  ;;  %v917_v36 = vld [vmem:[%s12637_s1 + $0x1bc8] sm:$0xff]  ;;  %v8700_v37 = vcombine.low %v892_v22, %v900_v24  ;;  %v1004_v24 = vld [vmem:[%s12637_s1 + $0x1e80] sm:$0xff] }
  0xc3   :  { %6425 = vmatprep.subr.bf16.mxu0 %v8605_v38  ;;  %6597 = vmatprep.subr.bf16.mxu1 %v8607_v39  ;;  %v8702_v38 = vcombine.low %v893_v25, %v901_v26  ;;  %v8717_v39 = vcombine.high %v908_v32, %v916_v33  ;;  %v8719_v40 = vcombine.high %v909_v34, %v917_v36  ;;  %v1012_v25 = vld [vmem:[%s12637_s1 + $0x1ec0] sm:$0xff]  ;;  %v1005_v26 = vld [vmem:[%s12637_s1 + $0x1e88] sm:$0xff] }
  0xc5   :  { %6415 = vmatmul.mubr.bf16.vlgmr.msra.gmra.mrb[0].mxu0 %v9731_v43  ;;  %6587 = vmatmul.mubr.bf16.vlgmr.msra.gmra.mrb[0].mxu1 %v9731_v43 }
  0xc6   :  { %6426 = vmatpush1.bf16.msra.mxu0 %v8604_v47  ;;  %6598 = vmatpush1.bf16.msra.mxu1 %v8606_v29  ;;  %v933_v47 = vld [vmem:[%s12637_s1 + $0x1c48] sm:$0xff]  ;;  %v8716_v29 = vcombine.low %v908_v32, %v916_v33  ;;  %v1020_v33 = vld [vmem:[%s12637_s1 + $0x1f00] sm:$0xff] }
  0xc7   :  { %6427 = vmatprep.subr.bf16.mxu0 %v8621_v30  ;;  %6599 = vmatprep.subr.bf16.mxu1 %v8623_v48  ;;  %v8718_v30 = vcombine.low %v909_v34, %v917_v36  ;;  %v8733_v48 = vcombine.high %v924_v41, %v932_v42  ;;  %v8735_v49 = vcombine.high %v925_v44, %v933_v47  ;;  %v1028_v34 = vld [vmem:[%s12637_s1 + $0x1f40] sm:$0xff]  ;;  %v1021_v36 = vld [vmem:[%s12637_s1 + $0x1f08] sm:$0xff] }
  0xc8   :  { %6457 = vmatprep.mubr.bf16.mxu0 %v9754_v51  ;;  %6629 = vmatprep.mubr.bf16.mxu1 %v9754_v51 }
  0xca   :  { %6428 = vmatpush1.bf16.msra.mxu0 %v8620_v56  ;;  %6600 = vmatpush1.bf16.msra.mxu1 %v8622_v57  ;;  %v949_v56 = vld [vmem:[%s12637_s1 + $0x1cc8] sm:$0xff]  ;;  %v8732_v57 = vcombine.low %v924_v41, %v932_v42  ;;  %v1036_v42 = vld [vmem:[%s12637_s1 + $0x1f80] sm:$0xff] }
  0xcb   :  { %6429 = vmatprep.subr.bf16.mxu0 %v8637_v59  ;;  %6601 = vmatprep.subr.bf16.mxu1 %v8639_v60  ;;  %v8734_v59 = vcombine.low %v925_v44, %v933_v47  ;;  %v8749_v60 = vcombine.high %v940_v50, %v948_v52  ;;  %v8751_v61 = vcombine.high %v941_v55, %v949_v56  ;;  %v1044_v44 = vld [vmem:[%s12637_s1 + $0x1fc0] sm:$0xff]  ;;  %v1037_v47 = vld [vmem:[%s12637_s1 + $0x1f88] sm:$0xff] }
  0xce   :  { %6430 = vmatpush1.bf16.msra.mxu0 %v8636_v1  ;;  %6602 = vmatpush1.bf16.msra.mxu1 %v8638_v2  ;;  %v965_v1 = vld [vmem:[%s12637_s1 + $0x1d48] sm:$0xff]  ;;  %v8748_v2 = vcombine.low %v940_v50, %v948_v52  ;;  %v30_v52 = vld [vmem:[%s12637_s1 + $0x10] sm:$0xff] }
  0xcf   :  { %6431 = vmatprep.subr.bf16.mxu0 %v8653_v3  ;;  %6603 = vmatprep.subr.bf16.mxu1 %v8655_v4  ;;  %v8750_v3 = vcombine.low %v941_v55, %v949_v56  ;;  %v8765_v4 = vcombine.high %v956_v62, %v964_v63  ;;  %v8767_v5 = vcombine.high %v957_v0, %v965_v1  ;;  %v38_v55 = vld [vmem:[%s12637_s1 + $0x50] sm:$0xff]  ;;  %v31_v56 = vld [vmem:[%s12637_s1 + $0x18] sm:$0xff] }
  0xd2   :  { %6432 = vmatpush1.bf16.msra.mxu0 %v8652_v9  ;;  %6604 = vmatpush1.bf16.msra.mxu1 %v8654_v10  ;;  %v981_v9 = vld [vmem:[%s12637_s1 + $0x1dc8] sm:$0xff]  ;;  %v8764_v10 = vcombine.low %v956_v62, %v964_v63  ;;  %v46_v63 = vld [vmem:[%s12637_s1 + $0x90] sm:$0xff] }
  0xd3   :  { %6433 = vmatprep.subr.bf16.mxu0 %v8669_v11  ;;  %6605 = vmatprep.subr.bf16.mxu1 %v8671_v12  ;;  %v8766_v11 = vcombine.low %v957_v0, %v965_v1  ;;  %v8781_v12 = vcombine.high %v972_v6, %v980_v7  ;;  %v8783_v13 = vcombine.high %v973_v8, %v981_v9  ;;  %v54_v0 = vld [vmem:[%s12637_s1 + $0xd0] sm:$0xff] }
  0xd4   :  { %v9942_v1 = vcombine.low %v9739_v45, %v9744_v46  ;;  %v62_v45 = vld [vmem:[%s12637_s1 + $0x110] sm:$0xff] }
  0xd5   :  { %v70_v46 = vld [vmem:[%s12637_s1 + $0x150] sm:$0xff] }
  0xd6   :  { %6434 = vmatpush1.bf16.msra.mxu0 %v8668_v53  ;;  %6606 = vmatpush1.bf16.msra.mxu1 %v8670_v54  ;;  %v997_v53 = vld [vmem:[%s12637_s1 + $0x1e48] sm:$0xff]  ;;  %v8780_v54 = vcombine.low %v972_v6, %v980_v7  ;;  %v7857_v6 = vcombine.high %v46_v63, %v54_v0 }
  0xd7   :  { %6435 = vmatprep.subr.bf16.mxu0 %v8685_v20  ;;  %6607 = vmatprep.subr.bf16.mxu1 %v8687_v21  ;;  %v8782_v20 = vcombine.low %v973_v8, %v981_v9  ;;  %v8797_v21 = vcombine.high %v988_v14, %v996_v16  ;;  %v8799_v22 = vcombine.high %v989_v19, %v997_v53  ;;  %v63_v8 = vld [vmem:[%s12637_s1 + $0x118] sm:$0xff] }
  0xd8   :  { %v71_v9 = vld [vmem:[%s12637_s1 + $0x158] sm:$0xff] }
  0xda   :  { %6436 = vmatpush1.bf16.msra.mxu0 %v8684_v28  ;;  %6608 = vmatpush1.bf16.msra.mxu1 %v8686_v31  ;;  %v1013_v28 = vld [vmem:[%s12637_s1 + $0x1ec8] sm:$0xff]  ;;  %v8796_v31 = vcombine.low %v988_v14, %v996_v16  ;;  %v78_v14 = vld [vmem:[%s12637_s1 + $0x190] sm:$0xff] }
  0xdb   :  { %6437 = vmatprep.subr.bf16.mxu0 %v8701_v17  ;;  %6609 = vmatprep.subr.bf16.mxu1 %v8703_v18  ;;  %v8798_v17 = vcombine.low %v989_v19, %v997_v53  ;;  %v8813_v18 = vcombine.high %v1004_v24, %v1012_v25  ;;  %v8815_v32 = vcombine.high %v1005_v26, %v1013_v28  ;;  %v86_v16 = vld [vmem:[%s12637_s1 + $0x1d0] sm:$0xff]  ;;  %v79_v19 = vld [vmem:[%s12637_s1 + $0x198] sm:$0xff] }
  0xdc   :  { %v87_v53 = vld [vmem:[%s12637_s1 + $0x1d8] sm:$0xff] }
  0xde   :  { %6438 = vmatpush1.bf16.msra.mxu0 %v8700_v37  ;;  %6610 = vmatpush1.bf16.msra.mxu1 %v8702_v38  ;;  %v1029_v37 = vld [vmem:[%s12637_s1 + $0x1f48] sm:$0xff]  ;;  %v8812_v38 = vcombine.low %v1004_v24, %v1012_v25  ;;  %v94_v24 = vld [vmem:[%s12637_s1 + $0x210] sm:$0xff] }
  0xdf   :  { %6439 = vmatprep.subr.bf16.mxu0 %v8717_v39  ;;  %6611 = vmatprep.subr.bf16.mxu1 %v8719_v40  ;;  %v8814_v39 = vcombine.low %v1005_v26, %v1013_v28  ;;  %v8829_v40 = vcombine.high %v1020_v33, %v1028_v34  ;;  %v8831_v41 = vcombine.high %v1021_v36, %v1029_v37  ;;  %v102_v25 = vld [vmem:[%s12637_s1 + $0x250] sm:$0xff]  ;;  %v95_v26 = vld [vmem:[%s12637_s1 + $0x218] sm:$0xff] }
  0xe0   :  { %v103_v28 = vld [vmem:[%s12637_s1 + $0x258] sm:$0xff] }
  0xe2   :  { %6440 = vmatpush1.bf16.msra.mxu0 %v8716_v29  ;;  %6612 = vmatpush1.bf16.msra.mxu1 %v8718_v30  ;;  %v1045_v29 = vld [vmem:[%s12637_s1 + $0x1fc8] sm:$0xff]  ;;  %v8828_v30 = vcombine.low %v1020_v33, %v1028_v34  ;;  %v110_v33 = vld [vmem:[%s12637_s1 + $0x290] sm:$0xff] }
  0xe3   :  { %6441 = vmatprep.subr.bf16.mxu0 %v8733_v48  ;;  %6613 = vmatprep.subr.bf16.mxu1 %v8735_v49  ;;  %v8830_v48 = vcombine.low %v1021_v36, %v1029_v37  ;;  %v8845_v49 = vcombine.high %v1036_v42, %v1044_v44  ;;  %v8847_v50 = vcombine.high %v1037_v47, %v1045_v29  ;;  %v118_v34 = vld [vmem:[%s12637_s1 + $0x2d0] sm:$0xff]  ;;  %v111_v36 = vld [vmem:[%s12637_s1 + $0x298] sm:$0xff] }
  0xe4   :  { %v119_v37 = vld [vmem:[%s12637_s1 + $0x2d8] sm:$0xff] }
  0xe6   :  { %6442 = vmatpush1.bf16.msra.mxu0 %v8732_v57  ;;  %6614 = vmatpush1.bf16.msra.mxu1 %v8734_v59  ;;  %v39_v57 = vld [vmem:[%s12637_s1 + $0x58] sm:$0xff]  ;;  %v8844_v59 = vcombine.low %v1036_v42, %v1044_v44  ;;  %v126_v42 = vld [vmem:[%s12637_s1 + $0x310] sm:$0xff] }
  0xe7   :  { %6443 = vmatprep.subr.bf16.mxu0 %v8749_v60  ;;  %6615 = vmatprep.subr.bf16.mxu1 %v8751_v61  ;;  %v8846_v60 = vcombine.low %v1037_v47, %v1045_v29  ;;  %v7841_v61 = vcombine.high %v30_v52, %v38_v55  ;;  %v7843_v62 = vcombine.high %v31_v56, %v39_v57  ;;  %v134_v44 = vld [vmem:[%s12637_s1 + $0x350] sm:$0xff]  ;;  %v127_v47 = vld [vmem:[%s12637_s1 + $0x318] sm:$0xff] }
  0xe8   :  { %v135_v29 = vld [vmem:[%s12637_s1 + $0x358] sm:$0xff] }
  0xea   :  { %6444 = vmatpush1.bf16.msra.mxu0 %v8748_v2  ;;  %6616 = vmatpush1.bf16.msra.mxu1 %v8750_v3  ;;  %v47_v2 = vld [vmem:[%s12637_s1 + $0x98] sm:$0xff] }
  0xeb   :  { %6445 = vmatprep.subr.bf16.mxu0 %v8765_v4  ;;  %6617 = vmatprep.subr.bf16.mxu1 %v8767_v5  ;;  %v55_v3 = vld [vmem:[%s12637_s1 + $0xd8] sm:$0xff]  ;;  %v7840_v4 = vcombine.low %v30_v52, %v38_v55  ;;  %v7842_v5 = vcombine.low %v31_v56, %v39_v57  ;;  %v142_v52 = vld [vmem:[%s12637_s1 + $0x390] sm:$0xff] }
  0xec   :  { %v7859_v7 = vcombine.high %v47_v2, %v55_v3  ;;  %v150_v55 = vld [vmem:[%s12637_s1 + $0x3d0] sm:$0xff]  ;;  %v143_v56 = vld [vmem:[%s12637_s1 + $0x398] sm:$0xff] }
  0xed   :  { %v151_v57 = vld [vmem:[%s12637_s1 + $0x3d8] sm:$0xff] }
  0xee   :  { %6446 = vmatpush1.bf16.msra.mxu0 %v8764_v10  ;;  %6618 = vmatpush1.bf16.msra.mxu1 %v8766_v11  ;;  %v7856_v10 = vcombine.low %v46_v63, %v54_v0  ;;  %v7858_v11 = vcombine.low %v47_v2, %v55_v3  ;;  %v158_v63 = vld [vmem:[%s12637_s1 + $0x410] sm:$0xff]  ;;  %v159_v2 = vld [vmem:[%s12637_s1 + $0x418] sm:$0xff] }
  0xef   :  { %6447 = vmatprep.subr.bf16.mxu0 %v8781_v12  ;;  %6619 = vmatprep.subr.bf16.mxu1 %v8783_v13  ;;  %v7873_v12 = vcombine.high %v62_v45, %v70_v46  ;;  %v7875_v13 = vcombine.high %v63_v8, %v71_v9  ;;  %v166_v0 = vld [vmem:[%s12637_s1 + $0x450] sm:$0xff]  ;;  %v167_v3 = vld [vmem:[%s12637_s1 + $0x458] sm:$0xff] }
  0xf2   :  { %6448 = vmatpush1.bf16.msra.mxu0 %v8780_v54  ;;  %6620 = vmatpush1.bf16.msra.mxu1 %v8782_v20  ;;  %v7872_v54 = vcombine.low %v62_v45, %v70_v46  ;;  %v7874_v20 = vcombine.low %v63_v8, %v71_v9  ;;  %v174_v45 = vld [vmem:[%s12637_s1 + $0x490] sm:$0xff]  ;;  %v175_v8 = vld [vmem:[%s12637_s1 + $0x498] sm:$0xff] }
  0xf3   :  { %6449 = vmatprep.subr.bf16.mxu0 %v8797_v21  ;;  %6621 = vmatprep.subr.bf16.mxu1 %v8799_v22  ;;  %v7889_v21 = vcombine.high %v78_v14, %v86_v16  ;;  %v7891_v22 = vcombine.high %v79_v19, %v87_v53  ;;  %v182_v46 = vld [vmem:[%s12637_s1 + $0x4d0] sm:$0xff]  ;;  %v183_v9 = vld [vmem:[%s12637_s1 + $0x4d8] sm:$0xff] }
  0xf6   :  { %6450 = vmatpush1.bf16.msra.mxu0 %v8796_v31  ;;  %6622 = vmatpush1.bf16.msra.mxu1 %v8798_v17  ;;  %v7888_v31 = vcombine.low %v78_v14, %v86_v16  ;;  %v7890_v17 = vcombine.low %v79_v19, %v87_v53  ;;  %v190_v14 = vld [vmem:[%s12637_s1 + $0x510] sm:$0xff]  ;;  %v191_v19 = vld [vmem:[%s12637_s1 + $0x518] sm:$0xff] }
  0xf7   :  { %6451 = vmatprep.subr.bf16.mxu0 %v8813_v18  ;;  %6623 = vmatprep.subr.bf16.mxu1 %v8815_v32  ;;  %v7905_v18 = vcombine.high %v94_v24, %v102_v25  ;;  %v7907_v32 = vcombine.high %v95_v26, %v103_v28  ;;  %v198_v16 = vld [vmem:[%s12637_s1 + $0x550] sm:$0xff]  ;;  %v199_v53 = vld [vmem:[%s12637_s1 + $0x558] sm:$0xff] }
  0xfa   :  { %6452 = vmatpush1.bf16.msra.mxu0 %v8812_v38  ;;  %6624 = vmatpush1.bf16.msra.mxu1 %v8814_v39  ;;  %v7904_v38 = vcombine.low %v94_v24, %v102_v25  ;;  %v7906_v39 = vcombine.low %v95_v26, %v103_v28  ;;  %v206_v24 = vld [vmem:[%s12637_s1 + $0x590] sm:$0xff]  ;;  %v207_v26 = vld [vmem:[%s12637_s1 + $0x598] sm:$0xff] }
  0xfb   :  { %6453 = vmatprep.subr.bf16.mxu0 %v8829_v40  ;;  %6625 = vmatprep.subr.bf16.mxu1 %v8831_v41  ;;  %v7921_v40 = vcombine.high %v110_v33, %v118_v34  ;;  %v7923_v41 = vcombine.high %v111_v36, %v119_v37  ;;  %v214_v25 = vld [vmem:[%s12637_s1 + $0x5d0] sm:$0xff]  ;;  %v215_v28 = vld [vmem:[%s12637_s1 + $0x5d8] sm:$0xff] }
  0xfe   :  { %6454 = vmatpush1.bf16.msra.mxu0 %v8828_v30  ;;  %6626 = vmatpush1.bf16.msra.mxu1 %v8830_v48  ;;  %v7920_v30 = vcombine.low %v110_v33, %v118_v34  ;;  %v7922_v48 = vcombine.low %v111_v36, %v119_v37  ;;  %v222_v33 = vld [vmem:[%s12637_s1 + $0x610] sm:$0xff]  ;;  %v223_v36 = vld [vmem:[%s12637_s1 + $0x618] sm:$0xff] }
  0xff   :  { %6455 = vmatprep.subr.bf16.mxu0 %v8845_v49  ;;  %6627 = vmatprep.subr.bf16.mxu1 %v8847_v50  ;;  %v7937_v49 = vcombine.high %v126_v42, %v134_v44  ;;  %v7939_v50 = vcombine.high %v127_v47, %v135_v29  ;;  %v230_v34 = vld [vmem:[%s12637_s1 + $0x650] sm:$0xff]  ;;  %v231_v37 = vld [vmem:[%s12637_s1 + $0x658] sm:$0xff] }
 0x102   :  { %6456 = vmatpush1.bf16.msra.mxu0 %v8844_v59  ;;  %6628 = vmatpush1.bf16.msra.mxu1 %v8846_v60  ;;  %v7936_v59 = vcombine.low %v126_v42, %v134_v44  ;;  %v7938_v60 = vcombine.low %v127_v47, %v135_v29  ;;  %v238_v42 = vld [vmem:[%s12637_s1 + $0x690] sm:$0xff]  ;;  %v239_v47 = vld [vmem:[%s12637_s1 + $0x698] sm:$0xff] }
 0x103   :  { %6640 = vmatprep.subr.bf16.mxu0 %v7841_v61  ;;  %6812 = vmatprep.subr.bf16.mxu1 %v7843_v62  ;;  %v7953_v61 = vcombine.high %v142_v52, %v150_v55  ;;  %v7955_v62 = vcombine.high %v143_v56, %v151_v57  ;;  %v246_v44 = vld [vmem:[%s12637_s1 + $0x6d0] sm:$0xff]  ;;  %v247_v29 = vld [vmem:[%s12637_s1 + $0x6d8] sm:$0xff] }
 0x105   :  { %6458 = vmatmul.mubr.bf16.vlgmr.msra.gmra.mrb[0].mxu0 %v9942_v1  ;;  %6630 = vmatmul.mubr.bf16.vlgmr.msra.gmra.mrb[0].mxu1 %v9942_v1 }
 0x106   :  { %6641 = vmatpush1.bf16.msra.mxu0 %v7840_v4  ;;  %6813 = vmatpush1.bf16.msra.mxu1 %v7842_v5  ;;  %v7952_v4 = vcombine.low %v142_v52, %v150_v55  ;;  %v7954_v5 = vcombine.low %v143_v56, %v151_v57  ;;  %v254_v52 = vld [vmem:[%s12637_s1 + $0x710] sm:$0xff]  ;;  %v255_v56 = vld [vmem:[%s12637_s1 + $0x718] sm:$0xff] }
 0x107   :  { %6642 = vmatprep.subr.bf16.mxu0 %v7857_v6  ;;  %6814 = vmatprep.subr.bf16.mxu1 %v7859_v7  ;;  %v7969_v6 = vcombine.high %v158_v63, %v166_v0  ;;  %v7971_v7 = vcombine.high %v159_v2, %v167_v3  ;;  %v262_v55 = vld [vmem:[%s12637_s1 + $0x750] sm:$0xff]  ;;  %v263_v57 = vld [vmem:[%s12637_s1 + $0x758] sm:$0xff] }
 0x108   :  { %6672 = vmatprep.mubr.bf16.mxu0 %v9174_v58  ;;  %6844 = vmatprep.mubr.bf16.mxu1 %v9174_v58 }
 0x10a   :  { %6643 = vmatpush1.bf16.msra.mxu0 %v7856_v10  ;;  %6815 = vmatpush1.bf16.msra.mxu1 %v7858_v11  ;;  %v7968_v10 = vcombine.low %v158_v63, %v166_v0  ;;  %v7970_v11 = vcombine.low %v159_v2, %v167_v3  ;;  %v270_v63 = vld [vmem:[%s12637_s1 + $0x790] sm:$0xff]  ;;  %v271_v2 = vld [vmem:[%s12637_s1 + $0x798] sm:$0xff] }
 0x10b   :  { %6644 = vmatprep.subr.bf16.mxu0 %v7873_v12  ;;  %6816 = vmatprep.subr.bf16.mxu1 %v7875_v13  ;;  %v7985_v12 = vcombine.high %v174_v45, %v182_v46  ;;  %v7987_v13 = vcombine.high %v175_v8, %v183_v9  ;;  %v278_v0 = vld [vmem:[%s12637_s1 + $0x7d0] sm:$0xff]  ;;  %v279_v3 = vld [vmem:[%s12637_s1 + $0x7d8] sm:$0xff] }
 0x10e   :  { %6645 = vmatpush1.bf16.msra.mxu0 %v7872_v54  ;;  %6817 = vmatpush1.bf16.msra.mxu1 %v7874_v20  ;;  %v7984_v54 = vcombine.low %v174_v45, %v182_v46  ;;  %v7986_v20 = vcombine.low %v175_v8, %v183_v9  ;;  %v286_v45 = vld [vmem:[%s12637_s1 + $0x810] sm:$0xff]  ;;  %v287_v8 = vld [vmem:[%s12637_s1 + $0x818] sm:$0xff] }
 0x10f   :  { %6646 = vmatprep.subr.bf16.mxu0 %v7889_v21  ;;  %6818 = vmatprep.subr.bf16.mxu1 %v7891_v22  ;;  %v8001_v21 = vcombine.high %v190_v14, %v198_v16  ;;  %v8003_v22 = vcombine.high %v191_v19, %v199_v53  ;;  %v294_v46 = vld [vmem:[%s12637_s1 + $0x850] sm:$0xff]  ;;  %v295_v9 = vld [vmem:[%s12637_s1 + $0x858] sm:$0xff] }
 0x112   :  { %6647 = vmatpush1.bf16.msra.mxu0 %v7888_v31  ;;  %6819 = vmatpush1.bf16.msra.mxu1 %v7890_v17  ;;  %v8000_v31 = vcombine.low %v190_v14, %v198_v16  ;;  %v8002_v17 = vcombine.low %v191_v19, %v199_v53  ;;  %v302_v14 = vld [vmem:[%s12637_s1 + $0x890] sm:$0xff]  ;;  %v303_v19 = vld [vmem:[%s12637_s1 + $0x898] sm:$0xff] }
 0x113   :  { %6648 = vmatprep.subr.bf16.mxu0 %v7905_v18  ;;  %6820 = vmatprep.subr.bf16.mxu1 %v7907_v32  ;;  %v8017_v18 = vcombine.high %v206_v24, %v214_v25  ;;  %v8019_v32 = vcombine.high %v207_v26, %v215_v28  ;;  %v310_v16 = vld [vmem:[%s12637_s1 + $0x8d0] sm:$0xff]  ;;  %v311_v53 = vld [vmem:[%s12637_s1 + $0x8d8] sm:$0xff] }
 0x116   :  { %6649 = vmatpush1.bf16.msra.mxu0 %v7904_v38  ;;  %6821 = vmatpush1.bf16.msra.mxu1 %v7906_v39  ;;  %v8016_v38 = vcombine.low %v206_v24, %v214_v25  ;;  %v8018_v39 = vcombine.low %v207_v26, %v215_v28  ;;  %v318_v24 = vld [vmem:[%s12637_s1 + $0x910] sm:$0xff]  ;;  %v319_v26 = vld [vmem:[%s12637_s1 + $0x918] sm:$0xff] }
 0x117   :  { %6650 = vmatprep.subr.bf16.mxu0 %v7921_v40  ;;  %6822 = vmatprep.subr.bf16.mxu1 %v7923_v41  ;;  %v8033_v40 = vcombine.high %v222_v33, %v230_v34  ;;  %v8035_v41 = vcombine.high %v223_v36, %v231_v37  ;;  %v326_v25 = vld [vmem:[%s12637_s1 + $0x950] sm:$0xff]  ;;  %v327_v28 = vld [vmem:[%s12637_s1 + $0x958] sm:$0xff] }
 0x11a   :  { %6651 = vmatpush1.bf16.msra.mxu0 %v7920_v30  ;;  %6823 = vmatpush1.bf16.msra.mxu1 %v7922_v48  ;;  %v8032_v30 = vcombine.low %v222_v33, %v230_v34  ;;  %v8034_v48 = vcombine.low %v223_v36, %v231_v37  ;;  %v334_v33 = vld [vmem:[%s12637_s1 + $0x990] sm:$0xff]  ;;  %v335_v36 = vld [vmem:[%s12637_s1 + $0x998] sm:$0xff] }
 0x11b   :  { %6652 = vmatprep.subr.bf16.mxu0 %v7937_v49  ;;  %6824 = vmatprep.subr.bf16.mxu1 %v7939_v50  ;;  %v8049_v49 = vcombine.high %v238_v42, %v246_v44  ;;  %v8051_v50 = vcombine.high %v239_v47, %v247_v29  ;;  %v342_v34 = vld [vmem:[%s12637_s1 + $0x9d0] sm:$0xff]  ;;  %v343_v37 = vld [vmem:[%s12637_s1 + $0x9d8] sm:$0xff] }
 0x11e   :  { %6653 = vmatpush1.bf16.msra.mxu0 %v7936_v59  ;;  %6825 = vmatpush1.bf16.msra.mxu1 %v7938_v60  ;;  %v8048_v59 = vcombine.low %v238_v42, %v246_v44  ;;  %v8050_v60 = vcombine.low %v239_v47, %v247_v29  ;;  %v350_v42 = vld [vmem:[%s12637_s1 + $0xa10] sm:$0xff]  ;;  %v351_v47 = vld [vmem:[%s12637_s1 + $0xa18] sm:$0xff] }
 0x11f   :  { %6654 = vmatprep.subr.bf16.mxu0 %v7953_v61  ;;  %6826 = vmatprep.subr.bf16.mxu1 %v7955_v62  ;;  %v8065_v61 = vcombine.high %v254_v52, %v262_v55  ;;  %v8067_v62 = vcombine.high %v255_v56, %v263_v57  ;;  %v358_v44 = vld [vmem:[%s12637_s1 + $0xa50] sm:$0xff]  ;;  %v359_v29 = vld [vmem:[%s12637_s1 + $0xa58] sm:$0xff] }
 0x122   :  { %6655 = vmatpush1.bf16.msra.mxu0 %v7952_v4  ;;  %6827 = vmatpush1.bf16.msra.mxu1 %v7954_v5  ;;  %v8064_v4 = vcombine.low %v254_v52, %v262_v55  ;;  %v8066_v5 = vcombine.low %v255_v56, %v263_v57  ;;  %v366_v52 = vld [vmem:[%s12637_s1 + $0xa90] sm:$0xff]  ;;  %v367_v56 = vld [vmem:[%s12637_s1 + $0xa98] sm:$0xff] }
 0x123   :  { %6656 = vmatprep.subr.bf16.mxu0 %v7969_v6  ;;  %6828 = vmatprep.subr.bf16.mxu1 %v7971_v7  ;;  %v8081_v6 = vcombine.high %v270_v63, %v278_v0  ;;  %v8083_v7 = vcombine.high %v271_v2, %v279_v3  ;;  %v374_v55 = vld [vmem:[%s12637_s1 + $0xad0] sm:$0xff]  ;;  %v375_v57 = vld [vmem:[%s12637_s1 + $0xad8] sm:$0xff] }
 0x126   :  { %6657 = vmatpush1.bf16.msra.mxu0 %v7968_v10  ;;  %6829 = vmatpush1.bf16.msra.mxu1 %v7970_v11  ;;  %v8080_v10 = vcombine.low %v270_v63, %v278_v0  ;;  %v8082_v11 = vcombine.low %v271_v2, %v279_v3  ;;  %v382_v63 = vld [vmem:[%s12637_s1 + $0xb10] sm:$0xff]  ;;  %v383_v2 = vld [vmem:[%s12637_s1 + $0xb18] sm:$0xff] }
 0x127   :  { %6658 = vmatprep.subr.bf16.mxu0 %v7985_v12  ;;  %6830 = vmatprep.subr.bf16.mxu1 %v7987_v13  ;;  %v8097_v12 = vcombine.high %v286_v45, %v294_v46  ;;  %v8099_v13 = vcombine.high %v287_v8, %v295_v9  ;;  %v390_v0 = vld [vmem:[%s12637_s1 + $0xb50] sm:$0xff]  ;;  %v391_v3 = vld [vmem:[%s12637_s1 + $0xb58] sm:$0xff] }
 0x12a   :  { %6659 = vmatpush1.bf16.msra.mxu0 %v7984_v54  ;;  %6831 = vmatpush1.bf16.msra.mxu1 %v7986_v20  ;;  %v8096_v54 = vcombine.low %v286_v45, %v294_v46  ;;  %v8098_v20 = vcombine.low %v287_v8, %v295_v9  ;;  %v398_v45 = vld [vmem:[%s12637_s1 + $0xb90] sm:$0xff]  ;;  %v399_v8 = vld [vmem:[%s12637_s1 + $0xb98] sm:$0xff] }
 0x12b   :  { %6660 = vmatprep.subr.bf16.mxu0 %v8001_v21  ;;  %6832 = vmatprep.subr.bf16.mxu1 %v8003_v22  ;;  %v8113_v21 = vcombine.high %v302_v14, %v310_v16  ;;  %v8115_v22 = vcombine.high %v303_v19, %v311_v53  ;;  %v406_v46 = vld [vmem:[%s12637_s1 + $0xbd0] sm:$0xff]  ;;  %v407_v9 = vld [vmem:[%s12637_s1 + $0xbd8] sm:$0xff] }
 0x12e   :  { %6661 = vmatpush1.bf16.msra.mxu0 %v8000_v31  ;;  %6833 = vmatpush1.bf16.msra.mxu1 %v8002_v17  ;;  %v8112_v31 = vcombine.low %v302_v14, %v310_v16  ;;  %v8114_v17 = vcombine.low %v303_v19, %v311_v53  ;;  %v414_v14 = vld [vmem:[%s12637_s1 + $0xc10] sm:$0xff]  ;;  %v415_v19 = vld [vmem:[%s12637_s1 + $0xc18] sm:$0xff] }
 0x12f   :  { %6662 = vmatprep.subr.bf16.mxu0 %v8017_v18  ;;  %6834 = vmatprep.subr.bf16.mxu1 %v8019_v32  ;;  %v8129_v18 = vcombine.high %v318_v24, %v326_v25  ;;  %v8131_v32 = vcombine.high %v319_v26, %v327_v28  ;;  %v422_v16 = vld [vmem:[%s12637_s1 + $0xc50] sm:$0xff]  ;;  %v423_v53 = vld [vmem:[%s12637_s1 + $0xc58] sm:$0xff] }
 0x132   :  { %6663 = vmatpush1.bf16.msra.mxu0 %v8016_v38  ;;  %6835 = vmatpush1.bf16.msra.mxu1 %v8018_v39  ;;  %v8128_v38 = vcombine.low %v318_v24, %v326_v25  ;;  %v8130_v39 = vcombine.low %v319_v26, %v327_v28  ;;  %v430_v24 = vld [vmem:[%s12637_s1 + $0xc90] sm:$0xff]  ;;  %v431_v26 = vld [vmem:[%s12637_s1 + $0xc98] sm:$0xff] }
 0x133   :  { %6664 = vmatprep.subr.bf16.mxu0 %v8033_v40  ;;  %6836 = vmatprep.subr.bf16.mxu1 %v8035_v41  ;;  %v8145_v40 = vcombine.high %v334_v33, %v342_v34  ;;  %v8147_v41 = vcombine.high %v335_v36, %v343_v37  ;;  %v438_v25 = vld [vmem:[%s12637_s1 + $0xcd0] sm:$0xff]  ;;  %v439_v28 = vld [vmem:[%s12637_s1 + $0xcd8] sm:$0xff] }
 0x136   :  { %6665 = vmatpush1.bf16.msra.mxu0 %v8032_v30  ;;  %6837 = vmatpush1.bf16.msra.mxu1 %v8034_v48  ;;  %v8144_v30 = vcombine.low %v334_v33, %v342_v34  ;;  %v8146_v48 = vcombine.low %v335_v36, %v343_v37  ;;  %v446_v33 = vld [vmem:[%s12637_s1 + $0xd10] sm:$0xff]  ;;  %v447_v36 = vld [vmem:[%s12637_s1 + $0xd18] sm:$0xff] }
 0x137   :  { %6666 = vmatprep.subr.bf16.mxu0 %v8049_v49  ;;  %6838 = vmatprep.subr.bf16.mxu1 %v8051_v50  ;;  %v8161_v49 = vcombine.high %v350_v42, %v358_v44  ;;  %v8163_v50 = vcombine.high %v351_v47, %v359_v29  ;;  %v454_v34 = vld [vmem:[%s12637_s1 + $0xd50] sm:$0xff]  ;;  %v455_v37 = vld [vmem:[%s12637_s1 + $0xd58] sm:$0xff] }
 0x13a   :  { %6667 = vmatpush1.bf16.msra.mxu0 %v8048_v59  ;;  %6839 = vmatpush1.bf16.msra.mxu1 %v8050_v60  ;;  %v8160_v59 = vcombine.low %v350_v42, %v358_v44  ;;  %v8162_v60 = vcombine.low %v351_v47, %v359_v29  ;;  %v462_v42 = vld [vmem:[%s12637_s1 + $0xd90] sm:$0xff]  ;;  %v463_v47 = vld [vmem:[%s12637_s1 + $0xd98] sm:$0xff] }
 0x13b   :  { %6668 = vmatprep.subr.bf16.mxu0 %v8065_v61  ;;  %6840 = vmatprep.subr.bf16.mxu1 %v8067_v62  ;;  %v8177_v61 = vcombine.high %v366_v52, %v374_v55  ;;  %v8179_v62 = vcombine.high %v367_v56, %v375_v57  ;;  %v470_v44 = vld [vmem:[%s12637_s1 + $0xdd0] sm:$0xff]  ;;  %v471_v29 = vld [vmem:[%s12637_s1 + $0xdd8] sm:$0xff] }
 0x13e   :  { %6669 = vmatpush1.bf16.msra.mxu0 %v8064_v4  ;;  %6841 = vmatpush1.bf16.msra.mxu1 %v8066_v5  ;;  %v8176_v4 = vcombine.low %v366_v52, %v374_v55  ;;  %v8178_v5 = vcombine.low %v367_v56, %v375_v57  ;;  %v478_v52 = vld [vmem:[%s12637_s1 + $0xe10] sm:$0xff]  ;;  %v479_v56 = vld [vmem:[%s12637_s1 + $0xe18] sm:$0xff] }
 0x13f   :  { %6670 = vmatprep.subr.bf16.mxu0 %v8081_v6  ;;  %6842 = vmatprep.subr.bf16.mxu1 %v8083_v7  ;;  %v8193_v6 = vcombine.high %v382_v63, %v390_v0  ;;  %v8195_v7 = vcombine.high %v383_v2, %v391_v3  ;;  %v486_v55 = vld [vmem:[%s12637_s1 + $0xe50] sm:$0xff]  ;;  %v487_v57 = vld [vmem:[%s12637_s1 + $0xe58] sm:$0xff] }
 0x142   :  { %6671 = vmatpush1.bf16.msra.mxu0 %v8080_v10  ;;  %6843 = vmatpush1.bf16.msra.mxu1 %v8082_v11  ;;  %v8192_v10 = vcombine.low %v382_v63, %v390_v0  ;;  %v8194_v11 = vcombine.low %v383_v2, %v391_v3  ;;  %v494_v63 = vld [vmem:[%s12637_s1 + $0xe90] sm:$0xff]  ;;  %v495_v2 = vld [vmem:[%s12637_s1 + $0xe98] sm:$0xff] }
 0x143   :  { %6683 = vmatprep.subr.bf16.mxu0 %v8097_v12  ;;  %6855 = vmatprep.subr.bf16.mxu1 %v8099_v13  ;;  %v8209_v12 = vcombine.high %v398_v45, %v406_v46  ;;  %v8211_v13 = vcombine.high %v399_v8, %v407_v9  ;;  %v502_v0 = vld [vmem:[%s12637_s1 + $0xed0] sm:$0xff]  ;;  %v503_v3 = vld [vmem:[%s12637_s1 + $0xed8] sm:$0xff] }
 0x145   :  { %6673 = vmatmul.mubr.bf16.vlgmr.msra.gmra.mrb[4].mxu0 %v9303_v15  ;;  %6845 = vmatmul.mubr.bf16.vlgmr.msra.gmra.mrb[4].mxu1 %v9303_v15 }
 0x146   :  { %6684 = vmatpush1.bf16.msra.mxu0 %v8096_v54  ;;  %6856 = vmatpush1.bf16.msra.mxu1 %v8098_v20  ;;  %v8208_v54 = vcombine.low %v398_v45, %v406_v46  ;;  %v8210_v20 = vcombine.low %v399_v8, %v407_v9  ;;  %v510_v45 = vld [vmem:[%s12637_s1 + $0xf10] sm:$0xff]  ;;  %v511_v8 = vld [vmem:[%s12637_s1 + $0xf18] sm:$0xff] }
 0x147   :  { %6685 = vmatprep.subr.bf16.mxu0 %v8113_v21  ;;  %6857 = vmatprep.subr.bf16.mxu1 %v8115_v22  ;;  %v8225_v21 = vcombine.high %v414_v14, %v422_v16  ;;  %v8227_v22 = vcombine.high %v415_v19, %v423_v53  ;;  %v518_v46 = vld [vmem:[%s12637_s1 + $0xf50] sm:$0xff]  ;;  %v519_v9 = vld [vmem:[%s12637_s1 + $0xf58] sm:$0xff] }
 0x148   :  { %6715 = vmatprep.mubr.bf16.mxu0 %v9326_v23  ;;  %6887 = vmatprep.mubr.bf16.mxu1 %v9326_v23 }
 0x14a   :  { %6686 = vmatpush1.bf16.msra.mxu0 %v8112_v31  ;;  %6858 = vmatpush1.bf16.msra.mxu1 %v8114_v17  ;;  %v8224_v31 = vcombine.low %v414_v14, %v422_v16  ;;  %v8226_v17 = vcombine.low %v415_v19, %v423_v53  ;;  %v526_v14 = vld [vmem:[%s12637_s1 + $0xf90] sm:$0xff]  ;;  %v527_v19 = vld [vmem:[%s12637_s1 + $0xf98] sm:$0xff] }
 0x14b   :  { %6687 = vmatprep.subr.bf16.mxu0 %v8129_v18  ;;  %6859 = vmatprep.subr.bf16.mxu1 %v8131_v32  ;;  %v8241_v18 = vcombine.high %v430_v24, %v438_v25  ;;  %v8243_v32 = vcombine.high %v431_v26, %v439_v28  ;;  %v534_v16 = vld [vmem:[%s12637_s1 + $0xfd0] sm:$0xff]  ;;  %v535_v53 = vld [vmem:[%s12637_s1 + $0xfd8] sm:$0xff] }
 0x14e   :  { %6688 = vmatpush1.bf16.msra.mxu0 %v8128_v38  ;;  %6860 = vmatpush1.bf16.msra.mxu1 %v8130_v39  ;;  %v8240_v38 = vcombine.low %v430_v24, %v438_v25  ;;  %v8242_v39 = vcombine.low %v431_v26, %v439_v28  ;;  %v542_v24 = vld [vmem:[%s12637_s1 + $0x1010] sm:$0xff]  ;;  %v543_v26 = vld [vmem:[%s12637_s1 + $0x1018] sm:$0xff] }
 0x14f   :  { %6689 = vmatprep.subr.bf16.mxu0 %v8145_v40  ;;  %6861 = vmatprep.subr.bf16.mxu1 %v8147_v41  ;;  %v8257_v40 = vcombine.high %v446_v33, %v454_v34  ;;  %v8259_v41 = vcombine.high %v447_v36, %v455_v37  ;;  %v550_v25 = vld [vmem:[%s12637_s1 + $0x1050] sm:$0xff]  ;;  %v551_v28 = vld [vmem:[%s12637_s1 + $0x1058] sm:$0xff] }
 0x152   :  { %6690 = vmatpush1.bf16.msra.mxu0 %v8144_v30  ;;  %6862 = vmatpush1.bf16.msra.mxu1 %v8146_v48  ;;  %v8256_v30 = vcombine.low %v446_v33, %v454_v34  ;;  %v8258_v48 = vcombine.low %v447_v36, %v455_v37  ;;  %v558_v33 = vld [vmem:[%s12637_s1 + $0x1090] sm:$0xff]  ;;  %v559_v36 = vld [vmem:[%s12637_s1 + $0x1098] sm:$0xff] }
 0x153   :  { %6691 = vmatprep.subr.bf16.mxu0 %v8161_v49  ;;  %6863 = vmatprep.subr.bf16.mxu1 %v8163_v50  ;;  %v8273_v49 = vcombine.high %v462_v42, %v470_v44  ;;  %v8275_v50 = vcombine.high %v463_v47, %v471_v29  ;;  %v566_v34 = vld [vmem:[%s12637_s1 + $0x10d0] sm:$0xff]  ;;  %v567_v37 = vld [vmem:[%s12637_s1 + $0x10d8] sm:$0xff] }
 0x156   :  { %6692 = vmatpush1.bf16.msra.mxu0 %v8160_v59  ;;  %6864 = vmatpush1.bf16.msra.mxu1 %v8162_v60  ;;  %v8272_v59 = vcombine.low %v462_v42, %v470_v44  ;;  %v8274_v60 = vcombine.low %v463_v47, %v471_v29  ;;  %v574_v42 = vld [vmem:[%s12637_s1 + $0x1110] sm:$0xff]  ;;  %v575_v47 = vld [vmem:[%s12637_s1 + $0x1118] sm:$0xff] }
 0x157   :  { %6693 = vmatprep.subr.bf16.mxu0 %v8177_v61  ;;  %6865 = vmatprep.subr.bf16.mxu1 %v8179_v62  ;;  %v8289_v61 = vcombine.high %v478_v52, %v486_v55  ;;  %v8291_v62 = vcombine.high %v479_v56, %v487_v57  ;;  %v582_v44 = vld [vmem:[%s12637_s1 + $0x1150] sm:$0xff]  ;;  %v583_v29 = vld [vmem:[%s12637_s1 + $0x1158] sm:$0xff] }
 0x15a   :  { %6694 = vmatpush1.bf16.msra.mxu0 %v8176_v4  ;;  %6866 = vmatpush1.bf16.msra.mxu1 %v8178_v5  ;;  %v8288_v4 = vcombine.low %v478_v52, %v486_v55  ;;  %v8290_v5 = vcombine.low %v479_v56, %v487_v57  ;;  %v590_v52 = vld [vmem:[%s12637_s1 + $0x1190] sm:$0xff]  ;;  %v591_v56 = vld [vmem:[%s12637_s1 + $0x1198] sm:$0xff] }
 0x15b   :  { %6695 = vmatprep.subr.bf16.mxu0 %v8193_v6  ;;  %6867 = vmatprep.subr.bf16.mxu1 %v8195_v7  ;;  %v8305_v6 = vcombine.high %v494_v63, %v502_v0  ;;  %v8307_v7 = vcombine.high %v495_v2, %v503_v3  ;;  %v598_v55 = vld [vmem:[%s12637_s1 + $0x11d0] sm:$0xff]  ;;  %v599_v57 = vld [vmem:[%s12637_s1 + $0x11d8] sm:$0xff] }
 0x15e   :  { %6696 = vmatpush1.bf16.msra.mxu0 %v8192_v10  ;;  %6868 = vmatpush1.bf16.msra.mxu1 %v8194_v11  ;;  %v8304_v10 = vcombine.low %v494_v63, %v502_v0  ;;  %v8306_v11 = vcombine.low %v495_v2, %v503_v3  ;;  %v606_v63 = vld [vmem:[%s12637_s1 + $0x1210] sm:$0xff]  ;;  %v607_v2 = vld [vmem:[%s12637_s1 + $0x1218] sm:$0xff] }
 0x15f   :  { %6697 = vmatprep.subr.bf16.mxu0 %v8209_v12  ;;  %6869 = vmatprep.subr.bf16.mxu1 %v8211_v13  ;;  %v8321_v12 = vcombine.high %v510_v45, %v518_v46  ;;  %v8323_v13 = vcombine.high %v511_v8, %v519_v9  ;;  %v614_v0 = vld [vmem:[%s12637_s1 + $0x1250] sm:$0xff]  ;;  %v615_v3 = vld [vmem:[%s12637_s1 + $0x1258] sm:$0xff] }
 0x162   :  { %6698 = vmatpush1.bf16.msra.mxu0 %v8208_v54  ;;  %6870 = vmatpush1.bf16.msra.mxu1 %v8210_v20  ;;  %v8320_v54 = vcombine.low %v510_v45, %v518_v46  ;;  %v8322_v20 = vcombine.low %v511_v8, %v519_v9  ;;  %v622_v45 = vld [vmem:[%s12637_s1 + $0x1290] sm:$0xff]  ;;  %v623_v8 = vld [vmem:[%s12637_s1 + $0x1298] sm:$0xff] }
 0x163   :  { %6699 = vmatprep.subr.bf16.mxu0 %v8225_v21  ;;  %6871 = vmatprep.subr.bf16.mxu1 %v8227_v22  ;;  %v8337_v21 = vcombine.high %v526_v14, %v534_v16  ;;  %v8339_v22 = vcombine.high %v527_v19, %v535_v53  ;;  %v630_v46 = vld [vmem:[%s12637_s1 + $0x12d0] sm:$0xff]  ;;  %v631_v9 = vld [vmem:[%s12637_s1 + $0x12d8] sm:$0xff] }
 0x166   :  { %6700 = vmatpush1.bf16.msra.mxu0 %v8224_v31  ;;  %6872 = vmatpush1.bf16.msra.mxu1 %v8226_v17  ;;  %v8336_v31 = vcombine.low %v526_v14, %v534_v16  ;;  %v8338_v17 = vcombine.low %v527_v19, %v535_v53  ;;  %v638_v14 = vld [vmem:[%s12637_s1 + $0x1310] sm:$0xff]  ;;  %v639_v19 = vld [vmem:[%s12637_s1 + $0x1318] sm:$0xff] }
 0x167   :  { %6701 = vmatprep.subr.bf16.mxu0 %v8241_v18  ;;  %6873 = vmatprep.subr.bf16.mxu1 %v8243_v32  ;;  %v8353_v18 = vcombine.high %v542_v24, %v550_v25  ;;  %v8355_v32 = vcombine.high %v543_v26, %v551_v28  ;;  %v646_v16 = vld [vmem:[%s12637_s1 + $0x1350] sm:$0xff]  ;;  %v647_v53 = vld [vmem:[%s12637_s1 + $0x1358] sm:$0xff] }
 0x16a   :  { %6702 = vmatpush1.bf16.msra.mxu0 %v8240_v38  ;;  %6874 = vmatpush1.bf16.msra.mxu1 %v8242_v39  ;;  %v8352_v38 = vcombine.low %v542_v24, %v550_v25  ;;  %v8354_v39 = vcombine.low %v543_v26, %v551_v28  ;;  %v654_v24 = vld [vmem:[%s12637_s1 + $0x1390] sm:$0xff]  ;;  %v655_v26 = vld [vmem:[%s12637_s1 + $0x1398] sm:$0xff] }
 0x16b   :  { %6703 = vmatprep.subr.bf16.mxu0 %v8257_v40  ;;  %6875 = vmatprep.subr.bf16.mxu1 %v8259_v41  ;;  %v8369_v40 = vcombine.high %v558_v33, %v566_v34  ;;  %v8371_v41 = vcombine.high %v559_v36, %v567_v37  ;;  %v662_v25 = vld [vmem:[%s12637_s1 + $0x13d0] sm:$0xff]  ;;  %v663_v28 = vld [vmem:[%s12637_s1 + $0x13d8] sm:$0xff] }
 0x16e   :  { %6704 = vmatpush1.bf16.msra.mxu0 %v8256_v30  ;;  %6876 = vmatpush1.bf16.msra.mxu1 %v8258_v48  ;;  %v8368_v30 = vcombine.low %v558_v33, %v566_v34  ;;  %v8370_v48 = vcombine.low %v559_v36, %v567_v37  ;;  %v670_v33 = vld [vmem:[%s12637_s1 + $0x1410] sm:$0xff]  ;;  %v671_v36 = vld [vmem:[%s12637_s1 + $0x1418] sm:$0xff] }
 0x16f   :  { %6705 = vmatprep.subr.bf16.mxu0 %v8273_v49  ;;  %6877 = vmatprep.subr.bf16.mxu1 %v8275_v50  ;;  %v8385_v49 = vcombine.high %v574_v42, %v582_v44  ;;  %v8387_v50 = vcombine.high %v575_v47, %v583_v29  ;;  %v678_v34 = vld [vmem:[%s12637_s1 + $0x1450] sm:$0xff]  ;;  %v679_v37 = vld [vmem:[%s12637_s1 + $0x1458] sm:$0xff] }
 0x172   :  { %6706 = vmatpush1.bf16.msra.mxu0 %v8272_v59  ;;  %6878 = vmatpush1.bf16.msra.mxu1 %v8274_v60  ;;  %v8384_v59 = vcombine.low %v574_v42, %v582_v44  ;;  %v8386_v60 = vcombine.low %v575_v47, %v583_v29  ;;  %v686_v42 = vld [vmem:[%s12637_s1 + $0x1490] sm:$0xff]  ;;  %v687_v47 = vld [vmem:[%s12637_s1 + $0x1498] sm:$0xff] }
 0x173   :  { %6707 = vmatprep.subr.bf16.mxu0 %v8289_v61  ;;  %6879 = vmatprep.subr.bf16.mxu1 %v8291_v62  ;;  %v8401_v61 = vcombine.high %v590_v52, %v598_v55  ;;  %v8403_v62 = vcombine.high %v591_v56, %v599_v57  ;;  %v694_v44 = vld [vmem:[%s12637_s1 + $0x14d0] sm:$0xff]  ;;  %v695_v29 = vld [vmem:[%s12637_s1 + $0x14d8] sm:$0xff] }
 0x176   :  { %6708 = vmatpush1.bf16.msra.mxu0 %v8288_v4  ;;  %6880 = vmatpush1.bf16.msra.mxu1 %v8290_v5  ;;  %v8400_v4 = vcombine.low %v590_v52, %v598_v55  ;;  %v8402_v5 = vcombine.low %v591_v56, %v599_v57  ;;  %v702_v52 = vld [vmem:[%s12637_s1 + $0x1510] sm:$0xff]  ;;  %v703_v56 = vld [vmem:[%s12637_s1 + $0x1518] sm:$0xff] }
 0x177   :  { %6709 = vmatprep.subr.bf16.mxu0 %v8305_v6  ;;  %6881 = vmatprep.subr.bf16.mxu1 %v8307_v7  ;;  %v8417_v6 = vcombine.high %v606_v63, %v614_v0  ;;  %v8419_v7 = vcombine.high %v607_v2, %v615_v3  ;;  %v710_v55 = vld [vmem:[%s12637_s1 + $0x1550] sm:$0xff]  ;;  %v711_v57 = vld [vmem:[%s12637_s1 + $0x1558] sm:$0xff] }
 0x17a   :  { %6710 = vmatpush1.bf16.msra.mxu0 %v8304_v10  ;;  %6882 = vmatpush1.bf16.msra.mxu1 %v8306_v11  ;;  %v8416_v10 = vcombine.low %v606_v63, %v614_v0  ;;  %v8418_v11 = vcombine.low %v607_v2, %v615_v3  ;;  %v718_v63 = vld [vmem:[%s12637_s1 + $0x1590] sm:$0xff]  ;;  %v719_v2 = vld [vmem:[%s12637_s1 + $0x1598] sm:$0xff] }
 0x17b   :  { %6711 = vmatprep.subr.bf16.mxu0 %v8321_v12  ;;  %6883 = vmatprep.subr.bf16.mxu1 %v8323_v13  ;;  %v8433_v12 = vcombine.high %v622_v45, %v630_v46  ;;  %v8435_v13 = vcombine.high %v623_v8, %v631_v9  ;;  %v726_v0 = vld [vmem:[%s12637_s1 + $0x15d0] sm:$0xff]  ;;  %v727_v3 = vld [vmem:[%s12637_s1 + $0x15d8] sm:$0xff] }
 0x17e   :  { %6712 = vmatpush1.bf16.msra.mxu0 %v8320_v54  ;;  %6884 = vmatpush1.bf16.msra.mxu1 %v8322_v20  ;;  %v8432_v54 = vcombine.low %v622_v45, %v630_v46  ;;  %v8434_v20 = vcombine.low %v623_v8, %v631_v9  ;;  %v734_v45 = vld [vmem:[%s12637_s1 + $0x1610] sm:$0xff]  ;;  %v735_v8 = vld [vmem:[%s12637_s1 + $0x1618] sm:$0xff] }
 0x17f   :  { %6713 = vmatprep.subr.bf16.mxu0 %v8337_v21  ;;  %6885 = vmatprep.subr.bf16.mxu1 %v8339_v22  ;;  %v8449_v21 = vcombine.high %v638_v14, %v646_v16  ;;  %v8451_v22 = vcombine.high %v639_v19, %v647_v53  ;;  %v742_v46 = vld [vmem:[%s12637_s1 + $0x1650] sm:$0xff]  ;;  %v743_v9 = vld [vmem:[%s12637_s1 + $0x1658] sm:$0xff] }
 0x182   :  { %6714 = vmatpush1.bf16.msra.mxu0 %v8336_v31  ;;  %6886 = vmatpush1.bf16.msra.mxu1 %v8338_v17  ;;  %v8448_v31 = vcombine.low %v638_v14, %v646_v16  ;;  %v8450_v17 = vcombine.low %v639_v19, %v647_v53  ;;  %v750_v14 = vld [vmem:[%s12637_s1 + $0x1690] sm:$0xff]  ;;  %v751_v19 = vld [vmem:[%s12637_s1 + $0x1698] sm:$0xff] }
 0x183   :  { %6726 = vmatprep.subr.bf16.mxu0 %v8353_v18  ;;  %6898 = vmatprep.subr.bf16.mxu1 %v8355_v32  ;;  %v8465_v18 = vcombine.high %v654_v24, %v662_v25  ;;  %v8467_v32 = vcombine.high %v655_v26, %v663_v28  ;;  %v758_v16 = vld [vmem:[%s12637_s1 + $0x16d0] sm:$0xff]  ;;  %v759_v53 = vld [vmem:[%s12637_s1 + $0x16d8] sm:$0xff] }
 0x185   :  { %6716 = vmatmul.mubr.bf16.vlgmr.msra.gmra.mrb[4].mxu0 %v9517_v27  ;;  %6888 = vmatmul.mubr.bf16.vlgmr.msra.gmra.mrb[4].mxu1 %v9517_v27 }
 0x186   :  { %6727 = vmatpush1.bf16.msra.mxu0 %v8352_v38  ;;  %6899 = vmatpush1.bf16.msra.mxu1 %v8354_v39  ;;  %v8464_v38 = vcombine.low %v654_v24, %v662_v25  ;;  %v8466_v39 = vcombine.low %v655_v26, %v663_v28  ;;  %v766_v24 = vld [vmem:[%s12637_s1 + $0x1710] sm:$0xff]  ;;  %v767_v26 = vld [vmem:[%s12637_s1 + $0x1718] sm:$0xff] }
 0x187   :  { %6728 = vmatprep.subr.bf16.mxu0 %v8369_v40  ;;  %6900 = vmatprep.subr.bf16.mxu1 %v8371_v41  ;;  %v8481_v40 = vcombine.high %v670_v33, %v678_v34  ;;  %v8483_v41 = vcombine.high %v671_v36, %v679_v37  ;;  %v774_v25 = vld [vmem:[%s12637_s1 + $0x1750] sm:$0xff]  ;;  %v775_v28 = vld [vmem:[%s12637_s1 + $0x1758] sm:$0xff] }
 0x188   :  { %6758 = vmatprep.mubr.bf16.mxu0 %v9540_v35  ;;  %6930 = vmatprep.mubr.bf16.mxu1 %v9540_v35 }
 0x18a   :  { %6729 = vmatpush1.bf16.msra.mxu0 %v8368_v30  ;;  %6901 = vmatpush1.bf16.msra.mxu1 %v8370_v48  ;;  %v8480_v30 = vcombine.low %v670_v33, %v678_v34  ;;  %v8482_v48 = vcombine.low %v671_v36, %v679_v37  ;;  %v782_v33 = vld [vmem:[%s12637_s1 + $0x1790] sm:$0xff]  ;;  %v783_v36 = vld [vmem:[%s12637_s1 + $0x1798] sm:$0xff] }
 0x18b   :  { %6730 = vmatprep.subr.bf16.mxu0 %v8385_v49  ;;  %6902 = vmatprep.subr.bf16.mxu1 %v8387_v50  ;;  %v8497_v49 = vcombine.high %v686_v42, %v694_v44  ;;  %v8499_v50 = vcombine.high %v687_v47, %v695_v29  ;;  %v790_v34 = vld [vmem:[%s12637_s1 + $0x17d0] sm:$0xff]  ;;  %v791_v37 = vld [vmem:[%s12637_s1 + $0x17d8] sm:$0xff] }
 0x18e   :  { %6731 = vmatpush1.bf16.msra.mxu0 %v8384_v59  ;;  %6903 = vmatpush1.bf16.msra.mxu1 %v8386_v60  ;;  %v8496_v59 = vcombine.low %v686_v42, %v694_v44  ;;  %v8498_v60 = vcombine.low %v687_v47, %v695_v29  ;;  %v798_v42 = vld [vmem:[%s12637_s1 + $0x1810] sm:$0xff]  ;;  %v799_v47 = vld [vmem:[%s12637_s1 + $0x1818] sm:$0xff] }
 0x18f   :  { %6732 = vmatprep.subr.bf16.mxu0 %v8401_v61  ;;  %6904 = vmatprep.subr.bf16.mxu1 %v8403_v62  ;;  %v8513_v61 = vcombine.high %v702_v52, %v710_v55  ;;  %v8515_v62 = vcombine.high %v703_v56, %v711_v57  ;;  %v806_v44 = vld [vmem:[%s12637_s1 + $0x1850] sm:$0xff]  ;;  %v807_v29 = vld [vmem:[%s12637_s1 + $0x1858] sm:$0xff] }
 0x192   :  { %6733 = vmatpush1.bf16.msra.mxu0 %v8400_v4  ;;  %6905 = vmatpush1.bf16.msra.mxu1 %v8402_v5  ;;  %v8512_v4 = vcombine.low %v702_v52, %v710_v55  ;;  %v8514_v5 = vcombine.low %v703_v56, %v711_v57  ;;  %v814_v52 = vld [vmem:[%s12637_s1 + $0x1890] sm:$0xff]  ;;  %v815_v56 = vld [vmem:[%s12637_s1 + $0x1898] sm:$0xff] }
 0x193   :  { %6734 = vmatprep.subr.bf16.mxu0 %v8417_v6  ;;  %6906 = vmatprep.subr.bf16.mxu1 %v8419_v7  ;;  %v8529_v6 = vcombine.high %v718_v63, %v726_v0  ;;  %v8531_v7 = vcombine.high %v719_v2, %v727_v3  ;;  %v822_v55 = vld [vmem:[%s12637_s1 + $0x18d0] sm:$0xff]  ;;  %v823_v57 = vld [vmem:[%s12637_s1 + $0x18d8] sm:$0xff] }
 0x196   :  { %6735 = vmatpush1.bf16.msra.mxu0 %v8416_v10  ;;  %6907 = vmatpush1.bf16.msra.mxu1 %v8418_v11  ;;  %v8528_v10 = vcombine.low %v718_v63, %v726_v0  ;;  %v8530_v11 = vcombine.low %v719_v2, %v727_v3  ;;  %v830_v63 = vld [vmem:[%s12637_s1 + $0x1910] sm:$0xff]  ;;  %v831_v2 = vld [vmem:[%s12637_s1 + $0x1918] sm:$0xff] }
 0x197   :  { %6736 = vmatprep.subr.bf16.mxu0 %v8433_v12  ;;  %6908 = vmatprep.subr.bf16.mxu1 %v8435_v13  ;;  %v8545_v12 = vcombine.high %v734_v45, %v742_v46  ;;  %v8547_v13 = vcombine.high %v735_v8, %v743_v9  ;;  %v838_v0 = vld [vmem:[%s12637_s1 + $0x1950] sm:$0xff]  ;;  %v839_v3 = vld [vmem:[%s12637_s1 + $0x1958] sm:$0xff] }
 0x19a   :  { %6737 = vmatpush1.bf16.msra.mxu0 %v8432_v54  ;;  %6909 = vmatpush1.bf16.msra.mxu1 %v8434_v20  ;;  %v8544_v54 = vcombine.low %v734_v45, %v742_v46  ;;  %v8546_v20 = vcombine.low %v735_v8, %v743_v9  ;;  %v846_v45 = vld [vmem:[%s12637_s1 + $0x1990] sm:$0xff]  ;;  %v847_v8 = vld [vmem:[%s12637_s1 + $0x1998] sm:$0xff] }
 0x19b   :  { %6738 = vmatprep.subr.bf16.mxu0 %v8449_v21  ;;  %6910 = vmatprep.subr.bf16.mxu1 %v8451_v22  ;;  %v8561_v21 = vcombine.high %v750_v14, %v758_v16  ;;  %v8563_v22 = vcombine.high %v751_v19, %v759_v53  ;;  %v854_v46 = vld [vmem:[%s12637_s1 + $0x19d0] sm:$0xff]  ;;  %v855_v9 = vld [vmem:[%s12637_s1 + $0x19d8] sm:$0xff] }
 0x19e   :  { %6739 = vmatpush1.bf16.msra.mxu0 %v8448_v31  ;;  %6911 = vmatpush1.bf16.msra.mxu1 %v8450_v17  ;;  %v8560_v31 = vcombine.low %v750_v14, %v758_v16  ;;  %v8562_v17 = vcombine.low %v751_v19, %v759_v53  ;;  %v8659_v14 = vcombine.high %v847_v8, %v855_v9  ;;  %v862_v16 = vld [vmem:[%s12637_s1 + $0x1a10] sm:$0xff]  ;;  %v863_v53 = vld [vmem:[%s12637_s1 + $0x1a18] sm:$0xff] }
 0x19f   :  { %6740 = vmatprep.subr.bf16.mxu0 %v8465_v18  ;;  %6912 = vmatprep.subr.bf16.mxu1 %v8467_v32  ;;  %v8577_v18 = vcombine.high %v766_v24, %v774_v25  ;;  %v8579_v32 = vcombine.high %v767_v26, %v775_v28  ;;  %v870_v19 = vld [vmem:[%s12637_s1 + $0x1a50] sm:$0xff] }
 0x1a2   :  { %6741 = vmatpush1.bf16.msra.mxu0 %v8464_v38  ;;  %6913 = vmatpush1.bf16.msra.mxu1 %v8466_v39  ;;  %v8576_v38 = vcombine.low %v766_v24, %v774_v25  ;;  %v8578_v39 = vcombine.low %v767_v26, %v775_v28  ;;  %v8673_v24 = vcombine.high %v862_v16, %v870_v19  ;;  %v878_v26 = vld [vmem:[%s12637_s1 + $0x1a90] sm:$0xff] }
 0x1a3   :  { %6742 = vmatprep.subr.bf16.mxu0 %v8481_v40  ;;  %6914 = vmatprep.subr.bf16.mxu1 %v8483_v41  ;;  %v8593_v40 = vcombine.high %v782_v33, %v790_v34  ;;  %v8595_v41 = vcombine.high %v783_v36, %v791_v37  ;;  %v886_v28 = vld [vmem:[%s12637_s1 + $0x1ad0] sm:$0xff] }
 0x1a6   :  { %6743 = vmatpush1.bf16.msra.mxu0 %v8480_v30  ;;  %6915 = vmatpush1.bf16.msra.mxu1 %v8482_v48  ;;  %v8592_v30 = vcombine.low %v782_v33, %v790_v34  ;;  %v8594_v48 = vcombine.low %v783_v36, %v791_v37  ;;  %v1052_v33 = vld [vmem:[%s12639_s2] sm:$0xff] }
 0x1a7   :  { %6744 = vmatprep.subr.bf16.mxu0 %v8497_v49  ;;  %6916 = vmatprep.subr.bf16.mxu1 %v8499_v50  ;;  %v8609_v49 = vcombine.high %v798_v42, %v806_v44  ;;  %v8611_v50 = vcombine.high %v799_v47, %v807_v29 }
 0x1aa   :  { %6745 = vmatpush1.bf16.msra.mxu0 %v8496_v59  ;;  %6917 = vmatpush1.bf16.msra.mxu1 %v8498_v60  ;;  %v8608_v59 = vcombine.low %v798_v42, %v806_v44  ;;  %v8610_v60 = vcombine.low %v799_v47, %v807_v29  ;;  %v902_v42 = vld [vmem:[%s12637_s1 + $0x1b50] sm:$0xff]  ;;  %v895_v47 = vld [vmem:[%s12637_s1 + $0x1b18] sm:$0xff] }
 0x1ab   :  { %6746 = vmatprep.subr.bf16.mxu0 %v8513_v61  ;;  %6918 = vmatprep.subr.bf16.mxu1 %v8515_v62  ;;  %v8625_v61 = vcombine.high %v814_v52, %v822_v55  ;;  %v8627_v62 = vcombine.high %v815_v56, %v823_v57  ;;  %v903_v29 = vld [vmem:[%s12637_s1 + $0x1b58] sm:$0xff] }
 0x1ae   :  { %6747 = vmatpush1.bf16.msra.mxu0 %v8512_v4  ;;  %6919 = vmatpush1.bf16.msra.mxu1 %v8514_v5  ;;  %v8624_v4 = vcombine.low %v814_v52, %v822_v55  ;;  %v8626_v5 = vcombine.low %v815_v56, %v823_v57  ;;  %v8707_v57 = vcombine.high %v895_v47, %v903_v29 }
 0x1af   :  { %6748 = vmatprep.subr.bf16.mxu0 %v8529_v6  ;;  %6920 = vmatprep.subr.bf16.mxu1 %v8531_v7  ;;  %v8641_v6 = vcombine.high %v830_v63, %v838_v0  ;;  %v8643_v7 = vcombine.high %v831_v2, %v839_v3 }
 0x1b2   :  { %6749 = vmatpush1.bf16.msra.mxu0 %v8528_v10  ;;  %6921 = vmatpush1.bf16.msra.mxu1 %v8530_v11  ;;  %v1056_v10 = vlaneseq  ;;  %v8640_v11 = vcombine.low %v830_v63, %v838_v0  ;;  %v911_v0 = vld [vmem:[%s12637_s1 + $0x1b98] sm:$0xff] }
 0x1b3   :  { %6750 = vmatprep.subr.bf16.mxu0 %v8545_v12  ;;  %6922 = vmatprep.subr.bf16.mxu1 %v8547_v13  ;;  %v8642_v12 = vcombine.low %v831_v2, %v839_v3  ;;  %v8657_v13 = vcombine.high %v846_v45, %v854_v46  ;;  %v919_v2 = vld [vmem:[%s12637_s1 + $0x1bd8] sm:$0xff] }
 0x1b6   :  { %6751 = vmatpush1.bf16.msra.mxu0 %v8544_v54  ;;  %6923 = vmatpush1.bf16.msra.mxu1 %v8546_v20  ;;  %v871_v54 = vld [vmem:[%s12637_s1 + $0x1a58] sm:$0xff]  ;;  %v10578_v20 = vshrl.u32 %v1056_v10, 7 }
 0x1b7   :  { %6752 = vmatprep.subr.bf16.mxu0 %v8561_v21  ;;  %6924 = vmatprep.subr.bf16.mxu1 %v8563_v22  ;;  %v8656_v21 = vcombine.low %v846_v45, %v854_v46  ;;  %v8658_v22 = vcombine.low %v847_v8, %v855_v9  ;;  %v8675_v25 = vcombine.high %v863_v53, %v871_v54 }
 0x1b8   :  { %v1066_v34 = vsub.s32 2, %v10578_v20  ;;  %v1062_v36 = vsub.s32 1, %v10578_v20  ;;  %v8674_v37 = vcombine.low %v863_v53, %v871_v54  ;;  %v8706_v45 = vcombine.low %v895_v47, %v903_v29  ;;  %v934_v53 = vld [vmem:[%s12637_s1 + $0x1c50] sm:$0xff]  ;;  %v959_v47 = vld [vmem:[%s12637_s1 + $0x1d18] sm:$0xff] }
 0x1b9   :  { %v967_v29 = vld [vmem:[%s12637_s1 + $0x1d58] sm:$0xff] }
 0x1ba   :  { %6753 = vmatpush1.bf16.msra.mxu0 %v8560_v31  ;;  %6925 = vmatpush1.bf16.msra.mxu1 %v8562_v17  ;;  %v1058_v31 = vsub.s32 0, %v10578_v20  ;;  %v879_v17 = vld [vmem:[%s12637_s1 + $0x1a98] sm:$0xff] }
 0x1bb   :  { %6754 = vmatprep.subr.bf16.mxu0 %v8577_v18  ;;  %6926 = vmatprep.subr.bf16.mxu1 %v8579_v32  ;;  %v887_v18 = vld [vmem:[%s12637_s1 + $0x1ad8] sm:$0xff]  ;;  %v8672_v32 = vcombine.low %v862_v16, %v870_v19  ;;  %v8723_v16 = vcombine.high %v911_v0, %v919_v2  ;;  %v926_v19 = vld [vmem:[%s12637_s1 + $0x1c10] sm:$0xff] }
 0x1bc   :  { %v1059_v44 = vrot.slane %v1052_v33, %v1058_v31  ;;  %v8690_v52 = vcombine.low %v879_v17, %v887_v18 }
 0x1be   :  { %6755 = vmatpush1.bf16.msra.mxu0 %v8576_v38  ;;  %6927 = vmatpush1.bf16.msra.mxu1 %v8578_v39  ;;  %v1070_v38 = vsub.s32 3, %v10578_v20  ;;  %v8689_v39 = vcombine.high %v878_v26, %v886_v28 }
 0x1bf   :  { %6756 = vmatprep.subr.bf16.mxu0 %v8593_v40  ;;  %6928 = vmatprep.subr.bf16.mxu1 %v8595_v41  ;;  %v8691_v40 = vcombine.high %v879_v17, %v887_v18  ;;  %v894_v41 = vld [vmem:[%s12637_s1 + $0x1b10] sm:$0xff] }
 0x1c0   :  { %v8705_v55 = vcombine.high %v894_v41, %v902_v42  ;;  %v942_v17 = vld [vmem:[%s12637_s1 + $0x1c90] sm:$0xff] }
 0x1c1   :  { %v950_v18 = vld [vmem:[%s12637_s1 + $0x1cd0] sm:$0xff] }
 0x1c2   :  { %6757 = vmatpush1.bf16.msra.mxu0 %v8592_v30  ;;  %6929 = vmatpush1.bf16.msra.mxu1 %v8594_v48  ;;  %v1067_v30 = vrot.slane %v1052_v33, %v1066_v34  ;;  %v1063_v48 = vrot.slane %v1052_v33, %v1062_v36 }
 0x1c3   :  { %6769 = vmatprep.subr.bf16.mxu0 %v8609_v49  ;;  %6941 = vmatprep.subr.bf16.mxu1 %v8611_v50  ;;  %v8688_v49 = vcombine.low %v878_v26, %v886_v28  ;;  %v1071_v50 = vrot.slane %v1052_v33, %v1070_v38  ;;  %v8737_v26 = vcombine.high %v926_v19, %v934_v53  ;;  %v951_v33 = vld [vmem:[%s12637_s1 + $0x1cd8] sm:$0xff] }
 0x1c5   :  { %6759 = vmatmul.mubr.bf16.vlgmr.msra.gmra.mrb[4].mxu0 %v9731_v43  ;;  %6931 = vmatmul.mubr.bf16.vlgmr.msra.gmra.mrb[4].mxu1 %v9731_v43 }
 0x1c6   :  { %6770 = vmatpush1.bf16.msra.mxu0 %v8608_v59  ;;  %6942 = vmatpush1.bf16.msra.mxu1 %v8610_v60  ;;  %v910_v59 = vld [vmem:[%s12637_s1 + $0x1b90] sm:$0xff] }
 0x1c7   :  { %6771 = vmatprep.subr.bf16.mxu0 %v8625_v61  ;;  %6943 = vmatprep.subr.bf16.mxu1 %v8627_v62  ;;  %v918_v60 = vld [vmem:[%s12637_s1 + $0x1bd0] sm:$0xff] }
 0x1c8   :  { %6801 = vmatprep.mubr.bf16.mxu0 %v9754_v51  ;;  %6973 = vmatprep.mubr.bf16.mxu1 %v9754_v51 }
 0x1ca   :  { %6772 = vmatpush1.bf16.msra.mxu0 %v8624_v4  ;;  %6944 = vmatpush1.bf16.msra.mxu1 %v8626_v5 }
 0x1cb   :  { %6773 = vmatprep.subr.bf16.mxu0 %v8641_v6  ;;  %6945 = vmatprep.subr.bf16.mxu1 %v8643_v7  ;;  %v8704_v7 = vcombine.low %v894_v41, %v902_v42  ;;  %v958_v42 = vld [vmem:[%s12637_s1 + $0x1d10] sm:$0xff] }
 0x1ce   :  { %6774 = vmatpush1.bf16.msra.mxu0 %v8640_v11  ;;  %6946 = vmatpush1.bf16.msra.mxu1 %v8642_v12  ;;  %v8721_v11 = vcombine.high %v910_v59, %v918_v60 }
 0x1cf   :  { %6775 = vmatprep.subr.bf16.mxu0 %v8657_v13  ;;  %6947 = vmatprep.subr.bf16.mxu1 %v8659_v14 }
 0x1d2   :  { %6776 = vmatpush1.bf16.msra.mxu0 %v8656_v21  ;;  %6948 = vmatpush1.bf16.msra.mxu1 %v8658_v22  ;;  %v927_v21 = vld [vmem:[%s12637_s1 + $0x1c18] sm:$0xff] }
 0x1d3   :  { %6777 = vmatprep.subr.bf16.mxu0 %v8673_v24  ;;  %6949 = vmatprep.subr.bf16.mxu1 %v8675_v25  ;;  %v935_v22 = vld [vmem:[%s12637_s1 + $0x1c58] sm:$0xff]  ;;  %v8720_v24 = vcombine.low %v910_v59, %v918_v60  ;;  %v8722_v25 = vcombine.low %v911_v0, %v919_v2  ;;  %v8770_v60 = vcombine.low %v959_v47, %v967_v29  ;;  %v998_v0 = vld [vmem:[%s12637_s1 + $0x1e50] sm:$0xff] }
 0x1d4   :  { %v8739_v28 = vcombine.high %v927_v21, %v935_v22  ;;  %v991_v2 = vld [vmem:[%s12637_s1 + $0x1e18] sm:$0xff] }
 0x1d6   :  { %6778 = vmatpush1.bf16.msra.mxu0 %v8672_v32  ;;  %6950 = vmatpush1.bf16.msra.mxu1 %v8674_v37  ;;  %v943_v32 = vld [vmem:[%s12637_s1 + $0x1c98] sm:$0xff]  ;;  %v8736_v37 = vcombine.low %v926_v19, %v934_v53 }
 0x1d7   :  { %6779 = vmatprep.subr.bf16.mxu0 %v8689_v39  ;;  %6951 = vmatprep.subr.bf16.mxu1 %v8691_v40  ;;  %v8738_v39 = vcombine.low %v927_v21, %v935_v22  ;;  %v8753_v40 = vcombine.high %v942_v17, %v950_v18  ;;  %v8755_v41 = vcombine.high %v943_v32, %v951_v33  ;;  %v1023_v19 = vld [vmem:[%s12637_s1 + $0x1f18] sm:$0xff] }
 0x1d8   :  { %v6459_v56 = vpop.f32.mrb[0].mxu0  ;;  %v6631_v62 = vpop.f32.mrb[0].mxu1  ;;  %v1031_v53 = vld [vmem:[%s12637_s1 + $0x1f58] sm:$0xff] }
 0x1d9   :  { %v8860_v61 = vadd.f32 %v6459_v56, %v1059_v44  ;;  %v6461_v63 = vpop.f32.mrb[1].mxu0  ;;  %v8864_v3 = vadd.f32 %v6631_v62, %v1067_v30  ;;  %v6633_v5 = vpop.f32.mrb[1].mxu1  ;;  %v975_v56 = vld [vmem:[%s12637_s1 + $0x1d98] sm:$0xff] }
 0x1da   :  { %v8861_v4 = vadd.f32 %v6461_v63, %v1063_v48  ;;  %v6463_v6 = vpop.f32.mrb[2].mxu0  ;;  %6780 = vmatpush1.bf16.msra.mxu0 %v8688_v49  ;;  %v8865_v46 = vadd.f32 %v6633_v5, %v1071_v50  ;;  %v6635_v9 = vpop.f32.mrb[2].mxu1  ;;  %6952 = vmatpush1.bf16.msra.mxu1 %v8690_v52  ;;  %v974_v52 = vld [vmem:[%s12637_s1 + $0x1d90] sm:$0xff] }
 0x1db   :  { %7672 = vst [vmem:[%s12640_s4] sm:$0xff] %v8860_v61  ;;  %v8862_v8 = vadd.f32 %v6463_v6, %v1059_v44  ;;  %v6465_v10 = vpop.f32.mrb[3].mxu0  ;;  %6781 = vmatprep.subr.bf16.mxu0 %v8705_v55  ;;  %7674 = vst [vmem:[%s12640_s4 + $0x10] sm:$0xff] %v8864_v3  ;;  %v8866_v12 = vadd.f32 %v6635_v9, %v1067_v30  ;;  %v6637_v14 = vpop.f32.mrb[3].mxu1  ;;  %6953 = vmatprep.subr.bf16.mxu1 %v8707_v57  ;;  %v966_v44 = vld [vmem:[%s12637_s1 + $0x1d50] sm:$0xff]  ;;  %v983_v57 = vld [vmem:[%s12637_s1 + $0x1dd8] sm:$0xff] }
 0x1dc   :  { %7673 = vst [vmem:[%s12640_s4 + $0x8] sm:$0xff] %v8861_v4  ;;  %v8863_v13 = vadd.f32 %v6465_v10, %v1063_v48  ;;  %7675 = vst [vmem:[%s12640_s4 + $0x18] sm:$0xff] %v8865_v46  ;;  %v8867_v54 = vadd.f32 %v6637_v14, %v1071_v50  ;;  %v8752_v30 = vcombine.low %v942_v17, %v950_v18  ;;  %v982_v55 = vld [vmem:[%s12637_s1 + $0x1dd0] sm:$0xff]  ;;  %v999_v3 = vld [vmem:[%s12637_s1 + $0x1e58] sm:$0xff] }
 0x1dd   :  { %7680 = vst [vmem:[%s12640_s4 + $0x40] sm:$0xff] %v8862_v8  ;;  %7682 = vst [vmem:[%s12640_s4 + $0x50] sm:$0xff] %v8866_v12  ;;  %v8754_v48 = vcombine.low %v943_v32, %v951_v33  ;;  %v8769_v49 = vcombine.high %v958_v42, %v966_v44  ;;  %v8771_v50 = vcombine.high %v959_v47, %v967_v29  ;;  %v990_v63 = vld [vmem:[%s12637_s1 + $0x1e10] sm:$0xff]  ;;  %v1007_v8 = vld [vmem:[%s12637_s1 + $0x1e98] sm:$0xff] }
 0x1de   :  { %7681 = vst [vmem:[%s12640_s4 + $0x48] sm:$0xff] %v8863_v13  ;;  %6782 = vmatpush1.bf16.msra.mxu0 %v8704_v7  ;;  %7683 = vst [vmem:[%s12640_s4 + $0x58] sm:$0xff] %v8867_v54  ;;  %6954 = vmatpush1.bf16.msra.mxu1 %v8706_v45  ;;  %v8768_v59 = vcombine.low %v958_v42, %v966_v44  ;;  %v8785_v61 = vcombine.high %v974_v52, %v982_v55  ;;  %v1006_v45 = vld [vmem:[%s12637_s1 + $0x1e90] sm:$0xff]  ;;  %v1015_v9 = vld [vmem:[%s12637_s1 + $0x1ed8] sm:$0xff] }
 0x1df   :  { %6783 = vmatprep.subr.bf16.mxu0 %v8721_v11  ;;  %6955 = vmatprep.subr.bf16.mxu1 %v8723_v16  ;;  %v8787_v62 = vcombine.high %v975_v56, %v983_v57  ;;  %v8784_v4 = vcombine.low %v974_v52, %v982_v55  ;;  %v8786_v5 = vcombine.low %v975_v56, %v983_v57  ;;  %v1014_v46 = vld [vmem:[%s12637_s1 + $0x1ed0] sm:$0xff]  ;;  %v1047_v17 = vld [vmem:[%s12637_s1 + $0x1fd8] sm:$0xff]  ;;  %v41_v42 = vld [vmem:[%s12637_s1 + $0x68] sm:$0xff] }
 0x1e0   :  { %v8801_v6 = vcombine.high %v990_v63, %v998_v0  ;;  %v8803_v7 = vcombine.high %v991_v2, %v999_v3  ;;  %v8800_v10 = vcombine.low %v990_v63, %v998_v0  ;;  %v8802_v11 = vcombine.low %v991_v2, %v999_v3  ;;  %v1022_v14 = vld [vmem:[%s12637_s1 + $0x1f10] sm:$0xff]  ;;  %v57_v52 = vld [vmem:[%s12637_s1 + $0xe8] sm:$0xff] }
 0x1e1   :  { %v8817_v12 = vcombine.high %v1006_v45, %v1014_v46  ;;  %v8819_v13 = vcombine.high %v1007_v8, %v1015_v9  ;;  %v1030_v16 = vld [vmem:[%s12637_s1 + $0x1f50] sm:$0xff]  ;;  %v8816_v54 = vcombine.low %v1006_v45, %v1014_v46  ;;  %v8818_v21 = vcombine.low %v1007_v8, %v1015_v9  ;;  %v73_v63 = vld [vmem:[%s12637_s1 + $0x168] sm:$0xff] }
 0x1e2   :  { %6784 = vmatpush1.bf16.msra.mxu0 %v8720_v24  ;;  %6956 = vmatpush1.bf16.msra.mxu1 %v8722_v25  ;;  %v8833_v22 = vcombine.high %v1022_v14, %v1030_v16  ;;  %v8835_v24 = vcombine.high %v1023_v19, %v1031_v53  ;;  %v1038_v25 = vld [vmem:[%s12637_s1 + $0x1f90] sm:$0xff]  ;;  %v8832_v18 = vcombine.low %v1022_v14, %v1030_v16  ;;  %v89_v45 = vld [vmem:[%s12637_s1 + $0x1e8] sm:$0xff] }
 0x1e3   :  { %6785 = vmatprep.subr.bf16.mxu0 %v8737_v26  ;;  %6957 = vmatprep.subr.bf16.mxu1 %v8739_v28  ;;  %v1046_v26 = vld [vmem:[%s12637_s1 + $0x1fd0] sm:$0xff]  ;;  %v1039_v28 = vld [vmem:[%s12637_s1 + $0x1f98] sm:$0xff]  ;;  %v8834_v32 = vcombine.low %v1023_v19, %v1031_v53  ;;  %v105_v14 = vld [vmem:[%s12637_s1 + $0x268] sm:$0xff] }
 0x1e4   :  { %v8849_v33 = vcombine.high %v1038_v25, %v1046_v26  ;;  %v8848_v44 = vcombine.low %v1038_v25, %v1046_v26  ;;  %v8850_v47 = vcombine.low %v1039_v28, %v1047_v17  ;;  %v121_v25 = vld [vmem:[%s12637_s1 + $0x2e8] sm:$0xff] }
 0x1e6   :  { %6786 = vmatpush1.bf16.msra.mxu0 %v8736_v37  ;;  %6958 = vmatpush1.bf16.msra.mxu1 %v8738_v39  ;;  %v8851_v37 = vcombine.high %v1039_v28, %v1047_v17  ;;  %v32_v39 = vld [vmem:[%s12637_s1 + $0x20] sm:$0xff] }
 0x1e7   :  { %6787 = vmatprep.subr.bf16.mxu0 %v8753_v40  ;;  %6959 = vmatprep.subr.bf16.mxu1 %v8755_v41  ;;  %v40_v40 = vld [vmem:[%s12637_s1 + $0x60] sm:$0xff]  ;;  %v33_v41 = vld [vmem:[%s12637_s1 + $0x28] sm:$0xff] }
 0x1e8   :  { %v7845_v29 = vcombine.high %v32_v39, %v40_v40  ;;  %v7844_v55 = vcombine.low %v32_v39, %v40_v40  ;;  %v7846_v56 = vcombine.low %v33_v41, %v41_v42  ;;  %v137_v39 = vld [vmem:[%s12637_s1 + $0x368] sm:$0xff] }
 0x1ea   :  { %6788 = vmatpush1.bf16.msra.mxu0 %v8752_v30  ;;  %6960 = vmatpush1.bf16.msra.mxu1 %v8754_v48  ;;  %v7847_v30 = vcombine.high %v33_v41, %v41_v42  ;;  %v48_v48 = vld [vmem:[%s12637_s1 + $0xa0] sm:$0xff] }
 0x1eb   :  { %6789 = vmatprep.subr.bf16.mxu0 %v8769_v49  ;;  %6961 = vmatprep.subr.bf16.mxu1 %v8771_v50  ;;  %v56_v49 = vld [vmem:[%s12637_s1 + $0xe0] sm:$0xff]  ;;  %v49_v50 = vld [vmem:[%s12637_s1 + $0xa8] sm:$0xff] }
 0x1ec   :  { %v7861_v57 = vcombine.high %v48_v48, %v56_v49  ;;  %v7860_v0 = vcombine.low %v48_v48, %v56_v49  ;;  %v7862_v2 = vcombine.low %v49_v50, %v57_v52  ;;  %v153_v48 = vld [vmem:[%s12637_s1 + $0x3e8] sm:$0xff] }
 0x1ee   :  { %6790 = vmatpush1.bf16.msra.mxu0 %v8768_v59  ;;  %6962 = vmatpush1.bf16.msra.mxu1 %v8770_v60  ;;  %v7863_v59 = vcombine.high %v49_v50, %v57_v52  ;;  %v64_v60 = vld [vmem:[%s12637_s1 + $0x120] sm:$0xff] }
 0x1ef   :  { %6791 = vmatprep.subr.bf16.mxu0 %v8785_v61  ;;  %6963 = vmatprep.subr.bf16.mxu1 %v8787_v62  ;;  %v72_v61 = vld [vmem:[%s12637_s1 + $0x160] sm:$0xff]  ;;  %v65_v62 = vld [vmem:[%s12637_s1 + $0x128] sm:$0xff] }
 0x1f0   :  { %v7877_v3 = vcombine.high %v64_v60, %v72_v61  ;;  %v7876_v46 = vcombine.low %v64_v60, %v72_v61  ;;  %v7878_v8 = vcombine.low %v65_v62, %v73_v63  ;;  %v169_v60 = vld [vmem:[%s12637_s1 + $0x468] sm:$0xff] }
 0x1f2   :  { %6792 = vmatpush1.bf16.msra.mxu0 %v8784_v4  ;;  %6964 = vmatpush1.bf16.msra.mxu1 %v8786_v5  ;;  %v7879_v4 = vcombine.high %v65_v62, %v73_v63  ;;  %v80_v5 = vld [vmem:[%s12637_s1 + $0x1a0] sm:$0xff] }
 0x1f3   :  { %6793 = vmatprep.subr.bf16.mxu0 %v8801_v6  ;;  %6965 = vmatprep.subr.bf16.mxu1 %v8803_v7  ;;  %v88_v6 = vld [vmem:[%s12637_s1 + $0x1e0] sm:$0xff]  ;;  %v81_v7 = vld [vmem:[%s12637_s1 + $0x1a8] sm:$0xff] }
 0x1f4   :  { %v7893_v9 = vcombine.high %v80_v5, %v88_v6  ;;  %v7892_v16 = vcombine.low %v80_v5, %v88_v6  ;;  %v7894_v19 = vcombine.low %v81_v7, %v89_v45  ;;  %v185_v5 = vld [vmem:[%s12637_s1 + $0x4e8] sm:$0xff] }
 0x1f6   :  { %6794 = vmatpush1.bf16.msra.mxu0 %v8800_v10  ;;  %6966 = vmatpush1.bf16.msra.mxu1 %v8802_v11  ;;  %v7895_v10 = vcombine.high %v81_v7, %v89_v45  ;;  %v96_v11 = vld [vmem:[%s12637_s1 + $0x220] sm:$0xff] }
 0x1f7   :  { %6795 = vmatprep.subr.bf16.mxu0 %v8817_v12  ;;  %6967 = vmatprep.subr.bf16.mxu1 %v8819_v13  ;;  %v104_v12 = vld [vmem:[%s12637_s1 + $0x260] sm:$0xff]  ;;  %v97_v13 = vld [vmem:[%s12637_s1 + $0x228] sm:$0xff] }
 0x1f8   :  { %v7909_v53 = vcombine.high %v96_v11, %v104_v12  ;;  %v7908_v26 = vcombine.low %v96_v11, %v104_v12  ;;  %v7910_v28 = vcombine.low %v97_v13, %v105_v14  ;;  %v201_v11 = vld [vmem:[%s12637_s1 + $0x568] sm:$0xff] }
 0x1fa   :  { %6796 = vmatpush1.bf16.msra.mxu0 %v8816_v54  ;;  %6968 = vmatpush1.bf16.msra.mxu1 %v8818_v21  ;;  %v7911_v54 = vcombine.high %v97_v13, %v105_v14  ;;  %v112_v21 = vld [vmem:[%s12637_s1 + $0x2a0] sm:$0xff] }
 0x1fb   :  { %6797 = vmatprep.subr.bf16.mxu0 %v8833_v22  ;;  %6969 = vmatprep.subr.bf16.mxu1 %v8835_v24  ;;  %v120_v22 = vld [vmem:[%s12637_s1 + $0x2e0] sm:$0xff]  ;;  %v113_v24 = vld [vmem:[%s12637_s1 + $0x2a8] sm:$0xff] }
 0x1fc   :  { %v7925_v17 = vcombine.high %v112_v21, %v120_v22  ;;  %v7924_v40 = vcombine.low %v112_v21, %v120_v22  ;;  %v7926_v41 = vcombine.low %v113_v24, %v121_v25  ;;  %v217_v21 = vld [vmem:[%s12637_s1 + $0x5e8] sm:$0xff] }
 0x1fe   :  { %6798 = vmatpush1.bf16.msra.mxu0 %v8832_v18  ;;  %6970 = vmatpush1.bf16.msra.mxu1 %v8834_v32  ;;  %v7927_v18 = vcombine.high %v113_v24, %v121_v25  ;;  %v128_v32 = vld [vmem:[%s12637_s1 + $0x320] sm:$0xff] }
 0x1ff   :  { %6799 = vmatprep.subr.bf16.mxu0 %v8849_v33  ;;  %6971 = vmatprep.subr.bf16.mxu1 %v8851_v37  ;;  %v136_v33 = vld [vmem:[%s12637_s1 + $0x360] sm:$0xff]  ;;  %v129_v37 = vld [vmem:[%s12637_s1 + $0x328] sm:$0xff] }
 0x200   :  { %v7941_v42 = vcombine.high %v128_v32, %v136_v33  ;;  %v7940_v49 = vcombine.low %v128_v32, %v136_v33  ;;  %v7942_v50 = vcombine.low %v129_v37, %v137_v39  ;;  %v233_v32 = vld [vmem:[%s12637_s1 + $0x668] sm:$0xff] }
 0x202   :  { %6800 = vmatpush1.bf16.msra.mxu0 %v8848_v44  ;;  %6972 = vmatpush1.bf16.msra.mxu1 %v8850_v47  ;;  %v7943_v44 = vcombine.high %v129_v37, %v137_v39  ;;  %v144_v47 = vld [vmem:[%s12637_s1 + $0x3a0] sm:$0xff] }
 0x203   :  { %6984 = vmatprep.subr.bf16.mxu0 %v7845_v29  ;;  %7156 = vmatprep.subr.bf16.mxu1 %v7847_v30  ;;  %v152_v29 = vld [vmem:[%s12637_s1 + $0x3e0] sm:$0xff]  ;;  %v145_v30 = vld [vmem:[%s12637_s1 + $0x3a8] sm:$0xff] }
 0x204   :  { %v7957_v52 = vcombine.high %v144_v47, %v152_v29  ;;  %v7956_v61 = vcombine.low %v144_v47, %v152_v29  ;;  %v7958_v62 = vcombine.low %v145_v30, %v153_v48  ;;  %v249_v47 = vld [vmem:[%s12637_s1 + $0x6e8] sm:$0xff] }
 0x205   :  { %6802 = vmatmul.mubr.bf16.vlgmr.msra.gmra.mrb[4].mxu0 %v9942_v1  ;;  %6974 = vmatmul.mubr.bf16.vlgmr.msra.gmra.mrb[4].mxu1 %v9942_v1 }
 0x206   :  { %6985 = vmatpush1.bf16.msra.mxu0 %v7844_v55  ;;  %7157 = vmatpush1.bf16.msra.mxu1 %v7846_v56  ;;  %v7959_v55 = vcombine.high %v145_v30, %v153_v48  ;;  %v160_v56 = vld [vmem:[%s12637_s1 + $0x420] sm:$0xff] }
 0x207   :  { %6986 = vmatprep.subr.bf16.mxu0 %v7861_v57  ;;  %7158 = vmatprep.subr.bf16.mxu1 %v7863_v59  ;;  %v168_v57 = vld [vmem:[%s12637_s1 + $0x460] sm:$0xff]  ;;  %v161_v59 = vld [vmem:[%s12637_s1 + $0x428] sm:$0xff] }
 0x208   :  { %7016 = vmatprep.mubr.bf16.mxu0 %v9174_v58  ;;  %7188 = vmatprep.mubr.bf16.mxu1 %v9174_v58  ;;  %v7973_v63 = vcombine.high %v160_v56, %v168_v57  ;;  %v7972_v6 = vcombine.low %v160_v56, %v168_v57  ;;  %v7974_v7 = vcombine.low %v161_v59, %v169_v60  ;;  %v265_v56 = vld [vmem:[%s12637_s1 + $0x768] sm:$0xff] }
 0x20a   :  { %6987 = vmatpush1.bf16.msra.mxu0 %v7860_v0  ;;  %7159 = vmatpush1.bf16.msra.mxu1 %v7862_v2  ;;  %v7975_v0 = vcombine.high %v161_v59, %v169_v60  ;;  %v176_v2 = vld [vmem:[%s12637_s1 + $0x4a0] sm:$0xff] }
 0x20b   :  { %6988 = vmatprep.subr.bf16.mxu0 %v7877_v3  ;;  %7160 = vmatprep.subr.bf16.mxu1 %v7879_v4  ;;  %v184_v3 = vld [vmem:[%s12637_s1 + $0x4e0] sm:$0xff]  ;;  %v177_v4 = vld [vmem:[%s12637_s1 + $0x4a8] sm:$0xff] }
 0x20c   :  { %v7989_v45 = vcombine.high %v176_v2, %v184_v3  ;;  %v7988_v12 = vcombine.low %v176_v2, %v184_v3  ;;  %v7990_v13 = vcombine.low %v177_v4, %v185_v5  ;;  %v281_v2 = vld [vmem:[%s12637_s1 + $0x7e8] sm:$0xff] }
 0x20e   :  { %6989 = vmatpush1.bf16.msra.mxu0 %v7876_v46  ;;  %7161 = vmatpush1.bf16.msra.mxu1 %v7878_v8  ;;  %v7991_v46 = vcombine.high %v177_v4, %v185_v5  ;;  %v192_v8 = vld [vmem:[%s12637_s1 + $0x520] sm:$0xff] }
 0x20f   :  { %6990 = vmatprep.subr.bf16.mxu0 %v7893_v9  ;;  %7162 = vmatprep.subr.bf16.mxu1 %v7895_v10  ;;  %v200_v9 = vld [vmem:[%s12637_s1 + $0x560] sm:$0xff]  ;;  %v193_v10 = vld [vmem:[%s12637_s1 + $0x528] sm:$0xff] }
 0x210   :  { %v8005_v14 = vcombine.high %v192_v8, %v200_v9  ;;  %v8004_v22 = vcombine.low %v192_v8, %v200_v9  ;;  %v8006_v24 = vcombine.low %v193_v10, %v201_v11  ;;  %v297_v8 = vld [vmem:[%s12637_s1 + $0x868] sm:$0xff] }
 0x212   :  { %6991 = vmatpush1.bf16.msra.mxu0 %v7892_v16  ;;  %7163 = vmatpush1.bf16.msra.mxu1 %v7894_v19  ;;  %v8007_v16 = vcombine.high %v193_v10, %v201_v11  ;;  %v208_v19 = vld [vmem:[%s12637_s1 + $0x5a0] sm:$0xff] }
 0x213   :  { %6992 = vmatprep.subr.bf16.mxu0 %v7909_v53  ;;  %7164 = vmatprep.subr.bf16.mxu1 %v7911_v54  ;;  %v216_v53 = vld [vmem:[%s12637_s1 + $0x5e0] sm:$0xff]  ;;  %v209_v54 = vld [vmem:[%s12637_s1 + $0x5a8] sm:$0xff] }
 0x214   :  { %v8021_v25 = vcombine.high %v208_v19, %v216_v53  ;;  %v8020_v33 = vcombine.low %v208_v19, %v216_v53  ;;  %v8022_v37 = vcombine.low %v209_v54, %v217_v21  ;;  %v313_v19 = vld [vmem:[%s12637_s1 + $0x8e8] sm:$0xff] }
 0x216   :  { %6993 = vmatpush1.bf16.msra.mxu0 %v7908_v26  ;;  %7165 = vmatpush1.bf16.msra.mxu1 %v7910_v28  ;;  %v8023_v26 = vcombine.high %v209_v54, %v217_v21  ;;  %v224_v28 = vld [vmem:[%s12637_s1 + $0x620] sm:$0xff] }
 0x217   :  { %6994 = vmatprep.subr.bf16.mxu0 %v7925_v17  ;;  %7166 = vmatprep.subr.bf16.mxu1 %v7927_v18  ;;  %v232_v17 = vld [vmem:[%s12637_s1 + $0x660] sm:$0xff]  ;;  %v225_v18 = vld [vmem:[%s12637_s1 + $0x628] sm:$0xff] }
 0x218   :  { %v8037_v39 = vcombine.high %v224_v28, %v232_v17  ;;  %v8036_v29 = vcombine.low %v224_v28, %v232_v17  ;;  %v8038_v30 = vcombine.low %v225_v18, %v233_v32  ;;  %v329_v28 = vld [vmem:[%s12637_s1 + $0x968] sm:$0xff] }
 0x21a   :  { %6995 = vmatpush1.bf16.msra.mxu0 %v7924_v40  ;;  %7167 = vmatpush1.bf16.msra.mxu1 %v7926_v41  ;;  %v8039_v40 = vcombine.high %v225_v18, %v233_v32  ;;  %v240_v41 = vld [vmem:[%s12637_s1 + $0x6a0] sm:$0xff] }
 0x21b   :  { %6996 = vmatprep.subr.bf16.mxu0 %v7941_v42  ;;  %7168 = vmatprep.subr.bf16.mxu1 %v7943_v44  ;;  %v248_v42 = vld [vmem:[%s12637_s1 + $0x6e0] sm:$0xff]  ;;  %v241_v44 = vld [vmem:[%s12637_s1 + $0x6a8] sm:$0xff] }
 0x21c   :  { %v8053_v48 = vcombine.high %v240_v41, %v248_v42  ;;  %v8052_v57 = vcombine.low %v240_v41, %v248_v42  ;;  %v8054_v59 = vcombine.low %v241_v44, %v249_v47  ;;  %v345_v41 = vld [vmem:[%s12637_s1 + $0x9e8] sm:$0xff] }
 0x21e   :  { %6997 = vmatpush1.bf16.msra.mxu0 %v7940_v49  ;;  %7169 = vmatpush1.bf16.msra.mxu1 %v7942_v50  ;;  %v8055_v49 = vcombine.high %v241_v44, %v249_v47  ;;  %v256_v50 = vld [vmem:[%s12637_s1 + $0x720] sm:$0xff] }
 0x21f   :  { %6998 = vmatprep.subr.bf16.mxu0 %v7957_v52  ;;  %7170 = vmatprep.subr.bf16.mxu1 %v7959_v55  ;;  %v264_v52 = vld [vmem:[%s12637_s1 + $0x760] sm:$0xff]  ;;  %v257_v55 = vld [vmem:[%s12637_s1 + $0x728] sm:$0xff] }
 0x220   :  { %v8069_v60 = vcombine.high %v256_v50, %v264_v52  ;;  %v8068_v3 = vcombine.low %v256_v50, %v264_v52  ;;  %v8070_v4 = vcombine.low %v257_v55, %v265_v56  ;;  %v361_v50 = vld [vmem:[%s12637_s1 + $0xa68] sm:$0xff] }
 0x222   :  { %6999 = vmatpush1.bf16.msra.mxu0 %v7956_v61  ;;  %7171 = vmatpush1.bf16.msra.mxu1 %v7958_v62  ;;  %v8071_v61 = vcombine.high %v257_v55, %v265_v56  ;;  %v272_v62 = vld [vmem:[%s12637_s1 + $0x7a0] sm:$0xff] }
 0x223   :  { %7000 = vmatprep.subr.bf16.mxu0 %v7973_v63  ;;  %7172 = vmatprep.subr.bf16.mxu1 %v7975_v0  ;;  %v280_v63 = vld [vmem:[%s12637_s1 + $0x7e0] sm:$0xff]  ;;  %v273_v0 = vld [vmem:[%s12637_s1 + $0x7a8] sm:$0xff] }
 0x224   :  { %v8085_v5 = vcombine.high %v272_v62, %v280_v63  ;;  %v8084_v9 = vcombine.low %v272_v62, %v280_v63  ;;  %v8086_v10 = vcombine.low %v273_v0, %v281_v2  ;;  %v377_v62 = vld [vmem:[%s12637_s1 + $0xae8] sm:$0xff] }
 0x226   :  { %7001 = vmatpush1.bf16.msra.mxu0 %v7972_v6  ;;  %7173 = vmatpush1.bf16.msra.mxu1 %v7974_v7  ;;  %v8087_v6 = vcombine.high %v273_v0, %v281_v2  ;;  %v288_v7 = vld [vmem:[%s12637_s1 + $0x820] sm:$0xff] }
 0x227   :  { %7002 = vmatprep.subr.bf16.mxu0 %v7989_v45  ;;  %7174 = vmatprep.subr.bf16.mxu1 %v7991_v46  ;;  %v296_v45 = vld [vmem:[%s12637_s1 + $0x860] sm:$0xff]  ;;  %v289_v46 = vld [vmem:[%s12637_s1 + $0x828] sm:$0xff] }
 0x228   :  { %v8101_v11 = vcombine.high %v288_v7, %v296_v45  ;;  %v8100_v53 = vcombine.low %v288_v7, %v296_v45  ;;  %v8102_v54 = vcombine.low %v289_v46, %v297_v8  ;;  %v393_v7 = vld [vmem:[%s12637_s1 + $0xb68] sm:$0xff] }
 0x22a   :  { %7003 = vmatpush1.bf16.msra.mxu0 %v7988_v12  ;;  %7175 = vmatpush1.bf16.msra.mxu1 %v7990_v13  ;;  %v8103_v12 = vcombine.high %v289_v46, %v297_v8  ;;  %v304_v13 = vld [vmem:[%s12637_s1 + $0x8a0] sm:$0xff] }
 0x22b   :  { %7004 = vmatprep.subr.bf16.mxu0 %v8005_v14  ;;  %7176 = vmatprep.subr.bf16.mxu1 %v8007_v16  ;;  %v312_v14 = vld [vmem:[%s12637_s1 + $0x8e0] sm:$0xff]  ;;  %v305_v16 = vld [vmem:[%s12637_s1 + $0x8a8] sm:$0xff] }
 0x22c   :  { %v8117_v21 = vcombine.high %v304_v13, %v312_v14  ;;  %v8116_v17 = vcombine.low %v304_v13, %v312_v14  ;;  %v8118_v18 = vcombine.low %v305_v16, %v313_v19  ;;  %v409_v13 = vld [vmem:[%s12637_s1 + $0xbe8] sm:$0xff] }
 0x22e   :  { %7005 = vmatpush1.bf16.msra.mxu0 %v8004_v22  ;;  %7177 = vmatpush1.bf16.msra.mxu1 %v8006_v24  ;;  %v8119_v22 = vcombine.high %v305_v16, %v313_v19  ;;  %v320_v24 = vld [vmem:[%s12637_s1 + $0x920] sm:$0xff] }
 0x22f   :  { %7006 = vmatprep.subr.bf16.mxu0 %v8021_v25  ;;  %7178 = vmatprep.subr.bf16.mxu1 %v8023_v26  ;;  %v328_v25 = vld [vmem:[%s12637_s1 + $0x960] sm:$0xff]  ;;  %v321_v26 = vld [vmem:[%s12637_s1 + $0x928] sm:$0xff] }
 0x230   :  { %v8133_v32 = vcombine.high %v320_v24, %v328_v25  ;;  %v8132_v42 = vcombine.low %v320_v24, %v328_v25  ;;  %v8134_v44 = vcombine.low %v321_v26, %v329_v28  ;;  %v425_v24 = vld [vmem:[%s12637_s1 + $0xc68] sm:$0xff] }
 0x232   :  { %7007 = vmatpush1.bf16.msra.mxu0 %v8020_v33  ;;  %7179 = vmatpush1.bf16.msra.mxu1 %v8022_v37  ;;  %v8135_v33 = vcombine.high %v321_v26, %v329_v28  ;;  %v336_v37 = vld [vmem:[%s12637_s1 + $0x9a0] sm:$0xff] }
 0x233   :  { %7008 = vmatprep.subr.bf16.mxu0 %v8037_v39  ;;  %7180 = vmatprep.subr.bf16.mxu1 %v8039_v40  ;;  %v344_v39 = vld [vmem:[%s12637_s1 + $0x9e0] sm:$0xff]  ;;  %v337_v40 = vld [vmem:[%s12637_s1 + $0x9a8] sm:$0xff] }
 0x234   :  { %v8149_v47 = vcombine.high %v336_v37, %v344_v39  ;;  %v8148_v52 = vcombine.low %v336_v37, %v344_v39  ;;  %v8150_v55 = vcombine.low %v337_v40, %v345_v41  ;;  %v441_v37 = vld [vmem:[%s12637_s1 + $0xce8] sm:$0xff] }
 0x236   :  { %7009 = vmatpush1.bf16.msra.mxu0 %v8036_v29  ;;  %7181 = vmatpush1.bf16.msra.mxu1 %v8038_v30  ;;  %v8151_v29 = vcombine.high %v337_v40, %v345_v41  ;;  %v352_v30 = vld [vmem:[%s12637_s1 + $0xa20] sm:$0xff] }
 0x237   :  { %7010 = vmatprep.subr.bf16.mxu0 %v8053_v48  ;;  %7182 = vmatprep.subr.bf16.mxu1 %v8055_v49  ;;  %v360_v48 = vld [vmem:[%s12637_s1 + $0xa60] sm:$0xff]  ;;  %v353_v49 = vld [vmem:[%s12637_s1 + $0xa28] sm:$0xff] }
 0x238   :  { %v8165_v56 = vcombine.high %v352_v30, %v360_v48  ;;  %v8164_v63 = vcombine.low %v352_v30, %v360_v48  ;;  %v8166_v0 = vcombine.low %v353_v49, %v361_v50  ;;  %v457_v30 = vld [vmem:[%s12637_s1 + $0xd68] sm:$0xff] }
 0x23a   :  { %7011 = vmatpush1.bf16.msra.mxu0 %v8052_v57  ;;  %7183 = vmatpush1.bf16.msra.mxu1 %v8054_v59  ;;  %v8167_v57 = vcombine.high %v353_v49, %v361_v50  ;;  %v368_v59 = vld [vmem:[%s12637_s1 + $0xaa0] sm:$0xff] }
 0x23b   :  { %7012 = vmatprep.subr.bf16.mxu0 %v8069_v60  ;;  %7184 = vmatprep.subr.bf16.mxu1 %v8071_v61  ;;  %v376_v60 = vld [vmem:[%s12637_s1 + $0xae0] sm:$0xff]  ;;  %v369_v61 = vld [vmem:[%s12637_s1 + $0xaa8] sm:$0xff] }
 0x23c   :  { %v8181_v2 = vcombine.high %v368_v59, %v376_v60  ;;  %v8180_v45 = vcombine.low %v368_v59, %v376_v60  ;;  %v8182_v46 = vcombine.low %v369_v61, %v377_v62  ;;  %v473_v59 = vld [vmem:[%s12637_s1 + $0xde8] sm:$0xff] }
 0x23e   :  { %7013 = vmatpush1.bf16.msra.mxu0 %v8068_v3  ;;  %7185 = vmatpush1.bf16.msra.mxu1 %v8070_v4  ;;  %v8183_v3 = vcombine.high %v369_v61, %v377_v62  ;;  %v384_v4 = vld [vmem:[%s12637_s1 + $0xb20] sm:$0xff] }
 0x23f   :  { %7014 = vmatprep.subr.bf16.mxu0 %v8085_v5  ;;  %7186 = vmatprep.subr.bf16.mxu1 %v8087_v6  ;;  %v392_v5 = vld [vmem:[%s12637_s1 + $0xb60] sm:$0xff]  ;;  %v385_v6 = vld [vmem:[%s12637_s1 + $0xb28] sm:$0xff] }
 0x240   :  { %v8197_v8 = vcombine.high %v384_v4, %v392_v5  ;;  %v8196_v14 = vcombine.low %v384_v4, %v392_v5  ;;  %v8198_v16 = vcombine.low %v385_v6, %v393_v7  ;;  %v489_v4 = vld [vmem:[%s12637_s1 + $0xe68] sm:$0xff] }
 0x242   :  { %7015 = vmatpush1.bf16.msra.mxu0 %v8084_v9  ;;  %7187 = vmatpush1.bf16.msra.mxu1 %v8086_v10  ;;  %v8199_v9 = vcombine.high %v385_v6, %v393_v7  ;;  %v400_v10 = vld [vmem:[%s12637_s1 + $0xba0] sm:$0xff] }
 0x243   :  { %7027 = vmatprep.subr.bf16.mxu0 %v8101_v11  ;;  %7199 = vmatprep.subr.bf16.mxu1 %v8103_v12  ;;  %v408_v11 = vld [vmem:[%s12637_s1 + $0xbe0] sm:$0xff]  ;;  %v401_v12 = vld [vmem:[%s12637_s1 + $0xba8] sm:$0xff] }
 0x244   :  { %v8213_v19 = vcombine.high %v400_v10, %v408_v11  ;;  %v8212_v25 = vcombine.low %v400_v10, %v408_v11  ;;  %v8214_v26 = vcombine.low %v401_v12, %v409_v13  ;;  %v505_v10 = vld [vmem:[%s12637_s1 + $0xee8] sm:$0xff] }
 0x245   :  { %7017 = vmatmul.mubr.bf16.vlgmr.msra.gmra.mrb[8].mxu0 %v9303_v15  ;;  %7189 = vmatmul.mubr.bf16.vlgmr.msra.gmra.mrb[8].mxu1 %v9303_v15 }
 0x246   :  { %7028 = vmatpush1.bf16.msra.mxu0 %v8100_v53  ;;  %7200 = vmatpush1.bf16.msra.mxu1 %v8102_v54  ;;  %v8215_v53 = vcombine.high %v401_v12, %v409_v13  ;;  %v416_v54 = vld [vmem:[%s12637_s1 + $0xc20] sm:$0xff] }
 0x247   :  { %7029 = vmatprep.subr.bf16.mxu0 %v8117_v21  ;;  %7201 = vmatprep.subr.bf16.mxu1 %v8119_v22  ;;  %v424_v21 = vld [vmem:[%s12637_s1 + $0xc60] sm:$0xff]  ;;  %v417_v22 = vld [vmem:[%s12637_s1 + $0xc28] sm:$0xff] }
 0x248   :  { %7059 = vmatprep.mubr.bf16.mxu0 %v9326_v23  ;;  %7231 = vmatprep.mubr.bf16.mxu1 %v9326_v23  ;;  %v8229_v28 = vcombine.high %v416_v54, %v424_v21  ;;  %v8228_v39 = vcombine.low %v416_v54, %v424_v21  ;;  %v8230_v40 = vcombine.low %v417_v22, %v425_v24  ;;  %v521_v54 = vld [vmem:[%s12637_s1 + $0xf68] sm:$0xff] }
 0x24a   :  { %7030 = vmatpush1.bf16.msra.mxu0 %v8116_v17  ;;  %7202 = vmatpush1.bf16.msra.mxu1 %v8118_v18  ;;  %v8231_v17 = vcombine.high %v417_v22, %v425_v24  ;;  %v432_v18 = vld [vmem:[%s12637_s1 + $0xca0] sm:$0xff] }
 0x24b   :  { %7031 = vmatprep.subr.bf16.mxu0 %v8133_v32  ;;  %7203 = vmatprep.subr.bf16.mxu1 %v8135_v33  ;;  %v440_v32 = vld [vmem:[%s12637_s1 + $0xce0] sm:$0xff]  ;;  %v433_v33 = vld [vmem:[%s12637_s1 + $0xca8] sm:$0xff] }
 0x24c   :  { %v8245_v41 = vcombine.high %v432_v18, %v440_v32  ;;  %v8244_v48 = vcombine.low %v432_v18, %v440_v32  ;;  %v8246_v49 = vcombine.low %v433_v33, %v441_v37  ;;  %v537_v18 = vld [vmem:[%s12637_s1 + $0xfe8] sm:$0xff] }
 0x24e   :  { %7032 = vmatpush1.bf16.msra.mxu0 %v8132_v42  ;;  %7204 = vmatpush1.bf16.msra.mxu1 %v8134_v44  ;;  %v8247_v42 = vcombine.high %v433_v33, %v441_v37  ;;  %v448_v44 = vld [vmem:[%s12637_s1 + $0xd20] sm:$0xff] }
 0x24f   :  { %7033 = vmatprep.subr.bf16.mxu0 %v8149_v47  ;;  %7205 = vmatprep.subr.bf16.mxu1 %v8151_v29  ;;  %v456_v47 = vld [vmem:[%s12637_s1 + $0xd60] sm:$0xff]  ;;  %v449_v29 = vld [vmem:[%s12637_s1 + $0xd28] sm:$0xff] }
 0x250   :  { %v8261_v50 = vcombine.high %v448_v44, %v456_v47  ;;  %v8260_v60 = vcombine.low %v448_v44, %v456_v47  ;;  %v8262_v61 = vcombine.low %v449_v29, %v457_v30  ;;  %v553_v44 = vld [vmem:[%s12637_s1 + $0x1068] sm:$0xff] }
 0x252   :  { %7034 = vmatpush1.bf16.msra.mxu0 %v8148_v52  ;;  %7206 = vmatpush1.bf16.msra.mxu1 %v8150_v55  ;;  %v8263_v52 = vcombine.high %v449_v29, %v457_v30  ;;  %v464_v55 = vld [vmem:[%s12637_s1 + $0xda0] sm:$0xff] }
 0x253   :  { %7035 = vmatprep.subr.bf16.mxu0 %v8165_v56  ;;  %7207 = vmatprep.subr.bf16.mxu1 %v8167_v57  ;;  %v472_v56 = vld [vmem:[%s12637_s1 + $0xde0] sm:$0xff]  ;;  %v465_v57 = vld [vmem:[%s12637_s1 + $0xda8] sm:$0xff] }
 0x254   :  { %v8277_v62 = vcombine.high %v464_v55, %v472_v56  ;;  %v8276_v5 = vcombine.low %v464_v55, %v472_v56  ;;  %v8278_v6 = vcombine.low %v465_v57, %v473_v59  ;;  %v569_v55 = vld [vmem:[%s12637_s1 + $0x10e8] sm:$0xff] }
 0x256   :  { %7036 = vmatpush1.bf16.msra.mxu0 %v8164_v63  ;;  %7208 = vmatpush1.bf16.msra.mxu1 %v8166_v0  ;;  %v8279_v63 = vcombine.high %v465_v57, %v473_v59  ;;  %v480_v0 = vld [vmem:[%s12637_s1 + $0xe20] sm:$0xff] }
 0x257   :  { %7037 = vmatprep.subr.bf16.mxu0 %v8181_v2  ;;  %7209 = vmatprep.subr.bf16.mxu1 %v8183_v3  ;;  %v488_v2 = vld [vmem:[%s12637_s1 + $0xe60] sm:$0xff]  ;;  %v481_v3 = vld [vmem:[%s12637_s1 + $0xe28] sm:$0xff] }
 0x258   :  { %v8293_v7 = vcombine.high %v480_v0, %v488_v2  ;;  %v8292_v11 = vcombine.low %v480_v0, %v488_v2  ;;  %v8294_v12 = vcombine.low %v481_v3, %v489_v4  ;;  %v585_v0 = vld [vmem:[%s12637_s1 + $0x1168] sm:$0xff] }
 0x25a   :  { %7038 = vmatpush1.bf16.msra.mxu0 %v8180_v45  ;;  %7210 = vmatpush1.bf16.msra.mxu1 %v8182_v46  ;;  %v8295_v45 = vcombine.high %v481_v3, %v489_v4  ;;  %v496_v46 = vld [vmem:[%s12637_s1 + $0xea0] sm:$0xff] }
 0x25b   :  { %7039 = vmatprep.subr.bf16.mxu0 %v8197_v8  ;;  %7211 = vmatprep.subr.bf16.mxu1 %v8199_v9  ;;  %v504_v8 = vld [vmem:[%s12637_s1 + $0xee0] sm:$0xff]  ;;  %v497_v9 = vld [vmem:[%s12637_s1 + $0xea8] sm:$0xff] }
 0x25c   :  { %v8309_v13 = vcombine.high %v496_v46, %v504_v8  ;;  %v8308_v21 = vcombine.low %v496_v46, %v504_v8  ;;  %v8310_v22 = vcombine.low %v497_v9, %v505_v10  ;;  %v601_v46 = vld [vmem:[%s12637_s1 + $0x11e8] sm:$0xff] }
 0x25e   :  { %7040 = vmatpush1.bf16.msra.mxu0 %v8196_v14  ;;  %7212 = vmatpush1.bf16.msra.mxu1 %v8198_v16  ;;  %v8311_v14 = vcombine.high %v497_v9, %v505_v10  ;;  %v512_v16 = vld [vmem:[%s12637_s1 + $0xf20] sm:$0xff] }
 0x25f   :  { %7041 = vmatprep.subr.bf16.mxu0 %v8213_v19  ;;  %7213 = vmatprep.subr.bf16.mxu1 %v8215_v53  ;;  %v520_v19 = vld [vmem:[%s12637_s1 + $0xf60] sm:$0xff]  ;;  %v513_v53 = vld [vmem:[%s12637_s1 + $0xf28] sm:$0xff] }
 0x260   :  { %v8325_v24 = vcombine.high %v512_v16, %v520_v19  ;;  %v8324_v32 = vcombine.low %v512_v16, %v520_v19  ;;  %v8326_v33 = vcombine.low %v513_v53, %v521_v54  ;;  %v617_v16 = vld [vmem:[%s12637_s1 + $0x1268] sm:$0xff] }
 0x262   :  { %7042 = vmatpush1.bf16.msra.mxu0 %v8212_v25  ;;  %7214 = vmatpush1.bf16.msra.mxu1 %v8214_v26  ;;  %v8327_v25 = vcombine.high %v513_v53, %v521_v54  ;;  %v528_v26 = vld [vmem:[%s12637_s1 + $0xfa0] sm:$0xff] }
 0x263   :  { %7043 = vmatprep.subr.bf16.mxu0 %v8229_v28  ;;  %7215 = vmatprep.subr.bf16.mxu1 %v8231_v17  ;;  %v536_v28 = vld [vmem:[%s12637_s1 + $0xfe0] sm:$0xff]  ;;  %v529_v17 = vld [vmem:[%s12637_s1 + $0xfa8] sm:$0xff] }
 0x264   :  { %v8341_v37 = vcombine.high %v528_v26, %v536_v28  ;;  %v8340_v47 = vcombine.low %v528_v26, %v536_v28  ;;  %v8342_v29 = vcombine.low %v529_v17, %v537_v18  ;;  %v633_v26 = vld [vmem:[%s12637_s1 + $0x12e8] sm:$0xff] }
 0x266   :  { %7044 = vmatpush1.bf16.msra.mxu0 %v8228_v39  ;;  %7216 = vmatpush1.bf16.msra.mxu1 %v8230_v40  ;;  %v8343_v39 = vcombine.high %v529_v17, %v537_v18  ;;  %v544_v40 = vld [vmem:[%s12637_s1 + $0x1020] sm:$0xff] }
 0x267   :  { %7045 = vmatprep.subr.bf16.mxu0 %v8245_v41  ;;  %7217 = vmatprep.subr.bf16.mxu1 %v8247_v42  ;;  %v552_v41 = vld [vmem:[%s12637_s1 + $0x1060] sm:$0xff]  ;;  %v545_v42 = vld [vmem:[%s12637_s1 + $0x1028] sm:$0xff] }
 0x268   :  { %v8357_v30 = vcombine.high %v544_v40, %v552_v41  ;;  %v8356_v56 = vcombine.low %v544_v40, %v552_v41  ;;  %v8358_v57 = vcombine.low %v545_v42, %v553_v44  ;;  %v649_v40 = vld [vmem:[%s12637_s1 + $0x1368] sm:$0xff] }
 0x26a   :  { %7046 = vmatpush1.bf16.msra.mxu0 %v8244_v48  ;;  %7218 = vmatpush1.bf16.msra.mxu1 %v8246_v49  ;;  %v8359_v48 = vcombine.high %v545_v42, %v553_v44  ;;  %v560_v49 = vld [vmem:[%s12637_s1 + $0x10a0] sm:$0xff] }
 0x26b   :  { %7047 = vmatprep.subr.bf16.mxu0 %v8261_v50  ;;  %7219 = vmatprep.subr.bf16.mxu1 %v8263_v52  ;;  %v568_v50 = vld [vmem:[%s12637_s1 + $0x10e0] sm:$0xff]  ;;  %v561_v52 = vld [vmem:[%s12637_s1 + $0x10a8] sm:$0xff] }
 0x26c   :  { %v8373_v59 = vcombine.high %v560_v49, %v568_v50  ;;  %v8372_v2 = vcombine.low %v560_v49, %v568_v50  ;;  %v8374_v3 = vcombine.low %v561_v52, %v569_v55  ;;  %v665_v49 = vld [vmem:[%s12637_s1 + $0x13e8] sm:$0xff] }
 0x26e   :  { %7048 = vmatpush1.bf16.msra.mxu0 %v8260_v60  ;;  %7220 = vmatpush1.bf16.msra.mxu1 %v8262_v61  ;;  %v8375_v60 = vcombine.high %v561_v52, %v569_v55  ;;  %v576_v61 = vld [vmem:[%s12637_s1 + $0x1120] sm:$0xff] }
 0x26f   :  { %7049 = vmatprep.subr.bf16.mxu0 %v8277_v62  ;;  %7221 = vmatprep.subr.bf16.mxu1 %v8279_v63  ;;  %v584_v62 = vld [vmem:[%s12637_s1 + $0x1160] sm:$0xff]  ;;  %v577_v63 = vld [vmem:[%s12637_s1 + $0x1128] sm:$0xff] }
 0x270   :  { %v8389_v4 = vcombine.high %v576_v61, %v584_v62  ;;  %v8388_v8 = vcombine.low %v576_v61, %v584_v62  ;;  %v8390_v9 = vcombine.low %v577_v63, %v585_v0  ;;  %v681_v61 = vld [vmem:[%s12637_s1 + $0x1468] sm:$0xff] }
 0x272   :  { %7050 = vmatpush1.bf16.msra.mxu0 %v8276_v5  ;;  %7222 = vmatpush1.bf16.msra.mxu1 %v8278_v6  ;;  %v8391_v5 = vcombine.high %v577_v63, %v585_v0  ;;  %v592_v6 = vld [vmem:[%s12637_s1 + $0x11a0] sm:$0xff] }
 0x273   :  { %7051 = vmatprep.subr.bf16.mxu0 %v8293_v7  ;;  %7223 = vmatprep.subr.bf16.mxu1 %v8295_v45  ;;  %v600_v7 = vld [vmem:[%s12637_s1 + $0x11e0] sm:$0xff]  ;;  %v593_v45 = vld [vmem:[%s12637_s1 + $0x11a8] sm:$0xff] }
 0x274   :  { %v8405_v10 = vcombine.high %v592_v6, %v600_v7  ;;  %v8404_v19 = vcombine.low %v592_v6, %v600_v7  ;;  %v8406_v53 = vcombine.low %v593_v45, %v601_v46  ;;  %v697_v6 = vld [vmem:[%s12637_s1 + $0x14e8] sm:$0xff] }
 0x276   :  { %7052 = vmatpush1.bf16.msra.mxu0 %v8292_v11  ;;  %7224 = vmatpush1.bf16.msra.mxu1 %v8294_v12  ;;  %v8407_v11 = vcombine.high %v593_v45, %v601_v46  ;;  %v608_v12 = vld [vmem:[%s12637_s1 + $0x1220] sm:$0xff] }
 0x277   :  { %7053 = vmatprep.subr.bf16.mxu0 %v8309_v13  ;;  %7225 = vmatprep.subr.bf16.mxu1 %v8311_v14  ;;  %v616_v13 = vld [vmem:[%s12637_s1 + $0x1260] sm:$0xff]  ;;  %v609_v14 = vld [vmem:[%s12637_s1 + $0x1228] sm:$0xff] }
 0x278   :  { %v8421_v54 = vcombine.high %v608_v12, %v616_v13  ;;  %v8420_v28 = vcombine.low %v608_v12, %v616_v13  ;;  %v8422_v17 = vcombine.low %v609_v14, %v617_v16  ;;  %v713_v12 = vld [vmem:[%s12637_s1 + $0x1568] sm:$0xff] }
 0x27a   :  { %7054 = vmatpush1.bf16.msra.mxu0 %v8308_v21  ;;  %7226 = vmatpush1.bf16.msra.mxu1 %v8310_v22  ;;  %v8423_v21 = vcombine.high %v609_v14, %v617_v16  ;;  %v624_v22 = vld [vmem:[%s12637_s1 + $0x12a0] sm:$0xff] }
 0x27b   :  { %7055 = vmatprep.subr.bf16.mxu0 %v8325_v24  ;;  %7227 = vmatprep.subr.bf16.mxu1 %v8327_v25  ;;  %v632_v24 = vld [vmem:[%s12637_s1 + $0x12e0] sm:$0xff]  ;;  %v625_v25 = vld [vmem:[%s12637_s1 + $0x12a8] sm:$0xff] }
 0x27c   :  { %v8437_v18 = vcombine.high %v624_v22, %v632_v24  ;;  %v8436_v41 = vcombine.low %v624_v22, %v632_v24  ;;  %v8438_v42 = vcombine.low %v625_v25, %v633_v26  ;;  %v729_v22 = vld [vmem:[%s12637_s1 + $0x15e8] sm:$0xff] }
 0x27e   :  { %7056 = vmatpush1.bf16.msra.mxu0 %v8324_v32  ;;  %7228 = vmatpush1.bf16.msra.mxu1 %v8326_v33  ;;  %v8439_v32 = vcombine.high %v625_v25, %v633_v26  ;;  %v640_v33 = vld [vmem:[%s12637_s1 + $0x1320] sm:$0xff] }
 0x27f   :  { %7057 = vmatprep.subr.bf16.mxu0 %v8341_v37  ;;  %7229 = vmatprep.subr.bf16.mxu1 %v8343_v39  ;;  %v648_v37 = vld [vmem:[%s12637_s1 + $0x1360] sm:$0xff]  ;;  %v641_v39 = vld [vmem:[%s12637_s1 + $0x1328] sm:$0xff] }
 0x280   :  { %v8453_v44 = vcombine.high %v640_v33, %v648_v37  ;;  %v8452_v50 = vcombine.low %v640_v33, %v648_v37  ;;  %v8454_v52 = vcombine.low %v641_v39, %v649_v40  ;;  %v745_v33 = vld [vmem:[%s12637_s1 + $0x1668] sm:$0xff] }
 0x282   :  { %7058 = vmatpush1.bf16.msra.mxu0 %v8340_v47  ;;  %7230 = vmatpush1.bf16.msra.mxu1 %v8342_v29  ;;  %v8455_v47 = vcombine.high %v641_v39, %v649_v40  ;;  %v656_v29 = vld [vmem:[%s12637_s1 + $0x13a0] sm:$0xff] }
 0x283   :  { %7070 = vmatprep.subr.bf16.mxu0 %v8357_v30  ;;  %7242 = vmatprep.subr.bf16.mxu1 %v8359_v48  ;;  %v664_v30 = vld [vmem:[%s12637_s1 + $0x13e0] sm:$0xff]  ;;  %v657_v48 = vld [vmem:[%s12637_s1 + $0x13a8] sm:$0xff] }
 0x284   :  { %v8469_v55 = vcombine.high %v656_v29, %v664_v30  ;;  %v8468_v62 = vcombine.low %v656_v29, %v664_v30  ;;  %v8470_v63 = vcombine.low %v657_v48, %v665_v49  ;;  %v761_v29 = vld [vmem:[%s12637_s1 + $0x16e8] sm:$0xff] }
 0x285   :  { %7060 = vmatmul.mubr.bf16.vlgmr.msra.gmra.mrb[8].mxu0 %v9517_v27  ;;  %7232 = vmatmul.mubr.bf16.vlgmr.msra.gmra.mrb[8].mxu1 %v9517_v27 }
 0x286   :  { %7071 = vmatpush1.bf16.msra.mxu0 %v8356_v56  ;;  %7243 = vmatpush1.bf16.msra.mxu1 %v8358_v57  ;;  %v8471_v56 = vcombine.high %v657_v48, %v665_v49  ;;  %v672_v57 = vld [vmem:[%s12637_s1 + $0x1420] sm:$0xff] }
 0x287   :  { %7072 = vmatprep.subr.bf16.mxu0 %v8373_v59  ;;  %7244 = vmatprep.subr.bf16.mxu1 %v8375_v60  ;;  %v680_v59 = vld [vmem:[%s12637_s1 + $0x1460] sm:$0xff]  ;;  %v673_v60 = vld [vmem:[%s12637_s1 + $0x1428] sm:$0xff] }
 0x288   :  { %7102 = vmatprep.mubr.bf16.mxu0 %v9540_v35  ;;  %7274 = vmatprep.mubr.bf16.mxu1 %v9540_v35  ;;  %v8485_v0 = vcombine.high %v672_v57, %v680_v59  ;;  %v8484_v7 = vcombine.low %v672_v57, %v680_v59  ;;  %v8486_v45 = vcombine.low %v673_v60, %v681_v61  ;;  %v777_v57 = vld [vmem:[%s12637_s1 + $0x1768] sm:$0xff] }
 0x28a   :  { %7073 = vmatpush1.bf16.msra.mxu0 %v8372_v2  ;;  %7245 = vmatpush1.bf16.msra.mxu1 %v8374_v3  ;;  %v8487_v2 = vcombine.high %v673_v60, %v681_v61  ;;  %v688_v3 = vld [vmem:[%s12637_s1 + $0x14a0] sm:$0xff] }
 0x28b   :  { %7074 = vmatprep.subr.bf16.mxu0 %v8389_v4  ;;  %7246 = vmatprep.subr.bf16.mxu1 %v8391_v5  ;;  %v696_v4 = vld [vmem:[%s12637_s1 + $0x14e0] sm:$0xff]  ;;  %v689_v5 = vld [vmem:[%s12637_s1 + $0x14a8] sm:$0xff] }
 0x28c   :  { %v8501_v46 = vcombine.high %v688_v3, %v696_v4  ;;  %v8500_v13 = vcombine.low %v688_v3, %v696_v4  ;;  %v8502_v14 = vcombine.low %v689_v5, %v697_v6  ;;  %v793_v3 = vld [vmem:[%s12637_s1 + $0x17e8] sm:$0xff] }
 0x28e   :  { %7075 = vmatpush1.bf16.msra.mxu0 %v8388_v8  ;;  %7247 = vmatpush1.bf16.msra.mxu1 %v8390_v9  ;;  %v8503_v8 = vcombine.high %v689_v5, %v697_v6  ;;  %v704_v9 = vld [vmem:[%s12637_s1 + $0x1520] sm:$0xff] }
 0x28f   :  { %7076 = vmatprep.subr.bf16.mxu0 %v8405_v10  ;;  %7248 = vmatprep.subr.bf16.mxu1 %v8407_v11  ;;  %v712_v10 = vld [vmem:[%s12637_s1 + $0x1560] sm:$0xff]  ;;  %v705_v11 = vld [vmem:[%s12637_s1 + $0x1528] sm:$0xff] }
 0x290   :  { %v8517_v16 = vcombine.high %v704_v9, %v712_v10  ;;  %v8516_v24 = vcombine.low %v704_v9, %v712_v10  ;;  %v8518_v25 = vcombine.low %v705_v11, %v713_v12  ;;  %v809_v9 = vld [vmem:[%s12637_s1 + $0x1868] sm:$0xff] }
 0x292   :  { %7077 = vmatpush1.bf16.msra.mxu0 %v8404_v19  ;;  %7249 = vmatpush1.bf16.msra.mxu1 %v8406_v53  ;;  %v8519_v19 = vcombine.high %v705_v11, %v713_v12  ;;  %v720_v53 = vld [vmem:[%s12637_s1 + $0x15a0] sm:$0xff] }
 0x293   :  { %7078 = vmatprep.subr.bf16.mxu0 %v8421_v54  ;;  %7250 = vmatprep.subr.bf16.mxu1 %v8423_v21  ;;  %v728_v54 = vld [vmem:[%s12637_s1 + $0x15e0] sm:$0xff]  ;;  %v721_v21 = vld [vmem:[%s12637_s1 + $0x15a8] sm:$0xff] }
 0x294   :  { %v8533_v26 = vcombine.high %v720_v53, %v728_v54  ;;  %v8532_v37 = vcombine.low %v720_v53, %v728_v54  ;;  %v8534_v39 = vcombine.low %v721_v21, %v729_v22  ;;  %v825_v53 = vld [vmem:[%s12637_s1 + $0x18e8] sm:$0xff] }
 0x296   :  { %7079 = vmatpush1.bf16.msra.mxu0 %v8420_v28  ;;  %7251 = vmatpush1.bf16.msra.mxu1 %v8422_v17  ;;  %v8535_v28 = vcombine.high %v721_v21, %v729_v22  ;;  %v736_v17 = vld [vmem:[%s12637_s1 + $0x1620] sm:$0xff] }
 0x297   :  { %7080 = vmatprep.subr.bf16.mxu0 %v8437_v18  ;;  %7252 = vmatprep.subr.bf16.mxu1 %v8439_v32  ;;  %v744_v18 = vld [vmem:[%s12637_s1 + $0x1660] sm:$0xff]  ;;  %v737_v32 = vld [vmem:[%s12637_s1 + $0x1628] sm:$0xff] }
 0x298   :  { %v8549_v40 = vcombine.high %v736_v17, %v744_v18  ;;  %v8548_v30 = vcombine.low %v736_v17, %v744_v18  ;;  %v8550_v48 = vcombine.low %v737_v32, %v745_v33  ;;  %v841_v17 = vld [vmem:[%s12637_s1 + $0x1968] sm:$0xff] }
 0x29a   :  { %7081 = vmatpush1.bf16.msra.mxu0 %v8436_v41  ;;  %7253 = vmatpush1.bf16.msra.mxu1 %v8438_v42  ;;  %v8551_v41 = vcombine.high %v737_v32, %v745_v33  ;;  %v752_v42 = vld [vmem:[%s12637_s1 + $0x16a0] sm:$0xff] }
 0x29b   :  { %7082 = vmatprep.subr.bf16.mxu0 %v8453_v44  ;;  %7254 = vmatprep.subr.bf16.mxu1 %v8455_v47  ;;  %v760_v44 = vld [vmem:[%s12637_s1 + $0x16e0] sm:$0xff]  ;;  %v753_v47 = vld [vmem:[%s12637_s1 + $0x16a8] sm:$0xff] }
 0x29c   :  { %v8565_v49 = vcombine.high %v752_v42, %v760_v44  ;;  %v8564_v59 = vcombine.low %v752_v42, %v760_v44  ;;  %v8566_v60 = vcombine.low %v753_v47, %v761_v29  ;;  %v857_v42 = vld [vmem:[%s12637_s1 + $0x19e8] sm:$0xff] }
 0x29e   :  { %7083 = vmatpush1.bf16.msra.mxu0 %v8452_v50  ;;  %7255 = vmatpush1.bf16.msra.mxu1 %v8454_v52  ;;  %v8567_v50 = vcombine.high %v753_v47, %v761_v29  ;;  %v768_v52 = vld [vmem:[%s12637_s1 + $0x1720] sm:$0xff] }
 0x29f   :  { %7084 = vmatprep.subr.bf16.mxu0 %v8469_v55  ;;  %7256 = vmatprep.subr.bf16.mxu1 %v8471_v56  ;;  %v776_v55 = vld [vmem:[%s12637_s1 + $0x1760] sm:$0xff]  ;;  %v769_v56 = vld [vmem:[%s12637_s1 + $0x1728] sm:$0xff] }
 0x2a0   :  { %v8581_v61 = vcombine.high %v768_v52, %v776_v55  ;;  %v8580_v4 = vcombine.low %v768_v52, %v776_v55  ;;  %v8582_v5 = vcombine.low %v769_v56, %v777_v57  ;;  %v873_v52 = vld [vmem:[%s12637_s1 + $0x1a68] sm:$0xff] }
 0x2a2   :  { %7085 = vmatpush1.bf16.msra.mxu0 %v8468_v62  ;;  %7257 = vmatpush1.bf16.msra.mxu1 %v8470_v63  ;;  %v8583_v62 = vcombine.high %v769_v56, %v777_v57  ;;  %v784_v63 = vld [vmem:[%s12637_s1 + $0x17a0] sm:$0xff] }
 0x2a3   :  { %7086 = vmatprep.subr.bf16.mxu0 %v8485_v0  ;;  %7258 = vmatprep.subr.bf16.mxu1 %v8487_v2  ;;  %v792_v0 = vld [vmem:[%s12637_s1 + $0x17e0] sm:$0xff]  ;;  %v785_v2 = vld [vmem:[%s12637_s1 + $0x17a8] sm:$0xff] }
 0x2a4   :  { %v8597_v6 = vcombine.high %v784_v63, %v792_v0  ;;  %v8596_v10 = vcombine.low %v784_v63, %v792_v0  ;;  %v8598_v11 = vcombine.low %v785_v2, %v793_v3  ;;  %v881_v63 = vld [vmem:[%s12637_s1 + $0x1aa8] sm:$0xff] }
 0x2a5   :  { %v889_v0 = vld [vmem:[%s12637_s1 + $0x1ae8] sm:$0xff] }
 0x2a6   :  { %7087 = vmatpush1.bf16.msra.mxu0 %v8484_v7  ;;  %7259 = vmatpush1.bf16.msra.mxu1 %v8486_v45  ;;  %v8599_v7 = vcombine.high %v785_v2, %v793_v3  ;;  %v800_v45 = vld [vmem:[%s12637_s1 + $0x1820] sm:$0xff]  ;;  %v1082_v3 = vsub.s32 6, %v10578_v20 }
 0x2a7   :  { %7088 = vmatprep.subr.bf16.mxu0 %v8501_v46  ;;  %7260 = vmatprep.subr.bf16.mxu1 %v8503_v8  ;;  %v808_v46 = vld [vmem:[%s12637_s1 + $0x1860] sm:$0xff]  ;;  %v801_v8 = vld [vmem:[%s12637_s1 + $0x1828] sm:$0xff] }
 0x2a8   :  { %v8613_v12 = vcombine.high %v800_v45, %v808_v46  ;;  %v8612_v54 = vcombine.low %v800_v45, %v808_v46  ;;  %v8614_v21 = vcombine.low %v801_v8, %v809_v9  ;;  %v8695_v45 = vcombine.high %v881_v63, %v889_v0  ;;  %v896_v46 = vld [vmem:[%s12637_s1 + $0x1b20] sm:$0xff] }
 0x2aa   :  { %7089 = vmatpush1.bf16.msra.mxu0 %v8500_v13  ;;  %7261 = vmatpush1.bf16.msra.mxu1 %v8502_v14  ;;  %v8615_v13 = vcombine.high %v801_v8, %v809_v9  ;;  %v816_v14 = vld [vmem:[%s12637_s1 + $0x18a0] sm:$0xff] }
 0x2ab   :  { %7090 = vmatprep.subr.bf16.mxu0 %v8517_v16  ;;  %7262 = vmatprep.subr.bf16.mxu1 %v8519_v19  ;;  %v824_v16 = vld [vmem:[%s12637_s1 + $0x18e0] sm:$0xff]  ;;  %v817_v19 = vld [vmem:[%s12637_s1 + $0x18a8] sm:$0xff] }
 0x2ac   :  { %v8629_v22 = vcombine.high %v816_v14, %v824_v16  ;;  %v8628_v18 = vcombine.low %v816_v14, %v824_v16  ;;  %v8630_v32 = vcombine.low %v817_v19, %v825_v53  ;;  %v904_v8 = vld [vmem:[%s12637_s1 + $0x1b60] sm:$0xff] }
 0x2ad   :  { %v9020_v9 = vld [vmem:[%s12639_s2] sm:$0xff] }
 0x2ae   :  { %7091 = vmatpush1.bf16.msra.mxu0 %v8516_v24  ;;  %7263 = vmatpush1.bf16.msra.mxu1 %v8518_v25  ;;  %v8631_v24 = vcombine.high %v817_v19, %v825_v53  ;;  %v832_v25 = vld [vmem:[%s12637_s1 + $0x1920] sm:$0xff]  ;;  %v8694_v53 = vcombine.low %v881_v63, %v889_v0 }
 0x2af   :  { %7092 = vmatprep.subr.bf16.mxu0 %v8533_v26  ;;  %7264 = vmatprep.subr.bf16.mxu1 %v8535_v28  ;;  %v840_v26 = vld [vmem:[%s12637_s1 + $0x1960] sm:$0xff]  ;;  %v833_v28 = vld [vmem:[%s12637_s1 + $0x1928] sm:$0xff] }
 0x2b0   :  { %v8645_v33 = vcombine.high %v832_v25, %v840_v26  ;;  %v8644_v44 = vcombine.low %v832_v25, %v840_v26  ;;  %v8646_v47 = vcombine.low %v833_v28, %v841_v17  ;;  %v920_v25 = vld [vmem:[%s12637_s1 + $0x1be0] sm:$0xff] }
 0x2b2   :  { %7093 = vmatpush1.bf16.msra.mxu0 %v8532_v37  ;;  %7265 = vmatpush1.bf16.msra.mxu1 %v8534_v39  ;;  %v8647_v37 = vcombine.high %v833_v28, %v841_v17  ;;  %v848_v39 = vld [vmem:[%s12637_s1 + $0x19a0] sm:$0xff] }
 0x2b3   :  { %7094 = vmatprep.subr.bf16.mxu0 %v8549_v40  ;;  %7266 = vmatprep.subr.bf16.mxu1 %v8551_v41  ;;  %v856_v40 = vld [vmem:[%s12637_s1 + $0x19e0] sm:$0xff]  ;;  %v849_v41 = vld [vmem:[%s12637_s1 + $0x19a8] sm:$0xff] }
 0x2b4   :  { %v8661_v29 = vcombine.high %v848_v39, %v856_v40  ;;  %v8660_v55 = vcombine.low %v848_v39, %v856_v40  ;;  %v8662_v56 = vcombine.low %v849_v41, %v857_v42 }
 0x2b6   :  { %7095 = vmatpush1.bf16.msra.mxu0 %v8548_v30  ;;  %7267 = vmatpush1.bf16.msra.mxu1 %v8550_v48  ;;  %v8663_v30 = vcombine.high %v849_v41, %v857_v42  ;;  %v864_v48 = vld [vmem:[%s12637_s1 + $0x1a20] sm:$0xff]  ;;  %v8708_v41 = vcombine.low %v896_v46, %v904_v8 }
 0x2b7   :  { %7096 = vmatprep.subr.bf16.mxu0 %v8565_v49  ;;  %7268 = vmatprep.subr.bf16.mxu1 %v8567_v50  ;;  %v872_v49 = vld [vmem:[%s12637_s1 + $0x1a60] sm:$0xff]  ;;  %v865_v50 = vld [vmem:[%s12637_s1 + $0x1a28] sm:$0xff] }
 0x2b8   :  { %v8677_v57 = vcombine.high %v864_v48, %v872_v49  ;;  %v8676_v2 = vcombine.low %v864_v48, %v872_v49 }
 0x2ba   :  { %7097 = vmatpush1.bf16.msra.mxu0 %v8564_v59  ;;  %7269 = vmatpush1.bf16.msra.mxu1 %v8566_v60  ;;  %v8679_v59 = vcombine.high %v865_v50, %v873_v52  ;;  %v880_v60 = vld [vmem:[%s12637_s1 + $0x1aa0] sm:$0xff] }
 0x2bb   :  { %7098 = vmatprep.subr.bf16.mxu0 %v8581_v61  ;;  %7270 = vmatprep.subr.bf16.mxu1 %v8583_v62  ;;  %v888_v61 = vld [vmem:[%s12637_s1 + $0x1ae0] sm:$0xff]  ;;  %v1074_v62 = vsub.s32 4, %v10578_v20 }
 0x2bc   :  { %v8692_v16 = vcombine.low %v880_v60, %v888_v61 }
 0x2be   :  { %7099 = vmatpush1.bf16.msra.mxu0 %v8580_v4  ;;  %7271 = vmatpush1.bf16.msra.mxu1 %v8582_v5  ;;  %v1078_v4 = vsub.s32 5, %v10578_v20  ;;  %v8678_v5 = vcombine.low %v865_v50, %v873_v52 }
 0x2bf   :  { %7100 = vmatprep.subr.bf16.mxu0 %v8597_v6  ;;  %7272 = vmatprep.subr.bf16.mxu1 %v8599_v7  ;;  %v1086_v6 = vsub.s32 7, %v10578_v20  ;;  %v8693_v7 = vcombine.high %v880_v60, %v888_v61  ;;  %v929_v60 = vld [vmem:[%s12637_s1 + $0x1c28] sm:$0xff] }
 0x2c0   :  { %v1079_v14 = vrot.slane %v9020_v9, %v1078_v4  ;;  %v937_v61 = vld [vmem:[%s12637_s1 + $0x1c68] sm:$0xff] }
 0x2c1   :  { %v1087_v19 = vrot.slane %v9020_v9, %v1086_v6 }
 0x2c2   :  { %7101 = vmatpush1.bf16.msra.mxu0 %v8596_v10  ;;  %7273 = vmatpush1.bf16.msra.mxu1 %v8598_v11  ;;  %v1075_v10 = vrot.slane %v9020_v9, %v1074_v62  ;;  %v897_v11 = vld [vmem:[%s12637_s1 + $0x1b28] sm:$0xff] }
 0x2c3   :  { %7113 = vmatprep.subr.bf16.mxu0 %v8613_v12  ;;  %7285 = vmatprep.subr.bf16.mxu1 %v8615_v13  ;;  %v905_v12 = vld [vmem:[%s12637_s1 + $0x1b68] sm:$0xff]  ;;  %v1083_v13 = vrot.slane %v9020_v9, %v1082_v3 }
 0x2c4   :  { %v8710_v42 = vcombine.low %v897_v11, %v905_v12 }
 0x2c5   :  { %7103 = vmatmul.mubr.bf16.vlgmr.msra.gmra.mrb[8].mxu0 %v9731_v43  ;;  %7275 = vmatmul.mubr.bf16.vlgmr.msra.gmra.mrb[8].mxu1 %v9731_v43 }
 0x2c6   :  { %7114 = vmatpush1.bf16.msra.mxu0 %v8612_v54  ;;  %7286 = vmatpush1.bf16.msra.mxu1 %v8614_v21  ;;  %v8709_v54 = vcombine.high %v896_v46, %v904_v8  ;;  %v945_v46 = vld [vmem:[%s12637_s1 + $0x1ca8] sm:$0xff] }
 0x2c7   :  { %7115 = vmatprep.subr.bf16.mxu0 %v8629_v22  ;;  %7287 = vmatprep.subr.bf16.mxu1 %v8631_v24  ;;  %v8711_v22 = vcombine.high %v897_v11, %v905_v12  ;;  %v912_v24 = vld [vmem:[%s12637_s1 + $0x1ba0] sm:$0xff]  ;;  %v953_v8 = vld [vmem:[%s12637_s1 + $0x1ce8] sm:$0xff] }
 0x2c8   :  { %7145 = vmatprep.mubr.bf16.mxu0 %v9754_v51  ;;  %7317 = vmatprep.mubr.bf16.mxu1 %v9754_v51  ;;  %v8725_v48 = vcombine.high %v912_v24, %v920_v25  ;;  %v8724_v63 = vcombine.low %v912_v24, %v920_v25  ;;  %v8759_v12 = vcombine.high %v945_v46, %v953_v8  ;;  %v976_v24 = vld [vmem:[%s12637_s1 + $0x1da0] sm:$0xff] }
 0x2c9   :  { %v984_v25 = vld [vmem:[%s12637_s1 + $0x1de0] sm:$0xff] }
 0x2ca   :  { %7116 = vmatpush1.bf16.msra.mxu0 %v8628_v18  ;;  %7288 = vmatpush1.bf16.msra.mxu1 %v8630_v32  ;;  %v913_v18 = vld [vmem:[%s12637_s1 + $0x1ba8] sm:$0xff] }
 0x2cb   :  { %7117 = vmatprep.subr.bf16.mxu0 %v8645_v33  ;;  %7289 = vmatprep.subr.bf16.mxu1 %v8647_v37  ;;  %v921_v32 = vld [vmem:[%s12637_s1 + $0x1be8] sm:$0xff] }
 0x2cc   :  { %v8726_v0 = vcombine.low %v913_v18, %v921_v32 }
 0x2ce   :  { %7118 = vmatpush1.bf16.msra.mxu0 %v8644_v44  ;;  %7290 = vmatpush1.bf16.msra.mxu1 %v8646_v47 }
 0x2cf   :  { %7119 = vmatprep.subr.bf16.mxu0 %v8661_v29  ;;  %7291 = vmatprep.subr.bf16.mxu1 %v8663_v30 }
 0x2d2   :  { %7120 = vmatpush1.bf16.msra.mxu0 %v8660_v55  ;;  %7292 = vmatpush1.bf16.msra.mxu1 %v8662_v56  ;;  %v8727_v55 = vcombine.high %v913_v18, %v921_v32  ;;  %v928_v56 = vld [vmem:[%s12637_s1 + $0x1c20] sm:$0xff]  ;;  %v8789_v32 = vcombine.high %v976_v24, %v984_v25 }
 0x2d3   :  { %7121 = vmatprep.subr.bf16.mxu0 %v8677_v57  ;;  %7293 = vmatprep.subr.bf16.mxu1 %v8679_v59  ;;  %v936_v57 = vld [vmem:[%s12637_s1 + $0x1c60] sm:$0xff] }
 0x2d4   :  { %v8740_v9 = vcombine.low %v928_v56, %v936_v57 }
 0x2d6   :  { %7122 = vmatpush1.bf16.msra.mxu0 %v8676_v2  ;;  %7294 = vmatpush1.bf16.msra.mxu1 %v8678_v5  ;;  %v8741_v2 = vcombine.high %v928_v56, %v936_v57  ;;  %v8743_v5 = vcombine.high %v929_v60, %v937_v61 }
 0x2d7   :  { %7123 = vmatprep.subr.bf16.mxu0 %v8693_v7  ;;  %7295 = vmatprep.subr.bf16.mxu1 %v8695_v45  ;;  %v944_v7 = vld [vmem:[%s12637_s1 + $0x1ca0] sm:$0xff] }
 0x2d8   :  { %v6803_v21 = vpop.f32.mrb[4].mxu0  ;;  %v6975_v28 = vpop.f32.mrb[4].mxu1  ;;  %v952_v45 = vld [vmem:[%s12637_s1 + $0x1ce0] sm:$0xff] }
 0x2d9   :  { %v8868_v26 = vadd.f32 %v6803_v21, %v1075_v10  ;;  %v6805_v17 = vpop.f32.mrb[5].mxu0  ;;  %v8872_v33 = vadd.f32 %v6975_v28, %v1083_v13  ;;  %v6977_v39 = vpop.f32.mrb[5].mxu1  ;;  %v8757_v11 = vcombine.high %v944_v7, %v952_v45  ;;  %v985_v28 = vld [vmem:[%s12637_s1 + $0x1de8] sm:$0xff] }
 0x2da   :  { %v8869_v37 = vadd.f32 %v6805_v17, %v1079_v14  ;;  %v6807_v40 = vpop.f32.mrb[6].mxu0  ;;  %7124 = vmatpush1.bf16.msra.mxu0 %v8692_v16  ;;  %v8873_v44 = vadd.f32 %v6977_v39, %v1087_v19  ;;  %v6979_v29 = vpop.f32.mrb[6].mxu1  ;;  %7296 = vmatpush1.bf16.msra.mxu1 %v8694_v53  ;;  %v961_v16 = vld [vmem:[%s12637_s1 + $0x1d28] sm:$0xff]  ;;  %v8756_v53 = vcombine.low %v944_v7, %v952_v45  ;;  %v1000_v39 = vld [vmem:[%s12637_s1 + $0x1e60] sm:$0xff] }
 0x2db   :  { %7676 = vst [vmem:[%s12640_s4 + $0x20] sm:$0xff] %v8868_v26  ;;  %v8870_v47 = vadd.f32 %v6807_v40, %v1075_v10  ;;  %v6809_v30 = vpop.f32.mrb[7].mxu0  ;;  %7125 = vmatprep.subr.bf16.mxu0 %v8709_v54  ;;  %7678 = vst [vmem:[%s12640_s4 + $0x30] sm:$0xff] %v8872_v33  ;;  %v8874_v49 = vadd.f32 %v6979_v29, %v1083_v13  ;;  %v6981_v52 = vpop.f32.mrb[7].mxu1  ;;  %7297 = vmatprep.subr.bf16.mxu1 %v8711_v22  ;;  %v960_v13 = vld [vmem:[%s12637_s1 + $0x1d20] sm:$0xff]  ;;  %v977_v26 = vld [vmem:[%s12637_s1 + $0x1da8] sm:$0xff] }
 0x2dc   :  { %7677 = vst [vmem:[%s12640_s4 + $0x28] sm:$0xff] %v8869_v37  ;;  %v8871_v50 = vadd.f32 %v6809_v30, %v1079_v14  ;;  %7679 = vst [vmem:[%s12640_s4 + $0x38] sm:$0xff] %v8873_v44  ;;  %v8875_v59 = vadd.f32 %v6981_v52, %v1087_v19  ;;  %v8742_v10 = vcombine.low %v929_v60, %v937_v61  ;;  %v968_v14 = vld [vmem:[%s12637_s1 + $0x1d60] sm:$0xff]  ;;  %v969_v19 = vld [vmem:[%s12637_s1 + $0x1d68] sm:$0xff] }
 0x2dd   :  { %7684 = vst [vmem:[%s12640_s4 + $0x60] sm:$0xff] %v8870_v47  ;;  %7686 = vst [vmem:[%s12640_s4 + $0x70] sm:$0xff] %v8874_v49  ;;  %v8758_v54 = vcombine.low %v945_v46, %v953_v8  ;;  %v8773_v21 = vcombine.high %v960_v13, %v968_v14  ;;  %v8775_v22 = vcombine.high %v961_v16, %v969_v19  ;;  %v992_v37 = vld [vmem:[%s12637_s1 + $0x1e20] sm:$0xff]  ;;  %v993_v40 = vld [vmem:[%s12637_s1 + $0x1e28] sm:$0xff] }
 0x2de   :  { %7685 = vst [vmem:[%s12640_s4 + $0x68] sm:$0xff] %v8871_v50  ;;  %7126 = vmatpush1.bf16.msra.mxu0 %v8708_v41  ;;  %7687 = vst [vmem:[%s12640_s4 + $0x78] sm:$0xff] %v8875_v59  ;;  %7298 = vmatpush1.bf16.msra.mxu1 %v8710_v42  ;;  %v8772_v17 = vcombine.low %v960_v13, %v968_v14  ;;  %v8774_v18 = vcombine.low %v961_v16, %v969_v19  ;;  %v1001_v41 = vld [vmem:[%s12637_s1 + $0x1e68] sm:$0xff]  ;;  %v1008_v30 = vld [vmem:[%s12637_s1 + $0x1ea0] sm:$0xff] }
 0x2df   :  { %7127 = vmatprep.subr.bf16.mxu0 %v8725_v48  ;;  %7299 = vmatprep.subr.bf16.mxu1 %v8727_v55  ;;  %v8791_v33 = vcombine.high %v977_v26, %v985_v28  ;;  %v8788_v42 = vcombine.low %v976_v24, %v984_v25  ;;  %v8790_v44 = vcombine.low %v977_v26, %v985_v28  ;;  %v1016_v48 = vld [vmem:[%s12637_s1 + $0x1ee0] sm:$0xff]  ;;  %v1009_v49 = vld [vmem:[%s12637_s1 + $0x1ea8] sm:$0xff]  ;;  %v34_v14 = vld [vmem:[%s12637_s1 + $0x30] sm:$0xff] }
 0x2e0   :  { %v8805_v47 = vcombine.high %v992_v37, %v1000_v39  ;;  %v8807_v29 = vcombine.high %v993_v40, %v1001_v41  ;;  %v1017_v50 = vld [vmem:[%s12637_s1 + $0x1ee8] sm:$0xff]  ;;  %v8804_v52 = vcombine.low %v992_v37, %v1000_v39  ;;  %v8806_v55 = vcombine.low %v993_v40, %v1001_v41  ;;  %v1024_v59 = vld [vmem:[%s12637_s1 + $0x1f20] sm:$0xff]  ;;  %v42_v16 = vld [vmem:[%s12637_s1 + $0x70] sm:$0xff] }
 0x2e1   :  { %v8821_v56 = vcombine.high %v1008_v30, %v1016_v48  ;;  %v8823_v57 = vcombine.high %v1009_v49, %v1017_v50  ;;  %v1032_v60 = vld [vmem:[%s12637_s1 + $0x1f60] sm:$0xff]  ;;  %v1025_v61 = vld [vmem:[%s12637_s1 + $0x1f28] sm:$0xff]  ;;  %v35_v19 = vld [vmem:[%s12637_s1 + $0x38] sm:$0xff] }
 0x2e2   :  { %7128 = vmatpush1.bf16.msra.mxu0 %v8724_v63  ;;  %7300 = vmatpush1.bf16.msra.mxu1 %v8726_v0  ;;  %v1033_v63 = vld [vmem:[%s12637_s1 + $0x1f68] sm:$0xff]  ;;  %v8820_v0 = vcombine.low %v1008_v30, %v1016_v48  ;;  %v1040_v45 = vld [vmem:[%s12637_s1 + $0x1fa0] sm:$0xff]  ;;  %v50_v25 = vld [vmem:[%s12637_s1 + $0xb0] sm:$0xff] }
 0x2e3   :  { %7129 = vmatprep.subr.bf16.mxu0 %v8741_v2  ;;  %7301 = vmatprep.subr.bf16.mxu1 %v8743_v5  ;;  %v8822_v2 = vcombine.low %v1009_v49, %v1017_v50  ;;  %v8837_v5 = vcombine.high %v1024_v59, %v1032_v60  ;;  %v8839_v7 = vcombine.high %v1025_v61, %v1033_v63  ;;  %v1048_v46 = vld [vmem:[%s12637_s1 + $0x1fe0] sm:$0xff]  ;;  %v1041_v8 = vld [vmem:[%s12637_s1 + $0x1fa8] sm:$0xff]  ;;  %v58_v26 = vld [vmem:[%s12637_s1 + $0xf0] sm:$0xff] }
 0x2e4   :  { %v51_v28 = vld [vmem:[%s12637_s1 + $0xb8] sm:$0xff]  ;;  %v66_v39 = vld [vmem:[%s12637_s1 + $0x130] sm:$0xff] }
 0x2e5   :  { %v74_v40 = vld [vmem:[%s12637_s1 + $0x170] sm:$0xff]  ;;  %v67_v41 = vld [vmem:[%s12637_s1 + $0x138] sm:$0xff] }
 0x2e6   :  { %7130 = vmatpush1.bf16.msra.mxu0 %v8740_v9  ;;  %7302 = vmatpush1.bf16.msra.mxu1 %v8742_v10  ;;  %v1049_v9 = vld [vmem:[%s12637_s1 + $0x1fe8] sm:$0xff]  ;;  %v8836_v10 = vcombine.low %v1024_v59, %v1032_v60  ;;  %v82_v48 = vld [vmem:[%s12637_s1 + $0x1b0] sm:$0xff]  ;;  %v83_v50 = vld [vmem:[%s12637_s1 + $0x1b8] sm:$0xff] }
 0x2e7   :  { %7131 = vmatprep.subr.bf16.mxu0 %v8757_v11  ;;  %7303 = vmatprep.subr.bf16.mxu1 %v8759_v12  ;;  %v8838_v11 = vcombine.low %v1025_v61, %v1033_v63  ;;  %v8853_v12 = vcombine.high %v1040_v45, %v1048_v46  ;;  %v8855_v13 = vcombine.high %v1041_v8, %v1049_v9  ;;  %v90_v49 = vld [vmem:[%s12637_s1 + $0x1f0] sm:$0xff]  ;;  %v107_v63 = vld [vmem:[%s12637_s1 + $0x278] sm:$0xff] }
 0x2e8   :  { %v98_v60 = vld [vmem:[%s12637_s1 + $0x230] sm:$0xff] }
 0x2e9   :  { %v106_v61 = vld [vmem:[%s12637_s1 + $0x270] sm:$0xff] }
 0x2ea   :  { %7132 = vmatpush1.bf16.msra.mxu0 %v8756_v53  ;;  %7304 = vmatpush1.bf16.msra.mxu1 %v8758_v54  ;;  %v43_v53 = vld [vmem:[%s12637_s1 + $0x78] sm:$0xff]  ;;  %v8852_v54 = vcombine.low %v1040_v45, %v1048_v46  ;;  %v114_v45 = vld [vmem:[%s12637_s1 + $0x2b0] sm:$0xff] }
 0x2eb   :  { %7133 = vmatprep.subr.bf16.mxu0 %v8773_v21  ;;  %7305 = vmatprep.subr.bf16.mxu1 %v8775_v22  ;;  %v8854_v21 = vcombine.low %v1041_v8, %v1049_v9  ;;  %v7849_v22 = vcombine.high %v34_v14, %v42_v16  ;;  %v7851_v24 = vcombine.high %v35_v19, %v43_v53  ;;  %v122_v46 = vld [vmem:[%s12637_s1 + $0x2f0] sm:$0xff]  ;;  %v115_v8 = vld [vmem:[%s12637_s1 + $0x2b8] sm:$0xff] }
 0x2ec   :  { %v123_v9 = vld [vmem:[%s12637_s1 + $0x2f8] sm:$0xff] }
 0x2ee   :  { %7134 = vmatpush1.bf16.msra.mxu0 %v8772_v17  ;;  %7306 = vmatpush1.bf16.msra.mxu1 %v8774_v18  ;;  %v59_v17 = vld [vmem:[%s12637_s1 + $0xf8] sm:$0xff]  ;;  %v7848_v18 = vcombine.low %v34_v14, %v42_v16  ;;  %v130_v14 = vld [vmem:[%s12637_s1 + $0x330] sm:$0xff] }
 0x2ef   :  { %7135 = vmatprep.subr.bf16.mxu0 %v8789_v32  ;;  %7307 = vmatprep.subr.bf16.mxu1 %v8791_v33  ;;  %v7850_v32 = vcombine.low %v35_v19, %v43_v53  ;;  %v7865_v33 = vcombine.high %v50_v25, %v58_v26  ;;  %v7867_v37 = vcombine.high %v51_v28, %v59_v17  ;;  %v138_v16 = vld [vmem:[%s12637_s1 + $0x370] sm:$0xff]  ;;  %v131_v19 = vld [vmem:[%s12637_s1 + $0x338] sm:$0xff] }
 0x2f0   :  { %v139_v53 = vld [vmem:[%s12637_s1 + $0x378] sm:$0xff] }
 0x2f2   :  { %7136 = vmatpush1.bf16.msra.mxu0 %v8788_v42  ;;  %7308 = vmatpush1.bf16.msra.mxu1 %v8790_v44  ;;  %v75_v42 = vld [vmem:[%s12637_s1 + $0x178] sm:$0xff]  ;;  %v7864_v44 = vcombine.low %v50_v25, %v58_v26  ;;  %v146_v25 = vld [vmem:[%s12637_s1 + $0x3b0] sm:$0xff] }
 0x2f3   :  { %7137 = vmatprep.subr.bf16.mxu0 %v8805_v47  ;;  %7309 = vmatprep.subr.bf16.mxu1 %v8807_v29  ;;  %v7866_v47 = vcombine.low %v51_v28, %v59_v17  ;;  %v7881_v29 = vcombine.high %v66_v39, %v74_v40  ;;  %v7883_v30 = vcombine.high %v67_v41, %v75_v42  ;;  %v154_v26 = vld [vmem:[%s12637_s1 + $0x3f0] sm:$0xff]  ;;  %v147_v28 = vld [vmem:[%s12637_s1 + $0x3b8] sm:$0xff] }
 0x2f4   :  { %v155_v17 = vld [vmem:[%s12637_s1 + $0x3f8] sm:$0xff] }
 0x2f6   :  { %7138 = vmatpush1.bf16.msra.mxu0 %v8804_v52  ;;  %7310 = vmatpush1.bf16.msra.mxu1 %v8806_v55  ;;  %v91_v52 = vld [vmem:[%s12637_s1 + $0x1f8] sm:$0xff]  ;;  %v7880_v55 = vcombine.low %v66_v39, %v74_v40  ;;  %v162_v39 = vld [vmem:[%s12637_s1 + $0x430] sm:$0xff] }
 0x2f7   :  { %7139 = vmatprep.subr.bf16.mxu0 %v8821_v56  ;;  %7311 = vmatprep.subr.bf16.mxu1 %v8823_v57  ;;  %v7882_v56 = vcombine.low %v67_v41, %v75_v42  ;;  %v7897_v57 = vcombine.high %v82_v48, %v90_v49  ;;  %v7899_v59 = vcombine.high %v83_v50, %v91_v52  ;;  %v170_v40 = vld [vmem:[%s12637_s1 + $0x470] sm:$0xff]  ;;  %v163_v41 = vld [vmem:[%s12637_s1 + $0x438] sm:$0xff] }
 0x2f8   :  { %v171_v42 = vld [vmem:[%s12637_s1 + $0x478] sm:$0xff] }
 0x2fa   :  { %7140 = vmatpush1.bf16.msra.mxu0 %v8820_v0  ;;  %7312 = vmatpush1.bf16.msra.mxu1 %v8822_v2  ;;  %v7896_v0 = vcombine.low %v82_v48, %v90_v49  ;;  %v7898_v2 = vcombine.low %v83_v50, %v91_v52  ;;  %v178_v48 = vld [vmem:[%s12637_s1 + $0x4b0] sm:$0xff]  ;;  %v179_v50 = vld [vmem:[%s12637_s1 + $0x4b8] sm:$0xff] }
 0x2fb   :  { %7141 = vmatprep.subr.bf16.mxu0 %v8837_v5  ;;  %7313 = vmatprep.subr.bf16.mxu1 %v8839_v7  ;;  %v7913_v5 = vcombine.high %v98_v60, %v106_v61  ;;  %v186_v49 = vld [vmem:[%s12637_s1 + $0x4f0] sm:$0xff]  ;;  %v187_v52 = vld [vmem:[%s12637_s1 + $0x4f8] sm:$0xff] }
 0x2fe   :  { %7142 = vmatpush1.bf16.msra.mxu0 %v8836_v10  ;;  %7314 = vmatpush1.bf16.msra.mxu1 %v8838_v11  ;;  %v7912_v10 = vcombine.low %v98_v60, %v106_v61  ;;  %v194_v60 = vld [vmem:[%s12637_s1 + $0x530] sm:$0xff] }
 0x2ff   :  { %7143 = vmatprep.subr.bf16.mxu0 %v8853_v12  ;;  %7315 = vmatprep.subr.bf16.mxu1 %v8855_v13  ;;  %v7929_v12 = vcombine.high %v114_v45, %v122_v46  ;;  %v7931_v13 = vcombine.high %v115_v8, %v123_v9  ;;  %v202_v61 = vld [vmem:[%s12637_s1 + $0x570] sm:$0xff] }
 0x302   :  { %7144 = vmatpush1.bf16.msra.mxu0 %v8852_v54  ;;  %7316 = vmatpush1.bf16.msra.mxu1 %v8854_v21  ;;  %v7928_v54 = vcombine.low %v114_v45, %v122_v46  ;;  %v7930_v21 = vcombine.low %v115_v8, %v123_v9  ;;  %v210_v45 = vld [vmem:[%s12637_s1 + $0x5b0] sm:$0xff]  ;;  %v211_v8 = vld [vmem:[%s12637_s1 + $0x5b8] sm:$0xff] }
 0x303   :  { %7328 = vmatprep.subr.bf16.mxu0 %v7849_v22  ;;  %7500 = vmatprep.subr.bf16.mxu1 %v7851_v24  ;;  %v7945_v22 = vcombine.high %v130_v14, %v138_v16  ;;  %v7947_v24 = vcombine.high %v131_v19, %v139_v53  ;;  %v218_v46 = vld [vmem:[%s12637_s1 + $0x5f0] sm:$0xff]  ;;  %v219_v9 = vld [vmem:[%s12637_s1 + $0x5f8] sm:$0xff] }
 0x305   :  { %7146 = vmatmul.mubr.bf16.vlgmr.msra.gmra.mrb[8].mxu0 %v9942_v1  ;;  %7318 = vmatmul.mubr.bf16.vlgmr.msra.gmra.mrb[8].mxu1 %v9942_v1 }
 0x306   :  { %7329 = vmatpush1.bf16.msra.mxu0 %v7848_v18  ;;  %7501 = vmatpush1.bf16.msra.mxu1 %v7850_v32  ;;  %v7944_v18 = vcombine.low %v130_v14, %v138_v16  ;;  %v7946_v32 = vcombine.low %v131_v19, %v139_v53  ;;  %v226_v14 = vld [vmem:[%s12637_s1 + $0x630] sm:$0xff]  ;;  %v227_v19 = vld [vmem:[%s12637_s1 + $0x638] sm:$0xff] }
 0x307   :  { %7330 = vmatprep.subr.bf16.mxu0 %v7865_v33  ;;  %7502 = vmatprep.subr.bf16.mxu1 %v7867_v37  ;;  %v7961_v33 = vcombine.high %v146_v25, %v154_v26  ;;  %v7963_v37 = vcombine.high %v147_v28, %v155_v17  ;;  %v234_v16 = vld [vmem:[%s12637_s1 + $0x670] sm:$0xff]  ;;  %v235_v53 = vld [vmem:[%s12637_s1 + $0x678] sm:$0xff] }
 0x308   :  { %7360 = vmatprep.mubr.bf16.mxu0 %v9174_v58  ;;  %7532 = vmatprep.mubr.bf16.mxu1 %v9174_v58  ;;  %v99_v58 = vld [vmem:[%s12637_s1 + $0x238] sm:$0xff] }
 0x309   :  { %v7915_v7 = vcombine.high %v99_v58, %v107_v63  ;;  %v7914_v11 = vcombine.low %v99_v58, %v107_v63  ;;  %v195_v58 = vld [vmem:[%s12637_s1 + $0x538] sm:$0xff] }
 0x30a   :  { %7331 = vmatpush1.bf16.msra.mxu0 %v7864_v44  ;;  %7503 = vmatpush1.bf16.msra.mxu1 %v7866_v47  ;;  %v7960_v44 = vcombine.low %v146_v25, %v154_v26  ;;  %v7962_v47 = vcombine.low %v147_v28, %v155_v17  ;;  %v203_v63 = vld [vmem:[%s12637_s1 + $0x578] sm:$0xff]  ;;  %v242_v25 = vld [vmem:[%s12637_s1 + $0x6b0] sm:$0xff] }
 0x30b   :  { %7332 = vmatprep.subr.bf16.mxu0 %v7881_v29  ;;  %7504 = vmatprep.subr.bf16.mxu1 %v7883_v30  ;;  %v7977_v29 = vcombine.high %v162_v39, %v170_v40  ;;  %v7979_v30 = vcombine.high %v163_v41, %v171_v42  ;;  %v250_v26 = vld [vmem:[%s12637_s1 + $0x6f0] sm:$0xff]  ;;  %v243_v28 = vld [vmem:[%s12637_s1 + $0x6b8] sm:$0xff] }
 0x30c   :  { %v251_v17 = vld [vmem:[%s12637_s1 + $0x6f8] sm:$0xff] }
 0x30e   :  { %7333 = vmatpush1.bf16.msra.mxu0 %v7880_v55  ;;  %7505 = vmatpush1.bf16.msra.mxu1 %v7882_v56  ;;  %v7976_v55 = vcombine.low %v162_v39, %v170_v40  ;;  %v7978_v56 = vcombine.low %v163_v41, %v171_v42  ;;  %v258_v39 = vld [vmem:[%s12637_s1 + $0x730] sm:$0xff]  ;;  %v259_v41 = vld [vmem:[%s12637_s1 + $0x738] sm:$0xff] }
 0x30f   :  { %7334 = vmatprep.subr.bf16.mxu0 %v7897_v57  ;;  %7506 = vmatprep.subr.bf16.mxu1 %v7899_v59  ;;  %v7993_v57 = vcombine.high %v178_v48, %v186_v49  ;;  %v7995_v59 = vcombine.high %v179_v50, %v187_v52  ;;  %v266_v40 = vld [vmem:[%s12637_s1 + $0x770] sm:$0xff]  ;;  %v267_v42 = vld [vmem:[%s12637_s1 + $0x778] sm:$0xff] }
 0x312   :  { %7335 = vmatpush1.bf16.msra.mxu0 %v7896_v0  ;;  %7507 = vmatpush1.bf16.msra.mxu1 %v7898_v2  ;;  %v7992_v0 = vcombine.low %v178_v48, %v186_v49  ;;  %v7994_v2 = vcombine.low %v179_v50, %v187_v52  ;;  %v274_v48 = vld [vmem:[%s12637_s1 + $0x7b0] sm:$0xff]  ;;  %v275_v50 = vld [vmem:[%s12637_s1 + $0x7b8] sm:$0xff] }
 0x313   :  { %7336 = vmatprep.subr.bf16.mxu0 %v7913_v5  ;;  %7508 = vmatprep.subr.bf16.mxu1 %v7915_v7  ;;  %v8009_v5 = vcombine.high %v194_v60, %v202_v61  ;;  %v8011_v7 = vcombine.high %v195_v58, %v203_v63  ;;  %v282_v49 = vld [vmem:[%s12637_s1 + $0x7f0] sm:$0xff]  ;;  %v283_v52 = vld [vmem:[%s12637_s1 + $0x7f8] sm:$0xff] }
 0x316   :  { %7337 = vmatpush1.bf16.msra.mxu0 %v7912_v10  ;;  %7509 = vmatpush1.bf16.msra.mxu1 %v7914_v11  ;;  %v8008_v10 = vcombine.low %v194_v60, %v202_v61  ;;  %v8010_v11 = vcombine.low %v195_v58, %v203_v63  ;;  %v290_v60 = vld [vmem:[%s12637_s1 + $0x830] sm:$0xff]  ;;  %v291_v58 = vld [vmem:[%s12637_s1 + $0x838] sm:$0xff] }
 0x317   :  { %7338 = vmatprep.subr.bf16.mxu0 %v7929_v12  ;;  %7510 = vmatprep.subr.bf16.mxu1 %v7931_v13  ;;  %v8025_v12 = vcombine.high %v210_v45, %v218_v46  ;;  %v8027_v13 = vcombine.high %v211_v8, %v219_v9  ;;  %v298_v61 = vld [vmem:[%s12637_s1 + $0x870] sm:$0xff]  ;;  %v299_v63 = vld [vmem:[%s12637_s1 + $0x878] sm:$0xff] }
 0x31a   :  { %7339 = vmatpush1.bf16.msra.mxu0 %v7928_v54  ;;  %7511 = vmatpush1.bf16.msra.mxu1 %v7930_v21  ;;  %v8024_v54 = vcombine.low %v210_v45, %v218_v46  ;;  %v8026_v21 = vcombine.low %v211_v8, %v219_v9  ;;  %v306_v45 = vld [vmem:[%s12637_s1 + $0x8b0] sm:$0xff]  ;;  %v307_v8 = vld [vmem:[%s12637_s1 + $0x8b8] sm:$0xff] }
 0x31b   :  { %7340 = vmatprep.subr.bf16.mxu0 %v7945_v22  ;;  %7512 = vmatprep.subr.bf16.mxu1 %v7947_v24  ;;  %v8041_v22 = vcombine.high %v226_v14, %v234_v16  ;;  %v8043_v24 = vcombine.high %v227_v19, %v235_v53  ;;  %v314_v46 = vld [vmem:[%s12637_s1 + $0x8f0] sm:$0xff]  ;;  %v315_v9 = vld [vmem:[%s12637_s1 + $0x8f8] sm:$0xff] }
 0x31e   :  { %7341 = vmatpush1.bf16.msra.mxu0 %v7944_v18  ;;  %7513 = vmatpush1.bf16.msra.mxu1 %v7946_v32  ;;  %v8040_v18 = vcombine.low %v226_v14, %v234_v16  ;;  %v8042_v32 = vcombine.low %v227_v19, %v235_v53  ;;  %v322_v14 = vld [vmem:[%s12637_s1 + $0x930] sm:$0xff]  ;;  %v323_v19 = vld [vmem:[%s12637_s1 + $0x938] sm:$0xff] }
 0x31f   :  { %7342 = vmatprep.subr.bf16.mxu0 %v7961_v33  ;;  %7514 = vmatprep.subr.bf16.mxu1 %v7963_v37  ;;  %v8057_v33 = vcombine.high %v242_v25, %v250_v26  ;;  %v8059_v37 = vcombine.high %v243_v28, %v251_v17  ;;  %v330_v16 = vld [vmem:[%s12637_s1 + $0x970] sm:$0xff]  ;;  %v331_v53 = vld [vmem:[%s12637_s1 + $0x978] sm:$0xff] }
 0x322   :  { %7343 = vmatpush1.bf16.msra.mxu0 %v7960_v44  ;;  %7515 = vmatpush1.bf16.msra.mxu1 %v7962_v47  ;;  %v8056_v44 = vcombine.low %v242_v25, %v250_v26  ;;  %v8058_v47 = vcombine.low %v243_v28, %v251_v17  ;;  %v338_v25 = vld [vmem:[%s12637_s1 + $0x9b0] sm:$0xff]  ;;  %v347_v28 = vld [vmem:[%s12637_s1 + $0x9f8] sm:$0xff]  ;;  %v8136_v17 = vcombine.low %v322_v14, %v330_v16 }
 0x323   :  { %7344 = vmatprep.subr.bf16.mxu0 %v7977_v29  ;;  %7516 = vmatprep.subr.bf16.mxu1 %v7979_v30  ;;  %v8073_v29 = vcombine.high %v258_v39, %v266_v40  ;;  %v8075_v30 = vcombine.high %v259_v41, %v267_v42  ;;  %v346_v26 = vld [vmem:[%s12637_s1 + $0x9f0] sm:$0xff] }
 0x326   :  { %7345 = vmatpush1.bf16.msra.mxu0 %v7976_v55  ;;  %7517 = vmatpush1.bf16.msra.mxu1 %v7978_v56  ;;  %v8072_v55 = vcombine.low %v258_v39, %v266_v40  ;;  %v8074_v56 = vcombine.low %v259_v41, %v267_v42  ;;  %v362_v39 = vld [vmem:[%s12637_s1 + $0xa70] sm:$0xff]  ;;  %v363_v40 = vld [vmem:[%s12637_s1 + $0xa78] sm:$0xff]  ;;  %v8152_v41 = vcombine.low %v338_v25, %v346_v26 }
 0x327   :  { %7346 = vmatprep.subr.bf16.mxu0 %v7993_v57  ;;  %7518 = vmatprep.subr.bf16.mxu1 %v7995_v59  ;;  %v8089_v57 = vcombine.high %v274_v48, %v282_v49  ;;  %v8091_v59 = vcombine.high %v275_v50, %v283_v52 }
 0x32a   :  { %7347 = vmatpush1.bf16.msra.mxu0 %v7992_v0  ;;  %7519 = vmatpush1.bf16.msra.mxu1 %v7994_v2  ;;  %v8088_v0 = vcombine.low %v274_v48, %v282_v49  ;;  %v8090_v2 = vcombine.low %v275_v50, %v283_v52  ;;  %v371_v48 = vld [vmem:[%s12637_s1 + $0xab8] sm:$0xff] }
 0x32b   :  { %7348 = vmatprep.subr.bf16.mxu0 %v8009_v5  ;;  %7520 = vmatprep.subr.bf16.mxu1 %v8011_v7  ;;  %v8105_v5 = vcombine.high %v290_v60, %v298_v61  ;;  %v8107_v7 = vcombine.high %v291_v58, %v299_v63  ;;  %v379_v49 = vld [vmem:[%s12637_s1 + $0xaf8] sm:$0xff] }
 0x32e   :  { %7349 = vmatpush1.bf16.msra.mxu0 %v8008_v10  ;;  %7521 = vmatpush1.bf16.msra.mxu1 %v8010_v11  ;;  %v8104_v10 = vcombine.low %v290_v60, %v298_v61  ;;  %v8106_v11 = vcombine.low %v291_v58, %v299_v63  ;;  %v387_v60 = vld [vmem:[%s12637_s1 + $0xb38] sm:$0xff]  ;;  %v8186_v63 = vcombine.low %v371_v48, %v379_v49 }
 0x32f   :  { %7350 = vmatprep.subr.bf16.mxu0 %v8025_v12  ;;  %7522 = vmatprep.subr.bf16.mxu1 %v8027_v13  ;;  %v8121_v12 = vcombine.high %v306_v45, %v314_v46  ;;  %v8123_v13 = vcombine.high %v307_v8, %v315_v9  ;;  %v395_v61 = vld [vmem:[%s12637_s1 + $0xb78] sm:$0xff] }
 0x332   :  { %7351 = vmatpush1.bf16.msra.mxu0 %v8024_v54  ;;  %7523 = vmatpush1.bf16.msra.mxu1 %v8026_v21  ;;  %v8120_v54 = vcombine.low %v306_v45, %v314_v46  ;;  %v8122_v21 = vcombine.low %v307_v8, %v315_v9  ;;  %v403_v45 = vld [vmem:[%s12637_s1 + $0xbb8] sm:$0xff]  ;;  %v8202_v9 = vcombine.low %v387_v60, %v395_v61 }
 0x333   :  { %7352 = vmatprep.subr.bf16.mxu0 %v8041_v22  ;;  %7524 = vmatprep.subr.bf16.mxu1 %v8043_v24  ;;  %v8137_v22 = vcombine.high %v322_v14, %v330_v16  ;;  %v8139_v24 = vcombine.high %v323_v19, %v331_v53  ;;  %v411_v46 = vld [vmem:[%s12637_s1 + $0xbf8] sm:$0xff] }
 0x334   :  { %v419_v14 = vld [vmem:[%s12637_s1 + $0xc38] sm:$0xff] }
 0x335   :  { %v427_v16 = vld [vmem:[%s12637_s1 + $0xc78] sm:$0xff] }
 0x336   :  { %7353 = vmatpush1.bf16.msra.mxu0 %v8040_v18  ;;  %7525 = vmatpush1.bf16.msra.mxu1 %v8042_v32  ;;  %v8138_v18 = vcombine.low %v323_v19, %v331_v53  ;;  %v8153_v32 = vcombine.high %v338_v25, %v346_v26  ;;  %v8218_v53 = vcombine.low %v403_v45, %v411_v46  ;;  %v435_v25 = vld [vmem:[%s12637_s1 + $0xcb8] sm:$0xff] }
 0x337   :  { %7354 = vmatprep.subr.bf16.mxu0 %v8057_v33  ;;  %7526 = vmatprep.subr.bf16.mxu1 %v8059_v37  ;;  %v354_v37 = vld [vmem:[%s12637_s1 + $0xa30] sm:$0xff]  ;;  %v443_v26 = vld [vmem:[%s12637_s1 + $0xcf8] sm:$0xff] }
 0x338   :  { %v8168_v50 = vcombine.low %v354_v37, %v362_v39 }
 0x33a   :  { %7355 = vmatpush1.bf16.msra.mxu0 %v8056_v44  ;;  %7527 = vmatpush1.bf16.msra.mxu1 %v8058_v47  ;;  %v8169_v44 = vcombine.high %v354_v37, %v362_v39  ;;  %v451_v37 = vld [vmem:[%s12637_s1 + $0xd38] sm:$0xff] }
 0x33b   :  { %7356 = vmatprep.subr.bf16.mxu0 %v8073_v29  ;;  %7528 = vmatprep.subr.bf16.mxu1 %v8075_v30  ;;  %v370_v29 = vld [vmem:[%s12637_s1 + $0xab0] sm:$0xff]  ;;  %v459_v39 = vld [vmem:[%s12637_s1 + $0xd78] sm:$0xff] }
 0x33c   :  { %v378_v30 = vld [vmem:[%s12637_s1 + $0xaf0] sm:$0xff] }
 0x33d   :  { %v8184_v58 = vcombine.low %v370_v29, %v378_v30 }
 0x33e   :  { %7357 = vmatpush1.bf16.msra.mxu0 %v8072_v55  ;;  %7529 = vmatpush1.bf16.msra.mxu1 %v8074_v56  ;;  %v8185_v55 = vcombine.high %v370_v29, %v378_v30  ;;  %v8187_v56 = vcombine.high %v371_v48, %v379_v49  ;;  %v467_v29 = vld [vmem:[%s12637_s1 + $0xdb8] sm:$0xff]  ;;  %v8266_v49 = vcombine.low %v451_v37, %v459_v39 }
 0x33f   :  { %7358 = vmatprep.subr.bf16.mxu0 %v8089_v57  ;;  %7530 = vmatprep.subr.bf16.mxu1 %v8091_v59  ;;  %v386_v57 = vld [vmem:[%s12637_s1 + $0xb30] sm:$0xff]  ;;  %v475_v30 = vld [vmem:[%s12637_s1 + $0xdf8] sm:$0xff] }
 0x340   :  { %v394_v59 = vld [vmem:[%s12637_s1 + $0xb70] sm:$0xff] }
 0x341   :  { %v8200_v8 = vcombine.low %v386_v57, %v394_v59 }
 0x342   :  { %7359 = vmatpush1.bf16.msra.mxu0 %v8088_v0  ;;  %7531 = vmatpush1.bf16.msra.mxu1 %v8090_v2  ;;  %v8201_v0 = vcombine.high %v386_v57, %v394_v59  ;;  %v8203_v2 = vcombine.high %v387_v60, %v395_v61  ;;  %v483_v57 = vld [vmem:[%s12637_s1 + $0xe38] sm:$0xff]  ;;  %v8282_v61 = vcombine.low %v467_v29, %v475_v30 }
 0x343   :  { %7371 = vmatprep.subr.bf16.mxu0 %v8105_v5  ;;  %7543 = vmatprep.subr.bf16.mxu1 %v8107_v7  ;;  %v402_v5 = vld [vmem:[%s12637_s1 + $0xbb0] sm:$0xff]  ;;  %v491_v59 = vld [vmem:[%s12637_s1 + $0xe78] sm:$0xff] }
 0x344   :  { %v410_v7 = vld [vmem:[%s12637_s1 + $0xbf0] sm:$0xff] }
 0x345   :  { %7361 = vmatmul.mubr.bf16.vlgmr.msra.gmra.mrb[12].mxu0 %v9303_v15  ;;  %7533 = vmatmul.mubr.bf16.vlgmr.msra.gmra.mrb[12].mxu1 %v9303_v15  ;;  %v339_v15 = vld [vmem:[%s12637_s1 + $0x9b8] sm:$0xff]  ;;  %v8216_v19 = vcombine.low %v402_v5, %v410_v7 }
 0x346   :  { %7372 = vmatpush1.bf16.msra.mxu0 %v8104_v10  ;;  %7544 = vmatpush1.bf16.msra.mxu1 %v8106_v11  ;;  %v8155_v33 = vcombine.high %v339_v15, %v347_v28  ;;  %v8154_v42 = vcombine.low %v339_v15, %v347_v28  ;;  %v8217_v10 = vcombine.high %v402_v5, %v410_v7  ;;  %v499_v5 = vld [vmem:[%s12637_s1 + $0xeb8] sm:$0xff] }
 0x347   :  { %7373 = vmatprep.subr.bf16.mxu0 %v8121_v12  ;;  %7545 = vmatprep.subr.bf16.mxu1 %v8123_v13  ;;  %v8219_v11 = vcombine.high %v403_v45, %v411_v46  ;;  %v418_v12 = vld [vmem:[%s12637_s1 + $0xc30] sm:$0xff]  ;;  %v8234_v28 = vcombine.low %v419_v14, %v427_v16  ;;  %v507_v7 = vld [vmem:[%s12637_s1 + $0xef8] sm:$0xff]  ;;  %v8298_v46 = vcombine.low %v483_v57, %v491_v59 }
 0x348   :  { %7403 = vmatprep.mubr.bf16.mxu0 %v9326_v23  ;;  %7575 = vmatprep.mubr.bf16.mxu1 %v9326_v23  ;;  %v355_v23 = vld [vmem:[%s12637_s1 + $0xa38] sm:$0xff]  ;;  %v426_v13 = vld [vmem:[%s12637_s1 + $0xc70] sm:$0xff] }
 0x349   :  { %v8171_v47 = vcombine.high %v355_v23, %v363_v40  ;;  %v8170_v52 = vcombine.low %v355_v23, %v363_v40  ;;  %v8232_v15 = vcombine.low %v418_v12, %v426_v13  ;;  %v8250_v40 = vcombine.low %v435_v25, %v443_v26 }
 0x34a   :  { %7374 = vmatpush1.bf16.msra.mxu0 %v8120_v54  ;;  %7546 = vmatpush1.bf16.msra.mxu1 %v8122_v21  ;;  %v8233_v54 = vcombine.high %v418_v12, %v426_v13  ;;  %v8235_v21 = vcombine.high %v419_v14, %v427_v16  ;;  %v515_v12 = vld [vmem:[%s12637_s1 + $0xf38] sm:$0xff]  ;;  %v8314_v16 = vcombine.low %v499_v5, %v507_v7 }
 0x34b   :  { %7375 = vmatprep.subr.bf16.mxu0 %v8137_v22  ;;  %7547 = vmatprep.subr.bf16.mxu1 %v8139_v24  ;;  %v434_v22 = vld [vmem:[%s12637_s1 + $0xcb0] sm:$0xff]  ;;  %v523_v13 = vld [vmem:[%s12637_s1 + $0xf78] sm:$0xff] }
 0x34c   :  { %v442_v24 = vld [vmem:[%s12637_s1 + $0xcf0] sm:$0xff] }
 0x34d   :  { %v8248_v23 = vcombine.low %v434_v22, %v442_v24 }
 0x34e   :  { %7376 = vmatpush1.bf16.msra.mxu0 %v8136_v17  ;;  %7548 = vmatpush1.bf16.msra.mxu1 %v8138_v18  ;;  %v8249_v17 = vcombine.high %v434_v22, %v442_v24  ;;  %v8251_v18 = vcombine.high %v435_v25, %v443_v26  ;;  %v531_v22 = vld [vmem:[%s12637_s1 + $0xfb8] sm:$0xff]  ;;  %v8330_v26 = vcombine.low %v515_v12, %v523_v13 }
 0x34f   :  { %7377 = vmatprep.subr.bf16.mxu0 %v8153_v32  ;;  %7549 = vmatprep.subr.bf16.mxu1 %v8155_v33  ;;  %v450_v32 = vld [vmem:[%s12637_s1 + $0xd30] sm:$0xff]  ;;  %v539_v24 = vld [vmem:[%s12637_s1 + $0xff8] sm:$0xff] }
 0x350   :  { %v458_v33 = vld [vmem:[%s12637_s1 + $0xd70] sm:$0xff] }
 0x351   :  { %v8264_v48 = vcombine.low %v450_v32, %v458_v33 }
 0x352   :  { %7378 = vmatpush1.bf16.msra.mxu0 %v8152_v41  ;;  %7550 = vmatpush1.bf16.msra.mxu1 %v8154_v42  ;;  %v8265_v41 = vcombine.high %v450_v32, %v458_v33  ;;  %v8267_v42 = vcombine.high %v451_v37, %v459_v39  ;;  %v547_v32 = vld [vmem:[%s12637_s1 + $0x1038] sm:$0xff]  ;;  %v8346_v39 = vcombine.low %v531_v22, %v539_v24 }
 0x353   :  { %7379 = vmatprep.subr.bf16.mxu0 %v8169_v44  ;;  %7551 = vmatprep.subr.bf16.mxu1 %v8171_v47  ;;  %v466_v44 = vld [vmem:[%s12637_s1 + $0xdb0] sm:$0xff]  ;;  %v555_v33 = vld [vmem:[%s12637_s1 + $0x1078] sm:$0xff] }
 0x354   :  { %v474_v47 = vld [vmem:[%s12637_s1 + $0xdf0] sm:$0xff] }
 0x355   :  { %v8280_v60 = vcombine.low %v466_v44, %v474_v47 }
 0x356   :  { %7380 = vmatpush1.bf16.msra.mxu0 %v8168_v50  ;;  %7552 = vmatpush1.bf16.msra.mxu1 %v8170_v52  ;;  %v8281_v50 = vcombine.high %v466_v44, %v474_v47  ;;  %v8283_v52 = vcombine.high %v467_v29, %v475_v30  ;;  %v563_v44 = vld [vmem:[%s12637_s1 + $0x10b8] sm:$0xff]  ;;  %v8362_v30 = vcombine.low %v547_v32, %v555_v33 }
 0x357   :  { %7381 = vmatprep.subr.bf16.mxu0 %v8185_v55  ;;  %7553 = vmatprep.subr.bf16.mxu1 %v8187_v56  ;;  %v482_v55 = vld [vmem:[%s12637_s1 + $0xe30] sm:$0xff]  ;;  %v571_v47 = vld [vmem:[%s12637_s1 + $0x10f8] sm:$0xff] }
 0x358   :  { %v490_v56 = vld [vmem:[%s12637_s1 + $0xe70] sm:$0xff] }
 0x359   :  { %v8296_v45 = vcombine.low %v482_v55, %v490_v56 }
 0x35a   :  { %7382 = vmatpush1.bf16.msra.mxu0 %v8184_v58  ;;  %7554 = vmatpush1.bf16.msra.mxu1 %v8186_v63  ;;  %v8297_v58 = vcombine.high %v482_v55, %v490_v56  ;;  %v8299_v63 = vcombine.high %v483_v57, %v491_v59  ;;  %v579_v55 = vld [vmem:[%s12637_s1 + $0x1138] sm:$0xff]  ;;  %v8378_v59 = vcombine.low %v563_v44, %v571_v47 }
 0x35b   :  { %7383 = vmatprep.subr.bf16.mxu0 %v8201_v0  ;;  %7555 = vmatprep.subr.bf16.mxu1 %v8203_v2  ;;  %v498_v0 = vld [vmem:[%s12637_s1 + $0xeb0] sm:$0xff]  ;;  %v587_v56 = vld [vmem:[%s12637_s1 + $0x1178] sm:$0xff] }
 0x35c   :  { %v506_v2 = vld [vmem:[%s12637_s1 + $0xef0] sm:$0xff] }
 0x35d   :  { %v8312_v14 = vcombine.low %v498_v0, %v506_v2 }
 0x35e   :  { %7384 = vmatpush1.bf16.msra.mxu0 %v8200_v8  ;;  %7556 = vmatpush1.bf16.msra.mxu1 %v8202_v9  ;;  %v8313_v8 = vcombine.high %v498_v0, %v506_v2  ;;  %v8315_v9 = vcombine.high %v499_v5, %v507_v7  ;;  %v603_v0 = vld [vmem:[%s12637_s1 + $0x11f8] sm:$0xff]  ;;  %v8394_v5 = vcombine.low %v579_v55, %v587_v56 }
 0x35f   :  { %7385 = vmatprep.subr.bf16.mxu0 %v8217_v10  ;;  %7557 = vmatprep.subr.bf16.mxu1 %v8219_v11  ;;  %v514_v10 = vld [vmem:[%s12637_s1 + $0xf30] sm:$0xff] }
 0x360   :  { %v522_v11 = vld [vmem:[%s12637_s1 + $0xf70] sm:$0xff] }
 0x361   :  { %v8328_v25 = vcombine.low %v514_v10, %v522_v11 }
 0x362   :  { %7386 = vmatpush1.bf16.msra.mxu0 %v8216_v19  ;;  %7558 = vmatpush1.bf16.msra.mxu1 %v8218_v53  ;;  %v8329_v19 = vcombine.high %v514_v10, %v522_v11  ;;  %v8331_v53 = vcombine.high %v515_v12, %v523_v13 }
 0x363   :  { %7387 = vmatprep.subr.bf16.mxu0 %v8233_v54  ;;  %7559 = vmatprep.subr.bf16.mxu1 %v8235_v21  ;;  %v530_v54 = vld [vmem:[%s12637_s1 + $0xfb0] sm:$0xff] }
 0x364   :  { %v538_v21 = vld [vmem:[%s12637_s1 + $0xff0] sm:$0xff] }
 0x365   :  { %v8344_v37 = vcombine.low %v530_v54, %v538_v21 }
 0x366   :  { %7388 = vmatpush1.bf16.msra.mxu0 %v8232_v15  ;;  %7560 = vmatpush1.bf16.msra.mxu1 %v8234_v28  ;;  %v8345_v15 = vcombine.high %v530_v54, %v538_v21  ;;  %v8347_v28 = vcombine.high %v531_v22, %v539_v24 }
 0x367   :  { %7389 = vmatprep.subr.bf16.mxu0 %v8249_v17  ;;  %7561 = vmatprep.subr.bf16.mxu1 %v8251_v18  ;;  %v546_v17 = vld [vmem:[%s12637_s1 + $0x1030] sm:$0xff] }
 0x368   :  { %v554_v18 = vld [vmem:[%s12637_s1 + $0x1070] sm:$0xff] }
 0x369   :  { %v8360_v29 = vcombine.low %v546_v17, %v554_v18 }
 0x36a   :  { %7390 = vmatpush1.bf16.msra.mxu0 %v8248_v23  ;;  %7562 = vmatpush1.bf16.msra.mxu1 %v8250_v40  ;;  %v8361_v23 = vcombine.high %v546_v17, %v554_v18  ;;  %v8363_v40 = vcombine.high %v547_v32, %v555_v33 }
 0x36b   :  { %7391 = vmatprep.subr.bf16.mxu0 %v8265_v41  ;;  %7563 = vmatprep.subr.bf16.mxu1 %v8267_v42  ;;  %v562_v41 = vld [vmem:[%s12637_s1 + $0x10b0] sm:$0xff] }
 0x36c   :  { %v570_v42 = vld [vmem:[%s12637_s1 + $0x10f0] sm:$0xff] }
 0x36d   :  { %v8376_v57 = vcombine.low %v562_v41, %v570_v42 }
 0x36e   :  { %7392 = vmatpush1.bf16.msra.mxu0 %v8264_v48  ;;  %7564 = vmatpush1.bf16.msra.mxu1 %v8266_v49  ;;  %v8377_v48 = vcombine.high %v562_v41, %v570_v42  ;;  %v8379_v49 = vcombine.high %v563_v44, %v571_v47 }
 0x36f   :  { %7393 = vmatprep.subr.bf16.mxu0 %v8281_v50  ;;  %7565 = vmatprep.subr.bf16.mxu1 %v8283_v52  ;;  %v578_v50 = vld [vmem:[%s12637_s1 + $0x1130] sm:$0xff] }
 0x370   :  { %v586_v52 = vld [vmem:[%s12637_s1 + $0x1170] sm:$0xff] }
 0x371   :  { %v8392_v2 = vcombine.low %v578_v50, %v586_v52 }
 0x372   :  { %7394 = vmatpush1.bf16.msra.mxu0 %v8280_v60  ;;  %7566 = vmatpush1.bf16.msra.mxu1 %v8282_v61  ;;  %v8393_v60 = vcombine.high %v578_v50, %v586_v52  ;;  %v8395_v61 = vcombine.high %v579_v55, %v587_v56 }
 0x373   :  { %7395 = vmatprep.subr.bf16.mxu0 %v8297_v58  ;;  %7567 = vmatprep.subr.bf16.mxu1 %v8299_v63  ;;  %v594_v58 = vld [vmem:[%s12637_s1 + $0x11b0] sm:$0xff] }
 0x374   :  { %v602_v63 = vld [vmem:[%s12637_s1 + $0x11f0] sm:$0xff] }
 0x375   :  { %v8409_v7 = vcombine.high %v594_v58, %v602_v63  ;;  %v8408_v10 = vcombine.low %v594_v58, %v602_v63 }
 0x376   :  { %7396 = vmatpush1.bf16.msra.mxu0 %v8296_v45  ;;  %7568 = vmatpush1.bf16.msra.mxu1 %v8298_v46  ;;  %v610_v46 = vld [vmem:[%s12637_s1 + $0x1230] sm:$0xff] }
 0x377   :  { %7397 = vmatprep.subr.bf16.mxu0 %v8313_v8  ;;  %7569 = vmatprep.subr.bf16.mxu1 %v8315_v9  ;;  %v618_v8 = vld [vmem:[%s12637_s1 + $0x1270] sm:$0xff]  ;;  %v619_v9 = vld [vmem:[%s12637_s1 + $0x1278] sm:$0xff] }
 0x378   :  { %v8425_v12 = vcombine.high %v610_v46, %v618_v8  ;;  %v8424_v54 = vcombine.low %v610_v46, %v618_v8 }
 0x37a   :  { %7398 = vmatpush1.bf16.msra.mxu0 %v8312_v14  ;;  %7570 = vmatpush1.bf16.msra.mxu1 %v8314_v16  ;;  %v626_v14 = vld [vmem:[%s12637_s1 + $0x12b0] sm:$0xff] }
 0x37b   :  { %7399 = vmatprep.subr.bf16.mxu0 %v8329_v19  ;;  %7571 = vmatprep.subr.bf16.mxu1 %v8331_v53  ;;  %v634_v16 = vld [vmem:[%s12637_s1 + $0x12f0] sm:$0xff]  ;;  %v627_v19 = vld [vmem:[%s12637_s1 + $0x12b8] sm:$0xff] }
 0x37c   :  { %v635_v53 = vld [vmem:[%s12637_s1 + $0x12f8] sm:$0xff]  ;;  %v8441_v22 = vcombine.high %v626_v14, %v634_v16  ;;  %v8440_v17 = vcombine.low %v626_v14, %v634_v16 }
 0x37d   :  { %v8443_v24 = vcombine.high %v627_v19, %v635_v53  ;;  %v8442_v18 = vcombine.low %v627_v19, %v635_v53 }
 0x37e   :  { %7400 = vmatpush1.bf16.msra.mxu0 %v8328_v25  ;;  %7572 = vmatpush1.bf16.msra.mxu1 %v8330_v26  ;;  %v642_v25 = vld [vmem:[%s12637_s1 + $0x1330] sm:$0xff] }
 0x37f   :  { %7401 = vmatprep.subr.bf16.mxu0 %v8345_v15  ;;  %7573 = vmatprep.subr.bf16.mxu1 %v8347_v28  ;;  %v650_v26 = vld [vmem:[%s12637_s1 + $0x1370] sm:$0xff]  ;;  %v643_v15 = vld [vmem:[%s12637_s1 + $0x1338] sm:$0xff] }
 0x380   :  { %v651_v28 = vld [vmem:[%s12637_s1 + $0x1378] sm:$0xff]  ;;  %v8457_v32 = vcombine.high %v642_v25, %v650_v26  ;;  %v8456_v41 = vcombine.low %v642_v25, %v650_v26 }
 0x381   :  { %v8459_v33 = vcombine.high %v643_v15, %v651_v28  ;;  %v8458_v42 = vcombine.low %v643_v15, %v651_v28 }
 0x382   :  { %7402 = vmatpush1.bf16.msra.mxu0 %v8344_v37  ;;  %7574 = vmatpush1.bf16.msra.mxu1 %v8346_v39  ;;  %v658_v37 = vld [vmem:[%s12637_s1 + $0x13b0] sm:$0xff] }
 0x383   :  { %7414 = vmatprep.subr.bf16.mxu0 %v8361_v23  ;;  %7586 = vmatprep.subr.bf16.mxu1 %v8363_v40  ;;  %v666_v39 = vld [vmem:[%s12637_s1 + $0x13f0] sm:$0xff]  ;;  %v659_v23 = vld [vmem:[%s12637_s1 + $0x13b8] sm:$0xff] }
 0x384   :  { %v667_v40 = vld [vmem:[%s12637_s1 + $0x13f8] sm:$0xff]  ;;  %v8473_v44 = vcombine.high %v658_v37, %v666_v39  ;;  %v8472_v50 = vcombine.low %v658_v37, %v666_v39 }
 0x385   :  { %7404 = vmatmul.mubr.bf16.vlgmr.msra.gmra.mrb[12].mxu0 %v9517_v27  ;;  %7576 = vmatmul.mubr.bf16.vlgmr.msra.gmra.mrb[12].mxu1 %v9517_v27  ;;  %v595_v27 = vld [vmem:[%s12637_s1 + $0x11b8] sm:$0xff]  ;;  %v8475_v47 = vcombine.high %v659_v23, %v667_v40  ;;  %v8474_v52 = vcombine.low %v659_v23, %v667_v40 }
 0x386   :  { %7415 = vmatpush1.bf16.msra.mxu0 %v8360_v29  ;;  %7587 = vmatpush1.bf16.msra.mxu1 %v8362_v30  ;;  %v8411_v45 = vcombine.high %v595_v27, %v603_v0  ;;  %v8410_v11 = vcombine.low %v595_v27, %v603_v0  ;;  %v674_v29 = vld [vmem:[%s12637_s1 + $0x1430] sm:$0xff] }
 0x387   :  { %7416 = vmatprep.subr.bf16.mxu0 %v8377_v48  ;;  %7588 = vmatprep.subr.bf16.mxu1 %v8379_v49  ;;  %v682_v30 = vld [vmem:[%s12637_s1 + $0x1470] sm:$0xff]  ;;  %v675_v48 = vld [vmem:[%s12637_s1 + $0x1438] sm:$0xff] }
 0x388   :  { %7446 = vmatprep.mubr.bf16.mxu0 %v9540_v35  ;;  %7618 = vmatprep.mubr.bf16.mxu1 %v9540_v35  ;;  %v611_v35 = vld [vmem:[%s12637_s1 + $0x1238] sm:$0xff]  ;;  %v8489_v55 = vcombine.high %v674_v29, %v682_v30  ;;  %v8488_v58 = vcombine.low %v674_v29, %v682_v30 }
 0x389   :  { %v8427_v13 = vcombine.high %v611_v35, %v619_v9  ;;  %v8426_v21 = vcombine.low %v611_v35, %v619_v9  ;;  %v683_v49 = vld [vmem:[%s12637_s1 + $0x1478] sm:$0xff] }
 0x38a   :  { %7417 = vmatpush1.bf16.msra.mxu0 %v8376_v57  ;;  %7589 = vmatpush1.bf16.msra.mxu1 %v8378_v59  ;;  %v8491_v56 = vcombine.high %v675_v48, %v683_v49  ;;  %v690_v57 = vld [vmem:[%s12637_s1 + $0x14b0] sm:$0xff]  ;;  %v8490_v63 = vcombine.low %v675_v48, %v683_v49 }
 0x38b   :  { %7418 = vmatprep.subr.bf16.mxu0 %v8393_v60  ;;  %7590 = vmatprep.subr.bf16.mxu1 %v8395_v61  ;;  %v698_v59 = vld [vmem:[%s12637_s1 + $0x14f0] sm:$0xff]  ;;  %v691_v60 = vld [vmem:[%s12637_s1 + $0x14b8] sm:$0xff] }
 0x38c   :  { %v699_v61 = vld [vmem:[%s12637_s1 + $0x14f8] sm:$0xff]  ;;  %v8505_v27 = vcombine.high %v690_v57, %v698_v59  ;;  %v8504_v46 = vcombine.low %v690_v57, %v698_v59 }
 0x38d   :  { %v8507_v0 = vcombine.high %v691_v60, %v699_v61  ;;  %v8506_v8 = vcombine.low %v691_v60, %v699_v61 }
 0x38e   :  { %7419 = vmatpush1.bf16.msra.mxu0 %v8392_v2  ;;  %7591 = vmatpush1.bf16.msra.mxu1 %v8394_v5  ;;  %v706_v2 = vld [vmem:[%s12637_s1 + $0x1530] sm:$0xff] }
 0x38f   :  { %7420 = vmatprep.subr.bf16.mxu0 %v8409_v7  ;;  %7592 = vmatprep.subr.bf16.mxu1 %v8411_v45  ;;  %v714_v5 = vld [vmem:[%s12637_s1 + $0x1570] sm:$0xff]  ;;  %v707_v7 = vld [vmem:[%s12637_s1 + $0x1538] sm:$0xff] }
 0x390   :  { %v715_v45 = vld [vmem:[%s12637_s1 + $0x1578] sm:$0xff]  ;;  %v8521_v35 = vcombine.high %v706_v2, %v714_v5  ;;  %v8520_v14 = vcombine.low %v706_v2, %v714_v5 }
 0x391   :  { %v8523_v9 = vcombine.high %v707_v7, %v715_v45  ;;  %v8522_v16 = vcombine.low %v707_v7, %v715_v45 }
 0x392   :  { %7421 = vmatpush1.bf16.msra.mxu0 %v8408_v10  ;;  %7593 = vmatpush1.bf16.msra.mxu1 %v8410_v11  ;;  %v722_v10 = vld [vmem:[%s12637_s1 + $0x15b0] sm:$0xff] }
 0x393   :  { %7422 = vmatprep.subr.bf16.mxu0 %v8425_v12  ;;  %7594 = vmatprep.subr.bf16.mxu1 %v8427_v13  ;;  %v730_v11 = vld [vmem:[%s12637_s1 + $0x15f0] sm:$0xff]  ;;  %v723_v12 = vld [vmem:[%s12637_s1 + $0x15b8] sm:$0xff] }
 0x394   :  { %v731_v13 = vld [vmem:[%s12637_s1 + $0x15f8] sm:$0xff]  ;;  %v8537_v19 = vcombine.high %v722_v10, %v730_v11  ;;  %v8536_v25 = vcombine.low %v722_v10, %v730_v11 }
 0x395   :  { %v8539_v53 = vcombine.high %v723_v12, %v731_v13  ;;  %v8538_v26 = vcombine.low %v723_v12, %v731_v13 }
 0x396   :  { %7423 = vmatpush1.bf16.msra.mxu0 %v8424_v54  ;;  %7595 = vmatpush1.bf16.msra.mxu1 %v8426_v21  ;;  %v738_v54 = vld [vmem:[%s12637_s1 + $0x1630] sm:$0xff] }
 0x397   :  { %7424 = vmatprep.subr.bf16.mxu0 %v8441_v22  ;;  %7596 = vmatprep.subr.bf16.mxu1 %v8443_v24  ;;  %v746_v21 = vld [vmem:[%s12637_s1 + $0x1670] sm:$0xff]  ;;  %v739_v22 = vld [vmem:[%s12637_s1 + $0x1638] sm:$0xff] }
 0x398   :  { %v747_v24 = vld [vmem:[%s12637_s1 + $0x1678] sm:$0xff]  ;;  %v8553_v15 = vcombine.high %v738_v54, %v746_v21  ;;  %v8552_v37 = vcombine.low %v738_v54, %v746_v21 }
 0x399   :  { %v8555_v28 = vcombine.high %v739_v22, %v747_v24  ;;  %v8554_v39 = vcombine.low %v739_v22, %v747_v24 }
 0x39a   :  { %7425 = vmatpush1.bf16.msra.mxu0 %v8440_v17  ;;  %7597 = vmatpush1.bf16.msra.mxu1 %v8442_v18  ;;  %v754_v17 = vld [vmem:[%s12637_s1 + $0x16b0] sm:$0xff] }
 0x39b   :  { %7426 = vmatprep.subr.bf16.mxu0 %v8457_v32  ;;  %7598 = vmatprep.subr.bf16.mxu1 %v8459_v33  ;;  %v762_v18 = vld [vmem:[%s12637_s1 + $0x16f0] sm:$0xff]  ;;  %v755_v32 = vld [vmem:[%s12637_s1 + $0x16b8] sm:$0xff] }
 0x39c   :  { %v763_v33 = vld [vmem:[%s12637_s1 + $0x16f8] sm:$0xff]  ;;  %v8569_v23 = vcombine.high %v754_v17, %v762_v18  ;;  %v8568_v29 = vcombine.low %v754_v17, %v762_v18 }
 0x39d   :  { %v8571_v40 = vcombine.high %v755_v32, %v763_v33  ;;  %v8570_v30 = vcombine.low %v755_v32, %v763_v33  ;;  %v866_v33 = vld [vmem:[%s12637_s1 + $0x1a30] sm:$0xff] }
 0x39e   :  { %7427 = vmatpush1.bf16.msra.mxu0 %v8456_v41  ;;  %7599 = vmatpush1.bf16.msra.mxu1 %v8458_v42  ;;  %v770_v41 = vld [vmem:[%s12637_s1 + $0x1730] sm:$0xff] }
 0x39f   :  { %7428 = vmatprep.subr.bf16.mxu0 %v8473_v44  ;;  %7600 = vmatprep.subr.bf16.mxu1 %v8475_v47  ;;  %v778_v42 = vld [vmem:[%s12637_s1 + $0x1770] sm:$0xff]  ;;  %v771_v44 = vld [vmem:[%s12637_s1 + $0x1738] sm:$0xff] }
 0x3a0   :  { %v779_v47 = vld [vmem:[%s12637_s1 + $0x1778] sm:$0xff]  ;;  %v8585_v48 = vcombine.high %v770_v41, %v778_v42  ;;  %v8584_v57 = vcombine.low %v770_v41, %v778_v42 }
 0x3a1   :  { %v8587_v49 = vcombine.high %v771_v44, %v779_v47  ;;  %v8586_v59 = vcombine.low %v771_v44, %v779_v47  ;;  %v882_v44 = vld [vmem:[%s12637_s1 + $0x1ab0] sm:$0xff] }
 0x3a2   :  { %7429 = vmatpush1.bf16.msra.mxu0 %v8472_v50  ;;  %7601 = vmatpush1.bf16.msra.mxu1 %v8474_v52  ;;  %v786_v50 = vld [vmem:[%s12637_s1 + $0x17b0] sm:$0xff] }
 0x3a3   :  { %7430 = vmatprep.subr.bf16.mxu0 %v8489_v55  ;;  %7602 = vmatprep.subr.bf16.mxu1 %v8491_v56  ;;  %v794_v52 = vld [vmem:[%s12637_s1 + $0x17f0] sm:$0xff]  ;;  %v787_v55 = vld [vmem:[%s12637_s1 + $0x17b8] sm:$0xff] }
 0x3a4   :  { %v795_v56 = vld [vmem:[%s12637_s1 + $0x17f8] sm:$0xff]  ;;  %v8601_v60 = vcombine.high %v786_v50, %v794_v52  ;;  %v8600_v2 = vcombine.low %v786_v50, %v794_v52  ;;  %v890_v47 = vld [vmem:[%s12637_s1 + $0x1af0] sm:$0xff] }
 0x3a5   :  { %v8603_v61 = vcombine.high %v787_v55, %v795_v56  ;;  %v8602_v5 = vcombine.low %v787_v55, %v795_v56  ;;  %v8697_v52 = vcombine.high %v882_v44, %v890_v47  ;;  %v12246_v56 = vld [vmem:[%s12637_s1 + $0x1b30] sm:$0xff] }
 0x3a6   :  { %7431 = vmatpush1.bf16.msra.mxu0 %v8488_v58  ;;  %7603 = vmatpush1.bf16.msra.mxu1 %v8490_v63  ;;  %v802_v58 = vld [vmem:[%s12637_s1 + $0x1830] sm:$0xff] }
 0x3a7   :  { %7432 = vmatprep.subr.bf16.mxu0 %v8505_v27  ;;  %7604 = vmatprep.subr.bf16.mxu1 %v8507_v0  ;;  %v810_v63 = vld [vmem:[%s12637_s1 + $0x1870] sm:$0xff]  ;;  %v803_v27 = vld [vmem:[%s12637_s1 + $0x1838] sm:$0xff] }
 0x3a8   :  { %v811_v0 = vld [vmem:[%s12637_s1 + $0x1878] sm:$0xff]  ;;  %v8617_v7 = vcombine.high %v802_v58, %v810_v63  ;;  %v8616_v10 = vcombine.low %v802_v58, %v810_v63 }
 0x3a9   :  { %v8619_v45 = vcombine.high %v803_v27, %v811_v0  ;;  %v8618_v11 = vcombine.low %v803_v27, %v811_v0  ;;  %v12275_v27 = vld [vmem:[%s12637_s1 + $0x1bb0] sm:$0xff] }
 0x3aa   :  { %7433 = vmatpush1.bf16.msra.mxu0 %v8504_v46  ;;  %7605 = vmatpush1.bf16.msra.mxu1 %v8506_v8  ;;  %v818_v46 = vld [vmem:[%s12637_s1 + $0x18b0] sm:$0xff] }
 0x3ab   :  { %7434 = vmatprep.subr.bf16.mxu0 %v8521_v35  ;;  %7606 = vmatprep.subr.bf16.mxu1 %v8523_v9  ;;  %v826_v8 = vld [vmem:[%s12637_s1 + $0x18f0] sm:$0xff]  ;;  %v819_v35 = vld [vmem:[%s12637_s1 + $0x18b8] sm:$0xff] }
 0x3ac   :  { %v827_v9 = vld [vmem:[%s12637_s1 + $0x18f8] sm:$0xff]  ;;  %v8633_v12 = vcombine.high %v818_v46, %v826_v8  ;;  %v8632_v54 = vcombine.low %v818_v46, %v826_v8  ;;  %v12280_v0 = vld [vmem:[%s12637_s1 + $0x1bf0] sm:$0xff] }
 0x3ad   :  { %v8635_v13 = vcombine.high %v819_v35, %v827_v9  ;;  %v8634_v21 = vcombine.low %v819_v35, %v827_v9  ;;  %v12304_v8 = vld [vmem:[%s12637_s1 + $0x1c30] sm:$0xff] }
 0x3ae   :  { %7435 = vmatpush1.bf16.msra.mxu0 %v8520_v14  ;;  %7607 = vmatpush1.bf16.msra.mxu1 %v8522_v16  ;;  %v834_v14 = vld [vmem:[%s12637_s1 + $0x1930] sm:$0xff] }
 0x3af   :  { %7436 = vmatprep.subr.bf16.mxu0 %v8537_v19  ;;  %7608 = vmatprep.subr.bf16.mxu1 %v8539_v53  ;;  %v842_v16 = vld [vmem:[%s12637_s1 + $0x1970] sm:$0xff]  ;;  %v835_v19 = vld [vmem:[%s12637_s1 + $0x1938] sm:$0xff] }
 0x3b0   :  { %v843_v53 = vld [vmem:[%s12637_s1 + $0x1978] sm:$0xff]  ;;  %v8649_v22 = vcombine.high %v834_v14, %v842_v16  ;;  %v12309_v35 = vld [vmem:[%s12637_s1 + $0x1c70] sm:$0xff] }
 0x3b1   :  { %v8651_v24 = vcombine.high %v835_v19, %v843_v53  ;;  %v8650_v17 = vcombine.low %v835_v19, %v843_v53 }
 0x3b2   :  { %7437 = vmatpush1.bf16.msra.mxu0 %v8536_v25  ;;  %7609 = vmatpush1.bf16.msra.mxu1 %v8538_v26  ;;  %v850_v25 = vld [vmem:[%s12637_s1 + $0x19b0] sm:$0xff] }
 0x3b3   :  { %7438 = vmatprep.subr.bf16.mxu0 %v8553_v15  ;;  %7610 = vmatprep.subr.bf16.mxu1 %v8555_v28  ;;  %v858_v26 = vld [vmem:[%s12637_s1 + $0x19f0] sm:$0xff]  ;;  %v859_v15 = vld [vmem:[%s12637_s1 + $0x19f8] sm:$0xff]  ;;  %v8648_v28 = vcombine.low %v834_v14, %v842_v16  ;;  %v8729_v14 = vcombine.high %v12275_v27, %v12280_v0 }
 0x3b4   :  { %v8665_v18 = vcombine.high %v850_v25, %v858_v26 }
 0x3b6   :  { %7439 = vmatpush1.bf16.msra.mxu0 %v8552_v37  ;;  %7611 = vmatpush1.bf16.msra.mxu1 %v8554_v39  ;;  %v874_v37 = vld [vmem:[%s12637_s1 + $0x1a70] sm:$0xff]  ;;  %v875_v39 = vld [vmem:[%s12637_s1 + $0x1a78] sm:$0xff] }
 0x3b7   :  { %7440 = vmatprep.subr.bf16.mxu0 %v8569_v23  ;;  %7612 = vmatprep.subr.bf16.mxu1 %v8571_v40  ;;  %v8664_v23 = vcombine.low %v850_v25, %v858_v26  ;;  %v8681_v41 = vcombine.high %v866_v33, %v874_v37 }
 0x3ba   :  { %7441 = vmatpush1.bf16.msra.mxu0 %v8568_v29  ;;  %7613 = vmatpush1.bf16.msra.mxu1 %v8570_v30  ;;  %v883_v29 = vld [vmem:[%s12637_s1 + $0x1ab8] sm:$0xff] }
 0x3bb   :  { %7442 = vmatprep.subr.bf16.mxu0 %v8585_v48  ;;  %7614 = vmatprep.subr.bf16.mxu1 %v8587_v49  ;;  %v891_v30 = vld [vmem:[%s12637_s1 + $0x1af8] sm:$0xff]  ;;  %v8680_v48 = vcombine.low %v866_v33, %v874_v37  ;;  %v12241_v49 = vld [vmem:[%s12639_s2 + $0x8] sm:$0xff] }
 0x3bc   :  { %v8699_v55 = vcombine.high %v883_v29, %v891_v30  ;;  %v1099_v58 = vrot.slane %v12241_v49, %v1066_v34  ;;  %v1095_v63 = vrot.slane %v12241_v49, %v1062_v36  ;;  %v1103_v34 = vrot.slane %v12241_v49, %v1070_v38 }
 0x3be   :  { %7443 = vmatpush1.bf16.msra.mxu0 %v8584_v57  ;;  %7615 = vmatpush1.bf16.msra.mxu1 %v8586_v59  ;;  %v12251_v57 = vld [vmem:[%s12637_s1 + $0x1b70] sm:$0xff]  ;;  %v1091_v59 = vrot.slane %v12241_v49, %v1058_v31  ;;  %v8696_v31 = vcombine.low %v882_v44, %v890_v47 }
 0x3bf   :  { %7444 = vmatprep.subr.bf16.mxu0 %v8601_v60  ;;  %7616 = vmatprep.subr.bf16.mxu1 %v8603_v61  ;;  %v12259_v60 = vld [vmem:[%s12637_s1 + $0x1b38] sm:$0xff]  ;;  %v8713_v36 = vcombine.high %v12246_v56, %v12251_v57  ;;  %v8712_v38 = vcombine.low %v12246_v56, %v12251_v57  ;;  %v946_v57 = vld [vmem:[%s12637_s1 + $0x1cb0] sm:$0xff] }
 0x3c0   :  { %v12264_v61 = vld [vmem:[%s12637_s1 + $0x1b78] sm:$0xff] }
 0x3c1   :  { %v8715_v46 = vcombine.high %v12259_v60, %v12264_v61 }
 0x3c2   :  { %7445 = vmatpush1.bf16.msra.mxu0 %v8600_v2  ;;  %7617 = vmatpush1.bf16.msra.mxu1 %v8602_v5  ;;  %v8698_v2 = vcombine.low %v883_v29, %v891_v30  ;;  %v12290_v5 = vld [vmem:[%s12637_s1 + $0x1bb8] sm:$0xff] }
 0x3c3   :  { %7457 = vmatprep.subr.bf16.mxu0 %v8617_v7  ;;  %7629 = vmatprep.subr.bf16.mxu1 %v8619_v45  ;;  %v12295_v7 = vld [vmem:[%s12637_s1 + $0x1bf8] sm:$0xff] }
 0x3c5   :  { %7447 = vmatmul.mubr.bf16.vlgmr.msra.gmra.mrb[12].mxu0 %v9731_v43  ;;  %7619 = vmatmul.mubr.bf16.vlgmr.msra.gmra.mrb[12].mxu1 %v9731_v43  ;;  %v851_v43 = vld [vmem:[%s12637_s1 + $0x19b8] sm:$0xff] }
 0x3c6   :  { %7458 = vmatpush1.bf16.msra.mxu0 %v8616_v10  ;;  %7630 = vmatpush1.bf16.msra.mxu1 %v8618_v11  ;;  %v8667_v32 = vcombine.high %v851_v43, %v859_v15  ;;  %v8666_v40 = vcombine.low %v851_v43, %v859_v15 }
 0x3c7   :  { %7459 = vmatprep.subr.bf16.mxu0 %v8633_v12  ;;  %7631 = vmatprep.subr.bf16.mxu1 %v8635_v13  ;;  %v8714_v12 = vcombine.low %v12259_v60, %v12264_v61  ;;  %v8728_v13 = vcombine.low %v12275_v27, %v12280_v0  ;;  %v947_v61 = vld [vmem:[%s12637_s1 + $0x1cb8] sm:$0xff] }
 0x3c8   :  { %7489 = vmatprep.mubr.bf16.mxu0 %v9754_v51  ;;  %7661 = vmatprep.mubr.bf16.mxu1 %v9754_v51  ;;  %v867_v51 = vld [vmem:[%s12637_s1 + $0x1a38] sm:$0xff] }
 0x3c9   :  { %v8683_v42 = vcombine.high %v867_v51, %v875_v39  ;;  %v8682_v50 = vcombine.low %v867_v51, %v875_v39 }
 0x3ca   :  { %7460 = vmatpush1.bf16.msra.mxu0 %v8632_v54  ;;  %7632 = vmatpush1.bf16.msra.mxu1 %v8634_v21  ;;  %v8730_v21 = vcombine.low %v12290_v5, %v12295_v7 }
 0x3cb   :  { %7461 = vmatprep.subr.bf16.mxu0 %v8649_v22  ;;  %7633 = vmatprep.subr.bf16.mxu1 %v8651_v24  ;;  %v8731_v22 = vcombine.high %v12290_v5, %v12295_v7  ;;  %v963_v5 = vld [vmem:[%s12637_s1 + $0x1d38] sm:$0xff] }
 0x3cc   :  { %v971_v7 = vld [vmem:[%s12637_s1 + $0x1d78] sm:$0xff] }
 0x3ce   :  { %7462 = vmatpush1.bf16.msra.mxu0 %v8648_v28  ;;  %7634 = vmatpush1.bf16.msra.mxu1 %v8650_v17  ;;  %v8745_v28 = vcombine.high %v12304_v8, %v12309_v35 }
 0x3cf   :  { %7463 = vmatprep.subr.bf16.mxu0 %v8665_v18  ;;  %7635 = vmatprep.subr.bf16.mxu1 %v8667_v32 }
 0x3d2   :  { %7464 = vmatpush1.bf16.msra.mxu0 %v8664_v23  ;;  %7636 = vmatpush1.bf16.msra.mxu1 %v8666_v40 }
 0x3d3   :  { %7465 = vmatprep.subr.bf16.mxu0 %v8681_v41  ;;  %7637 = vmatprep.subr.bf16.mxu1 %v8683_v42  ;;  %v931_v41 = vld [vmem:[%s12637_s1 + $0x1c38] sm:$0xff] }
 0x3d4   :  { %v939_v42 = vld [vmem:[%s12637_s1 + $0x1c78] sm:$0xff] }
 0x3d5   :  { %v8747_v56 = vcombine.high %v931_v41, %v939_v42  ;;  %v8746_v27 = vcombine.low %v931_v41, %v939_v42  ;;  %v7713_v42 = vld [vmem:[%s12642_s3 + $0x48] sm:$0xff] }
 0x3d6   :  { %7466 = vmatpush1.bf16.msra.mxu0 %v8680_v48  ;;  %7638 = vmatpush1.bf16.msra.mxu1 %v8682_v50 }
 0x3d7   :  { %7467 = vmatprep.subr.bf16.mxu0 %v8697_v52  ;;  %7639 = vmatprep.subr.bf16.mxu1 %v8699_v55 }
 0x3d8   :  { %v7147_v45 = vpop.f32.mrb[8].mxu0  ;;  %v7319_v10 = vpop.f32.mrb[8].mxu1 }
 0x3d9   :  { %v8876_v9 = vadd.f32 %v7147_v45, %v1091_v59  ;;  %v7149_v11 = vpop.f32.mrb[9].mxu0  ;;  %v8880_v16 = vadd.f32 %v7319_v10, %v1099_v58  ;;  %v7321_v53 = vpop.f32.mrb[9].mxu1  ;;  %v12388_v10 = vld [vmem:[%s12637_s1 + $0x1db0] sm:$0xff] }
 0x3da   :  { %v8877_v19 = vadd.f32 %v7149_v11, %v1095_v63  ;;  %v7151_v54 = vpop.f32.mrb[10].mxu0  ;;  %7468 = vmatpush1.bf16.msra.mxu0 %v8696_v31  ;;  %v8881_v25 = vadd.f32 %v7321_v53, %v1103_v34  ;;  %v7323_v43 = vpop.f32.mrb[10].mxu1  ;;  %7640 = vmatpush1.bf16.msra.mxu1 %v8698_v2  ;;  %v8744_v31 = vcombine.low %v12304_v8, %v12309_v35  ;;  %v962_v2 = vld [vmem:[%s12637_s1 + $0x1d30] sm:$0xff] }
 0x3db   :  { %7688 = vst [vmem:[%s12641_s5] sm:$0xff] %v8876_v9  ;;  %v7720_v24 = vmul.f32 0.5, %v8876_v9  ;;  %v8878_v26 = vadd.f32 %v7151_v54, %v1091_v59  ;;  %v7153_v15 = vpop.f32.mrb[11].mxu0  ;;  %7469 = vmatprep.subr.bf16.mxu0 %v8713_v36  ;;  %7690 = vst [vmem:[%s12641_s5 + $0x10] sm:$0xff] %v8880_v16  ;;  %v7722_v17 = vmul.f32 0.5, %v8880_v16  ;;  %v8882_v32 = vadd.f32 %v7323_v43, %v1099_v58  ;;  %v7325_v37 = vpop.f32.mrb[11].mxu1  ;;  %v954_v59 = vld [vmem:[%s12637_s1 + $0x1cf0] sm:$0xff] }
 0x3dc   :  { %7689 = vst [vmem:[%s12641_s5 + $0x8] sm:$0xff] %v8877_v19  ;;  %v7721_v18 = vmul.f32 0.5, %v8877_v19  ;;  %v8879_v33 = vadd.f32 %v7153_v15, %v1095_v63  ;;  %7641 = vmatprep.subr.bf16.mxu1 %v8715_v46  ;;  %7691 = vst [vmem:[%s12641_s5 + $0x18] sm:$0xff] %v8881_v25  ;;  %v7723_v39 = vmul.f32 0.5, %v8881_v25  ;;  %v8883_v40 = vadd.f32 %v7325_v37, %v1103_v34  ;;  %v955_v58 = vld [vmem:[%s12637_s1 + $0x1cf8] sm:$0xff]  ;;  %v970_v36 = vld [vmem:[%s12637_s1 + $0x1d70] sm:$0xff] }
 0x3dd   :  { %v7736_v51 = vmul.f32 1.442695, %v7720_v24  ;;  %7696 = vst [vmem:[%s12641_s5 + $0x40] sm:$0xff] %v8878_v26  ;;  %v7728_v23 = vmul.f32 0.5, %v8878_v26  ;;  %v7740_v44 = vmul.f32 1.442695, %v7722_v17  ;;  %v8761_v0 = vcombine.high %v946_v57, %v954_v59 }
 0x3de   :  { %v7738_v47 = vmul.f32 1.442695, %v7721_v18  ;;  %7698 = vst [vmem:[%s12641_s5 + $0x50] sm:$0xff] %v8882_v32  ;;  %v7730_v29 = vmul.f32 0.5, %v8882_v32  ;;  %7697 = vst [vmem:[%s12641_s5 + $0x48] sm:$0xff] %v8879_v33  ;;  %v7729_v30 = vmul.f32 0.5, %v8879_v33  ;;  %7470 = vmatpush1.bf16.msra.mxu0 %v8712_v38  ;;  %7642 = vmatpush1.bf16.msra.mxu1 %v8714_v12  ;;  %v8763_v34 = vcombine.high %v947_v61, %v955_v58 }
 0x3df   :  { %8988 = vpow2.f32 %v7736_v51  ;;  %v7742_v48 = vmul.f32 1.442695, %v7723_v39  ;;  %v7752_v50 = vmul.f32 1.442695, %v7728_v23  ;;  %7699 = vst [vmem:[%s12641_s5 + $0x58] sm:$0xff] %v8883_v40  ;;  %v7731_v52 = vmul.f32 0.5, %v8883_v40  ;;  %7471 = vmatprep.subr.bf16.mxu0 %v8729_v14  ;;  %7643 = vmatprep.subr.bf16.mxu1 %v8731_v22 }
 0x3e0   :  { %8990 = vpow2.f32 %v7740_v44  ;;  %v7756_v55 = vmul.f32 1.442695, %v7730_v29  ;;  %v7754_v60 = vmul.f32 1.442695, %v7729_v30  ;;  %v8760_v45 = vcombine.low %v946_v57, %v954_v59  ;;  %v7704_v38 = vld [vmem:[%s12642_s3] sm:$0xff]  ;;  %v7706_v35 = vld [vmem:[%s12642_s3 + $0x10] sm:$0xff] }
 0x3e1   :  { %8992 = vpow2.f32 %v7738_v47  ;;  %v7758_v63 = vmul.f32 1.442695, %v7731_v52  ;;  %v8762_v46 = vcombine.low %v947_v61, %v955_v58  ;;  %v8777_v8 = vcombine.high %v962_v2, %v970_v36  ;;  %v12393_v11 = vld [vmem:[%s12637_s1 + $0x1df0] sm:$0xff]  ;;  %v12401_v14 = vld [vmem:[%s12637_s1 + $0x1db8] sm:$0xff]  ;;  %v7712_v25 = vld [vmem:[%s12642_s3 + $0x40] sm:$0xff] }
 0x3e2   :  { %8994 = vpow2.f32 %v7742_v48  ;;  %7472 = vmatpush1.bf16.msra.mxu0 %v8728_v13  ;;  %7644 = vmatpush1.bf16.msra.mxu1 %v8730_v21  ;;  %v8779_v9 = vcombine.high %v963_v5, %v971_v7  ;;  %v7705_v13 = vld [vmem:[%s12642_s3 + $0x8] sm:$0xff]  ;;  %v12406_v16 = vld [vmem:[%s12637_s1 + $0x1df8] sm:$0xff]  ;;  %v8776_v21 = vcombine.low %v962_v2, %v970_v36  ;;  %v8778_v26 = vcombine.low %v963_v5, %v971_v7  ;;  %v7714_v32 = vld [vmem:[%s12642_s3 + $0x50] sm:$0xff] }
 0x3e3   :  { %8996 = vpow2.f32 %v7752_v50  ;;  %7473 = vmatprep.subr.bf16.mxu0 %v8745_v28  ;;  %7645 = vmatprep.subr.bf16.mxu1 %v8747_v56  ;;  %v7707_v54 = vld [vmem:[%s12642_s3 + $0x18] sm:$0xff]  ;;  %v8793_v43 = vcombine.high %v12388_v10, %v12393_v11  ;;  %v9021_v28 = vld [vmem:[%s12640_s4] sm:$0xff]  ;;  %v8795_v33 = vcombine.high %v12401_v14, %v12406_v16  ;;  %v994_v37 = vld [vmem:[%s12637_s1 + $0x1e30] sm:$0xff]  ;;  %v8794_v56 = vcombine.low %v12401_v14, %v12406_v16 }
 0x3e4   :  { %8998 = vpow2.f32 %v7756_v55  ;;  %v1002_v51 = vld [vmem:[%s12637_s1 + $0x1e70] sm:$0xff]  ;;  %v995_v44 = vld [vmem:[%s12637_s1 + $0x1e38] sm:$0xff]  ;;  %v9023_v30 = vld [vmem:[%s12640_s4 + $0x8] sm:$0xff]  ;;  %v8792_v55 = vcombine.low %v12388_v10, %v12393_v11 }
 0x3e5   :  { %9000 = vpow2.f32 %v7754_v60  ;;  %v9022_v23 = vld [vmem:[%s12640_s4 + $0x10] sm:$0xff]  ;;  %v1003_v47 = vld [vmem:[%s12637_s1 + $0x1e78] sm:$0xff]  ;;  %v8809_v58 = vcombine.high %v994_v37, %v1002_v51 }
 0x3e6   :  { %9002 = vpow2.f32 %v7758_v63  ;;  %7474 = vmatpush1.bf16.msra.mxu0 %v8744_v31  ;;  %7646 = vmatpush1.bf16.msra.mxu1 %v8746_v27  ;;  %v7715_v52 = vld [vmem:[%s12642_s3 + $0x58] sm:$0xff]  ;;  %v9025_v31 = vld [vmem:[%s12640_s4 + $0x40] sm:$0xff]  ;;  %v1010_v2 = vld [vmem:[%s12637_s1 + $0x1eb0] sm:$0xff] }
 0x3e7   :  { %7475 = vmatprep.subr.bf16.mxu0 %v8761_v0  ;;  %7647 = vmatprep.subr.bf16.mxu1 %v8763_v34  ;;  %v9024_v59 = vld [vmem:[%s12640_s4 + $0x18] sm:$0xff]  ;;  %v8811_v34 = vcombine.high %v995_v44, %v1003_v47  ;;  %v1018_v36 = vld [vmem:[%s12637_s1 + $0x1ef0] sm:$0xff] }
 0x3e8   :  { %v9026_v5 = vld [vmem:[%s12640_s4 + $0x50] sm:$0xff]  ;;  %v9028_v10 = vld [vmem:[%s12640_s4 + $0x58] sm:$0xff] }
 0x3e9   :  { %v8989_v12 = vpop.eup %8988  ;;  %v1026_v16 = vld [vmem:[%s12637_s1 + $0x1f30] sm:$0xff] }
 0x3ea   :  { %v8991_v19 = vpop.eup %8990  ;;  %v7768_v53 = vmul.f32 %v8989_v12, %v7704_v38  ;;  %7476 = vmatpush1.bf16.msra.mxu0 %v8760_v45  ;;  %7648 = vmatpush1.bf16.msra.mxu1 %v8762_v46  ;;  %v1011_v38 = vld [vmem:[%s12637_s1 + $0x1eb8] sm:$0xff]  ;;  %v8810_v12 = vcombine.low %v995_v44, %v1003_v47 }
 0x3eb   :  { %v8993_v22 = vpop.eup %8992  ;;  %v7770_v24 = vmul.f32 %v8991_v19, %v7706_v35  ;;  %7477 = vmatprep.subr.bf16.mxu0 %v8777_v8  ;;  %7649 = vmatprep.subr.bf16.mxu1 %v8779_v9  ;;  %v1019_v46 = vld [vmem:[%s12637_s1 + $0x1ef8] sm:$0xff]  ;;  %v9027_v8 = vld [vmem:[%s12640_s4 + $0x48] sm:$0xff]  ;;  %v8808_v9 = vcombine.low %v994_v37, %v1002_v51  ;;  %v1034_v19 = vld [vmem:[%s12637_s1 + $0x1f70] sm:$0xff] }
 0x3ec   :  { %v8995_v15 = vpop.eup %8994  ;;  %v7784_v17 = vadd.f32 %v9021_v28, %v7768_v53  ;;  %v7769_v18 = vmul.f32 %v8993_v22, %v7705_v13  ;;  %v8825_v13 = vcombine.high %v1010_v2, %v1018_v36  ;;  %v8827_v14 = vcombine.high %v1011_v38, %v1019_v46  ;;  %v1027_v53 = vld [vmem:[%s12637_s1 + $0x1f38] sm:$0xff] }
 0x3ed   :  { %v8997_v39 = vpop.eup %8996  ;;  %v7786_v40 = vadd.f32 %v9022_v23, %v7770_v24  ;;  %v7771_v41 = vmul.f32 %v8995_v15, %v7707_v54  ;;  %v1035_v54 = vld [vmem:[%s12637_s1 + $0x1f78] sm:$0xff]  ;;  %v8826_v22 = vcombine.low %v1011_v38, %v1019_v46  ;;  %v8841_v24 = vcombine.high %v1026_v16, %v1034_v19  ;;  %v7708_v38 = vld [vmem:[%s12642_s3 + $0x20] sm:$0xff]  ;;  %v7710_v46 = vld [vmem:[%s12642_s3 + $0x30] sm:$0xff] }
 0x3ee   :  { %v8999_v29 = vpop.eup %8998  ;;  %7800 = vst [vmem:[%s12643_s6] sm:$0xff] %v7784_v17  ;;  %v7785_v48 = vadd.f32 %v9023_v30, %v7769_v18  ;;  %v7776_v50 = vmul.f32 %v8997_v39, %v7712_v25  ;;  %7478 = vmatpush1.bf16.msra.mxu0 %v8776_v21  ;;  %7650 = vmatpush1.bf16.msra.mxu1 %v8778_v26  ;;  %v1042_v26 = vld [vmem:[%s12637_s1 + $0x1fb0] sm:$0xff]  ;;  %v1043_v15 = vld [vmem:[%s12637_s1 + $0x1fb8] sm:$0xff] }
 0x3ef   :  { %v9001_v57 = vpop.eup %9000  ;;  %7802 = vst [vmem:[%s12643_s6 + $0x10] sm:$0xff] %v7786_v40  ;;  %v7787_v60 = vadd.f32 %v9024_v59, %v7771_v41  ;;  %v7778_v61 = vmul.f32 %v8999_v29, %v7714_v32  ;;  %7479 = vmatprep.subr.bf16.mxu0 %v8793_v43  ;;  %7651 = vmatprep.subr.bf16.mxu1 %v8795_v33  ;;  %v1050_v43 = vld [vmem:[%s12637_s1 + $0x1ff0] sm:$0xff]  ;;  %v1051_v28 = vld [vmem:[%s12637_s1 + $0x1ff8] sm:$0xff] }
 0x3f0   :  { %v9003_v63 = vpop.eup %9002  ;;  %7801 = vst [vmem:[%s12643_s6 + $0x8] sm:$0xff] %v7785_v48  ;;  %v7792_v27 = vadd.f32 %v9025_v31, %v7776_v50  ;;  %v7777_v0 = vmul.f32 %v9001_v57, %v7713_v42  ;;  %v8824_v21 = vcombine.low %v1010_v2, %v1018_v36  ;;  %v8843_v25 = vcombine.high %v1027_v53, %v1035_v54 }
 0x3f1   :  { %7803 = vst [vmem:[%s12643_s6 + $0x18] sm:$0xff] %v7787_v60  ;;  %v7794_v7 = vadd.f32 %v9026_v5, %v7778_v61  ;;  %v7779_v45 = vmul.f32 %v9003_v63, %v7715_v52  ;;  %v8840_v17 = vcombine.low %v1026_v16, %v1034_v19  ;;  %v8842_v18 = vcombine.low %v1027_v53, %v1035_v54  ;;  %v9029_v19 = vld [vmem:[%s12640_s4 + $0x20] sm:$0xff] }
 0x3f2   :  { %7808 = vst [vmem:[%s12643_s6 + $0x40] sm:$0xff] %v7792_v27  ;;  %v7793_v35 = vadd.f32 %v9027_v8, %v7777_v0  ;;  %7480 = vmatpush1.bf16.msra.mxu0 %v8792_v55  ;;  %7652 = vmatpush1.bf16.msra.mxu1 %v8794_v56  ;;  %v8857_v32 = vcombine.high %v1042_v26, %v1050_v43 }
 0x3f3   :  { %7810 = vst [vmem:[%s12643_s6 + $0x50] sm:$0xff] %v7794_v7  ;;  %v7795_v11 = vadd.f32 %v9028_v10, %v7779_v45  ;;  %7481 = vmatprep.subr.bf16.mxu0 %v8809_v58  ;;  %7653 = vmatprep.subr.bf16.mxu1 %v8811_v34  ;;  %v8859_v33 = vcombine.high %v1043_v15, %v1051_v28 }
 0x3f4   :  { %7809 = vst [vmem:[%s12643_s6 + $0x48] sm:$0xff] %v7793_v35  ;;  %v8856_v37 = vcombine.low %v1042_v26, %v1050_v43  ;;  %v8858_v51 = vcombine.low %v1043_v15, %v1051_v28  ;;  %v1107_v39 = vrot.slane %v12241_v49, %v1074_v62  ;;  %v1115_v23 = vrot.slane %v12241_v49, %v1082_v3  ;;  %v7709_v35 = vld [vmem:[%s12642_s3 + $0x28] sm:$0xff] }
 0x3f5   :  { %7811 = vst [vmem:[%s12643_s6 + $0x58] sm:$0xff] %v7795_v11  ;;  %v1111_v40 = vrot.slane %v12241_v49, %v1078_v4  ;;  %v1119_v41 = vrot.slane %v12241_v49, %v1086_v6  ;;  %v7711_v11 = vld [vmem:[%s12642_s3 + $0x38] sm:$0xff]  ;;  %v7717_v43 = vld [vmem:[%s12642_s3 + $0x68] sm:$0xff] }
 0x3f6   :  { %7482 = vmatpush1.bf16.msra.mxu0 %v8808_v9  ;;  %7654 = vmatpush1.bf16.msra.mxu1 %v8810_v12  ;;  %v9031_v28 = vld [vmem:[%s12640_s4 + $0x28] sm:$0xff] }
 0x3f7   :  { %7483 = vmatprep.subr.bf16.mxu0 %v8825_v13  ;;  %7655 = vmatprep.subr.bf16.mxu1 %v8827_v14  ;;  %v7716_v14 = vld [vmem:[%s12642_s3 + $0x60] sm:$0xff] }
 0x3fa   :  { %7484 = vmatpush1.bf16.msra.mxu0 %v8824_v21  ;;  %7656 = vmatpush1.bf16.msra.mxu1 %v8826_v22  ;;  %v7718_v21 = vld [vmem:[%s12642_s3 + $0x70] sm:$0xff] }
 0x3fb   :  { %7485 = vmatprep.subr.bf16.mxu0 %v8841_v24  ;;  %7657 = vmatprep.subr.bf16.mxu1 %v8843_v25  ;;  %v9030_v24 = vld [vmem:[%s12640_s4 + $0x30] sm:$0xff] }
 0x3fe   :  { %7486 = vmatpush1.bf16.msra.mxu0 %v8840_v17  ;;  %7658 = vmatpush1.bf16.msra.mxu1 %v8842_v18 }
 0x3ff   :  { %7487 = vmatprep.subr.bf16.mxu0 %v8857_v32  ;;  %7659 = vmatprep.subr.bf16.mxu1 %v8859_v33  ;;  %v7719_v32 = vld [vmem:[%s12642_s3 + $0x78] sm:$0xff] }
 0x402   :  { %7488 = vmatpush1.bf16.msra.mxu0 %v8856_v37  ;;  %7660 = vmatpush1.bf16.msra.mxu1 %v8858_v51  ;;  %v9032_v37 = vld [vmem:[%s12640_s4 + $0x38] sm:$0xff] }
 0x405   :  { %7490 = vmatmul.mubr.bf16.vlgmr.msra.gmra.mrb[12].mxu0 %v9942_v1  ;;  %7662 = vmatmul.mubr.bf16.vlgmr.msra.gmra.mrb[12].mxu1 %v9942_v1 }
 0x4d8   :  { %v7491_v42 = vpop.f32.mrb[12].mxu0  ;;  %v7663_v47 = vpop.f32.mrb[12].mxu1 }
 0x4d9   :  { %v8884_v44 = vadd.f32 %v7491_v42, %v1107_v39  ;;  %v7493_v1 = vpop.f32.mrb[13].mxu0  ;;  %v8888_v29 = vadd.f32 %v7663_v47, %v1115_v23  ;;  %v7665_v48 = vpop.f32.mrb[13].mxu1 }
 0x4da   :  { %v8885_v30 = vadd.f32 %v7493_v1, %v1111_v40  ;;  %v7495_v62 = vpop.f32.mrb[14].mxu0  ;;  %v8889_v50 = vadd.f32 %v7665_v48, %v1119_v41  ;;  %v7667_v4 = vpop.f32.mrb[14].mxu1  ;;  %v9036_v48 = vld [vmem:[%s12640_s4 + $0x78] sm:$0xff] }
 0x4db   :  { %7692 = vst [vmem:[%s12641_s5 + $0x20] sm:$0xff] %v8884_v44  ;;  %v7724_v3 = vmul.f32 0.5, %v8884_v44  ;;  %v8886_v52 = vadd.f32 %v7495_v62, %v1107_v39  ;;  %v7497_v55 = vpop.f32.mrb[15].mxu0  ;;  %7694 = vst [vmem:[%s12641_s5 + $0x30] sm:$0xff] %v8888_v29  ;;  %v7726_v20 = vmul.f32 0.5, %v8888_v29  ;;  %v8890_v49 = vadd.f32 %v7667_v4, %v1115_v23  ;;  %v7669_v57 = vpop.f32.mrb[15].mxu1 }
 0x4dc   :  { %7693 = vst [vmem:[%s12641_s5 + $0x28] sm:$0xff] %v8885_v30  ;;  %v7725_v6 = vmul.f32 0.5, %v8885_v30  ;;  %v8887_v56 = vadd.f32 %v7497_v55, %v1111_v40  ;;  %7695 = vst [vmem:[%s12641_s5 + $0x38] sm:$0xff] %v8889_v50  ;;  %v7727_v60 = vmul.f32 0.5, %v8889_v50  ;;  %v8891_v58 = vadd.f32 %v7669_v57, %v1119_v41  ;;  %v9033_v40 = vld [vmem:[%s12640_s4 + $0x60] sm:$0xff]  ;;  %v9034_v44 = vld [vmem:[%s12640_s4 + $0x70] sm:$0xff] }
 0x4dd   :  { %v7744_v59 = vmul.f32 1.442695, %v7724_v3  ;;  %7700 = vst [vmem:[%s12641_s5 + $0x60] sm:$0xff] %v8886_v52  ;;  %v7732_v61 = vmul.f32 0.5, %v8886_v52  ;;  %v7748_v63 = vmul.f32 1.442695, %v7726_v20 }
 0x4de   :  { %v7746_v31 = vmul.f32 1.442695, %v7725_v6  ;;  %7702 = vst [vmem:[%s12641_s5 + $0x70] sm:$0xff] %v8890_v49  ;;  %v7734_v27 = vmul.f32 0.5, %v8890_v49  ;;  %7701 = vst [vmem:[%s12641_s5 + $0x68] sm:$0xff] %v8887_v56  ;;  %v7733_v0 = vmul.f32 0.5, %v8887_v56 }
 0x4df   :  { %9004 = vpow2.f32 %v7744_v59  ;;  %v7750_v34 = vmul.f32 1.442695, %v7727_v60  ;;  %v7760_v2 = vmul.f32 1.442695, %v7732_v61  ;;  %7703 = vst [vmem:[%s12641_s5 + $0x78] sm:$0xff] %v8891_v58  ;;  %v7735_v36 = vmul.f32 0.5, %v8891_v58 }
 0x4e0   :  { %9006 = vpow2.f32 %v7748_v63  ;;  %v7764_v5 = vmul.f32 1.442695, %v7734_v27  ;;  %v7762_v7 = vmul.f32 1.442695, %v7733_v0  ;;  %v9035_v29 = vld [vmem:[%s12640_s4 + $0x68] sm:$0xff] }
 0x4e1   :  { %9008 = vpow2.f32 %v7746_v31  ;;  %v7766_v45 = vmul.f32 1.442695, %v7735_v36 }
 0x4e2   :  { %9010 = vpow2.f32 %v7750_v34 }
 0x4e3   :  { %9012 = vpow2.f32 %v7760_v2 }
 0x4e4   :  { %9014 = vpow2.f32 %v7764_v5 }
 0x4e5   :  { %9016 = vpow2.f32 %v7762_v7 }
 0x4e6   :  { %9018 = vpow2.f32 %v7766_v45 }
 0x4e9   :  { %v9005_v8 = vpop.eup %9004 }
 0x4ea   :  { %v9007_v9 = vpop.eup %9006  ;;  %v7772_v10 = vmul.f32 %v9005_v8, %v7708_v38 }
 0x4eb   :  { %v9009_v12 = vpop.eup %9008  ;;  %v7774_v13 = vmul.f32 %v9007_v9, %v7710_v46 }
 0x4ec   :  { %v9011_v16 = vpop.eup %9010  ;;  %v7788_v53 = vadd.f32 %v9029_v19, %v7772_v10  ;;  %v7773_v54 = vmul.f32 %v9009_v12, %v7709_v35 }
 0x4ed   :  { %v9013_v22 = vpop.eup %9012  ;;  %v7790_v25 = vadd.f32 %v9030_v24, %v7774_v13  ;;  %v7775_v26 = vmul.f32 %v9011_v16, %v7711_v11 }
 0x4ee   :  { %v9015_v15 = vpop.eup %9014  ;;  %7804 = vst [vmem:[%s12643_s6 + $0x20] sm:$0xff] %v7788_v53  ;;  %v7789_v17 = vadd.f32 %v9031_v28, %v7773_v54  ;;  %v7780_v18 = vmul.f32 %v9013_v22, %v7716_v14 }
 0x4ef   :  { %v9017_v33 = vpop.eup %9016  ;;  %7806 = vst [vmem:[%s12643_s6 + $0x30] sm:$0xff] %v7790_v25  ;;  %v7791_v51 = vadd.f32 %v9032_v37, %v7775_v26  ;;  %v7782_v39 = vmul.f32 %v9015_v15, %v7718_v21 }
 0x4f0   :  { %v9019_v23 = vpop.eup %9018  ;;  %7805 = vst [vmem:[%s12643_s6 + $0x28] sm:$0xff] %v7789_v17  ;;  %v7796_v41 = vadd.f32 %v9033_v40, %v7780_v18  ;;  %v7781_v42 = vmul.f32 %v9017_v33, %v7717_v43 }
 0x4f1   :  { %7807 = vst [vmem:[%s12643_s6 + $0x38] sm:$0xff] %v7791_v51  ;;  %v7798_v47 = vadd.f32 %v9034_v44, %v7782_v39  ;;  %v7783_v1 = vmul.f32 %v9019_v23, %v7719_v32 }
 0x4f2   :  { %7812 = vst [vmem:[%s12643_s6 + $0x60] sm:$0xff] %v7796_v41  ;;  %v7797_v30 = vadd.f32 %v9035_v29, %v7781_v42 }
 0x4f3   :  { %7814 = vst [vmem:[%s12643_s6 + $0x70] sm:$0xff] %v7798_v47  ;;  %v7799_v62 = vadd.f32 %v9036_v48, %v7783_v1 }
 0x4f4   :  { %7813 = vst [vmem:[%s12643_s6 + $0x68] sm:$0xff] %v7797_v30 }
 0x4f5   :  { %7815 = vst [vmem:[%s12643_s6 + $0x78] sm:$0xff] %v7799_v62 }

// kernel: vae_reset_forward.17
= control target key start
LH: loop header
LB: loop body
LE: loop exit
PB: predicated region body
PF: predicated region fallthrough
CT: control target
= control target key end

     0   :  { %s1722_s1 = inlined_call_operand.vmem [shape: bf16[128,128], index: 1, kind: input, shape index: {}]   ;;  %s1723_s0 = inlined_call_operand.vmem [shape: bf16[512,128], index: 0, kind: input, shape index: {}]   ;;  %s1724_s2 = inlined_call_operand.vmem [shape: f32[1,128], index: 2, kind: input, shape index: {}]   ;;  %s1725_s3 = inlined_call_operand.vmem [shape: f32[1,128], index: 3, kind: input, shape index: {}]   ;;  %s1726_s4 = inlined_call_operand.vmem [shape: f32[512,128], index: 4, kind: output, shape index: {}]  }
   0x1   :  { %v1079_v0 = vld [vmem:[%s1722_s1] sm:$0xff]   ;;  %v1080_v1 = vld [vmem:[%s1722_s1 + $0x8] sm:$0xff]   ;;  %v1081_v2 = vld [vmem:[%s1722_s1 + $0x10] sm:$0xff]  }
   0x2   :  { %983 = vmatprep.subr.bf16.mxu0 %v1079_v0  ;;  %1063 = vmatprep.subr.bf16.mxu1 %v1079_v0  ;;  %v1082_v3 = vld [vmem:[%s1722_s1 + $0x18] sm:$0xff]   ;;  %v1087_v4 = vld [vmem:[%s1723_s0] sm:$0xff]   ;;  %v1084_v7 = vld [vmem:[%s1722_s1 + $0x28] sm:$0xff]  }
   0x3   :  { %984 = vmatpush3.bf16.msra.mxu0 %v1079_v0  ;;  %1071 = vmatpush3.bf16.msra.mxu1 %v1079_v0  ;;  %v1088_v5 = vld [vmem:[%s1723_s0 + $0x80] sm:$0xff]   ;;  %v1085_v8 = vld [vmem:[%s1722_s1 + $0x30] sm:$0xff]   ;;  %v1086_v9 = vld [vmem:[%s1722_s1 + $0x38] sm:$0xff]  }
   0x4   :  { %985 = vmatprep.subr.bf16.mxu0 %v1080_v1  ;;  %1064 = vmatprep.subr.bf16.mxu1 %v1080_v1  ;;  %v1083_v6 = vld [vmem:[%s1722_s1 + $0x20] sm:$0xff]   ;;  %v1089_v10 = vld [vmem:[%s1723_s0 + $0x8] sm:$0xff]   ;;  %v1091_v12 = vld [vmem:[%s1723_s0 + $0x10] sm:$0xff]  }
   0x5   :  { %999 = vmatprep.mubr.bf16.mxu0 %v1087_v4  ;;  %1031 = vmatprep.mubr.bf16.mxu1 %v1088_v5  ;;  %v1090_v11 = vld [vmem:[%s1723_s0 + $0x88] sm:$0xff]   ;;  %v1092_v13 = vld [vmem:[%s1723_s0 + $0x90] sm:$0xff]   ;;  %v1093_v14 = vld [vmem:[%s1723_s0 + $0x18] sm:$0xff]  }
   0x6   :  { %v1094_v15 = vld [vmem:[%s1723_s0 + $0x98] sm:$0xff]   ;;  %v1095_v16 = vld [vmem:[%s1723_s0 + $0x20] sm:$0xff]   ;;  %v1097_v18 = vld [vmem:[%s1723_s0 + $0x28] sm:$0xff]  }
   0x7   :  { %986 = vmatpush3.bf16.msra.mxu0 %v1080_v1  ;;  %1072 = vmatpush3.bf16.msra.mxu1 %v1080_v1  ;;  %v1096_v17 = vld [vmem:[%s1723_s0 + $0xa0] sm:$0xff]   ;;  %v1098_v19 = vld [vmem:[%s1723_s0 + $0xa8] sm:$0xff]   ;;  %v1099_v20 = vld [vmem:[%s1723_s0 + $0x30] sm:$0xff]  }
   0x8   :  { %987 = vmatprep.subr.bf16.mxu0 %v1081_v2  ;;  %1065 = vmatprep.subr.bf16.mxu1 %v1081_v2  ;;  %v1100_v21 = vld [vmem:[%s1723_s0 + $0xb0] sm:$0xff]   ;;  %v1101_v22 = vld [vmem:[%s1723_s0 + $0x38] sm:$0xff]   ;;  %v1103_v24 = vld [vmem:[%s1723_s0 + $0x40] sm:$0xff]  }
   0x9   :  { %v1102_v23 = vld [vmem:[%s1723_s0 + $0xb8] sm:$0xff]   ;;  %v1104_v25 = vld [vmem:[%s1723_s0 + $0xc0] sm:$0xff]   ;;  %v1105_v26 = vld [vmem:[%s1723_s0 + $0x48] sm:$0xff]  }
   0xa   :  { %v1106_v27 = vld [vmem:[%s1723_s0 + $0xc8] sm:$0xff]   ;;  %v1107_v28 = vld [vmem:[%s1723_s0 + $0x50] sm:$0xff]   ;;  %v1109_v30 = vld [vmem:[%s1723_s0 + $0x58] sm:$0xff]  }
   0xb   :  { %988 = vmatpush3.bf16.msra.mxu0 %v1081_v2  ;;  %1073 = vmatpush3.bf16.msra.mxu1 %v1081_v2  ;;  %v1108_v29 = vld [vmem:[%s1723_s0 + $0xd0] sm:$0xff]   ;;  %v1110_v31 = vld [vmem:[%s1723_s0 + $0xd8] sm:$0xff]   ;;  %v1111_v32 = vld [vmem:[%s1723_s0 + $0x60] sm:$0xff]  }
   0xc   :  { %989 = vmatprep.subr.bf16.mxu0 %v1082_v3  ;;  %1066 = vmatprep.subr.bf16.mxu1 %v1082_v3  ;;  %v1112_v33 = vld [vmem:[%s1723_s0 + $0xe0] sm:$0xff]   ;;  %v1113_v34 = vld [vmem:[%s1723_s0 + $0x68] sm:$0xff]   ;;  %v1115_v36 = vld [vmem:[%s1723_s0 + $0x70] sm:$0xff]  }
   0xd   :  { %v1114_v35 = vld [vmem:[%s1723_s0 + $0xe8] sm:$0xff]   ;;  %v1116_v37 = vld [vmem:[%s1723_s0 + $0xf0] sm:$0xff]   ;;  %v1117_v38 = vld [vmem:[%s1723_s0 + $0x78] sm:$0xff]  }
   0xe   :  { %v1118_v39 = vld [vmem:[%s1723_s0 + $0xf8] sm:$0xff]   ;;  %v1395_v40 = vld [vmem:[%s1724_s2] ss:$0 sm:$0xff] }
   0xf   :  { %990 = vmatpush3.bf16.msra.mxu0 %v1082_v3  ;;  %1074 = vmatpush3.bf16.msra.mxu1 %v1082_v3  ;;  %v1400_v42 = vld [vmem:[%s1725_s3] ss:$0 sm:$0xff] }
  0x10   :  { %991 = vmatprep.subr.bf16.mxu0 %v1083_v6  ;;  %1067 = vmatprep.subr.bf16.mxu1 %v1083_v6 }
  0x13   :  { %992 = vmatpush3.bf16.msra.mxu0 %v1083_v6  ;;  %1075 = vmatpush3.bf16.msra.mxu1 %v1083_v6 }
  0x14   :  { %993 = vmatprep.subr.bf16.mxu0 %v1084_v7  ;;  %1068 = vmatprep.subr.bf16.mxu1 %v1084_v7 }
  0x17   :  { %994 = vmatpush3.bf16.msra.mxu0 %v1084_v7  ;;  %1076 = vmatpush3.bf16.msra.mxu1 %v1084_v7 }
  0x18   :  { %995 = vmatprep.subr.bf16.mxu0 %v1085_v8  ;;  %1069 = vmatprep.subr.bf16.mxu1 %v1085_v8 }
  0x1b   :  { %996 = vmatpush3.bf16.msra.mxu0 %v1085_v8  ;;  %1077 = vmatpush3.bf16.msra.mxu1 %v1085_v8 }
  0x1c   :  { %997 = vmatprep.subr.bf16.mxu0 %v1086_v9  ;;  %1070 = vmatprep.subr.bf16.mxu1 %v1086_v9 }
  0x1f   :  { %998 = vmatpush3.bf16.msra.mxu0 %v1086_v9  ;;  %1078 = vmatpush3.bf16.msra.mxu1 %v1086_v9 }
  0x22   :  { %1000 = vmatmul.mubr.bf16.vlgmr.msra.gmra.mrb[0].mxu0 %v1089_v10  ;;  %1032 = vmatmul.mubr.bf16.vlgmr.msra.gmra.mrb[0].mxu1 %v1090_v11 }
  0x23   :  { %1003 = vmatprep.mubr.bf16.mxu0 %v1091_v12  ;;  %1035 = vmatprep.mubr.bf16.mxu1 %v1092_v13 }
  0x2a   :  { %1004 = vmatmul.mubr.bf16.gmra.mrb[4].mxu0 %v1093_v14  ;;  %1036 = vmatmul.mubr.bf16.gmra.mrb[4].mxu1 %v1094_v15 }
  0x2b   :  { %1007 = vmatprep.mubr.bf16.mxu0 %v1095_v16  ;;  %1039 = vmatprep.mubr.bf16.mxu1 %v1096_v17 }
  0x32   :  { %1008 = vmatmul.mubr.bf16.gmra.mrb[8].mxu0 %v1097_v18  ;;  %1040 = vmatmul.mubr.bf16.gmra.mrb[8].mxu1 %v1098_v19 }
  0x33   :  { %1011 = vmatprep.mubr.bf16.mxu0 %v1099_v20  ;;  %1043 = vmatprep.mubr.bf16.mxu1 %v1100_v21 }
  0x3a   :  { %1012 = vmatmul.mubr.bf16.gmra.mrb[12].mxu0 %v1101_v22  ;;  %1044 = vmatmul.mubr.bf16.gmra.mrb[12].mxu1 %v1102_v23 }
  0x3b   :  { %1015 = vmatprep.mubr.bf16.mxu0 %v1103_v24  ;;  %1047 = vmatprep.mubr.bf16.mxu1 %v1104_v25 }
  0x42   :  { %1016 = vmatmul.mubr.bf16.gmra.mrb[16].mxu0 %v1105_v26  ;;  %1048 = vmatmul.mubr.bf16.gmra.mrb[16].mxu1 %v1106_v27 }
  0x43   :  { %1019 = vmatprep.mubr.bf16.mxu0 %v1107_v28  ;;  %1051 = vmatprep.mubr.bf16.mxu1 %v1108_v29 }
  0x4a   :  { %1020 = vmatmul.mubr.bf16.gmra.mrb[20].mxu0 %v1109_v30  ;;  %1052 = vmatmul.mubr.bf16.gmra.mrb[20].mxu1 %v1110_v31 }
  0x4b   :  { %1023 = vmatprep.mubr.bf16.mxu0 %v1111_v32  ;;  %1055 = vmatprep.mubr.bf16.mxu1 %v1112_v33 }
  0x52   :  { %1024 = vmatmul.mubr.bf16.gmra.mrb[24].mxu0 %v1113_v34  ;;  %1056 = vmatmul.mubr.bf16.gmra.mrb[24].mxu1 %v1114_v35 }
  0x53   :  { %1027 = vmatprep.mubr.bf16.mxu0 %v1115_v36  ;;  %1059 = vmatprep.mubr.bf16.mxu1 %v1116_v37 }
  0x5a   :  { %1028 = vmatmul.mubr.bf16.gmra.mrb[28].mxu0 %v1117_v38  ;;  %1060 = vmatmul.mubr.bf16.gmra.mrb[28].mxu1 %v1118_v39 }
  0xf5   :  { %v1001_v41 = vpop.f32.mrb[0].mxu0  ;;  %v1033_v43 = vpop.f32.mrb[0].mxu1 }
  0xf6   :  { %v636_v44 = vmul.f32 %v1001_v41, %v1395_v40  ;;  %v668_v45 = vmul.f32 %v1033_v43, %v1395_v40  ;;  %v372_v46 = vpop.f32.mrb[1].mxu0  ;;  %v500_v47 = vpop.f32.mrb[1].mxu1 }
  0xf7   :  { %v634_v48 = vmul.f32 %v1395_v40, %v372_v46  ;;  %v666_v49 = vmul.f32 %v1395_v40, %v500_v47  ;;  %v1002_v50 = vpop.f32.mrb[2].mxu0  ;;  %v1034_v51 = vpop.f32.mrb[2].mxu1 }
  0xf8   :  { %v707_v52 = vadd.f32 %v1400_v42, %v636_v44  ;;  %v739_v53 = vadd.f32 %v1400_v42, %v668_v45  ;;  %v637_v54 = vmul.f32 %v1002_v50, %v1395_v40  ;;  %v669_v55 = vmul.f32 %v1034_v51, %v1395_v40  ;;  %v375_v56 = vpop.f32.mrb[3].mxu0  ;;  %v503_v57 = vpop.f32.mrb[3].mxu1 }
  0xf9   :  { %v705_v58 = vadd.f32 %v1400_v42, %v634_v48  ;;  %v737_v59 = vadd.f32 %v1400_v42, %v666_v49  ;;  %v635_v60 = vmul.f32 %v1395_v40, %v375_v56  ;;  %v667_v61 = vmul.f32 %v1395_v40, %v503_v57 }
  0xfa   :  { %1119 = vtanh.f32 %v707_v52  ;;  %v708_v62 = vadd.f32 %v1400_v42, %v637_v54  ;;  %v740_v63 = vadd.f32 %v1400_v42, %v669_v55 }
  0xfb   :  { %1121 = vtanh.f32 %v739_v53  ;;  %v706_v0 = vadd.f32 %v1400_v42, %v635_v60  ;;  %v738_v1 = vadd.f32 %v1400_v42, %v667_v61 }
  0xfc   :  { %1123 = vtanh.f32 %v705_v58 }
  0xfd   :  { %1125 = vtanh.f32 %v737_v59  ;;  %v1005_v2 = vpop.f32.mrb[4].mxu0  ;;  %v1037_v3 = vpop.f32.mrb[4].mxu1 }
  0xfe   :  { %1127 = vtanh.f32 %v708_v62  ;;  %v640_v4 = vmul.f32 %v1005_v2, %v1395_v40  ;;  %v672_v5 = vmul.f32 %v1037_v3, %v1395_v40  ;;  %v388_v6 = vpop.f32.mrb[5].mxu0  ;;  %v516_v7 = vpop.f32.mrb[5].mxu1 }
  0xff   :  { %1129 = vtanh.f32 %v740_v63  ;;  %v638_v8 = vmul.f32 %v1395_v40, %v388_v6  ;;  %v670_v9 = vmul.f32 %v1395_v40, %v516_v7  ;;  %v1006_v10 = vpop.f32.mrb[6].mxu0  ;;  %v1038_v11 = vpop.f32.mrb[6].mxu1 }
 0x100   :  { %1131 = vtanh.f32 %v706_v0  ;;  %v711_v12 = vadd.f32 %v1400_v42, %v640_v4  ;;  %v743_v13 = vadd.f32 %v1400_v42, %v672_v5  ;;  %v641_v14 = vmul.f32 %v1006_v10, %v1395_v40  ;;  %v391_v15 = vpop.f32.mrb[7].mxu0  ;;  %v519_v16 = vpop.f32.mrb[7].mxu1 }
 0x101   :  { %1133 = vtanh.f32 %v738_v1  ;;  %v709_v17 = vadd.f32 %v1400_v42, %v638_v8  ;;  %v741_v18 = vadd.f32 %v1400_v42, %v670_v9  ;;  %v673_v19 = vmul.f32 %v1038_v11, %v1395_v40 }
 0x102   :  { %1135 = vtanh.f32 %v711_v12  ;;  %v712_v20 = vadd.f32 %v1400_v42, %v641_v14  ;;  %v639_v21 = vmul.f32 %v1395_v40, %v391_v15  ;;  %v671_v22 = vmul.f32 %v1395_v40, %v519_v16 }
 0x103   :  { %1137 = vtanh.f32 %v743_v13  ;;  %v744_v23 = vadd.f32 %v1400_v42, %v673_v19 }
 0x104   :  { %v1120_v24 = vpop.eup %1119  ;;  %1139 = vtanh.f32 %v709_v17  ;;  %v710_v25 = vadd.f32 %v1400_v42, %v639_v21  ;;  %v742_v27 = vadd.f32 %v1400_v42, %v671_v22 }
 0x105   :  { %v1122_v26 = vpop.eup %1121  ;;  %835 = vst [vmem:[%s1726_s4 + $0x10] sm:$0xff] %v1120_v24  ;;  %1141 = vtanh.f32 %v741_v18  ;;  %v1009_v28 = vpop.f32.mrb[8].mxu0 }
 0x106   :  { %v1041_v29 = vpop.f32.mrb[8].mxu1  ;;  %v1124_v30 = vpop.eup %1123  ;;  %867 = vst [vmem:[%s1726_s4 + $0x110] sm:$0xff] %v1122_v26  ;;  %1143 = vtanh.f32 %v712_v20  ;;  %v644_v31 = vmul.f32 %v1009_v28, %v1395_v40 }
 0x107   :  { %v676_v32 = vmul.f32 %v1041_v29, %v1395_v40  ;;  %v404_v33 = vpop.f32.mrb[9].mxu0  ;;  %v532_v34 = vpop.f32.mrb[9].mxu1  ;;  %833 = vst [vmem:[%s1726_s4] sm:$0xff] %v1124_v30  ;;  %1145 = vtanh.f32 %v744_v23 }
 0x108   :  { %v1126_v35 = vpop.eup %1125  ;;  %v642_v36 = vmul.f32 %v1395_v40, %v404_v33  ;;  %v674_v37 = vmul.f32 %v1395_v40, %v532_v34  ;;  %v1010_v38 = vpop.f32.mrb[10].mxu0  ;;  %1147 = vtanh.f32 %v710_v25  ;;  %v715_v43 = vadd.f32 %v1400_v42, %v644_v31 }
 0x109   :  { %v1042_v39 = vpop.f32.mrb[10].mxu1  ;;  %v1128_v41 = vpop.eup %1127  ;;  %865 = vst [vmem:[%s1726_s4 + $0x100] sm:$0xff] %v1126_v35  ;;  %v747_v44 = vadd.f32 %v1400_v42, %v676_v32  ;;  %v645_v45 = vmul.f32 %v1010_v38, %v1395_v40  ;;  %1149 = vtanh.f32 %v742_v27 }
 0x10a   :  { %v407_v46 = vpop.f32.mrb[11].mxu0  ;;  %v535_v47 = vpop.f32.mrb[11].mxu1  ;;  %836 = vst [vmem:[%s1726_s4 + $0x18] sm:$0xff] %v1128_v41  ;;  %v713_v49 = vadd.f32 %v1400_v42, %v642_v36  ;;  %v745_v50 = vadd.f32 %v1400_v42, %v674_v37  ;;  %v677_v51 = vmul.f32 %v1042_v39, %v1395_v40  ;;  %1151 = vtanh.f32 %v715_v43 }
 0x10b   :  { %v1130_v48 = vpop.eup %1129  ;;  %v716_v53 = vadd.f32 %v1400_v42, %v645_v45  ;;  %v643_v54 = vmul.f32 %v1395_v40, %v407_v46  ;;  %v675_v55 = vmul.f32 %v1395_v40, %v535_v47  ;;  %1153 = vtanh.f32 %v747_v44 }
 0x10c   :  { %v1132_v52 = vpop.eup %1131  ;;  %868 = vst [vmem:[%s1726_s4 + $0x118] sm:$0xff] %v1130_v48  ;;  %v748_v57 = vadd.f32 %v1400_v42, %v677_v51  ;;  %1155 = vtanh.f32 %v713_v49 }
 0x10d   :  { %v1134_v56 = vpop.eup %1133  ;;  %834 = vst [vmem:[%s1726_s4 + $0x8] sm:$0xff] %v1132_v52  ;;  %v714_v59 = vadd.f32 %v1400_v42, %v643_v54  ;;  %1157 = vtanh.f32 %v745_v50  ;;  %v746_v61 = vadd.f32 %v1400_v42, %v675_v55  ;;  %v1013_v62 = vpop.f32.mrb[12].mxu0 }
 0x10e   :  { %v1136_v58 = vpop.eup %1135  ;;  %866 = vst [vmem:[%s1726_s4 + $0x108] sm:$0xff] %v1134_v56  ;;  %v1045_v63 = vpop.f32.mrb[12].mxu1  ;;  %1159 = vtanh.f32 %v716_v53  ;;  %v648_v1 = vmul.f32 %v1013_v62, %v1395_v40 }
 0x10f   :  { %v1138_v60 = vpop.eup %1137  ;;  %839 = vst [vmem:[%s1726_s4 + $0x30] sm:$0xff] %v1136_v58  ;;  %v680_v2 = vmul.f32 %v1045_v63, %v1395_v40  ;;  %v420_v3 = vpop.f32.mrb[13].mxu0  ;;  %1161 = vtanh.f32 %v748_v57 }
 0x110   :  { %v1140_v0 = vpop.eup %1139  ;;  %871 = vst [vmem:[%s1726_s4 + $0x130] sm:$0xff] %v1138_v60  ;;  %v548_v4 = vpop.f32.mrb[13].mxu1  ;;  %v646_v6 = vmul.f32 %v1395_v40, %v420_v3  ;;  %1163 = vtanh.f32 %v714_v59  ;;  %v719_v11 = vadd.f32 %v1400_v42, %v648_v1 }
 0x111   :  { %v1142_v5 = vpop.eup %1141  ;;  %837 = vst [vmem:[%s1726_s4 + $0x20] sm:$0xff] %v1140_v0  ;;  %v678_v7 = vmul.f32 %v1395_v40, %v548_v4  ;;  %v1014_v8 = vpop.f32.mrb[14].mxu0  ;;  %v751_v12 = vadd.f32 %v1400_v42, %v680_v2  ;;  %1165 = vtanh.f32 %v746_v61 }
 0x112   :  { %v1046_v9 = vpop.f32.mrb[14].mxu1  ;;  %v1144_v10 = vpop.eup %1143  ;;  %869 = vst [vmem:[%s1726_s4 + $0x120] sm:$0xff] %v1142_v5  ;;  %v649_v13 = vmul.f32 %v1014_v8, %v1395_v40  ;;  %v717_v17 = vadd.f32 %v1400_v42, %v646_v6  ;;  %1167 = vtanh.f32 %v719_v11 }
 0x113   :  { %v423_v14 = vpop.f32.mrb[15].mxu0  ;;  %v551_v15 = vpop.f32.mrb[15].mxu1  ;;  %840 = vst [vmem:[%s1726_s4 + $0x38] sm:$0xff] %v1144_v10  ;;  %v749_v18 = vadd.f32 %v1400_v42, %v678_v7  ;;  %v681_v19 = vmul.f32 %v1046_v9, %v1395_v40  ;;  %1169 = vtanh.f32 %v751_v12 }
 0x114   :  { %v1146_v16 = vpop.eup %1145  ;;  %v720_v21 = vadd.f32 %v1400_v42, %v649_v13  ;;  %v647_v22 = vmul.f32 %v1395_v40, %v423_v14  ;;  %v679_v23 = vmul.f32 %v1395_v40, %v551_v15  ;;  %1171 = vtanh.f32 %v717_v17 }
 0x115   :  { %v1148_v20 = vpop.eup %1147  ;;  %872 = vst [vmem:[%s1726_s4 + $0x138] sm:$0xff] %v1146_v16  ;;  %v752_v25 = vadd.f32 %v1400_v42, %v681_v19  ;;  %1173 = vtanh.f32 %v749_v18  ;;  %v1017_v30 = vpop.f32.mrb[16].mxu0 }
 0x116   :  { %v1150_v24 = vpop.eup %1149  ;;  %838 = vst [vmem:[%s1726_s4 + $0x28] sm:$0xff] %v1148_v20  ;;  %v718_v27 = vadd.f32 %v1400_v42, %v647_v22  ;;  %v750_v29 = vadd.f32 %v1400_v42, %v679_v23  ;;  %v1049_v31 = vpop.f32.mrb[16].mxu1  ;;  %1175 = vtanh.f32 %v720_v21  ;;  %v652_v33 = vmul.f32 %v1017_v30, %v1395_v40 }
 0x117   :  { %v1152_v26 = vpop.eup %1151  ;;  %870 = vst [vmem:[%s1726_s4 + $0x128] sm:$0xff] %v1150_v24  ;;  %v684_v34 = vmul.f32 %v1049_v31, %v1395_v40  ;;  %v436_v35 = vpop.f32.mrb[17].mxu0  ;;  %1177 = vtanh.f32 %v752_v25 }
 0x118   :  { %v1154_v28 = vpop.eup %1153  ;;  %843 = vst [vmem:[%s1726_s4 + $0x50] sm:$0xff] %v1152_v26  ;;  %v564_v36 = vpop.f32.mrb[17].mxu1  ;;  %v650_v38 = vmul.f32 %v1395_v40, %v436_v35  ;;  %1179 = vtanh.f32 %v718_v27  ;;  %v723_v45 = vadd.f32 %v1400_v42, %v652_v33 }
 0x119   :  { %v1156_v32 = vpop.eup %1155  ;;  %875 = vst [vmem:[%s1726_s4 + $0x150] sm:$0xff] %v1154_v28  ;;  %v682_v39 = vmul.f32 %v1395_v40, %v564_v36  ;;  %v1018_v41 = vpop.f32.mrb[18].mxu0  ;;  %v755_v46 = vadd.f32 %v1400_v42, %v684_v34  ;;  %1181 = vtanh.f32 %v750_v29 }
 0x11a   :  { %v1158_v37 = vpop.eup %1157  ;;  %841 = vst [vmem:[%s1726_s4 + $0x40] sm:$0xff] %v1156_v32  ;;  %v1050_v43 = vpop.f32.mrb[18].mxu1  ;;  %v653_v47 = vmul.f32 %v1018_v41, %v1395_v40  ;;  %v721_v51 = vadd.f32 %v1400_v42, %v650_v38  ;;  %1183 = vtanh.f32 %v723_v45 }
 0x11b   :  { %v1160_v44 = vpop.eup %1159  ;;  %873 = vst [vmem:[%s1726_s4 + $0x140] sm:$0xff] %v1158_v37  ;;  %v439_v48 = vpop.f32.mrb[19].mxu0  ;;  %v753_v52 = vadd.f32 %v1400_v42, %v682_v39  ;;  %v685_v53 = vmul.f32 %v1050_v43, %v1395_v40  ;;  %1185 = vtanh.f32 %v755_v46 }
 0x11c   :  { %v567_v49 = vpop.f32.mrb[19].mxu1  ;;  %v1162_v50 = vpop.eup %1161  ;;  %844 = vst [vmem:[%s1726_s4 + $0x58] sm:$0xff] %v1160_v44  ;;  %v724_v55 = vadd.f32 %v1400_v42, %v653_v47  ;;  %v651_v56 = vmul.f32 %v1395_v40, %v439_v48  ;;  %1187 = vtanh.f32 %v721_v51 }
 0x11d   :  { %v1164_v54 = vpop.eup %1163  ;;  %876 = vst [vmem:[%s1726_s4 + $0x158] sm:$0xff] %v1162_v50  ;;  %v683_v57 = vmul.f32 %v1395_v40, %v567_v49  ;;  %v756_v59 = vadd.f32 %v1400_v42, %v685_v53  ;;  %1189 = vtanh.f32 %v753_v52  ;;  %v1021_v0 = vpop.f32.mrb[20].mxu0 }
 0x11e   :  { %v1166_v58 = vpop.eup %1165  ;;  %842 = vst [vmem:[%s1726_s4 + $0x48] sm:$0xff] %v1164_v54  ;;  %v722_v61 = vadd.f32 %v1400_v42, %v651_v56  ;;  %v1053_v1 = vpop.f32.mrb[20].mxu1  ;;  %1191 = vtanh.f32 %v724_v55  ;;  %v656_v3 = vmul.f32 %v1021_v0, %v1395_v40 }
 0x11f   :  { %v1168_v60 = vpop.eup %1167  ;;  %874 = vst [vmem:[%s1726_s4 + $0x148] sm:$0xff] %v1166_v58  ;;  %v754_v63 = vadd.f32 %v1400_v42, %v683_v57  ;;  %v688_v4 = vmul.f32 %v1053_v1, %v1395_v40  ;;  %v452_v5 = vpop.f32.mrb[21].mxu0  ;;  %1193 = vtanh.f32 %v756_v59 }
 0x120   :  { %v1170_v62 = vpop.eup %1169  ;;  %847 = vst [vmem:[%s1726_s4 + $0x70] sm:$0xff] %v1168_v60  ;;  %v580_v6 = vpop.f32.mrb[21].mxu1  ;;  %v654_v8 = vmul.f32 %v1395_v40, %v452_v5  ;;  %1195 = vtanh.f32 %v722_v61  ;;  %v727_v13 = vadd.f32 %v1400_v42, %v656_v3 }
 0x121   :  { %v1172_v2 = vpop.eup %1171  ;;  %879 = vst [vmem:[%s1726_s4 + $0x170] sm:$0xff] %v1170_v62  ;;  %v686_v9 = vmul.f32 %v1395_v40, %v580_v6  ;;  %v1022_v10 = vpop.f32.mrb[22].mxu0  ;;  %v759_v14 = vadd.f32 %v1400_v42, %v688_v4  ;;  %1197 = vtanh.f32 %v754_v63 }
 0x122   :  { %v1174_v7 = vpop.eup %1173  ;;  %845 = vst [vmem:[%s1726_s4 + $0x60] sm:$0xff] %v1172_v2  ;;  %v1054_v11 = vpop.f32.mrb[22].mxu1  ;;  %v657_v15 = vmul.f32 %v1022_v10, %v1395_v40  ;;  %v725_v19 = vadd.f32 %v1400_v42, %v654_v8  ;;  %1199 = vtanh.f32 %v727_v13 }
 0x123   :  { %v1176_v12 = vpop.eup %1175  ;;  %877 = vst [vmem:[%s1726_s4 + $0x160] sm:$0xff] %v1174_v7  ;;  %v455_v16 = vpop.f32.mrb[23].mxu0  ;;  %v757_v20 = vadd.f32 %v1400_v42, %v686_v9  ;;  %v689_v21 = vmul.f32 %v1054_v11, %v1395_v40  ;;  %1201 = vtanh.f32 %v759_v14 }
 0x124   :  { %v583_v17 = vpop.f32.mrb[23].mxu1  ;;  %v1178_v18 = vpop.eup %1177  ;;  %848 = vst [vmem:[%s1726_s4 + $0x78] sm:$0xff] %v1176_v12  ;;  %v728_v23 = vadd.f32 %v1400_v42, %v657_v15  ;;  %v655_v24 = vmul.f32 %v1395_v40, %v455_v16  ;;  %1203 = vtanh.f32 %v725_v19 }
 0x125   :  { %v1180_v22 = vpop.eup %1179  ;;  %880 = vst [vmem:[%s1726_s4 + $0x178] sm:$0xff] %v1178_v18  ;;  %v687_v25 = vmul.f32 %v1395_v40, %v583_v17  ;;  %v760_v27 = vadd.f32 %v1400_v42, %v689_v21  ;;  %1205 = vtanh.f32 %v757_v20  ;;  %v1025_v32 = vpop.f32.mrb[24].mxu0 }
 0x126   :  { %v1182_v26 = vpop.eup %1181  ;;  %846 = vst [vmem:[%s1726_s4 + $0x68] sm:$0xff] %v1180_v22  ;;  %v726_v29 = vadd.f32 %v1400_v42, %v655_v24  ;;  %v1057_v33 = vpop.f32.mrb[24].mxu1  ;;  %1207 = vtanh.f32 %v728_v23  ;;  %v660_v35 = vmul.f32 %v1025_v32, %v1395_v40 }
 0x127   :  { %v1184_v28 = vpop.eup %1183  ;;  %878 = vst [vmem:[%s1726_s4 + $0x168] sm:$0xff] %v1182_v26  ;;  %v758_v31 = vadd.f32 %v1400_v42, %v687_v25  ;;  %v692_v36 = vmul.f32 %v1057_v33, %v1395_v40  ;;  %v468_v37 = vpop.f32.mrb[25].mxu0  ;;  %1209 = vtanh.f32 %v760_v27 }
 0x128   :  { %v1186_v30 = vpop.eup %1185  ;;  %851 = vst [vmem:[%s1726_s4 + $0x90] sm:$0xff] %v1184_v28  ;;  %v596_v38 = vpop.f32.mrb[25].mxu1  ;;  %v658_v41 = vmul.f32 %v1395_v40, %v468_v37  ;;  %1211 = vtanh.f32 %v726_v29  ;;  %v731_v47 = vadd.f32 %v1400_v42, %v660_v35 }
 0x129   :  { %v1188_v34 = vpop.eup %1187  ;;  %883 = vst [vmem:[%s1726_s4 + $0x190] sm:$0xff] %v1186_v30  ;;  %v690_v43 = vmul.f32 %v1395_v40, %v596_v38  ;;  %v1026_v44 = vpop.f32.mrb[26].mxu0  ;;  %v763_v48 = vadd.f32 %v1400_v42, %v692_v36  ;;  %1213 = vtanh.f32 %v758_v31 }
 0x12a   :  { %v1190_v39 = vpop.eup %1189  ;;  %849 = vst [vmem:[%s1726_s4 + $0x80] sm:$0xff] %v1188_v34  ;;  %v1058_v45 = vpop.f32.mrb[26].mxu1  ;;  %v661_v49 = vmul.f32 %v1026_v44, %v1395_v40  ;;  %v729_v53 = vadd.f32 %v1400_v42, %v658_v41  ;;  %1215 = vtanh.f32 %v731_v47 }
 0x12b   :  { %v1192_v46 = vpop.eup %1191  ;;  %881 = vst [vmem:[%s1726_s4 + $0x180] sm:$0xff] %v1190_v39  ;;  %v471_v50 = vpop.f32.mrb[27].mxu0  ;;  %v761_v54 = vadd.f32 %v1400_v42, %v690_v43  ;;  %v693_v55 = vmul.f32 %v1058_v45, %v1395_v40  ;;  %1217 = vtanh.f32 %v763_v48 }
 0x12c   :  { %v599_v51 = vpop.f32.mrb[27].mxu1  ;;  %v1194_v52 = vpop.eup %1193  ;;  %852 = vst [vmem:[%s1726_s4 + $0x98] sm:$0xff] %v1192_v46  ;;  %v732_v57 = vadd.f32 %v1400_v42, %v661_v49  ;;  %v659_v58 = vmul.f32 %v1395_v40, %v471_v50  ;;  %1219 = vtanh.f32 %v729_v53 }
 0x12d   :  { %v1196_v56 = vpop.eup %1195  ;;  %884 = vst [vmem:[%s1726_s4 + $0x198] sm:$0xff] %v1194_v52  ;;  %v691_v59 = vmul.f32 %v1395_v40, %v599_v51  ;;  %v764_v61 = vadd.f32 %v1400_v42, %v693_v55  ;;  %1221 = vtanh.f32 %v761_v54  ;;  %v1029_v2 = vpop.f32.mrb[28].mxu0 }
 0x12e   :  { %v1198_v60 = vpop.eup %1197  ;;  %850 = vst [vmem:[%s1726_s4 + $0x88] sm:$0xff] %v1196_v56  ;;  %v730_v63 = vadd.f32 %v1400_v42, %v659_v58  ;;  %v1061_v3 = vpop.f32.mrb[28].mxu1  ;;  %1223 = vtanh.f32 %v732_v57  ;;  %v664_v5 = vmul.f32 %v1029_v2, %v1395_v40 }
 0x12f   :  { %v1200_v62 = vpop.eup %1199  ;;  %882 = vst [vmem:[%s1726_s4 + $0x188] sm:$0xff] %v1198_v60  ;;  %v762_v1 = vadd.f32 %v1400_v42, %v691_v59  ;;  %v696_v6 = vmul.f32 %v1061_v3, %v1395_v40  ;;  %v484_v7 = vpop.f32.mrb[29].mxu0  ;;  %1225 = vtanh.f32 %v764_v61 }
 0x130   :  { %v1202_v0 = vpop.eup %1201  ;;  %855 = vst [vmem:[%s1726_s4 + $0xb0] sm:$0xff] %v1200_v62  ;;  %v612_v8 = vpop.f32.mrb[29].mxu1  ;;  %v662_v10 = vmul.f32 %v1395_v40, %v484_v7  ;;  %1227 = vtanh.f32 %v730_v63  ;;  %v735_v15 = vadd.f32 %v1400_v42, %v664_v5 }
 0x131   :  { %v1204_v4 = vpop.eup %1203  ;;  %887 = vst [vmem:[%s1726_s4 + $0x1b0] sm:$0xff] %v1202_v0  ;;  %v694_v11 = vmul.f32 %v1395_v40, %v612_v8  ;;  %v1030_v12 = vpop.f32.mrb[30].mxu0  ;;  %v767_v16 = vadd.f32 %v1400_v42, %v696_v6  ;;  %1229 = vtanh.f32 %v762_v1 }
 0x132   :  { %v1206_v9 = vpop.eup %1205  ;;  %853 = vst [vmem:[%s1726_s4 + $0xa0] sm:$0xff] %v1204_v4  ;;  %v1062_v13 = vpop.f32.mrb[30].mxu1  ;;  %v665_v17 = vmul.f32 %v1030_v12, %v1395_v40  ;;  %v733_v21 = vadd.f32 %v1400_v42, %v662_v10  ;;  %1231 = vtanh.f32 %v735_v15 }
 0x133   :  { %v1208_v14 = vpop.eup %1207  ;;  %885 = vst [vmem:[%s1726_s4 + $0x1a0] sm:$0xff] %v1206_v9  ;;  %v487_v18 = vpop.f32.mrb[31].mxu0  ;;  %v765_v22 = vadd.f32 %v1400_v42, %v694_v11  ;;  %v697_v23 = vmul.f32 %v1062_v13, %v1395_v40  ;;  %1233 = vtanh.f32 %v767_v16 }
 0x134   :  { %v615_v19 = vpop.f32.mrb[31].mxu1  ;;  %v1210_v20 = vpop.eup %1209  ;;  %856 = vst [vmem:[%s1726_s4 + $0xb8] sm:$0xff] %v1208_v14  ;;  %v736_v25 = vadd.f32 %v1400_v42, %v665_v17  ;;  %v663_v26 = vmul.f32 %v1395_v40, %v487_v18  ;;  %1235 = vtanh.f32 %v733_v21 }
 0x135   :  { %v1212_v24 = vpop.eup %1211  ;;  %888 = vst [vmem:[%s1726_s4 + $0x1b8] sm:$0xff] %v1210_v20  ;;  %v695_v27 = vmul.f32 %v1395_v40, %v615_v19  ;;  %v768_v29 = vadd.f32 %v1400_v42, %v697_v23  ;;  %1237 = vtanh.f32 %v765_v22 }
 0x136   :  { %v1214_v28 = vpop.eup %1213  ;;  %854 = vst [vmem:[%s1726_s4 + $0xa8] sm:$0xff] %v1212_v24  ;;  %v734_v31 = vadd.f32 %v1400_v42, %v663_v26  ;;  %1239 = vtanh.f32 %v736_v25 }
 0x137   :  { %v1216_v30 = vpop.eup %1215  ;;  %886 = vst [vmem:[%s1726_s4 + $0x1a8] sm:$0xff] %v1214_v28  ;;  %v766_v40 = vadd.f32 %v1400_v42, %v695_v27  ;;  %1241 = vtanh.f32 %v768_v29 }
 0x138   :  { %v1218_v32 = vpop.eup %1217  ;;  %859 = vst [vmem:[%s1726_s4 + $0xd0] sm:$0xff] %v1216_v30  ;;  %1243 = vtanh.f32 %v734_v31 }
 0x139   :  { %v1220_v33 = vpop.eup %1219  ;;  %891 = vst [vmem:[%s1726_s4 + $0x1d0] sm:$0xff] %v1218_v32  ;;  %1245 = vtanh.f32 %v766_v40 }
 0x13a   :  { %v1222_v34 = vpop.eup %1221  ;;  %857 = vst [vmem:[%s1726_s4 + $0xc0] sm:$0xff] %v1220_v33 }
 0x13b   :  { %v1224_v35 = vpop.eup %1223  ;;  %889 = vst [vmem:[%s1726_s4 + $0x1c0] sm:$0xff] %v1222_v34 }
 0x13c   :  { %v1226_v36 = vpop.eup %1225  ;;  %860 = vst [vmem:[%s1726_s4 + $0xd8] sm:$0xff] %v1224_v35 }
 0x13d   :  { %v1228_v42 = vpop.eup %1227  ;;  %892 = vst [vmem:[%s1726_s4 + $0x1d8] sm:$0xff] %v1226_v36 }
 0x13e   :  { %v1230_v37 = vpop.eup %1229  ;;  %858 = vst [vmem:[%s1726_s4 + $0xc8] sm:$0xff] %v1228_v42 }
 0x13f   :  { %v1232_v38 = vpop.eup %1231  ;;  %890 = vst [vmem:[%s1726_s4 + $0x1c8] sm:$0xff] %v1230_v37 }
 0x140   :  { %v1234_v39 = vpop.eup %1233  ;;  %863 = vst [vmem:[%s1726_s4 + $0xf0] sm:$0xff] %v1232_v38 }
 0x141   :  { %v1236_v41 = vpop.eup %1235  ;;  %895 = vst [vmem:[%s1726_s4 + $0x1f0] sm:$0xff] %v1234_v39 }
 0x142   :  { %v1238_v43 = vpop.eup %1237  ;;  %861 = vst [vmem:[%s1726_s4 + $0xe0] sm:$0xff] %v1236_v41 }
 0x143   :  { %v1240_v44 = vpop.eup %1239  ;;  %893 = vst [vmem:[%s1726_s4 + $0x1e0] sm:$0xff] %v1238_v43 }
 0x144   :  { %v1242_v45 = vpop.eup %1241  ;;  %864 = vst [vmem:[%s1726_s4 + $0xf8] sm:$0xff] %v1240_v44 }
 0x145   :  { %v1244_v46 = vpop.eup %1243  ;;  %896 = vst [vmem:[%s1726_s4 + $0x1f8] sm:$0xff] %v1242_v45 }
 0x146   :  { %v1246_v47 = vpop.eup %1245  ;;  %862 = vst [vmem:[%s1726_s4 + $0xe8] sm:$0xff] %v1244_v46 }
 0x147   :  { %894 = vst [vmem:[%s1726_s4 + $0x1e8] sm:$0xff] %v1246_v47 }

</bundles_post_ra>
